<compile_context>
chip_gen: v7x
topology: tpu7x:2x2x1
jax: 0.10.0
libtpu: 0.0.40
codegen_flags: <defaults>
</compile_context>

<pallas_src>
import numpy as np
from functools import partial

import jax
import jax.numpy as jnp
from jax import lax
from jax.experimental import pallas as pl
from jax.experimental.pallas import tpu as pltpu

# ----------------------------- hyper-parameters -----------------------------
WORD_VOCAB = 20
CHAR_VOCAB = 16
WE_DIM = 32
ENC_HIDDEN = 32
DEC_HIDDEN = 32
WORD_ENCODER_LAYERS = 2
CHAR_ENCODER_LAYERS = 1        # must be 1 (reference does .squeeze(0) on h_n)
NUM_CLASSES = 10
NC_PAD = 128                   # lane-dense logits width (NUM_CLASSES padded to 128 lanes)

B = 2                          # sentences
MAX_WORDS = 6                  # max words per sentence (= max(words_num))
MAX_CHARS = 5                  # max chars per word

GRU_HIDDEN = 2 * DEC_HIDDEN    # GRU hidden = context dim = 2*ENC_HIDDEN
assert GRU_HIDDEN == 2 * ENC_HIDDEN


def _vmem_spec():
    return pl.BlockSpec(memory_space=pltpu.MemorySpace.VMEM)


def _vmem_specs(n):
    return [_vmem_spec() for _ in range(n)]


def _sigmoid(x):
    # exp -> EUP; approx reciprocal keeps the divide off the VPU as well.
    return pl.reciprocal(1.0 + jnp.exp(-x), approx=True)


# ------------------------------- Pallas kernels ------------------------------
def _bilstm_layer_kernel(x_ref, m_ref, dmask_ref, w_ref, b_ref, out_ref, h_sc, c_sc):
    """One full bidirectional LSTM layer, both directions stacked on the batch axis.

    x_ref    : (T, 2B, D)   rows [0,B) = fwd input, rows [B,2B) = time-reversed bwd input
    m_ref    : (T, 2B, H)   validity mask (packed-sequence semantics), lane-broadcast
    dmask_ref: (2B, 4H)     1.0 for fwd rows, 0.0 for bwd rows
    w_ref    : (D+H, 8H)    [W_fwd | W_bwd] on N; each = [W_ih^T ; W_hh^T] stacked on K
    b_ref    : (1, 8H)      [b_fwd | b_bwd]  (b = b_ih + b_hh)
    out_ref  : (T, 2B, H)   masked hidden outputs (zero at padded steps)
    """
    H = h_sc.shape[-1]
    T = x_ref.shape[0]
    h_sc[...] = jnp.zeros_like(h_sc)
    c_sc[...] = jnp.zeros_like(c_sc)
    w = w_ref[...]
    b = b_ref[...]
    dm = dmask_ref[...]
    dm_c = 1.0 - dm

    # T is a static trace-time constant -> fully unrolled inside the kernel.
    for t in range(T):
        h = h_sc[...]
        c = c_sc[...]
        xh = jnp.concatenate([x_ref[t], h], axis=-1)                       # (2B, D+H)
        g2 = jnp.dot(xh, w, preferred_element_type=jnp.float32) + b        # (2B, 8H)
        # pick this row's direction (both 4H-wide halves are vreg aligned: 4H = 128)
        g = dm * g2[:, :4 * H] + dm_c * g2[:, 4 * H:]
        # TODO(synk): gate slices below are 32-lane (not 128-aligned); lane-aligned gate
        # padding was skipped as a minor micro-opt at these sizes.
        i = _sigmoid(g[:, 0 * H:1 * H])
        f = _sigmoid(g[:, 1 * H:2 * H])
        gg = jnp.tanh(g[:, 2 * H:3 * H])
        o = _sigmoid(g[:, 3 * H:4 * H])
        c_new = f * c + i * gg
        h_new = o * jnp.tanh(c_new)
        m = m_ref[t]                                                       # (2B, H)
        h_sc[...] = m * h_new + (1.0 - m) * h
        c_sc[...] = m * c_new + (1.0 - m) * c
        out_ref[t] = m * h_new                                             # zero at padding


def _char_lstm_kernel(x_ref, m_ref, w_ref, b_ref, h_out_ref, h_sc, c_sc):
    """Unidirectional LSTM over the whole (B*MAX_WORDS)-row batch; returns final hidden.

    x_ref: (T, N, D); m_ref: (T, N, H); w_ref: (D+H, 4H); b_ref: (1, 4H); h_out_ref: (N, H)
    """
    H = h_sc.shape[-1]
    T = x_ref.shape[0]
    h_sc[...] = jnp.zeros_like(h_sc)
    c_sc[...] = jnp.zeros_like(c_sc)
    w = w_ref[...]
    b = b_ref[...]

    for t in range(T):
        h = h_sc[...]
        c = c_sc[...]
        xh = jnp.concatenate([x_ref[t], h], axis=-1)
        g = jnp.dot(xh, w, preferred_element_type=jnp.float32) + b
        i = _sigmoid(g[:, 0 * H:1 * H])
        f = _sigmoid(g[:, 1 * H:2 * H])
        gg = jnp.tanh(g[:, 2 * H:3 * H])
        o = _sigmoid(g[:, 3 * H:4 * H])
        c_new = f * c + i * gg
        h_new = o * jnp.tanh(c_new)
        m = m_ref[t]
        h_sc[...] = m * h_new + (1.0 - m) * h
        c_sc[...] = m * c_new + (1.0 - m) * c

    h_out_ref[...] = h_sc[...]                  # packed-sequence h_n (zero rows for len==0)


def _make_decoder_kernel(max_len, use_targets):
    """Fused autoregressive decoder: GRU + output Linear + greedy feedback, all in-kernel."""
    Hd = GRU_HIDDEN

    def kernel(ce_ref, h0_ref, emb_ref, tgt_ref, wih_ref, whh_ref, bih_ref, bhh_ref,
               wout_ref, bout_ref, logits_ref, h_sc, x_sc):
        # ce_ref : (max_len, B, H_enc)   per-step char encodings
        # h0_ref : (B, Hd)               encoder context (GRU initial hidden)
        # emb_ref: (NC_PAD, WE)          decoder embedding table (zero rows >= NUM_CLASSES)
        # tgt_ref: (max_len, B, NC_PAD)  teacher-forcing one-hots (zeros when unused)
        # wih/whh/bih/bhh                GRU params (PyTorch gate order [r, z, n])
        # wout/bout                      output head padded to NC_PAD lanes (-1e30 pad bias)
        # logits_ref: (max_len, B, NC_PAD)
        h_sc[...] = h0_ref[...]
        # <start> token = class 0
        x_sc[...] = jnp.broadcast_to(emb_ref[0:1, :], x_sc.shape)
        wih = wih_ref[...]
        whh = whh_ref[...]
        bih = bih_ref[...]
        bhh = bhh_ref[...]
        wout = wout_ref[...]
        bout = bout_ref[...]
        emb = emb_ref[...]

        for i in range(max_len):
            x = jnp.concatenate([x_sc[...], ce_ref[i]], axis=-1)            # (B, WE+H_enc)
            h = h_sc[...]
            gi = jnp.dot(x, wih, preferred_element_type=jnp.float32) + bih  # (B, 3Hd)
            gh = jnp.dot(h, whh, preferred_element_type=jnp.float32) + bhh  # (B, 3Hd)
            r = _sigmoid(gi[:, 0 * Hd:1 * Hd] + gh[:, 0 * Hd:1 * Hd])
            z = _sigmoid(gi[:, 1 * Hd:2 * Hd] + gh[:, 1 * Hd:2 * Hd])
            n = jnp.tanh(gi[:, 2 * Hd:3 * Hd] + r * gh[:, 2 * Hd:3 * Hd])
            h_new = (1.0 - z) * n + z * h
            logits = jnp.dot(h_new, wout, preferred_element_type=jnp.float32) + bout  # (B, NC_PAD)
            logits_ref[i] = logits                                          # lane-dense store
            h_sc[...] = h_new
            if use_targets:
                onehot = tgt_ref[i]
            else:
                # greedy argmax with first-match tie-break (torch.topk(1)), lane-padded
                # classes carry -1e30 bias so they can never win.
                rowmax = jnp.max(logits, axis=-1, keepdims=True)
                iota = lax.broadcasted_iota(jnp.int32, logits.shape, 1).astype(jnp.float32)
                cand = jnp.where(logits == rowmax, iota, jnp.float32(NC_PAD))
                first = jnp.min(cand, axis=-1, keepdims=True)
                onehot = (iota == first).astype(jnp.float32)                # (B, NC_PAD)
            # embedding lookup as a one-hot matmul (table stays resident in VMEM)
            x_sc[...] = jnp.dot(onehot, emb, preferred_element_type=jnp.float32)

    return kernel


# ------------------------------ kernel wrappers -------------------------------
def bilstm_layer(x, lengths, w_fwd, b_fwd, w_bwd, b_bwd):
    """x: (B, T, D) f32, lengths: (B,) int32 -> (B, T, 2H) with packed-sequence masking."""
    Bn, T, D = x.shape
    H = ENC_HIDDEN
    # stacked input: fwd rows as-is, bwd rows time-reversed
    xs = jnp.concatenate([x, jnp.flip(x, axis=1)], axis=0)          # (2B, T, D)
    xs = jnp.transpose(xs, (1, 0, 2))                               # (T, 2B, D)
    # validity masks, computed once (not per step)
    t_idx = jnp.arange(T, dtype=jnp.int32)
    m_f = t_idx[None, :] < lengths[:, None]                         # fwd: t < len
    m_b = t_idx[None, :] >= (T - lengths)[:, None]                  # bwd (reversed time)
    m = jnp.concatenate([m_f, m_b], axis=0).astype(jnp.float32)     # (2B, T)
    m = jnp.broadcast_to(jnp.transpose(m)[:, :, None], (T, 2 * Bn, H))
    dmask = jnp.concatenate([jnp.ones((Bn, 4 * H), jnp.float32),
                             jnp.zeros((Bn, 4 * H), jnp.float32)], axis=0)
    w = jnp.concatenate([w_fwd, w_bwd], axis=1)                     # (D+H, 8H)
    b = jnp.concatenate([b_fwd, b_bwd], axis=1)                     # (1, 8H)

    out = pl.pallas_call(
        _bilstm_layer_kernel,
        out_shape=jax.ShapeDtypeStruct((T, 2 * Bn, H), jnp.float32),
        in_specs=_vmem_specs(5),
        out_specs=_vmem_spec(),
        scratch_shapes=[pltpu.VMEM((2 * Bn, H), jnp.float32),
                        pltpu.VMEM((2 * Bn, H), jnp.float32)],
    )(xs, m, dmask, w, b)

    out = jnp.transpose(out, (1, 0, 2))                             # (2B, T, H)
    out_f = out[:Bn]
    out_b = jnp.flip(out[Bn:], axis=1)                              # un-reverse time
    return jnp.concatenate([out_f, out_b], axis=-1)                 # (B, T, 2H)


def char_lstm(x, lengths, w, b):
    """x: (N, Tc, D), lengths: (N,) -> final hidden h_n (N, H) of the packed LSTM."""
    N, T, D = x.shape
    H = ENC_HIDDEN
    xs = jnp.transpose(x, (1, 0, 2))                                # (T, N, D)
    t_idx = jnp.arange(T, dtype=jnp.int32)
    m = (t_idx[:, None] < lengths[None, :]).astype(jnp.float32)     # (T, N)
    m = jnp.broadcast_to(m[:, :, None], (T, N, H))
    return pl.pallas_call(
        _char_lstm_kernel,
        out_shape=jax.ShapeDtypeStruct((N, H), jnp.float32),
        in_specs=_vmem_specs(4),
        out_specs=_vmem_spec(),
        scratch_shapes=[pltpu.VMEM((N, H), jnp.float32),
                        pltpu.VMEM((N, H), jnp.float32)],
    )(xs, m, w, b)


# --------------------------------- encoder -----------------------------------
def encoder_forward(params, words, words_num, chars, char_lens):
    H = ENC_HIDDEN
    # word path
    x = jnp.take(params['word_embedd'], words, axis=0)              # (B, T, we)
    for layer in params['word_lstm']:
        x = bilstm_layer(x, words_num,
                         layer['w_fwd'], layer['b_fwd'],
                         layer['w_bwd'], layer['b_bwd'])            # (B, T, 2H)
    context = jnp.concatenate([x[:, -1, :H], x[:, 0, H:]], axis=-1)  # (B, 2H)
    # char path (one LSTM run per word, batched over B*MAX_WORDS rows)
    Bn, MW, MC = chars.shape
    ce = jnp.take(params['char_embedd'], chars.reshape(Bn * MW, MC), axis=0)
    y = char_lstm(ce, char_lens.reshape(Bn * MW), params['char_w'], params['char_b'])
    chars_encoded = y.reshape(Bn, MW, H)                            # pad_sequence zeros
    return context, chars_encoded


# --------------------------------- decoder -----------------------------------
def decoder_forward(params, context, chars_encoded, max_len, targets=None):
    dec = params['decoder']
    Bn = context.shape[0]
    Hd = GRU_HIDDEN
    ce = jnp.transpose(chars_encoded[:, :max_len, :], (1, 0, 2))    # (max_len, B, H)
    # lane-dense padded output head (zeros in padded weight lanes, -1e30 in padded bias)
    wout = jnp.zeros((Hd, NC_PAD), jnp.float32).at[:, :NUM_CLASSES].set(dec['out_w_t'])
    bout = jnp.full((1, NC_PAD), -1e30, jnp.float32).at[:, :NUM_CLASSES].set(dec['out_b'])
    emb = jnp.zeros((NC_PAD, WE_DIM), jnp.float32).at[:NUM_CLASSES].set(dec['embedding'])

    use_targets = targets is not None
    if use_targets:
        tgt = jax.nn.one_hot(targets[:, :max_len].astype(jnp.int32), NC_PAD, dtype=jnp.float32)
        tgt = jnp.transpose(tgt, (1, 0, 2))                         # (max_len, B, NC_PAD)
    else:
        tgt = jnp.zeros((max_len, Bn, NC_PAD), jnp.float32)

    logits = pl.pallas_call(
        _make_decoder_kernel(max_len, use_targets),
        out_shape=jax.ShapeDtypeStruct((max_len, Bn, NC_PAD), jnp.float32),
        in_specs=_vmem_specs(10),
        out_specs=_vmem_spec(),
        scratch_shapes=[pltpu.VMEM((Bn, Hd), jnp.float32),
                        pltpu.VMEM((Bn, WE_DIM), jnp.float32)],
    )(ce, context, emb, tgt, dec['gru_wih_t'], dec['gru_whh_t'],
      dec['gru_bih'], dec['gru_bhh'], wout, bout)

    return jnp.transpose(logits[:, :, :NUM_CLASSES], (1, 0, 2))     # (B, max_len, C)


@partial(jax.jit, static_argnames=("max_len",))
def seq2seq_forward(params, words, words_num, chars, char_lens, max_len, targets=None):
    context, chars_encoded = encoder_forward(params, words, words_num, chars, char_lens)
    return decoder_forward(params, context, chars_encoded, max_len, targets)


# ------------------------------ parameter init --------------------------------
def init_params(key):
    keys = iter(jax.random.split(key, 64))

    def rnd(shape, scale=0.1):
        return scale * jax.random.normal(next(keys), shape, dtype=jnp.float32)

    p = {}
    p['word_embedd'] = rnd((WORD_VOCAB, WE_DIM))
    p['char_embedd'] = rnd((CHAR_VOCAB, WE_DIM))

    layers = []
    for l in range(WORD_ENCODER_LAYERS):
        d_in = WE_DIM if l == 0 else 2 * ENC_HIDDEN
        layer = {}
        for d in ('fwd', 'bwd'):
            # fused per-cell weights: [W_ih^T ; W_hh^T] stacked on K; bias = b_ih + b_hh
            layer['w_' + d] = rnd((d_in + ENC_HIDDEN, 4 * ENC_HIDDEN))
            layer['b_' + d] = rnd((1, 4 * ENC_HIDDEN))
        layers.append(layer)
    p['word_lstm'] = layers

    p['char_w'] = rnd((WE_DIM + ENC_HIDDEN, 4 * ENC_HIDDEN))
    p['char_b'] = rnd((1, 4 * ENC_HIDDEN))

    gru_in = WE_DIM + ENC_HIDDEN
    p['decoder'] = {
        'embedding': rnd((NUM_CLASSES, WE_DIM)),
        'gru_wih_t': rnd((gru_in, 3 * GRU_HIDDEN)),
        'gru_whh_t': rnd((GRU_HIDDEN, 3 * GRU_HIDDEN)),
        'gru_bih': rnd((1, 3 * GRU_HIDDEN)),
        'gru_bhh': rnd((1, 3 * GRU_HIDDEN)),
        'out_w_t': rnd((GRU_HIDDEN, NUM_CLASSES)),
        'out_b': rnd((1, NUM_CLASSES)),
    }
    return p


# ----------------------------------- main --------------------------------------
if __name__ == "__main__":
    key = jax.random.PRNGKey(0)
    k_par, k_w, k_c, k_cl = jax.random.split(key, 4)

    params = init_params(k_par)

    # np.array(...) makes writable copies (np.asarray of a jax array is read-only).
    words_num_np = np.array([MAX_WORDS, 4], dtype=np.int32)          # sentence lengths
    words_np = np.array(jax.random.randint(k_w, (B, MAX_WORDS), 1, WORD_VOCAB), dtype=np.int32)
    chars_np = np.array(jax.random.randint(k_c, (B, MAX_WORDS, MAX_CHARS), 1, CHAR_VOCAB),
                        dtype=np.int32)
    char_lens_np = np.array(jax.random.randint(k_cl, (B, MAX_WORDS), 1, MAX_CHARS + 1),
                            dtype=np.int32)

    # zero out padding (words / chars beyond each sentence's length)
    for b in range(B):
        words_np[b, words_num_np[b]:] = 0
        chars_np[b, words_num_np[b]:, :] = 0
        char_lens_np[b, words_num_np[b]:] = 0

    words = jnp.asarray(words_np, jnp.int32)
    words_num = jnp.asarray(words_num_np, jnp.int32)
    chars = jnp.asarray(chars_np, jnp.int32)
    char_lens = jnp.asarray(char_lens_np, jnp.int32)

    max_len = int(words_num_np.max())   # torch: torch.max(words_num).item()

    out = seq2seq_forward(params, words, words_num, chars, char_lens, max_len)
    out = jax.block_until_ready(out)
    assert out.shape == (B, max_len, NUM_CLASSES), out.shape
    assert bool(jnp.all(jnp.isfinite(out)))
    # TODO(synk): training-mode dropout inside stacked LSTM/GRU is an eval no-op and omitted.
    # TODO(synk): v7x dual-TensorCore sharding of char-LSTM vs word-LSTM not exploited.
    print("KERNEL_OK")
</pallas_src>

<mosaic_0001>
module attributes {stable_mosaic.version = 11 : i64} {
  func.func @_bilstm_layer_kernel(%arg0: memref<6x4x32xf32, #tpu.memory_space<vmem>>, %arg1: memref<6x4x32xf32, #tpu.memory_space<vmem>>, %arg2: memref<4x128xf32, #tpu.memory_space<vmem>>, %arg3: memref<64x256xf32, #tpu.memory_space<vmem>>, %arg4: memref<1x256xf32, #tpu.memory_space<vmem>>, %arg5: memref<6x4x32xf32, #tpu.memory_space<vmem>>, %arg6: memref<4x32xf32, #tpu.memory_space<vmem>>, %arg7: memref<4x32xf32, #tpu.memory_space<vmem>>) attributes {dimension_semantics = [], scalar_prefetch = 0 : i64, scratch_operands = 2 : i64, tpu.core_type = #tpu.core_type<tc>} {
    %cst = arith.constant 0.000000e+00 : f32
    %0 = vector.broadcast %cst : f32 to vector<4x32xf32>
    %c0 = arith.constant 0 : index
    %c0_0 = arith.constant 0 : index
    %1 = vector.load %arg6[%c0, %c0_0] : memref<4x32xf32, #tpu.memory_space<vmem>>, vector<4x32xf32>
    tpu.vector_store %arg6[%c0, %c0_0], %0 {strides = array<i32>} : memref<4x32xf32, #tpu.memory_space<vmem>>, vector<4x32xf32>,
    %cst_1 = arith.constant 0.000000e+00 : f32
    %2 = vector.broadcast %cst_1 : f32 to vector<4x32xf32>
    %c0_2 = arith.constant 0 : index
    %c0_3 = arith.constant 0 : index
    %3 = vector.load %arg7[%c0_2, %c0_3] : memref<4x32xf32, #tpu.memory_space<vmem>>, vector<4x32xf32>
    tpu.vector_store %arg7[%c0_2, %c0_3], %2 {strides = array<i32>} : memref<4x32xf32, #tpu.memory_space<vmem>>, vector<4x32xf32>,
    %c0_4 = arith.constant 0 : index
    %c0_5 = arith.constant 0 : index
    %4 = vector.load %arg3[%c0_4, %c0_5] : memref<64x256xf32, #tpu.memory_space<vmem>>, vector<64x256xf32>
    %c0_6 = arith.constant 0 : index
    %c0_7 = arith.constant 0 : index
    %5 = vector.load %arg4[%c0_6, %c0_7] : memref<1x256xf32, #tpu.memory_space<vmem>>, vector<1x256xf32>
    %c0_8 = arith.constant 0 : index
    %c0_9 = arith.constant 0 : index
    %6 = vector.load %arg2[%c0_8, %c0_9] : memref<4x128xf32, #tpu.memory_space<vmem>>, vector<4x128xf32>
    %cst_10 = arith.constant 1.000000e+00 : f32
    %7 = vector.broadcast %cst_10 : f32 to vector<4x128xf32>
    %8 = arith.subf %7, %6 : vector<4x128xf32>
    %c0_11 = arith.constant 0 : index
    %c0_12 = arith.constant 0 : index
    %9 = vector.load %arg6[%c0_11, %c0_12] : memref<4x32xf32, #tpu.memory_space<vmem>>, vector<4x32xf32>
    %c0_13 = arith.constant 0 : index
    %c0_14 = arith.constant 0 : index
    %10 = vector.load %arg7[%c0_13, %c0_14] : memref<4x32xf32, #tpu.memory_space<vmem>>, vector<4x32xf32>
    %c0_15 = arith.constant 0 : index
    %c0_16 = arith.constant 0 : index
    %c0_17 = arith.constant 0 : index
    %11 = vector.load %arg0[%c0_15, %c0_16, %c0_17] : memref<6x4x32xf32, #tpu.memory_space<vmem>>, vector<1x4x32xf32>
    %12 = vector.shape_cast %11 : vector<1x4x32xf32> to vector<4x32xf32>
    %13 = tpu.concatenate %12, %9 in 1 : vector<4x32xf32>, vector<4x32xf32> -> vector<4x64xf32>
    %cst_18 = arith.constant dense<0.000000e+00> : vector<4x256xf32>
    %14 = tpu.matmul %13, %4, %cst_18 {dimension_numbers = #tpu.dot_dimension_numbers<[1], [0], [0], [1], [0, 0, 1, 1], [], []>} : vector<4x64xf32>, vector<64x256xf32>, vector<4x256xf32> -> vector<4x256xf32>
    %15 = vector.broadcast %5 : vector<1x256xf32> to vector<4x256xf32>
    %16 = arith.addf %14, %15 : vector<4x256xf32>
    %17 = vector.extract_strided_slice %16 {offsets = [0, 0], sizes = [4, 128], strides = [1, 1]} : vector<4x256xf32> to vector<4x128xf32>
    %18 = arith.mulf %6, %17 : vector<4x128xf32>
    %19 = vector.extract_strided_slice %16 {offsets = [0, 128], sizes = [4, 128], strides = [1, 1]} : vector<4x256xf32> to vector<4x128xf32>
    %20 = arith.mulf %8, %19 : vector<4x128xf32>
    %21 = arith.addf %18, %20 : vector<4x128xf32>
    %22 = vector.extract_strided_slice %21 {offsets = [0, 0], sizes = [4, 32], strides = [1, 1]} : vector<4x128xf32> to vector<4x32xf32>
    %cst_19 = arith.constant 0.000000e+00 : f32
    %23 = vector.broadcast %cst_19 : f32 to vector<4x32xf32>
    %24 = arith.subf %23, %22 : vector<4x32xf32>
    %25 = math.exp %24 : vector<4x32xf32>
    %cst_20 = arith.constant 1.000000e+00 : f32
    %26 = vector.broadcast %cst_20 : f32 to vector<4x32xf32>
    %27 = arith.addf %26, %25 : vector<4x32xf32>
    %28 = tpu.reciprocal %27 {approx = true} : vector<4x32xf32> -> vector<4x32xf32>
    %29 = vector.extract_strided_slice %21 {offsets = [0, 32], sizes = [4, 32], strides = [1, 1]} : vector<4x128xf32> to vector<4x32xf32>
    %cst_21 = arith.constant 0.000000e+00 : f32
    %30 = vector.broadcast %cst_21 : f32 to vector<4x32xf32>
    %31 = arith.subf %30, %29 : vector<4x32xf32>
    %32 = math.exp %31 : vector<4x32xf32>
    %cst_22 = arith.constant 1.000000e+00 : f32
    %33 = vector.broadcast %cst_22 : f32 to vector<4x32xf32>
    %34 = arith.addf %33, %32 : vector<4x32xf32>
    %35 = tpu.reciprocal %34 {approx = true} : vector<4x32xf32> -> vector<4x32xf32>
    %36 = vector.extract_strided_slice %21 {offsets = [0, 64], sizes = [4, 32], strides = [1, 1]} : vector<4x128xf32> to vector<4x32xf32>
    %37 = math.tanh %36 : vector<4x32xf32>
    %38 = vector.extract_strided_slice %21 {offsets = [0, 96], sizes = [4, 32], strides = [1, 1]} : vector<4x128xf32> to vector<4x32xf32>
    %cst_23 = arith.constant 0.000000e+00 : f32
    %39 = vector.broadcast %cst_23 : f32 to vector<4x32xf32>
    %40 = arith.subf %39, %38 : vector<4x32xf32>
    %41 = math.exp %40 : vector<4x32xf32>
    %cst_24 = arith.constant 1.000000e+00 : f32
    %42 = vector.broadcast %cst_24 : f32 to vector<4x32xf32>
    %43 = arith.addf %42, %41 : vector<4x32xf32>
    %44 = tpu.reciprocal %43 {approx = true} : vector<4x32xf32> -> vector<4x32xf32>
    %45 = arith.mulf %35, %10 : vector<4x32xf32>
    %46 = arith.mulf %28, %37 : vector<4x32xf32>
    %47 = arith.addf %45, %46 : vector<4x32xf32>
    %48 = math.tanh %47 : vector<4x32xf32>
    %49 = arith.mulf %44, %48 : vector<4x32xf32>
    %c0_25 = arith.constant 0 : index
    %c0_26 = arith.constant 0 : index
    %c0_27 = arith.constant 0 : index
    %50 = vector.load %arg1[%c0_25, %c0_26, %c0_27] : memref<6x4x32xf32, #tpu.memory_space<vmem>>, vector<1x4x32xf32>
    %51 = vector.shape_cast %50 : vector<1x4x32xf32> to vector<4x32xf32>
    %52 = arith.mulf %51, %49 : vector<4x32xf32>
    %cst_28 = arith.constant 1.000000e+00 : f32
    %53 = vector.broadcast %cst_28 : f32 to vector<4x32xf32>
    %54 = arith.subf %53, %51 : vector<4x32xf32>
    %55 = arith.mulf %54, %9 : vector<4x32xf32>
    %56 = arith.addf %52, %55 : vector<4x32xf32>
    %c0_29 = arith.constant 0 : index
    %c0_30 = arith.constant 0 : index
    %57 = vector.load %arg6[%c0_29, %c0_30] : memref<4x32xf32, #tpu.memory_space<vmem>>, vector<4x32xf32>
    tpu.vector_store %arg6[%c0_29, %c0_30], %56 {strides = array<i32>} : memref<4x32xf32, #tpu.memory_space<vmem>>, vector<4x32xf32>,
    %58 = arith.mulf %51, %47 : vector<4x32xf32>
    %cst_31 = arith.constant 1.000000e+00 : f32
    %59 = vector.broadcast %cst_31 : f32 to vector<4x32xf32>
    %60 = arith.subf %59, %51 : vector<4x32xf32>
    %61 = arith.mulf %60, %10 : vector<4x32xf32>
    %62 = arith.addf %58, %61 : vector<4x32xf32>
    %c0_32 = arith.constant 0 : index
    %c0_33 = arith.constant 0 : index
    %63 = vector.load %arg7[%c0_32, %c0_33] : memref<4x32xf32, #tpu.memory_space<vmem>>, vector<4x32xf32>
    tpu.vector_store %arg7[%c0_32, %c0_33], %62 {strides = array<i32>} : memref<4x32xf32, #tpu.memory_space<vmem>>, vector<4x32xf32>,
    %64 = arith.mulf %51, %49 : vector<4x32xf32>
    %c0_34 = arith.constant 0 : index
    %c0_35 = arith.constant 0 : index
    %c0_36 = arith.constant 0 : index
    %65 = vector.load %arg5[%c0_34, %c0_35, %c0_36] : memref<6x4x32xf32, #tpu.memory_space<vmem>>, vector<1x4x32xf32>
    %66 = vector.shape_cast %65 : vector<1x4x32xf32> to vector<4x32xf32>
    %67 = vector.shape_cast %64 : vector<4x32xf32> to vector<1x4x32xf32>
    tpu.vector_store %arg5[%c0_34, %c0_35, %c0_36], %67 {strides = array<i32>} : memref<6x4x32xf32, #tpu.memory_space<vmem>>, vector<1x4x32xf32>,
    %c0_37 = arith.constant 0 : index
    %c0_38 = arith.constant 0 : index
    %68 = vector.load %arg6[%c0_37, %c0_38] : memref<4x32xf32, #tpu.memory_space<vmem>>, vector<4x32xf32>
    %c0_39 = arith.constant 0 : index
    %c0_40 = arith.constant 0 : index
    %69 = vector.load %arg7[%c0_39, %c0_40] : memref<4x32xf32, #tpu.memory_space<vmem>>, vector<4x32xf32>
    %c1 = arith.constant 1 : index
    %c0_41 = arith.constant 0 : index
    %c0_42 = arith.constant 0 : index
    %70 = vector.load %arg0[%c1, %c0_41, %c0_42] : memref<6x4x32xf32, #tpu.memory_space<vmem>>, vector<1x4x32xf32>
    %71 = vector.shape_cast %70 : vector<1x4x32xf32> to vector<4x32xf32>
    %72 = tpu.concatenate %71, %68 in 1 : vector<4x32xf32>, vector<4x32xf32> -> vector<4x64xf32>
    %cst_43 = arith.constant dense<0.000000e+00> : vector<4x256xf32>
    %73 = tpu.matmul %72, %4, %cst_43 {dimension_numbers = #tpu.dot_dimension_numbers<[1], [0], [0], [1], [0, 0, 1, 1], [], []>} : vector<4x64xf32>, vector<64x256xf32>, vector<4x256xf32> -> vector<4x256xf32>
    %74 = vector.broadcast %5 : vector<1x256xf32> to vector<4x256xf32>
    %75 = arith.addf %73, %74 : vector<4x256xf32>
    %76 = vector.extract_strided_slice %75 {offsets = [0, 0], sizes = [4, 128], strides = [1, 1]} : vector<4x256xf32> to vector<4x128xf32>
    %77 = arith.mulf %6, %76 : vector<4x128xf32>
    %78 = vector.extract_strided_slice %75 {offsets = [0, 128], sizes = [4, 128], strides = [1, 1]} : vector<4x256xf32> to vector<4x128xf32>
    %79 = arith.mulf %8, %78 : vector<4x128xf32>
    %80 = arith.addf %77, %79 : vector<4x128xf32>
    %81 = vector.extract_strided_slice %80 {offsets = [0, 0], sizes = [4, 32], strides = [1, 1]} : vector<4x128xf32> to vector<4x32xf32>
    %cst_44 = arith.constant 0.000000e+00 : f32
    %82 = vector.broadcast %cst_44 : f32 to vector<4x32xf32>
    %83 = arith.subf %82, %81 : vector<4x32xf32>
    %84 = math.exp %83 : vector<4x32xf32>
    %cst_45 = arith.constant 1.000000e+00 : f32
    %85 = vector.broadcast %cst_45 : f32 to vector<4x32xf32>
    %86 = arith.addf %85, %84 : vector<4x32xf32>
    %87 = tpu.reciprocal %86 {approx = true} : vector<4x32xf32> -> vector<4x32xf32>
    %88 = vector.extract_strided_slice %80 {offsets = [0, 32], sizes = [4, 32], strides = [1, 1]} : vector<4x128xf32> to vector<4x32xf32>
    %cst_46 = arith.constant 0.000000e+00 : f32
    %89 = vector.broadcast %cst_46 : f32 to vector<4x32xf32>
    %90 = arith.subf %89, %88 : vector<4x32xf32>
    %91 = math.exp %90 : vector<4x32xf32>
    %cst_47 = arith.constant 1.000000e+00 : f32
    %92 = vector.broadcast %cst_47 : f32 to vector<4x32xf32>
    %93 = arith.addf %92, %91 : vector<4x32xf32>
    %94 = tpu.reciprocal %93 {approx = true} : vector<4x32xf32> -> vector<4x32xf32>
    %95 = vector.extract_strided_slice %80 {offsets = [0, 64], sizes = [4, 32], strides = [1, 1]} : vector<4x128xf32> to vector<4x32xf32>
    %96 = math.tanh %95 : vector<4x32xf32>
    %97 = vector.extract_strided_slice %80 {offsets = [0, 96], sizes = [4, 32], strides = [1, 1]} : vector<4x128xf32> to vector<4x32xf32>
    %cst_48 = arith.constant 0.000000e+00 : f32
    %98 = vector.broadcast %cst_48 : f32 to vector<4x32xf32>
    %99 = arith.subf %98, %97 : vector<4x32xf32>
    %100 = math.exp %99 : vector<4x32xf32>
    %cst_49 = arith.constant 1.000000e+00 : f32
    %101 = vector.broadcast %cst_49 : f32 to vector<4x32xf32>
    %102 = arith.addf %101, %100 : vector<4x32xf32>
    %103 = tpu.reciprocal %102 {approx = true} : vector<4x32xf32> -> vector<4x32xf32>
    %104 = arith.mulf %94, %69 : vector<4x32xf32>
    %105 = arith.mulf %87, %96 : vector<4x32xf32>
    %106 = arith.addf %104, %105 : vector<4x32xf32>
    %107 = math.tanh %106 : vector<4x32xf32>
    %108 = arith.mulf %103, %107 : vector<4x32xf32>
    %c1_50 = arith.constant 1 : index
    %c0_51 = arith.constant 0 : index
    %c0_52 = arith.constant 0 : index
    %109 = vector.load %arg1[%c1_50, %c0_51, %c0_52] : memref<6x4x32xf32, #tpu.memory_space<vmem>>, vector<1x4x32xf32>
    %110 = vector.shape_cast %109 : vector<1x4x32xf32> to vector<4x32xf32>
    %111 = arith.mulf %110, %108 : vector<4x32xf32>
    %cst_53 = arith.constant 1.000000e+00 : f32
    %112 = vector.broadcast %cst_53 : f32 to vector<4x32xf32>
    %113 = arith.subf %112, %110 : vector<4x32xf32>
    %114 = arith.mulf %113, %68 : vector<4x32xf32>
    %115 = arith.addf %111, %114 : vector<4x32xf32>
    %c0_54 = arith.constant 0 : index
    %c0_55 = arith.constant 0 : index
    %116 = vector.load %arg6[%c0_54, %c0_55] : memref<4x32xf32, #tpu.memory_space<vmem>>, vector<4x32xf32>
    tpu.vector_store %arg6[%c0_54, %c0_55], %115 {strides = array<i32>} : memref<4x32xf32, #tpu.memory_space<vmem>>, vector<4x32xf32>,
    %117 = arith.mulf %110, %106 : vector<4x32xf32>
    %cst_56 = arith.constant 1.000000e+00 : f32
    %118 = vector.broadcast %cst_56 : f32 to vector<4x32xf32>
    %119 = arith.subf %118, %110 : vector<4x32xf32>
    %120 = arith.mulf %119, %69 : vector<4x32xf32>
    %121 = arith.addf %117, %120 : vector<4x32xf32>
    %c0_57 = arith.constant 0 : index
    %c0_58 = arith.constant 0 : index
    %122 = vector.load %arg7[%c0_57, %c0_58] : memref<4x32xf32, #tpu.memory_space<vmem>>, vector<4x32xf32>
    tpu.vector_store %arg7[%c0_57, %c0_58], %121 {strides = array<i32>} : memref<4x32xf32, #tpu.memory_space<vmem>>, vector<4x32xf32>,
    %123 = arith.mulf %110, %108 : vector<4x32xf32>
    %c1_59 = arith.constant 1 : index
    %c0_60 = arith.constant 0 : index
    %c0_61 = arith.constant 0 : index
    %124 = vector.load %arg5[%c1_59, %c0_60, %c0_61] : memref<6x4x32xf32, #tpu.memory_space<vmem>>, vector<1x4x32xf32>
    %125 = vector.shape_cast %124 : vector<1x4x32xf32> to vector<4x32xf32>
    %126 = vector.shape_cast %123 : vector<4x32xf32> to vector<1x4x32xf32>
    tpu.vector_store %arg5[%c1_59, %c0_60, %c0_61], %126 {strides = array<i32>} : memref<6x4x32xf32, #tpu.memory_space<vmem>>, vector<1x4x32xf32>,
    %c0_62 = arith.constant 0 : index
    %c0_63 = arith.constant 0 : index
    %127 = vector.load %arg6[%c0_62, %c0_63] : memref<4x32xf32, #tpu.memory_space<vmem>>, vector<4x32xf32>
    %c0_64 = arith.constant 0 : index
    %c0_65 = arith.constant 0 : index
    %128 = vector.load %arg7[%c0_64, %c0_65] : memref<4x32xf32, #tpu.memory_space<vmem>>, vector<4x32xf32>
    %c2 = arith.constant 2 : index
    %c0_66 = arith.constant 0 : index
    %c0_67 = arith.constant 0 : index
    %129 = vector.load %arg0[%c2, %c0_66, %c0_67] : memref<6x4x32xf32, #tpu.memory_space<vmem>>, vector<1x4x32xf32>
    %130 = vector.shape_cast %129 : vector<1x4x32xf32> to vector<4x32xf32>
    %131 = tpu.concatenate %130, %127 in 1 : vector<4x32xf32>, vector<4x32xf32> -> vector<4x64xf32>
    %cst_68 = arith.constant dense<0.000000e+00> : vector<4x256xf32>
    %132 = tpu.matmul %131, %4, %cst_68 {dimension_numbers = #tpu.dot_dimension_numbers<[1], [0], [0], [1], [0, 0, 1, 1], [], []>} : vector<4x64xf32>, vector<64x256xf32>, vector<4x256xf32> -> vector<4x256xf32>
    %133 = vector.broadcast %5 : vector<1x256xf32> to vector<4x256xf32>
    %134 = arith.addf %132, %133 : vector<4x256xf32>
    %135 = vector.extract_strided_slice %134 {offsets = [0, 0], sizes = [4, 128], strides = [1, 1]} : vector<4x256xf32> to vector<4x128xf32>
    %136 = arith.mulf %6, %135 : vector<4x128xf32>
    %137 = vector.extract_strided_slice %134 {offsets = [0, 128], sizes = [4, 128], strides = [1, 1]} : vector<4x256xf32> to vector<4x128xf32>
    %138 = arith.mulf %8, %137 : vector<4x128xf32>
    %139 = arith.addf %136, %138 : vector<4x128xf32>
    %140 = vector.extract_strided_slice %139 {offsets = [0, 0], sizes = [4, 32], strides = [1, 1]} : vector<4x128xf32> to vector<4x32xf32>
    %cst_69 = arith.constant 0.000000e+00 : f32
    %141 = vector.broadcast %cst_69 : f32 to vector<4x32xf32>
    %142 = arith.subf %141, %140 : vector<4x32xf32>
    %143 = math.exp %142 : vector<4x32xf32>
    %cst_70 = arith.constant 1.000000e+00 : f32
    %144 = vector.broadcast %cst_70 : f32 to vector<4x32xf32>
    %145 = arith.addf %144, %143 : vector<4x32xf32>
    %146 = tpu.reciprocal %145 {approx = true} : vector<4x32xf32> -> vector<4x32xf32>
    %147 = vector.extract_strided_slice %139 {offsets = [0, 32], sizes = [4, 32], strides = [1, 1]} : vector<4x128xf32> to vector<4x32xf32>
    %cst_71 = arith.constant 0.000000e+00 : f32
    %148 = vector.broadcast %cst_71 : f32 to vector<4x32xf32>
    %149 = arith.subf %148, %147 : vector<4x32xf32>
    %150 = math.exp %149 : vector<4x32xf32>
    %cst_72 = arith.constant 1.000000e+00 : f32
    %151 = vector.broadcast %cst_72 : f32 to vector<4x32xf32>
    %152 = arith.addf %151, %150 : vector<4x32xf32>
    %153 = tpu.reciprocal %152 {approx = true} : vector<4x32xf32> -> vector<4x32xf32>
    %154 = vector.extract_strided_slice %139 {offsets = [0, 64], sizes = [4, 32], strides = [1, 1]} : vector<4x128xf32> to vector<4x32xf32>
    %155 = math.tanh %154 : vector<4x32xf32>
    %156 = vector.extract_strided_slice %139 {offsets = [0, 96], sizes = [4, 32], strides = [1, 1]} : vector<4x128xf32> to vector<4x32xf32>
    %cst_73 = arith.constant 0.000000e+00 : f32
    %157 = vector.broadcast %cst_73 : f32 to vector<4x32xf32>
    %158 = arith.subf %157, %156 : vector<4x32xf32>
    %159 = math.exp %158 : vector<4x32xf32>
    %cst_74 = arith.constant 1.000000e+00 : f32
    %160 = vector.broadcast %cst_74 : f32 to vector<4x32xf32>
    %161 = arith.addf %160, %159 : vector<4x32xf32>
    %162 = tpu.reciprocal %161 {approx = true} : vector<4x32xf32> -> vector<4x32xf32>
    %163 = arith.mulf %153, %128 : vector<4x32xf32>
    %164 = arith.mulf %146, %155 : vector<4x32xf32>
    %165 = arith.addf %163, %164 : vector<4x32xf32>
    %166 = math.tanh %165 : vector<4x32xf32>
    %167 = arith.mulf %162, %166 : vector<4x32xf32>
    %c2_75 = arith.constant 2 : index
    %c0_76 = arith.constant 0 : index
    %c0_77 = arith.constant 0 : index
    %168 = vector.load %arg1[%c2_75, %c0_76, %c0_77] : memref<6x4x32xf32, #tpu.memory_space<vmem>>, vector<1x4x32xf32>
    %169 = vector.shape_cast %168 : vector<1x4x32xf32> to vector<4x32xf32>
    %170 = arith.mulf %169, %167 : vector<4x32xf32>
    %cst_78 = arith.constant 1.000000e+00 : f32
    %171 = vector.broadcast %cst_78 : f32 to vector<4x32xf32>
    %172 = arith.subf %171, %169 : vector<4x32xf32>
    %173 = arith.mulf %172, %127 : vector<4x32xf32>
    %174 = arith.addf %170, %173 : vector<4x32xf32>
    %c0_79 = arith.constant 0 : index
    %c0_80 = arith.constant 0 : index
    %175 = vector.load %arg6[%c0_79, %c0_80] : memref<4x32xf32, #tpu.memory_space<vmem>>, vector<4x32xf32>
    tpu.vector_store %arg6[%c0_79, %c0_80], %174 {strides = array<i32>} : memref<4x32xf32, #tpu.memory_space<vmem>>, vector<4x32xf32>,
    %176 = arith.mulf %169, %165 : vector<4x32xf32>
    %cst_81 = arith.constant 1.000000e+00 : f32
    %177 = vector.broadcast %cst_81 : f32 to vector<4x32xf32>
    %178 = arith.subf %177, %169 : vector<4x32xf32>
    %179 = arith.mulf %178, %128 : vector<4x32xf32>
    %180 = arith.addf %176, %179 : vector<4x32xf32>
    %c0_82 = arith.constant 0 : index
    %c0_83 = arith.constant 0 : index
    %181 = vector.load %arg7[%c0_82, %c0_83] : memref<4x32xf32, #tpu.memory_space<vmem>>, vector<4x32xf32>
    tpu.vector_store %arg7[%c0_82, %c0_83], %180 {strides = array<i32>} : memref<4x32xf32, #tpu.memory_space<vmem>>, vector<4x32xf32>,
    %182 = arith.mulf %169, %167 : vector<4x32xf32>
    %c2_84 = arith.constant 2 : index
    %c0_85 = arith.constant 0 : index
    %c0_86 = arith.constant 0 : index
    %183 = vector.load %arg5[%c2_84, %c0_85, %c0_86] : memref<6x4x32xf32, #tpu.memory_space<vmem>>, vector<1x4x32xf32>
    %184 = vector.shape_cast %183 : vector<1x4x32xf32> to vector<4x32xf32>
    %185 = vector.shape_cast %182 : vector<4x32xf32> to vector<1x4x32xf32>
    tpu.vector_store %arg5[%c2_84, %c0_85, %c0_86], %185 {strides = array<i32>} : memref<6x4x32xf32, #tpu.memory_space<vmem>>, vector<1x4x32xf32>,
    %c0_87 = arith.constant 0 : index
    %c0_88 = arith.constant 0 : index
    %186 = vector.load %arg6[%c0_87, %c0_88] : memref<4x32xf32, #tpu.memory_space<vmem>>, vector<4x32xf32>
    %c0_89 = arith.constant 0 : index
    %c0_90 = arith.constant 0 : index
    %187 = vector.load %arg7[%c0_89, %c0_90] : memref<4x32xf32, #tpu.memory_space<vmem>>, vector<4x32xf32>
    %c3 = arith.constant 3 : index
    %c0_91 = arith.constant 0 : index
    %c0_92 = arith.constant 0 : index
    %188 = vector.load %arg0[%c3, %c0_91, %c0_92] : memref<6x4x32xf32, #tpu.memory_space<vmem>>, vector<1x4x32xf32>
    %189 = vector.shape_cast %188 : vector<1x4x32xf32> to vector<4x32xf32>
    %190 = tpu.concatenate %189, %186 in 1 : vector<4x32xf32>, vector<4x32xf32> -> vector<4x64xf32>
    %cst_93 = arith.constant dense<0.000000e+00> : vector<4x256xf32>
    %191 = tpu.matmul %190, %4, %cst_93 {dimension_numbers = #tpu.dot_dimension_numbers<[1], [0], [0], [1], [0, 0, 1, 1], [], []>} : vector<4x64xf32>, vector<64x256xf32>, vector<4x256xf32> -> vector<4x256xf32>
    %192 = vector.broadcast %5 : vector<1x256xf32> to vector<4x256xf32>
    %193 = arith.addf %191, %192 : vector<4x256xf32>
    %194 = vector.extract_strided_slice %193 {offsets = [0, 0], sizes = [4, 128], strides = [1, 1]} : vector<4x256xf32> to vector<4x128xf32>
    %195 = arith.mulf %6, %194 : vector<4x128xf32>
    %196 = vector.extract_strided_slice %193 {offsets = [0, 128], sizes = [4, 128], strides = [1, 1]} : vector<4x256xf32> to vector<4x128xf32>
    %197 = arith.mulf %8, %196 : vector<4x128xf32>
    %198 = arith.addf %195, %197 : vector<4x128xf32>
    %199 = vector.extract_strided_slice %198 {offsets = [0, 0], sizes = [4, 32], strides = [1, 1]} : vector<4x128xf32> to vector<4x32xf32>
    %cst_94 = arith.constant 0.000000e+00 : f32
    %200 = vector.broadcast %cst_94 : f32 to vector<4x32xf32>
    %201 = arith.subf %200, %199 : vector<4x32xf32>
    %202 = math.exp %201 : vector<4x32xf32>
    %cst_95 = arith.constant 1.000000e+00 : f32
    %203 = vector.broadcast %cst_95 : f32 to vector<4x32xf32>
    %204 = arith.addf %203, %202 : vector<4x32xf32>
    %205 = tpu.reciprocal %204 {approx = true} : vector<4x32xf32> -> vector<4x32xf32>
    %206 = vector.extract_strided_slice %198 {offsets = [0, 32], sizes = [4, 32], strides = [1, 1]} : vector<4x128xf32> to vector<4x32xf32>
    %cst_96 = arith.constant 0.000000e+00 : f32
    %207 = vector.broadcast %cst_96 : f32 to vector<4x32xf32>
    %208 = arith.subf %207, %206 : vector<4x32xf32>
    %209 = math.exp %208 : vector<4x32xf32>
    %cst_97 = arith.constant 1.000000e+00 : f32
    %210 = vector.broadcast %cst_97 : f32 to vector<4x32xf32>
    %211 = arith.addf %210, %209 : vector<4x32xf32>
    %212 = tpu.reciprocal %211 {approx = true} : vector<4x32xf32> -> vector<4x32xf32>
    %213 = vector.extract_strided_slice %198 {offsets = [0, 64], sizes = [4, 32], strides = [1, 1]} : vector<4x128xf32> to vector<4x32xf32>
    %214 = math.tanh %213 : vector<4x32xf32>
    %215 = vector.extract_strided_slice %198 {offsets = [0, 96], sizes = [4, 32], strides = [1, 1]} : vector<4x128xf32> to vector<4x32xf32>
    %cst_98 = arith.constant 0.000000e+00 : f32
    %216 = vector.broadcast %cst_98 : f32 to vector<4x32xf32>
    %217 = arith.subf %216, %215 : vector<4x32xf32>
    %218 = math.exp %217 : vector<4x32xf32>
    %cst_99 = arith.constant 1.000000e+00 : f32
    %219 = vector.broadcast %cst_99 : f32 to vector<4x32xf32>
    %220 = arith.addf %219, %218 : vector<4x32xf32>
    %221 = tpu.reciprocal %220 {approx = true} : vector<4x32xf32> -> vector<4x32xf32>
    %222 = arith.mulf %212, %187 : vector<4x32xf32>
    %223 = arith.mulf %205, %214 : vector<4x32xf32>
    %224 = arith.addf %222, %223 : vector<4x32xf32>
    %225 = math.tanh %224 : vector<4x32xf32>
    %226 = arith.mulf %221, %225 : vector<4x32xf32>
    %c3_100 = arith.constant 3 : index
    %c0_101 = arith.constant 0 : index
    %c0_102 = arith.constant 0 : index
    %227 = vector.load %arg1[%c3_100, %c0_101, %c0_102] : memref<6x4x32xf32, #tpu.memory_space<vmem>>, vector<1x4x32xf32>
    %228 = vector.shape_cast %227 : vector<1x4x32xf32> to vector<4x32xf32>
    %229 = arith.mulf %228, %226 : vector<4x32xf32>
    %cst_103 = arith.constant 1.000000e+00 : f32
    %230 = vector.broadcast %cst_103 : f32 to vector<4x32xf32>
    %231 = arith.subf %230, %228 : vector<4x32xf32>
    %232 = arith.mulf %231, %186 : vector<4x32xf32>
    %233 = arith.addf %229, %232 : vector<4x32xf32>
    %c0_104 = arith.constant 0 : index
    %c0_105 = arith.constant 0 : index
    %234 = vector.load %arg6[%c0_104, %c0_105] : memref<4x32xf32, #tpu.memory_space<vmem>>, vector<4x32xf32>
    tpu.vector_store %arg6[%c0_104, %c0_105], %233 {strides = array<i32>} : memref<4x32xf32, #tpu.memory_space<vmem>>, vector<4x32xf32>,
    %235 = arith.mulf %228, %224 : vector<4x32xf32>
    %cst_106 = arith.constant 1.000000e+00 : f32
    %236 = vector.broadcast %cst_106 : f32 to vector<4x32xf32>
    %237 = arith.subf %236, %228 : vector<4x32xf32>
    %238 = arith.mulf %237, %187 : vector<4x32xf32>
    %239 = arith.addf %235, %238 : vector<4x32xf32>
    %c0_107 = arith.constant 0 : index
    %c0_108 = arith.constant 0 : index
    %240 = vector.load %arg7[%c0_107, %c0_108] : memref<4x32xf32, #tpu.memory_space<vmem>>, vector<4x32xf32>
    tpu.vector_store %arg7[%c0_107, %c0_108], %239 {strides = array<i32>} : memref<4x32xf32, #tpu.memory_space<vmem>>, vector<4x32xf32>,
    %241 = arith.mulf %228, %226 : vector<4x32xf32>
    %c3_109 = arith.constant 3 : index
    %c0_110 = arith.constant 0 : index
    %c0_111 = arith.constant 0 : index
    %242 = vector.load %arg5[%c3_109, %c0_110, %c0_111] : memref<6x4x32xf32, #tpu.memory_space<vmem>>, vector<1x4x32xf32>
    %243 = vector.shape_cast %242 : vector<1x4x32xf32> to vector<4x32xf32>
    %244 = vector.shape_cast %241 : vector<4x32xf32> to vector<1x4x32xf32>
    tpu.vector_store %arg5[%c3_109, %c0_110, %c0_111], %244 {strides = array<i32>} : memref<6x4x32xf32, #tpu.memory_space<vmem>>, vector<1x4x32xf32>,
    %c0_112 = arith.constant 0 : index
    %c0_113 = arith.constant 0 : index
    %245 = vector.load %arg6[%c0_112, %c0_113] : memref<4x32xf32, #tpu.memory_space<vmem>>, vector<4x32xf32>
    %c0_114 = arith.constant 0 : index
    %c0_115 = arith.constant 0 : index
    %246 = vector.load %arg7[%c0_114, %c0_115] : memref<4x32xf32, #tpu.memory_space<vmem>>, vector<4x32xf32>
    %c4 = arith.constant 4 : index
    %c0_116 = arith.constant 0 : index
    %c0_117 = arith.constant 0 : index
    %247 = vector.load %arg0[%c4, %c0_116, %c0_117] : memref<6x4x32xf32, #tpu.memory_space<vmem>>, vector<1x4x32xf32>
    %248 = vector.shape_cast %247 : vector<1x4x32xf32> to vector<4x32xf32>
    %249 = tpu.concatenate %248, %245 in 1 : vector<4x32xf32>, vector<4x32xf32> -> vector<4x64xf32>
    %cst_118 = arith.constant dense<0.000000e+00> : vector<4x256xf32>
    %250 = tpu.matmul %249, %4, %cst_118 {dimension_numbers = #tpu.dot_dimension_numbers<[1], [0], [0], [1], [0, 0, 1, 1], [], []>} : vector<4x64xf32>, vector<64x256xf32>, vector<4x256xf32> -> vector<4x256xf32>
    %251 = vector.broadcast %5 : vector<1x256xf32> to vector<4x256xf32>
    %252 = arith.addf %250, %251 : vector<4x256xf32>
    %253 = vector.extract_strided_slice %252 {offsets = [0, 0], sizes = [4, 128], strides = [1, 1]} : vector<4x256xf32> to vector<4x128xf32>
    %254 = arith.mulf %6, %253 : vector<4x128xf32>
    %255 = vector.extract_strided_slice %252 {offsets = [0, 128], sizes = [4, 128], strides = [1, 1]} : vector<4x256xf32> to vector<4x128xf32>
    %256 = arith.mulf %8, %255 : vector<4x128xf32>
    %257 = arith.addf %254, %256 : vector<4x128xf32>
    %258 = vector.extract_strided_slice %257 {offsets = [0, 0], sizes = [4, 32], strides = [1, 1]} : vector<4x128xf32> to vector<4x32xf32>
    %cst_119 = arith.constant 0.000000e+00 : f32
    %259 = vector.broadcast %cst_119 : f32 to vector<4x32xf32>
    %260 = arith.subf %259, %258 : vector<4x32xf32>
    %261 = math.exp %260 : vector<4x32xf32>
    %cst_120 = arith.constant 1.000000e+00 : f32
    %262 = vector.broadcast %cst_120 : f32 to vector<4x32xf32>
    %263 = arith.addf %262, %261 : vector<4x32xf32>
    %264 = tpu.reciprocal %263 {approx = true} : vector<4x32xf32> -> vector<4x32xf32>
    %265 = vector.extract_strided_slice %257 {offsets = [0, 32], sizes = [4, 32], strides = [1, 1]} : vector<4x128xf32> to vector<4x32xf32>
    %cst_121 = arith.constant 0.000000e+00 : f32
    %266 = vector.broadcast %cst_121 : f32 to vector<4x32xf32>
    %267 = arith.subf %266, %265 : vector<4x32xf32>
    %268 = math.exp %267 : vector<4x32xf32>
    %cst_122 = arith.constant 1.000000e+00 : f32
    %269 = vector.broadcast %cst_122 : f32 to vector<4x32xf32>
    %270 = arith.addf %269, %268 : vector<4x32xf32>
    %271 = tpu.reciprocal %270 {approx = true} : vector<4x32xf32> -> vector<4x32xf32>
    %272 = vector.extract_strided_slice %257 {offsets = [0, 64], sizes = [4, 32], strides = [1, 1]} : vector<4x128xf32> to vector<4x32xf32>
    %273 = math.tanh %272 : vector<4x32xf32>
    %274 = vector.extract_strided_slice %257 {offsets = [0, 96], sizes = [4, 32], strides = [1, 1]} : vector<4x128xf32> to vector<4x32xf32>
    %cst_123 = arith.constant 0.000000e+00 : f32
    %275 = vector.broadcast %cst_123 : f32 to vector<4x32xf32>
    %276 = arith.subf %275, %274 : vector<4x32xf32>
    %277 = math.exp %276 : vector<4x32xf32>
    %cst_124 = arith.constant 1.000000e+00 : f32
    %278 = vector.broadcast %cst_124 : f32 to vector<4x32xf32>
    %279 = arith.addf %278, %277 : vector<4x32xf32>
    %280 = tpu.reciprocal %279 {approx = true} : vector<4x32xf32> -> vector<4x32xf32>
    %281 = arith.mulf %271, %246 : vector<4x32xf32>
    %282 = arith.mulf %264, %273 : vector<4x32xf32>
    %283 = arith.addf %281, %282 : vector<4x32xf32>
    %284 = math.tanh %283 : vector<4x32xf32>
    %285 = arith.mulf %280, %284 : vector<4x32xf32>
    %c4_125 = arith.constant 4 : index
    %c0_126 = arith.constant 0 : index
    %c0_127 = arith.constant 0 : index
    %286 = vector.load %arg1[%c4_125, %c0_126, %c0_127] : memref<6x4x32xf32, #tpu.memory_space<vmem>>, vector<1x4x32xf32>
    %287 = vector.shape_cast %286 : vector<1x4x32xf32> to vector<4x32xf32>
    %288 = arith.mulf %287, %285 : vector<4x32xf32>
    %cst_128 = arith.constant 1.000000e+00 : f32
    %289 = vector.broadcast %cst_128 : f32 to vector<4x32xf32>
    %290 = arith.subf %289, %287 : vector<4x32xf32>
    %291 = arith.mulf %290, %245 : vector<4x32xf32>
    %292 = arith.addf %288, %291 : vector<4x32xf32>
    %c0_129 = arith.constant 0 : index
    %c0_130 = arith.constant 0 : index
    %293 = vector.load %arg6[%c0_129, %c0_130] : memref<4x32xf32, #tpu.memory_space<vmem>>, vector<4x32xf32>
    tpu.vector_store %arg6[%c0_129, %c0_130], %292 {strides = array<i32>} : memref<4x32xf32, #tpu.memory_space<vmem>>, vector<4x32xf32>,
    %294 = arith.mulf %287, %283 : vector<4x32xf32>
    %cst_131 = arith.constant 1.000000e+00 : f32
    %295 = vector.broadcast %cst_131 : f32 to vector<4x32xf32>
    %296 = arith.subf %295, %287 : vector<4x32xf32>
    %297 = arith.mulf %296, %246 : vector<4x32xf32>
    %298 = arith.addf %294, %297 : vector<4x32xf32>
    %c0_132 = arith.constant 0 : index
    %c0_133 = arith.constant 0 : index
    %299 = vector.load %arg7[%c0_132, %c0_133] : memref<4x32xf32, #tpu.memory_space<vmem>>, vector<4x32xf32>
    tpu.vector_store %arg7[%c0_132, %c0_133], %298 {strides = array<i32>} : memref<4x32xf32, #tpu.memory_space<vmem>>, vector<4x32xf32>,
    %300 = arith.mulf %287, %285 : vector<4x32xf32>
    %c4_134 = arith.constant 4 : index
    %c0_135 = arith.constant 0 : index
    %c0_136 = arith.constant 0 : index
    %301 = vector.load %arg5[%c4_134, %c0_135, %c0_136] : memref<6x4x32xf32, #tpu.memory_space<vmem>>, vector<1x4x32xf32>
    %302 = vector.shape_cast %301 : vector<1x4x32xf32> to vector<4x32xf32>
    %303 = vector.shape_cast %300 : vector<4x32xf32> to vector<1x4x32xf32>
    tpu.vector_store %arg5[%c4_134, %c0_135, %c0_136], %303 {strides = array<i32>} : memref<6x4x32xf32, #tpu.memory_space<vmem>>, vector<1x4x32xf32>,
    %c0_137 = arith.constant 0 : index
    %c0_138 = arith.constant 0 : index
    %304 = vector.load %arg6[%c0_137, %c0_138] : memref<4x32xf32, #tpu.memory_space<vmem>>, vector<4x32xf32>
    %c0_139 = arith.constant 0 : index
    %c0_140 = arith.constant 0 : index
    %305 = vector.load %arg7[%c0_139, %c0_140] : memref<4x32xf32, #tpu.memory_space<vmem>>, vector<4x32xf32>
    %c5 = arith.constant 5 : index
    %c0_141 = arith.constant 0 : index
    %c0_142 = arith.constant 0 : index
    %306 = vector.load %arg0[%c5, %c0_141, %c0_142] : memref<6x4x32xf32, #tpu.memory_space<vmem>>, vector<1x4x32xf32>
    %307 = vector.shape_cast %306 : vector<1x4x32xf32> to vector<4x32xf32>
    %308 = tpu.concatenate %307, %304 in 1 : vector<4x32xf32>, vector<4x32xf32> -> vector<4x64xf32>
    %cst_143 = arith.constant dense<0.000000e+00> : vector<4x256xf32>
    %309 = tpu.matmul %308, %4, %cst_143 {dimension_numbers = #tpu.dot_dimension_numbers<[1], [0], [0], [1], [0, 0, 1, 1], [], []>} : vector<4x64xf32>, vector<64x256xf32>, vector<4x256xf32> -> vector<4x256xf32>
    %310 = vector.broadcast %5 : vector<1x256xf32> to vector<4x256xf32>
    %311 = arith.addf %309, %310 : vector<4x256xf32>
    %312 = vector.extract_strided_slice %311 {offsets = [0, 0], sizes = [4, 128], strides = [1, 1]} : vector<4x256xf32> to vector<4x128xf32>
    %313 = arith.mulf %6, %312 : vector<4x128xf32>
    %314 = vector.extract_strided_slice %311 {offsets = [0, 128], sizes = [4, 128], strides = [1, 1]} : vector<4x256xf32> to vector<4x128xf32>
    %315 = arith.mulf %8, %314 : vector<4x128xf32>
    %316 = arith.addf %313, %315 : vector<4x128xf32>
    %317 = vector.extract_strided_slice %316 {offsets = [0, 0], sizes = [4, 32], strides = [1, 1]} : vector<4x128xf32> to vector<4x32xf32>
    %cst_144 = arith.constant 0.000000e+00 : f32
    %318 = vector.broadcast %cst_144 : f32 to vector<4x32xf32>
    %319 = arith.subf %318, %317 : vector<4x32xf32>
    %320 = math.exp %319 : vector<4x32xf32>
    %cst_145 = arith.constant 1.000000e+00 : f32
    %321 = vector.broadcast %cst_145 : f32 to vector<4x32xf32>
    %322 = arith.addf %321, %320 : vector<4x32xf32>
    %323 = tpu.reciprocal %322 {approx = true} : vector<4x32xf32> -> vector<4x32xf32>
    %324 = vector.extract_strided_slice %316 {offsets = [0, 32], sizes = [4, 32], strides = [1, 1]} : vector<4x128xf32> to vector<4x32xf32>
    %cst_146 = arith.constant 0.000000e+00 : f32
    %325 = vector.broadcast %cst_146 : f32 to vector<4x32xf32>
    %326 = arith.subf %325, %324 : vector<4x32xf32>
    %327 = math.exp %326 : vector<4x32xf32>
    %cst_147 = arith.constant 1.000000e+00 : f32
    %328 = vector.broadcast %cst_147 : f32 to vector<4x32xf32>
    %329 = arith.addf %328, %327 : vector<4x32xf32>
    %330 = tpu.reciprocal %329 {approx = true} : vector<4x32xf32> -> vector<4x32xf32>
    %331 = vector.extract_strided_slice %316 {offsets = [0, 64], sizes = [4, 32], strides = [1, 1]} : vector<4x128xf32> to vector<4x32xf32>
    %332 = math.tanh %331 : vector<4x32xf32>
    %333 = vector.extract_strided_slice %316 {offsets = [0, 96], sizes = [4, 32], strides = [1, 1]} : vector<4x128xf32> to vector<4x32xf32>
    %cst_148 = arith.constant 0.000000e+00 : f32
    %334 = vector.broadcast %cst_148 : f32 to vector<4x32xf32>
    %335 = arith.subf %334, %333 : vector<4x32xf32>
    %336 = math.exp %335 : vector<4x32xf32>
    %cst_149 = arith.constant 1.000000e+00 : f32
    %337 = vector.broadcast %cst_149 : f32 to vector<4x32xf32>
    %338 = arith.addf %337, %336 : vector<4x32xf32>
    %339 = tpu.reciprocal %338 {approx = true} : vector<4x32xf32> -> vector<4x32xf32>
    %340 = arith.mulf %330, %305 : vector<4x32xf32>
    %341 = arith.mulf %323, %332 : vector<4x32xf32>
    %342 = arith.addf %340, %341 : vector<4x32xf32>
    %343 = math.tanh %342 : vector<4x32xf32>
    %344 = arith.mulf %339, %343 : vector<4x32xf32>
    %c5_150 = arith.constant 5 : index
    %c0_151 = arith.constant 0 : index
    %c0_152 = arith.constant 0 : index
    %345 = vector.load %arg1[%c5_150, %c0_151, %c0_152] : memref<6x4x32xf32, #tpu.memory_space<vmem>>, vector<1x4x32xf32>
    %346 = vector.shape_cast %345 : vector<1x4x32xf32> to vector<4x32xf32>
    %347 = arith.mulf %346, %344 : vector<4x32xf32>
    %cst_153 = arith.constant 1.000000e+00 : f32
    %348 = vector.broadcast %cst_153 : f32 to vector<4x32xf32>
    %349 = arith.subf %348, %346 : vector<4x32xf32>
    %350 = arith.mulf %349, %304 : vector<4x32xf32>
    %351 = arith.addf %347, %350 : vector<4x32xf32>
    %c0_154 = arith.constant 0 : index
    %c0_155 = arith.constant 0 : index
    %352 = vector.load %arg6[%c0_154, %c0_155] : memref<4x32xf32, #tpu.memory_space<vmem>>, vector<4x32xf32>
    tpu.vector_store %arg6[%c0_154, %c0_155], %351 {strides = array<i32>} : memref<4x32xf32, #tpu.memory_space<vmem>>, vector<4x32xf32>,
    %353 = arith.mulf %346, %342 : vector<4x32xf32>
    %cst_156 = arith.constant 1.000000e+00 : f32
    %354 = vector.broadcast %cst_156 : f32 to vector<4x32xf32>
    %355 = arith.subf %354, %346 : vector<4x32xf32>
    %356 = arith.mulf %355, %305 : vector<4x32xf32>
    %357 = arith.addf %353, %356 : vector<4x32xf32>
    %c0_157 = arith.constant 0 : index
    %c0_158 = arith.constant 0 : index
    %358 = vector.load %arg7[%c0_157, %c0_158] : memref<4x32xf32, #tpu.memory_space<vmem>>, vector<4x32xf32>
    tpu.vector_store %arg7[%c0_157, %c0_158], %357 {strides = array<i32>} : memref<4x32xf32, #tpu.memory_space<vmem>>, vector<4x32xf32>,
    %359 = arith.mulf %346, %344 : vector<4x32xf32>
    %c5_159 = arith.constant 5 : index
    %c0_160 = arith.constant 0 : index
    %c0_161 = arith.constant 0 : index
    %360 = vector.load %arg5[%c5_159, %c0_160, %c0_161] : memref<6x4x32xf32, #tpu.memory_space<vmem>>, vector<1x4x32xf32>
    %361 = vector.shape_cast %360 : vector<1x4x32xf32> to vector<4x32xf32>
    %362 = vector.shape_cast %359 : vector<4x32xf32> to vector<1x4x32xf32>
    tpu.vector_store %arg5[%c5_159, %c0_160, %c0_161], %362 {strides = array<i32>} : memref<6x4x32xf32, #tpu.memory_space<vmem>>, vector<1x4x32xf32>,
    return
  }
}

module attributes {stable_mosaic.version = 11 : i64} {
  func.func @_bilstm_layer_kernel(%arg0: memref<6x4x64xf32, #tpu.memory_space<vmem>>, %arg1: memref<6x4x32xf32, #tpu.memory_space<vmem>>, %arg2: memref<4x128xf32, #tpu.memory_space<vmem>>, %arg3: memref<96x256xf32, #tpu.memory_space<vmem>>, %arg4: memref<1x256xf32, #tpu.memory_space<vmem>>, %arg5: memref<6x4x32xf32, #tpu.memory_space<vmem>>, %arg6: memref<4x32xf32, #tpu.memory_space<vmem>>, %arg7: memref<4x32xf32, #tpu.memory_space<vmem>>) attributes {dimension_semantics = [], scalar_prefetch = 0 : i64, scratch_operands = 2 : i64, tpu.core_type = #tpu.core_type<tc>} {
    %cst = arith.constant 0.000000e+00 : f32
    %0 = vector.broadcast %cst : f32 to vector<4x32xf32>
    %c0 = arith.constant 0 : index
    %c0_0 = arith.constant 0 : index
    %1 = vector.load %arg6[%c0, %c0_0] : memref<4x32xf32, #tpu.memory_space<vmem>>, vector<4x32xf32>
    tpu.vector_store %arg6[%c0, %c0_0], %0 {strides = array<i32>} : memref<4x32xf32, #tpu.memory_space<vmem>>, vector<4x32xf32>,
    %cst_1 = arith.constant 0.000000e+00 : f32
    %2 = vector.broadcast %cst_1 : f32 to vector<4x32xf32>
    %c0_2 = arith.constant 0 : index
    %c0_3 = arith.constant 0 : index
    %3 = vector.load %arg7[%c0_2, %c0_3] : memref<4x32xf32, #tpu.memory_space<vmem>>, vector<4x32xf32>
    tpu.vector_store %arg7[%c0_2, %c0_3], %2 {strides = array<i32>} : memref<4x32xf32, #tpu.memory_space<vmem>>, vector<4x32xf32>,
    %c0_4 = arith.constant 0 : index
    %c0_5 = arith.constant 0 : index
    %4 = vector.load %arg3[%c0_4, %c0_5] : memref<96x256xf32, #tpu.memory_space<vmem>>, vector<96x256xf32>
    %c0_6 = arith.constant 0 : index
    %c0_7 = arith.constant 0 : index
    %5 = vector.load %arg4[%c0_6, %c0_7] : memref<1x256xf32, #tpu.memory_space<vmem>>, vector<1x256xf32>
    %c0_8 = arith.constant 0 : index
    %c0_9 = arith.constant 0 : index
    %6 = vector.load %arg2[%c0_8, %c0_9] : memref<4x128xf32, #tpu.memory_space<vmem>>, vector<4x128xf32>
    %cst_10 = arith.constant 1.000000e+00 : f32
    %7 = vector.broadcast %cst_10 : f32 to vector<4x128xf32>
    %8 = arith.subf %7, %6 : vector<4x128xf32>
    %c0_11 = arith.constant 0 : index
    %c0_12 = arith.constant 0 : index
    %9 = vector.load %arg6[%c0_11, %c0_12] : memref<4x32xf32, #tpu.memory_space<vmem>>, vector<4x32xf32>
    %c0_13 = arith.constant 0 : index
    %c0_14 = arith.constant 0 : index
    %10 = vector.load %arg7[%c0_13, %c0_14] : memref<4x32xf32, #tpu.memory_space<vmem>>, vector<4x32xf32>
    %c0_15 = arith.constant 0 : index
    %c0_16 = arith.constant 0 : index
    %c0_17 = arith.constant 0 : index
    %11 = vector.load %arg0[%c0_15, %c0_16, %c0_17] : memref<6x4x64xf32, #tpu.memory_space<vmem>>, vector<1x4x64xf32>
    %12 = vector.shape_cast %11 : vector<1x4x64xf32> to vector<4x64xf32>
    %13 = tpu.concatenate %12, %9 in 1 : vector<4x64xf32>, vector<4x32xf32> -> vector<4x96xf32>
    %cst_18 = arith.constant dense<0.000000e+00> : vector<4x256xf32>
    %14 = tpu.matmul %13, %4, %cst_18 {dimension_numbers = #tpu.dot_dimension_numbers<[1], [0], [0], [1], [0, 0, 1, 1], [], []>} : vector<4x96xf32>, vector<96x256xf32>, vector<4x256xf32> -> vector<4x256xf32>
    %15 = vector.broadcast %5 : vector<1x256xf32> to vector<4x256xf32>
    %16 = arith.addf %14, %15 : vector<4x256xf32>
    %17 = vector.extract_strided_slice %16 {offsets = [0, 0], sizes = [4, 128], strides = [1, 1]} : vector<4x256xf32> to vector<4x128xf32>
    %18 = arith.mulf %6, %17 : vector<4x128xf32>
    %19 = vector.extract_strided_slice %16 {offsets = [0, 128], sizes = [4, 128], strides = [1, 1]} : vector<4x256xf32> to vector<4x128xf32>
    %20 = arith.mulf %8, %19 : vector<4x128xf32>
    %21 = arith.addf %18, %20 : vector<4x128xf32>
    %22 = vector.extract_strided_slice %21 {offsets = [0, 0], sizes = [4, 32], strides = [1, 1]} : vector<4x128xf32> to vector<4x32xf32>
    %cst_19 = arith.constant 0.000000e+00 : f32
    %23 = vector.broadcast %cst_19 : f32 to vector<4x32xf32>
    %24 = arith.subf %23, %22 : vector<4x32xf32>
    %25 = math.exp %24 : vector<4x32xf32>
    %cst_20 = arith.constant 1.000000e+00 : f32
    %26 = vector.broadcast %cst_20 : f32 to vector<4x32xf32>
    %27 = arith.addf %26, %25 : vector<4x32xf32>
    %28 = tpu.reciprocal %27 {approx = true} : vector<4x32xf32> -> vector<4x32xf32>
    %29 = vector.extract_strided_slice %21 {offsets = [0, 32], sizes = [4, 32], strides = [1, 1]} : vector<4x128xf32> to vector<4x32xf32>
    %cst_21 = arith.constant 0.000000e+00 : f32
    %30 = vector.broadcast %cst_21 : f32 to vector<4x32xf32>
    %31 = arith.subf %30, %29 : vector<4x32xf32>
    %32 = math.exp %31 : vector<4x32xf32>
    %cst_22 = arith.constant 1.000000e+00 : f32
    %33 = vector.broadcast %cst_22 : f32 to vector<4x32xf32>
    %34 = arith.addf %33, %32 : vector<4x32xf32>
    %35 = tpu.reciprocal %34 {approx = true} : vector<4x32xf32> -> vector<4x32xf32>
    %36 = vector.extract_strided_slice %21 {offsets = [0, 64], sizes = [4, 32], strides = [1, 1]} : vector<4x128xf32> to vector<4x32xf32>
    %37 = math.tanh %36 : vector<4x32xf32>
    %38 = vector.extract_strided_slice %21 {offsets = [0, 96], sizes = [4, 32], strides = [1, 1]} : vector<4x128xf32> to vector<4x32xf32>
    %cst_23 = arith.constant 0.000000e+00 : f32
    %39 = vector.broadcast %cst_23 : f32 to vector<4x32xf32>
    %40 = arith.subf %39, %38 : vector<4x32xf32>
    %41 = math.exp %40 : vector<4x32xf32>
    %cst_24 = arith.constant 1.000000e+00 : f32
    %42 = vector.broadcast %cst_24 : f32 to vector<4x32xf32>
    %43 = arith.addf %42, %41 : vector<4x32xf32>
    %44 = tpu.reciprocal %43 {approx = true} : vector<4x32xf32> -> vector<4x32xf32>
    %45 = arith.mulf %35, %10 : vector<4x32xf32>
    %46 = arith.mulf %28, %37 : vector<4x32xf32>
    %47 = arith.addf %45, %46 : vector<4x32xf32>
    %48 = math.tanh %47 : vector<4x32xf32>
    %49 = arith.mulf %44, %48 : vector<4x32xf32>
    %c0_25 = arith.constant 0 : index
    %c0_26 = arith.constant 0 : index
    %c0_27 = arith.constant 0 : index
    %50 = vector.load %arg1[%c0_25, %c0_26, %c0_27] : memref<6x4x32xf32, #tpu.memory_space<vmem>>, vector<1x4x32xf32>
    %51 = vector.shape_cast %50 : vector<1x4x32xf32> to vector<4x32xf32>
    %52 = arith.mulf %51, %49 : vector<4x32xf32>
    %cst_28 = arith.constant 1.000000e+00 : f32
    %53 = vector.broadcast %cst_28 : f32 to vector<4x32xf32>
    %54 = arith.subf %53, %51 : vector<4x32xf32>
    %55 = arith.mulf %54, %9 : vector<4x32xf32>
    %56 = arith.addf %52, %55 : vector<4x32xf32>
    %c0_29 = arith.constant 0 : index
    %c0_30 = arith.constant 0 : index
    %57 = vector.load %arg6[%c0_29, %c0_30] : memref<4x32xf32, #tpu.memory_space<vmem>>, vector<4x32xf32>
    tpu.vector_store %arg6[%c0_29, %c0_30], %56 {strides = array<i32>} : memref<4x32xf32, #tpu.memory_space<vmem>>, vector<4x32xf32>,
    %58 = arith.mulf %51, %47 : vector<4x32xf32>
    %cst_31 = arith.constant 1.000000e+00 : f32
    %59 = vector.broadcast %cst_31 : f32 to vector<4x32xf32>
    %60 = arith.subf %59, %51 : vector<4x32xf32>
    %61 = arith.mulf %60, %10 : vector<4x32xf32>
    %62 = arith.addf %58, %61 : vector<4x32xf32>
    %c0_32 = arith.constant 0 : index
    %c0_33 = arith.constant 0 : index
    %63 = vector.load %arg7[%c0_32, %c0_33] : memref<4x32xf32, #tpu.memory_space<vmem>>, vector<4x32xf32>
    tpu.vector_store %arg7[%c0_32, %c0_33], %62 {strides = array<i32>} : memref<4x32xf32, #tpu.memory_space<vmem>>, vector<4x32xf32>,
    %64 = arith.mulf %51, %49 : vector<4x32xf32>
    %c0_34 = arith.constant 0 : index
    %c0_35 = arith.constant 0 : index
    %c0_36 = arith.constant 0 : index
    %65 = vector.load %arg5[%c0_34, %c0_35, %c0_36] : memref<6x4x32xf32, #tpu.memory_space<vmem>>, vector<1x4x32xf32>
    %66 = vector.shape_cast %65 : vector<1x4x32xf32> to vector<4x32xf32>
    %67 = vector.shape_cast %64 : vector<4x32xf32> to vector<1x4x32xf32>
    tpu.vector_store %arg5[%c0_34, %c0_35, %c0_36], %67 {strides = array<i32>} : memref<6x4x32xf32, #tpu.memory_space<vmem>>, vector<1x4x32xf32>,
    %c0_37 = arith.constant 0 : index
    %c0_38 = arith.constant 0 : index
    %68 = vector.load %arg6[%c0_37, %c0_38] : memref<4x32xf32, #tpu.memory_space<vmem>>, vector<4x32xf32>
    %c0_39 = arith.constant 0 : index
    %c0_40 = arith.constant 0 : index
    %69 = vector.load %arg7[%c0_39, %c0_40] : memref<4x32xf32, #tpu.memory_space<vmem>>, vector<4x32xf32>
    %c1 = arith.constant 1 : index
    %c0_41 = arith.constant 0 : index
    %c0_42 = arith.constant 0 : index
    %70 = vector.load %arg0[%c1, %c0_41, %c0_42] : memref<6x4x64xf32, #tpu.memory_space<vmem>>, vector<1x4x64xf32>
    %71 = vector.shape_cast %70 : vector<1x4x64xf32> to vector<4x64xf32>
    %72 = tpu.concatenate %71, %68 in 1 : vector<4x64xf32>, vector<4x32xf32> -> vector<4x96xf32>
    %cst_43 = arith.constant dense<0.000000e+00> : vector<4x256xf32>
    %73 = tpu.matmul %72, %4, %cst_43 {dimension_numbers = #tpu.dot_dimension_numbers<[1], [0], [0], [1], [0, 0, 1, 1], [], []>} : vector<4x96xf32>, vector<96x256xf32>, vector<4x256xf32> -> vector<4x256xf32>
    %74 = vector.broadcast %5 : vector<1x256xf32> to vector<4x256xf32>
    %75 = arith.addf %73, %74 : vector<4x256xf32>
    %76 = vector.extract_strided_slice %75 {offsets = [0, 0], sizes = [4, 128], strides = [1, 1]} : vector<4x256xf32> to vector<4x128xf32>
    %77 = arith.mulf %6, %76 : vector<4x128xf32>
    %78 = vector.extract_strided_slice %75 {offsets = [0, 128], sizes = [4, 128], strides = [1, 1]} : vector<4x256xf32> to vector<4x128xf32>
    %79 = arith.mulf %8, %78 : vector<4x128xf32>
    %80 = arith.addf %77, %79 : vector<4x128xf32>
    %81 = vector.extract_strided_slice %80 {offsets = [0, 0], sizes = [4, 32], strides = [1, 1]} : vector<4x128xf32> to vector<4x32xf32>
    %cst_44 = arith.constant 0.000000e+00 : f32
    %82 = vector.broadcast %cst_44 : f32 to vector<4x32xf32>
    %83 = arith.subf %82, %81 : vector<4x32xf32>
    %84 = math.exp %83 : vector<4x32xf32>
    %cst_45 = arith.constant 1.000000e+00 : f32
    %85 = vector.broadcast %cst_45 : f32 to vector<4x32xf32>
    %86 = arith.addf %85, %84 : vector<4x32xf32>
    %87 = tpu.reciprocal %86 {approx = true} : vector<4x32xf32> -> vector<4x32xf32>
    %88 = vector.extract_strided_slice %80 {offsets = [0, 32], sizes = [4, 32], strides = [1, 1]} : vector<4x128xf32> to vector<4x32xf32>
    %cst_46 = arith.constant 0.000000e+00 : f32
    %89 = vector.broadcast %cst_46 : f32 to vector<4x32xf32>
    %90 = arith.subf %89, %88 : vector<4x32xf32>
    %91 = math.exp %90 : vector<4x32xf32>
    %cst_47 = arith.constant 1.000000e+00 : f32
    %92 = vector.broadcast %cst_47 : f32 to vector<4x32xf32>
    %93 = arith.addf %92, %91 : vector<4x32xf32>
    %94 = tpu.reciprocal %93 {approx = true} : vector<4x32xf32> -> vector<4x32xf32>
    %95 = vector.extract_strided_slice %80 {offsets = [0, 64], sizes = [4, 32], strides = [1, 1]} : vector<4x128xf32> to vector<4x32xf32>
    %96 = math.tanh %95 : vector<4x32xf32>
    %97 = vector.extract_strided_slice %80 {offsets = [0, 96], sizes = [4, 32], strides = [1, 1]} : vector<4x128xf32> to vector<4x32xf32>
    %cst_48 = arith.constant 0.000000e+00 : f32
    %98 = vector.broadcast %cst_48 : f32 to vector<4x32xf32>
    %99 = arith.subf %98, %97 : vector<4x32xf32>
    %100 = math.exp %99 : vector<4x32xf32>
    %cst_49 = arith.constant 1.000000e+00 : f32
    %101 = vector.broadcast %cst_49 : f32 to vector<4x32xf32>
    %102 = arith.addf %101, %100 : vector<4x32xf32>
    %103 = tpu.reciprocal %102 {approx = true} : vector<4x32xf32> -> vector<4x32xf32>
    %104 = arith.mulf %94, %69 : vector<4x32xf32>
    %105 = arith.mulf %87, %96 : vector<4x32xf32>
    %106 = arith.addf %104, %105 : vector<4x32xf32>
    %107 = math.tanh %106 : vector<4x32xf32>
    %108 = arith.mulf %103, %107 : vector<4x32xf32>
    %c1_50 = arith.constant 1 : index
    %c0_51 = arith.constant 0 : index
    %c0_52 = arith.constant 0 : index
    %109 = vector.load %arg1[%c1_50, %c0_51, %c0_52] : memref<6x4x32xf32, #tpu.memory_space<vmem>>, vector<1x4x32xf32>
    %110 = vector.shape_cast %109 : vector<1x4x32xf32> to vector<4x32xf32>
    %111 = arith.mulf %110, %108 : vector<4x32xf32>
    %cst_53 = arith.constant 1.000000e+00 : f32
    %112 = vector.broadcast %cst_53 : f32 to vector<4x32xf32>
    %113 = arith.subf %112, %110 : vector<4x32xf32>
    %114 = arith.mulf %113, %68 : vector<4x32xf32>
    %115 = arith.addf %111, %114 : vector<4x32xf32>
    %c0_54 = arith.constant 0 : index
    %c0_55 = arith.constant 0 : index
    %116 = vector.load %arg6[%c0_54, %c0_55] : memref<4x32xf32, #tpu.memory_space<vmem>>, vector<4x32xf32>
    tpu.vector_store %arg6[%c0_54, %c0_55], %115 {strides = array<i32>} : memref<4x32xf32, #tpu.memory_space<vmem>>, vector<4x32xf32>,
    %117 = arith.mulf %110, %106 : vector<4x32xf32>
    %cst_56 = arith.constant 1.000000e+00 : f32
    %118 = vector.broadcast %cst_56 : f32 to vector<4x32xf32>
    %119 = arith.subf %118, %110 : vector<4x32xf32>
    %120 = arith.mulf %119, %69 : vector<4x32xf32>
    %121 = arith.addf %117, %120 : vector<4x32xf32>
    %c0_57 = arith.constant 0 : index
    %c0_58 = arith.constant 0 : index
    %122 = vector.load %arg7[%c0_57, %c0_58] : memref<4x32xf32, #tpu.memory_space<vmem>>, vector<4x32xf32>
    tpu.vector_store %arg7[%c0_57, %c0_58], %121 {strides = array<i32>} : memref<4x32xf32, #tpu.memory_space<vmem>>, vector<4x32xf32>,
    %123 = arith.mulf %110, %108 : vector<4x32xf32>
    %c1_59 = arith.constant 1 : index
    %c0_60 = arith.constant 0 : index
    %c0_61 = arith.constant 0 : index
    %124 = vector.load %arg5[%c1_59, %c0_60, %c0_61] : memref<6x4x32xf32, #tpu.memory_space<vmem>>, vector<1x4x32xf32>
    %125 = vector.shape_cast %124 : vector<1x4x32xf32> to vector<4x32xf32>
    %126 = vector.shape_cast %123 : vector<4x32xf32> to vector<1x4x32xf32>
    tpu.vector_store %arg5[%c1_59, %c0_60, %c0_61], %126 {strides = array<i32>} : memref<6x4x32xf32, #tpu.memory_space<vmem>>, vector<1x4x32xf32>,
    %c0_62 = arith.constant 0 : index
    %c0_63 = arith.constant 0 : index
    %127 = vector.load %arg6[%c0_62, %c0_63] : memref<4x32xf32, #tpu.memory_space<vmem>>, vector<4x32xf32>
    %c0_64 = arith.constant 0 : index
    %c0_65 = arith.constant 0 : index
    %128 = vector.load %arg7[%c0_64, %c0_65] : memref<4x32xf32, #tpu.memory_space<vmem>>, vector<4x32xf32>
    %c2 = arith.constant 2 : index
    %c0_66 = arith.constant 0 : index
    %c0_67 = arith.constant 0 : index
    %129 = vector.load %arg0[%c2, %c0_66, %c0_67] : memref<6x4x64xf32, #tpu.memory_space<vmem>>, vector<1x4x64xf32>
    %130 = vector.shape_cast %129 : vector<1x4x64xf32> to vector<4x64xf32>
    %131 = tpu.concatenate %130, %127 in 1 : vector<4x64xf32>, vector<4x32xf32> -> vector<4x96xf32>
    %cst_68 = arith.constant dense<0.000000e+00> : vector<4x256xf32>
    %132 = tpu.matmul %131, %4, %cst_68 {dimension_numbers = #tpu.dot_dimension_numbers<[1], [0], [0], [1], [0, 0, 1, 1], [], []>} : vector<4x96xf32>, vector<96x256xf32>, vector<4x256xf32> -> vector<4x256xf32>
    %133 = vector.broadcast %5 : vector<1x256xf32> to vector<4x256xf32>
    %134 = arith.addf %132, %133 : vector<4x256xf32>
    %135 = vector.extract_strided_slice %134 {offsets = [0, 0], sizes = [4, 128], strides = [1, 1]} : vector<4x256xf32> to vector<4x128xf32>
    %136 = arith.mulf %6, %135 : vector<4x128xf32>
    %137 = vector.extract_strided_slice %134 {offsets = [0, 128], sizes = [4, 128], strides = [1, 1]} : vector<4x256xf32> to vector<4x128xf32>
    %138 = arith.mulf %8, %137 : vector<4x128xf32>
    %139 = arith.addf %136, %138 : vector<4x128xf32>
    %140 = vector.extract_strided_slice %139 {offsets = [0, 0], sizes = [4, 32], strides = [1, 1]} : vector<4x128xf32> to vector<4x32xf32>
    %cst_69 = arith.constant 0.000000e+00 : f32
    %141 = vector.broadcast %cst_69 : f32 to vector<4x32xf32>
    %142 = arith.subf %141, %140 : vector<4x32xf32>
    %143 = math.exp %142 : vector<4x32xf32>
    %cst_70 = arith.constant 1.000000e+00 : f32
    %144 = vector.broadcast %cst_70 : f32 to vector<4x32xf32>
    %145 = arith.addf %144, %143 : vector<4x32xf32>
    %146 = tpu.reciprocal %145 {approx = true} : vector<4x32xf32> -> vector<4x32xf32>
    %147 = vector.extract_strided_slice %139 {offsets = [0, 32], sizes = [4, 32], strides = [1, 1]} : vector<4x128xf32> to vector<4x32xf32>
    %cst_71 = arith.constant 0.000000e+00 : f32
    %148 = vector.broadcast %cst_71 : f32 to vector<4x32xf32>
    %149 = arith.subf %148, %147 : vector<4x32xf32>
    %150 = math.exp %149 : vector<4x32xf32>
    %cst_72 = arith.constant 1.000000e+00 : f32
    %151 = vector.broadcast %cst_72 : f32 to vector<4x32xf32>
    %152 = arith.addf %151, %150 : vector<4x32xf32>
    %153 = tpu.reciprocal %152 {approx = true} : vector<4x32xf32> -> vector<4x32xf32>
    %154 = vector.extract_strided_slice %139 {offsets = [0, 64], sizes = [4, 32], strides = [1, 1]} : vector<4x128xf32> to vector<4x32xf32>
    %155 = math.tanh %154 : vector<4x32xf32>
    %156 = vector.extract_strided_slice %139 {offsets = [0, 96], sizes = [4, 32], strides = [1, 1]} : vector<4x128xf32> to vector<4x32xf32>
    %cst_73 = arith.constant 0.000000e+00 : f32
    %157 = vector.broadcast %cst_73 : f32 to vector<4x32xf32>
    %158 = arith.subf %157, %156 : vector<4x32xf32>
    %159 = math.exp %158 : vector<4x32xf32>
    %cst_74 = arith.constant 1.000000e+00 : f32
    %160 = vector.broadcast %cst_74 : f32 to vector<4x32xf32>
    %161 = arith.addf %160, %159 : vector<4x32xf32>
    %162 = tpu.reciprocal %161 {approx = true} : vector<4x32xf32> -> vector<4x32xf32>
    %163 = arith.mulf %153, %128 : vector<4x32xf32>
    %164 = arith.mulf %146, %155 : vector<4x32xf32>
    %165 = arith.addf %163, %164 : vector<4x32xf32>
    %166 = math.tanh %165 : vector<4x32xf32>
    %167 = arith.mulf %162, %166 : vector<4x32xf32>
    %c2_75 = arith.constant 2 : index
    %c0_76 = arith.constant 0 : index
    %c0_77 = arith.constant 0 : index
    %168 = vector.load %arg1[%c2_75, %c0_76, %c0_77] : memref<6x4x32xf32, #tpu.memory_space<vmem>>, vector<1x4x32xf32>
    %169 = vector.shape_cast %168 : vector<1x4x32xf32> to vector<4x32xf32>
    %170 = arith.mulf %169, %167 : vector<4x32xf32>
    %cst_78 = arith.constant 1.000000e+00 : f32
    %171 = vector.broadcast %cst_78 : f32 to vector<4x32xf32>
    %172 = arith.subf %171, %169 : vector<4x32xf32>
    %173 = arith.mulf %172, %127 : vector<4x32xf32>
    %174 = arith.addf %170, %173 : vector<4x32xf32>
    %c0_79 = arith.constant 0 : index
    %c0_80 = arith.constant 0 : index
    %175 = vector.load %arg6[%c0_79, %c0_80] : memref<4x32xf32, #tpu.memory_space<vmem>>, vector<4x32xf32>
    tpu.vector_store %arg6[%c0_79, %c0_80], %174 {strides = array<i32>} : memref<4x32xf32, #tpu.memory_space<vmem>>, vector<4x32xf32>,
    %176 = arith.mulf %169, %165 : vector<4x32xf32>
    %cst_81 = arith.constant 1.000000e+00 : f32
    %177 = vector.broadcast %cst_81 : f32 to vector<4x32xf32>
    %178 = arith.subf %177, %169 : vector<4x32xf32>
    %179 = arith.mulf %178, %128 : vector<4x32xf32>
    %180 = arith.addf %176, %179 : vector<4x32xf32>
    %c0_82 = arith.constant 0 : index
    %c0_83 = arith.constant 0 : index
    %181 = vector.load %arg7[%c0_82, %c0_83] : memref<4x32xf32, #tpu.memory_space<vmem>>, vector<4x32xf32>
    tpu.vector_store %arg7[%c0_82, %c0_83], %180 {strides = array<i32>} : memref<4x32xf32, #tpu.memory_space<vmem>>, vector<4x32xf32>,
    %182 = arith.mulf %169, %167 : vector<4x32xf32>
    %c2_84 = arith.constant 2 : index
    %c0_85 = arith.constant 0 : index
    %c0_86 = arith.constant 0 : index
    %183 = vector.load %arg5[%c2_84, %c0_85, %c0_86] : memref<6x4x32xf32, #tpu.memory_space<vmem>>, vector<1x4x32xf32>
    %184 = vector.shape_cast %183 : vector<1x4x32xf32> to vector<4x32xf32>
    %185 = vector.shape_cast %182 : vector<4x32xf32> to vector<1x4x32xf32>
    tpu.vector_store %arg5[%c2_84, %c0_85, %c0_86], %185 {strides = array<i32>} : memref<6x4x32xf32, #tpu.memory_space<vmem>>, vector<1x4x32xf32>,
    %c0_87 = arith.constant 0 : index
    %c0_88 = arith.constant 0 : index
    %186 = vector.load %arg6[%c0_87, %c0_88] : memref<4x32xf32, #tpu.memory_space<vmem>>, vector<4x32xf32>
    %c0_89 = arith.constant 0 : index
    %c0_90 = arith.constant 0 : index
    %187 = vector.load %arg7[%c0_89, %c0_90] : memref<4x32xf32, #tpu.memory_space<vmem>>, vector<4x32xf32>
    %c3 = arith.constant 3 : index
    %c0_91 = arith.constant 0 : index
    %c0_92 = arith.constant 0 : index
    %188 = vector.load %arg0[%c3, %c0_91, %c0_92] : memref<6x4x64xf32, #tpu.memory_space<vmem>>, vector<1x4x64xf32>
    %189 = vector.shape_cast %188 : vector<1x4x64xf32> to vector<4x64xf32>
    %190 = tpu.concatenate %189, %186 in 1 : vector<4x64xf32>, vector<4x32xf32> -> vector<4x96xf32>
    %cst_93 = arith.constant dense<0.000000e+00> : vector<4x256xf32>
    %191 = tpu.matmul %190, %4, %cst_93 {dimension_numbers = #tpu.dot_dimension_numbers<[1], [0], [0], [1], [0, 0, 1, 1], [], []>} : vector<4x96xf32>, vector<96x256xf32>, vector<4x256xf32> -> vector<4x256xf32>
    %192 = vector.broadcast %5 : vector<1x256xf32> to vector<4x256xf32>
    %193 = arith.addf %191, %192 : vector<4x256xf32>
    %194 = vector.extract_strided_slice %193 {offsets = [0, 0], sizes = [4, 128], strides = [1, 1]} : vector<4x256xf32> to vector<4x128xf32>
    %195 = arith.mulf %6, %194 : vector<4x128xf32>
    %196 = vector.extract_strided_slice %193 {offsets = [0, 128], sizes = [4, 128], strides = [1, 1]} : vector<4x256xf32> to vector<4x128xf32>
    %197 = arith.mulf %8, %196 : vector<4x128xf32>
    %198 = arith.addf %195, %197 : vector<4x128xf32>
    %199 = vector.extract_strided_slice %198 {offsets = [0, 0], sizes = [4, 32], strides = [1, 1]} : vector<4x128xf32> to vector<4x32xf32>
    %cst_94 = arith.constant 0.000000e+00 : f32
    %200 = vector.broadcast %cst_94 : f32 to vector<4x32xf32>
    %201 = arith.subf %200, %199 : vector<4x32xf32>
    %202 = math.exp %201 : vector<4x32xf32>
    %cst_95 = arith.constant 1.000000e+00 : f32
    %203 = vector.broadcast %cst_95 : f32 to vector<4x32xf32>
    %204 = arith.addf %203, %202 : vector<4x32xf32>
    %205 = tpu.reciprocal %204 {approx = true} : vector<4x32xf32> -> vector<4x32xf32>
    %206 = vector.extract_strided_slice %198 {offsets = [0, 32], sizes = [4, 32], strides = [1, 1]} : vector<4x128xf32> to vector<4x32xf32>
    %cst_96 = arith.constant 0.000000e+00 : f32
    %207 = vector.broadcast %cst_96 : f32 to vector<4x32xf32>
    %208 = arith.subf %207, %206 : vector<4x32xf32>
    %209 = math.exp %208 : vector<4x32xf32>
    %cst_97 = arith.constant 1.000000e+00 : f32
    %210 = vector.broadcast %cst_97 : f32 to vector<4x32xf32>
    %211 = arith.addf %210, %209 : vector<4x32xf32>
    %212 = tpu.reciprocal %211 {approx = true} : vector<4x32xf32> -> vector<4x32xf32>
    %213 = vector.extract_strided_slice %198 {offsets = [0, 64], sizes = [4, 32], strides = [1, 1]} : vector<4x128xf32> to vector<4x32xf32>
    %214 = math.tanh %213 : vector<4x32xf32>
    %215 = vector.extract_strided_slice %198 {offsets = [0, 96], sizes = [4, 32], strides = [1, 1]} : vector<4x128xf32> to vector<4x32xf32>
    %cst_98 = arith.constant 0.000000e+00 : f32
    %216 = vector.broadcast %cst_98 : f32 to vector<4x32xf32>
    %217 = arith.subf %216, %215 : vector<4x32xf32>
    %218 = math.exp %217 : vector<4x32xf32>
    %cst_99 = arith.constant 1.000000e+00 : f32
    %219 = vector.broadcast %cst_99 : f32 to vector<4x32xf32>
    %220 = arith.addf %219, %218 : vector<4x32xf32>
    %221 = tpu.reciprocal %220 {approx = true} : vector<4x32xf32> -> vector<4x32xf32>
    %222 = arith.mulf %212, %187 : vector<4x32xf32>
    %223 = arith.mulf %205, %214 : vector<4x32xf32>
    %224 = arith.addf %222, %223 : vector<4x32xf32>
    %225 = math.tanh %224 : vector<4x32xf32>
    %226 = arith.mulf %221, %225 : vector<4x32xf32>
    %c3_100 = arith.constant 3 : index
    %c0_101 = arith.constant 0 : index
    %c0_102 = arith.constant 0 : index
    %227 = vector.load %arg1[%c3_100, %c0_101, %c0_102] : memref<6x4x32xf32, #tpu.memory_space<vmem>>, vector<1x4x32xf32>
    %228 = vector.shape_cast %227 : vector<1x4x32xf32> to vector<4x32xf32>
    %229 = arith.mulf %228, %226 : vector<4x32xf32>
    %cst_103 = arith.constant 1.000000e+00 : f32
    %230 = vector.broadcast %cst_103 : f32 to vector<4x32xf32>
    %231 = arith.subf %230, %228 : vector<4x32xf32>
    %232 = arith.mulf %231, %186 : vector<4x32xf32>
    %233 = arith.addf %229, %232 : vector<4x32xf32>
    %c0_104 = arith.constant 0 : index
    %c0_105 = arith.constant 0 : index
    %234 = vector.load %arg6[%c0_104, %c0_105] : memref<4x32xf32, #tpu.memory_space<vmem>>, vector<4x32xf32>
    tpu.vector_store %arg6[%c0_104, %c0_105], %233 {strides = array<i32>} : memref<4x32xf32, #tpu.memory_space<vmem>>, vector<4x32xf32>,
    %235 = arith.mulf %228, %224 : vector<4x32xf32>
    %cst_106 = arith.constant 1.000000e+00 : f32
    %236 = vector.broadcast %cst_106 : f32 to vector<4x32xf32>
    %237 = arith.subf %236, %228 : vector<4x32xf32>
    %238 = arith.mulf %237, %187 : vector<4x32xf32>
    %239 = arith.addf %235, %238 : vector<4x32xf32>
    %c0_107 = arith.constant 0 : index
    %c0_108 = arith.constant 0 : index
    %240 = vector.load %arg7[%c0_107, %c0_108] : memref<4x32xf32, #tpu.memory_space<vmem>>, vector<4x32xf32>
    tpu.vector_store %arg7[%c0_107, %c0_108], %239 {strides = array<i32>} : memref<4x32xf32, #tpu.memory_space<vmem>>, vector<4x32xf32>,
    %241 = arith.mulf %228, %226 : vector<4x32xf32>
    %c3_109 = arith.constant 3 : index
    %c0_110 = arith.constant 0 : index
    %c0_111 = arith.constant 0 : index
    %242 = vector.load %arg5[%c3_109, %c0_110, %c0_111] : memref<6x4x32xf32, #tpu.memory_space<vmem>>, vector<1x4x32xf32>
    %243 = vector.shape_cast %242 : vector<1x4x32xf32> to vector<4x32xf32>
    %244 = vector.shape_cast %241 : vector<4x32xf32> to vector<1x4x32xf32>
    tpu.vector_store %arg5[%c3_109, %c0_110, %c0_111], %244 {strides = array<i32>} : memref<6x4x32xf32, #tpu.memory_space<vmem>>, vector<1x4x32xf32>,
    %c0_112 = arith.constant 0 : index
    %c0_113 = arith.constant 0 : index
    %245 = vector.load %arg6[%c0_112, %c0_113] : memref<4x32xf32, #tpu.memory_space<vmem>>, vector<4x32xf32>
    %c0_114 = arith.constant 0 : index
    %c0_115 = arith.constant 0 : index
    %246 = vector.load %arg7[%c0_114, %c0_115] : memref<4x32xf32, #tpu.memory_space<vmem>>, vector<4x32xf32>
    %c4 = arith.constant 4 : index
    %c0_116 = arith.constant 0 : index
    %c0_117 = arith.constant 0 : index
    %247 = vector.load %arg0[%c4, %c0_116, %c0_117] : memref<6x4x64xf32, #tpu.memory_space<vmem>>, vector<1x4x64xf32>
    %248 = vector.shape_cast %247 : vector<1x4x64xf32> to vector<4x64xf32>
    %249 = tpu.concatenate %248, %245 in 1 : vector<4x64xf32>, vector<4x32xf32> -> vector<4x96xf32>
    %cst_118 = arith.constant dense<0.000000e+00> : vector<4x256xf32>
    %250 = tpu.matmul %249, %4, %cst_118 {dimension_numbers = #tpu.dot_dimension_numbers<[1], [0], [0], [1], [0, 0, 1, 1], [], []>} : vector<4x96xf32>, vector<96x256xf32>, vector<4x256xf32> -> vector<4x256xf32>
    %251 = vector.broadcast %5 : vector<1x256xf32> to vector<4x256xf32>
    %252 = arith.addf %250, %251 : vector<4x256xf32>
    %253 = vector.extract_strided_slice %252 {offsets = [0, 0], sizes = [4, 128], strides = [1, 1]} : vector<4x256xf32> to vector<4x128xf32>
    %254 = arith.mulf %6, %253 : vector<4x128xf32>
    %255 = vector.extract_strided_slice %252 {offsets = [0, 128], sizes = [4, 128], strides = [1, 1]} : vector<4x256xf32> to vector<4x128xf32>
    %256 = arith.mulf %8, %255 : vector<4x128xf32>
    %257 = arith.addf %254, %256 : vector<4x128xf32>
    %258 = vector.extract_strided_slice %257 {offsets = [0, 0], sizes = [4, 32], strides = [1, 1]} : vector<4x128xf32> to vector<4x32xf32>
    %cst_119 = arith.constant 0.000000e+00 : f32
    %259 = vector.broadcast %cst_119 : f32 to vector<4x32xf32>
    %260 = arith.subf %259, %258 : vector<4x32xf32>
    %261 = math.exp %260 : vector<4x32xf32>
    %cst_120 = arith.constant 1.000000e+00 : f32
    %262 = vector.broadcast %cst_120 : f32 to vector<4x32xf32>
    %263 = arith.addf %262, %261 : vector<4x32xf32>
    %264 = tpu.reciprocal %263 {approx = true} : vector<4x32xf32> -> vector<4x32xf32>
    %265 = vector.extract_strided_slice %257 {offsets = [0, 32], sizes = [4, 32], strides = [1, 1]} : vector<4x128xf32> to vector<4x32xf32>
    %cst_121 = arith.constant 0.000000e+00 : f32
    %266 = vector.broadcast %cst_121 : f32 to vector<4x32xf32>
    %267 = arith.subf %266, %265 : vector<4x32xf32>
    %268 = math.exp %267 : vector<4x32xf32>
    %cst_122 = arith.constant 1.000000e+00 : f32
    %269 = vector.broadcast %cst_122 : f32 to vector<4x32xf32>
    %270 = arith.addf %269, %268 : vector<4x32xf32>
    %271 = tpu.reciprocal %270 {approx = true} : vector<4x32xf32> -> vector<4x32xf32>
    %272 = vector.extract_strided_slice %257 {offsets = [0, 64], sizes = [4, 32], strides = [1, 1]} : vector<4x128xf32> to vector<4x32xf32>
    %273 = math.tanh %272 : vector<4x32xf32>
    %274 = vector.extract_strided_slice %257 {offsets = [0, 96], sizes = [4, 32], strides = [1, 1]} : vector<4x128xf32> to vector<4x32xf32>
    %cst_123 = arith.constant 0.000000e+00 : f32
    %275 = vector.broadcast %cst_123 : f32 to vector<4x32xf32>
    %276 = arith.subf %275, %274 : vector<4x32xf32>
    %277 = math.exp %276 : vector<4x32xf32>
    %cst_124 = arith.constant 1.000000e+00 : f32
    %278 = vector.broadcast %cst_124 : f32 to vector<4x32xf32>
    %279 = arith.addf %278, %277 : vector<4x32xf32>
    %280 = tpu.reciprocal %279 {approx = true} : vector<4x32xf32> -> vector<4x32xf32>
    %281 = arith.mulf %271, %246 : vector<4x32xf32>
    %282 = arith.mulf %264, %273 : vector<4x32xf32>
    %283 = arith.addf %281, %282 : vector<4x32xf32>
    %284 = math.tanh %283 : vector<4x32xf32>
    %285 = arith.mulf %280, %284 : vector<4x32xf32>
    %c4_125 = arith.constant 4 : index
    %c0_126 = arith.constant 0 : index
    %c0_127 = arith.constant 0 : index
    %286 = vector.load %arg1[%c4_125, %c0_126, %c0_127] : memref<6x4x32xf32, #tpu.memory_space<vmem>>, vector<1x4x32xf32>
    %287 = vector.shape_cast %286 : vector<1x4x32xf32> to vector<4x32xf32>
    %288 = arith.mulf %287, %285 : vector<4x32xf32>
    %cst_128 = arith.constant 1.000000e+00 : f32
    %289 = vector.broadcast %cst_128 : f32 to vector<4x32xf32>
    %290 = arith.subf %289, %287 : vector<4x32xf32>
    %291 = arith.mulf %290, %245 : vector<4x32xf32>
    %292 = arith.addf %288, %291 : vector<4x32xf32>
    %c0_129 = arith.constant 0 : index
    %c0_130 = arith.constant 0 : index
    %293 = vector.load %arg6[%c0_129, %c0_130] : memref<4x32xf32, #tpu.memory_space<vmem>>, vector<4x32xf32>
    tpu.vector_store %arg6[%c0_129, %c0_130], %292 {strides = array<i32>} : memref<4x32xf32, #tpu.memory_space<vmem>>, vector<4x32xf32>,
    %294 = arith.mulf %287, %283 : vector<4x32xf32>
    %cst_131 = arith.constant 1.000000e+00 : f32
    %295 = vector.broadcast %cst_131 : f32 to vector<4x32xf32>
    %296 = arith.subf %295, %287 : vector<4x32xf32>
    %297 = arith.mulf %296, %246 : vector<4x32xf32>
    %298 = arith.addf %294, %297 : vector<4x32xf32>
    %c0_132 = arith.constant 0 : index
    %c0_133 = arith.constant 0 : index
    %299 = vector.load %arg7[%c0_132, %c0_133] : memref<4x32xf32, #tpu.memory_space<vmem>>, vector<4x32xf32>
    tpu.vector_store %arg7[%c0_132, %c0_133], %298 {strides = array<i32>} : memref<4x32xf32, #tpu.memory_space<vmem>>, vector<4x32xf32>,
    %300 = arith.mulf %287, %285 : vector<4x32xf32>
    %c4_134 = arith.constant 4 : index
    %c0_135 = arith.constant 0 : index
    %c0_136 = arith.constant 0 : index
    %301 = vector.load %arg5[%c4_134, %c0_135, %c0_136] : memref<6x4x32xf32, #tpu.memory_space<vmem>>, vector<1x4x32xf32>
    %302 = vector.shape_cast %301 : vector<1x4x32xf32> to vector<4x32xf32>
    %303 = vector.shape_cast %300 : vector<4x32xf32> to vector<1x4x32xf32>
    tpu.vector_store %arg5[%c4_134, %c0_135, %c0_136], %303 {strides = array<i32>} : memref<6x4x32xf32, #tpu.memory_space<vmem>>, vector<1x4x32xf32>,
    %c0_137 = arith.constant 0 : index
    %c0_138 = arith.constant 0 : index
    %304 = vector.load %arg6[%c0_137, %c0_138] : memref<4x32xf32, #tpu.memory_space<vmem>>, vector<4x32xf32>
    %c0_139 = arith.constant 0 : index
    %c0_140 = arith.constant 0 : index
    %305 = vector.load %arg7[%c0_139, %c0_140] : memref<4x32xf32, #tpu.memory_space<vmem>>, vector<4x32xf32>
    %c5 = arith.constant 5 : index
    %c0_141 = arith.constant 0 : index
    %c0_142 = arith.constant 0 : index
    %306 = vector.load %arg0[%c5, %c0_141, %c0_142] : memref<6x4x64xf32, #tpu.memory_space<vmem>>, vector<1x4x64xf32>
    %307 = vector.shape_cast %306 : vector<1x4x64xf32> to vector<4x64xf32>
    %308 = tpu.concatenate %307, %304 in 1 : vector<4x64xf32>, vector<4x32xf32> -> vector<4x96xf32>
    %cst_143 = arith.constant dense<0.000000e+00> : vector<4x256xf32>
    %309 = tpu.matmul %308, %4, %cst_143 {dimension_numbers = #tpu.dot_dimension_numbers<[1], [0], [0], [1], [0, 0, 1, 1], [], []>} : vector<4x96xf32>, vector<96x256xf32>, vector<4x256xf32> -> vector<4x256xf32>
    %310 = vector.broadcast %5 : vector<1x256xf32> to vector<4x256xf32>
    %311 = arith.addf %309, %310 : vector<4x256xf32>
    %312 = vector.extract_strided_slice %311 {offsets = [0, 0], sizes = [4, 128], strides = [1, 1]} : vector<4x256xf32> to vector<4x128xf32>
    %313 = arith.mulf %6, %312 : vector<4x128xf32>
    %314 = vector.extract_strided_slice %311 {offsets = [0, 128], sizes = [4, 128], strides = [1, 1]} : vector<4x256xf32> to vector<4x128xf32>
    %315 = arith.mulf %8, %314 : vector<4x128xf32>
    %316 = arith.addf %313, %315 : vector<4x128xf32>
    %317 = vector.extract_strided_slice %316 {offsets = [0, 0], sizes = [4, 32], strides = [1, 1]} : vector<4x128xf32> to vector<4x32xf32>
    %cst_144 = arith.constant 0.000000e+00 : f32
    %318 = vector.broadcast %cst_144 : f32 to vector<4x32xf32>
    %319 = arith.subf %318, %317 : vector<4x32xf32>
    %320 = math.exp %319 : vector<4x32xf32>
    %cst_145 = arith.constant 1.000000e+00 : f32
    %321 = vector.broadcast %cst_145 : f32 to vector<4x32xf32>
    %322 = arith.addf %321, %320 : vector<4x32xf32>
    %323 = tpu.reciprocal %322 {approx = true} : vector<4x32xf32> -> vector<4x32xf32>
    %324 = vector.extract_strided_slice %316 {offsets = [0, 32], sizes = [4, 32], strides = [1, 1]} : vector<4x128xf32> to vector<4x32xf32>
    %cst_146 = arith.constant 0.000000e+00 : f32
    %325 = vector.broadcast %cst_146 : f32 to vector<4x32xf32>
    %326 = arith.subf %325, %324 : vector<4x32xf32>
    %327 = math.exp %326 : vector<4x32xf32>
    %cst_147 = arith.constant 1.000000e+00 : f32
    %328 = vector.broadcast %cst_147 : f32 to vector<4x32xf32>
    %329 = arith.addf %328, %327 : vector<4x32xf32>
    %330 = tpu.reciprocal %329 {approx = true} : vector<4x32xf32> -> vector<4x32xf32>
    %331 = vector.extract_strided_slice %316 {offsets = [0, 64], sizes = [4, 32], strides = [1, 1]} : vector<4x128xf32> to vector<4x32xf32>
    %332 = math.tanh %331 : vector<4x32xf32>
    %333 = vector.extract_strided_slice %316 {offsets = [0, 96], sizes = [4, 32], strides = [1, 1]} : vector<4x128xf32> to vector<4x32xf32>
    %cst_148 = arith.constant 0.000000e+00 : f32
    %334 = vector.broadcast %cst_148 : f32 to vector<4x32xf32>
    %335 = arith.subf %334, %333 : vector<4x32xf32>
    %336 = math.exp %335 : vector<4x32xf32>
    %cst_149 = arith.constant 1.000000e+00 : f32
    %337 = vector.broadcast %cst_149 : f32 to vector<4x32xf32>
    %338 = arith.addf %337, %336 : vector<4x32xf32>
    %339 = tpu.reciprocal %338 {approx = true} : vector<4x32xf32> -> vector<4x32xf32>
    %340 = arith.mulf %330, %305 : vector<4x32xf32>
    %341 = arith.mulf %323, %332 : vector<4x32xf32>
    %342 = arith.addf %340, %341 : vector<4x32xf32>
    %343 = math.tanh %342 : vector<4x32xf32>
    %344 = arith.mulf %339, %343 : vector<4x32xf32>
    %c5_150 = arith.constant 5 : index
    %c0_151 = arith.constant 0 : index
    %c0_152 = arith.constant 0 : index
    %345 = vector.load %arg1[%c5_150, %c0_151, %c0_152] : memref<6x4x32xf32, #tpu.memory_space<vmem>>, vector<1x4x32xf32>
    %346 = vector.shape_cast %345 : vector<1x4x32xf32> to vector<4x32xf32>
    %347 = arith.mulf %346, %344 : vector<4x32xf32>
    %cst_153 = arith.constant 1.000000e+00 : f32
    %348 = vector.broadcast %cst_153 : f32 to vector<4x32xf32>
    %349 = arith.subf %348, %346 : vector<4x32xf32>
    %350 = arith.mulf %349, %304 : vector<4x32xf32>
    %351 = arith.addf %347, %350 : vector<4x32xf32>
    %c0_154 = arith.constant 0 : index
    %c0_155 = arith.constant 0 : index
    %352 = vector.load %arg6[%c0_154, %c0_155] : memref<4x32xf32, #tpu.memory_space<vmem>>, vector<4x32xf32>
    tpu.vector_store %arg6[%c0_154, %c0_155], %351 {strides = array<i32>} : memref<4x32xf32, #tpu.memory_space<vmem>>, vector<4x32xf32>,
    %353 = arith.mulf %346, %342 : vector<4x32xf32>
    %cst_156 = arith.constant 1.000000e+00 : f32
    %354 = vector.broadcast %cst_156 : f32 to vector<4x32xf32>
    %355 = arith.subf %354, %346 : vector<4x32xf32>
    %356 = arith.mulf %355, %305 : vector<4x32xf32>
    %357 = arith.addf %353, %356 : vector<4x32xf32>
    %c0_157 = arith.constant 0 : index
    %c0_158 = arith.constant 0 : index
    %358 = vector.load %arg7[%c0_157, %c0_158] : memref<4x32xf32, #tpu.memory_space<vmem>>, vector<4x32xf32>
    tpu.vector_store %arg7[%c0_157, %c0_158], %357 {strides = array<i32>} : memref<4x32xf32, #tpu.memory_space<vmem>>, vector<4x32xf32>,
    %359 = arith.mulf %346, %344 : vector<4x32xf32>
    %c5_159 = arith.constant 5 : index
    %c0_160 = arith.constant 0 : index
    %c0_161 = arith.constant 0 : index
    %360 = vector.load %arg5[%c5_159, %c0_160, %c0_161] : memref<6x4x32xf32, #tpu.memory_space<vmem>>, vector<1x4x32xf32>
    %361 = vector.shape_cast %360 : vector<1x4x32xf32> to vector<4x32xf32>
    %362 = vector.shape_cast %359 : vector<4x32xf32> to vector<1x4x32xf32>
    tpu.vector_store %arg5[%c5_159, %c0_160, %c0_161], %362 {strides = array<i32>} : memref<6x4x32xf32, #tpu.memory_space<vmem>>, vector<1x4x32xf32>,
    return
  }
}

module attributes {stable_mosaic.version = 11 : i64} {
  func.func @kernel(%arg0: memref<6x2x32xf32, #tpu.memory_space<vmem>>, %arg1: memref<2x64xf32, #tpu.memory_space<vmem>>, %arg2: memref<128x32xf32, #tpu.memory_space<vmem>>, %arg3: memref<6x2x128xf32, #tpu.memory_space<vmem>>, %arg4: memref<64x192xf32, #tpu.memory_space<vmem>>, %arg5: memref<64x192xf32, #tpu.memory_space<vmem>>, %arg6: memref<1x192xf32, #tpu.memory_space<vmem>>, %arg7: memref<1x192xf32, #tpu.memory_space<vmem>>, %arg8: memref<64x128xf32, #tpu.memory_space<vmem>>, %arg9: memref<1x128xf32, #tpu.memory_space<vmem>>, %arg10: memref<6x2x128xf32, #tpu.memory_space<vmem>>, %arg11: memref<2x64xf32, #tpu.memory_space<vmem>>, %arg12: memref<2x32xf32, #tpu.memory_space<vmem>>) attributes {dimension_semantics = [], scalar_prefetch = 0 : i64, scratch_operands = 2 : i64, tpu.core_type = #tpu.core_type<tc>} {
    %c0 = arith.constant 0 : index
    %c0_0 = arith.constant 0 : index
    %0 = vector.load %arg1[%c0, %c0_0] : memref<2x64xf32, #tpu.memory_space<vmem>>, vector<2x64xf32>
    %c0_1 = arith.constant 0 : index
    %c0_2 = arith.constant 0 : index
    %1 = vector.load %arg11[%c0_1, %c0_2] : memref<2x64xf32, #tpu.memory_space<vmem>>, vector<2x64xf32>
    tpu.vector_store %arg11[%c0_1, %c0_2], %0 {strides = array<i32>} : memref<2x64xf32, #tpu.memory_space<vmem>>, vector<2x64xf32>,
    %c0_3 = arith.constant 0 : index
    %c0_4 = arith.constant 0 : index
    %2 = vector.load %arg2[%c0_3, %c0_4] : memref<128x32xf32, #tpu.memory_space<vmem>>, vector<1x32xf32>
    %3 = vector.shape_cast %2 : vector<1x32xf32> to vector<1x32xf32>
    %4 = vector.broadcast %3 : vector<1x32xf32> to vector<2x32xf32>
    %c0_5 = arith.constant 0 : index
    %c0_6 = arith.constant 0 : index
    %5 = vector.load %arg12[%c0_5, %c0_6] : memref<2x32xf32, #tpu.memory_space<vmem>>, vector<2x32xf32>
    tpu.vector_store %arg12[%c0_5, %c0_6], %4 {strides = array<i32>} : memref<2x32xf32, #tpu.memory_space<vmem>>, vector<2x32xf32>,
    %c0_7 = arith.constant 0 : index
    %c0_8 = arith.constant 0 : index
    %6 = vector.load %arg4[%c0_7, %c0_8] : memref<64x192xf32, #tpu.memory_space<vmem>>, vector<64x192xf32>
    %c0_9 = arith.constant 0 : index
    %c0_10 = arith.constant 0 : index
    %7 = vector.load %arg5[%c0_9, %c0_10] : memref<64x192xf32, #tpu.memory_space<vmem>>, vector<64x192xf32>
    %c0_11 = arith.constant 0 : index
    %c0_12 = arith.constant 0 : index
    %8 = vector.load %arg6[%c0_11, %c0_12] : memref<1x192xf32, #tpu.memory_space<vmem>>, vector<1x192xf32>
    %c0_13 = arith.constant 0 : index
    %c0_14 = arith.constant 0 : index
    %9 = vector.load %arg7[%c0_13, %c0_14] : memref<1x192xf32, #tpu.memory_space<vmem>>, vector<1x192xf32>
    %c0_15 = arith.constant 0 : index
    %c0_16 = arith.constant 0 : index
    %10 = vector.load %arg8[%c0_15, %c0_16] : memref<64x128xf32, #tpu.memory_space<vmem>>, vector<64x128xf32>
    %c0_17 = arith.constant 0 : index
    %c0_18 = arith.constant 0 : index
    %11 = vector.load %arg9[%c0_17, %c0_18] : memref<1x128xf32, #tpu.memory_space<vmem>>, vector<1x128xf32>
    %c0_19 = arith.constant 0 : index
    %c0_20 = arith.constant 0 : index
    %12 = vector.load %arg2[%c0_19, %c0_20] : memref<128x32xf32, #tpu.memory_space<vmem>>, vector<128x32xf32>
    %c0_21 = arith.constant 0 : index
    %c0_22 = arith.constant 0 : index
    %13 = vector.load %arg12[%c0_21, %c0_22] : memref<2x32xf32, #tpu.memory_space<vmem>>, vector<2x32xf32>
    %c0_23 = arith.constant 0 : index
    %c0_24 = arith.constant 0 : index
    %c0_25 = arith.constant 0 : index
    %14 = vector.load %arg0[%c0_23, %c0_24, %c0_25] : memref<6x2x32xf32, #tpu.memory_space<vmem>>, vector<1x2x32xf32>
    %15 = vector.shape_cast %14 : vector<1x2x32xf32> to vector<2x32xf32>
    %16 = tpu.concatenate %13, %15 in 1 : vector<2x32xf32>, vector<2x32xf32> -> vector<2x64xf32>
    %c0_26 = arith.constant 0 : index
    %c0_27 = arith.constant 0 : index
    %17 = vector.load %arg11[%c0_26, %c0_27] : memref<2x64xf32, #tpu.memory_space<vmem>>, vector<2x64xf32>
    %cst = arith.constant dense<0.000000e+00> : vector<2x192xf32>
    %18 = tpu.matmul %16, %6, %cst {dimension_numbers = #tpu.dot_dimension_numbers<[1], [0], [0], [1], [0, 0, 1, 1], [], []>} : vector<2x64xf32>, vector<64x192xf32>, vector<2x192xf32> -> vector<2x192xf32>
    %19 = vector.broadcast %8 : vector<1x192xf32> to vector<2x192xf32>
    %20 = arith.addf %18, %19 : vector<2x192xf32>
    %cst_28 = arith.constant dense<0.000000e+00> : vector<2x192xf32>
    %21 = tpu.matmul %17, %7, %cst_28 {dimension_numbers = #tpu.dot_dimension_numbers<[1], [0], [0], [1], [0, 0, 1, 1], [], []>} : vector<2x64xf32>, vector<64x192xf32>, vector<2x192xf32> -> vector<2x192xf32>
    %22 = vector.broadcast %9 : vector<1x192xf32> to vector<2x192xf32>
    %23 = arith.addf %21, %22 : vector<2x192xf32>
    %24 = vector.extract_strided_slice %20 {offsets = [0, 0], sizes = [2, 64], strides = [1, 1]} : vector<2x192xf32> to vector<2x64xf32>
    %25 = vector.extract_strided_slice %23 {offsets = [0, 0], sizes = [2, 64], strides = [1, 1]} : vector<2x192xf32> to vector<2x64xf32>
    %26 = arith.addf %24, %25 : vector<2x64xf32>
    %cst_29 = arith.constant 0.000000e+00 : f32
    %27 = vector.broadcast %cst_29 : f32 to vector<2x64xf32>
    %28 = arith.subf %27, %26 : vector<2x64xf32>
    %29 = math.exp %28 : vector<2x64xf32>
    %cst_30 = arith.constant 1.000000e+00 : f32
    %30 = vector.broadcast %cst_30 : f32 to vector<2x64xf32>
    %31 = arith.addf %30, %29 : vector<2x64xf32>
    %32 = tpu.reciprocal %31 {approx = true} : vector<2x64xf32> -> vector<2x64xf32>
    %33 = vector.extract_strided_slice %20 {offsets = [0, 64], sizes = [2, 64], strides = [1, 1]} : vector<2x192xf32> to vector<2x64xf32>
    %34 = vector.extract_strided_slice %23 {offsets = [0, 64], sizes = [2, 64], strides = [1, 1]} : vector<2x192xf32> to vector<2x64xf32>
    %35 = arith.addf %33, %34 : vector<2x64xf32>
    %cst_31 = arith.constant 0.000000e+00 : f32
    %36 = vector.broadcast %cst_31 : f32 to vector<2x64xf32>
    %37 = arith.subf %36, %35 : vector<2x64xf32>
    %38 = math.exp %37 : vector<2x64xf32>
    %cst_32 = arith.constant 1.000000e+00 : f32
    %39 = vector.broadcast %cst_32 : f32 to vector<2x64xf32>
    %40 = arith.addf %39, %38 : vector<2x64xf32>
    %41 = tpu.reciprocal %40 {approx = true} : vector<2x64xf32> -> vector<2x64xf32>
    %42 = vector.extract_strided_slice %20 {offsets = [0, 128], sizes = [2, 64], strides = [1, 1]} : vector<2x192xf32> to vector<2x64xf32>
    %43 = vector.extract_strided_slice %23 {offsets = [0, 128], sizes = [2, 64], strides = [1, 1]} : vector<2x192xf32> to vector<2x64xf32>
    %44 = arith.mulf %32, %43 : vector<2x64xf32>
    %45 = arith.addf %42, %44 : vector<2x64xf32>
    %46 = math.tanh %45 : vector<2x64xf32>
    %cst_33 = arith.constant 1.000000e+00 : f32
    %47 = vector.broadcast %cst_33 : f32 to vector<2x64xf32>
    %48 = arith.subf %47, %41 : vector<2x64xf32>
    %49 = arith.mulf %48, %46 : vector<2x64xf32>
    %50 = arith.mulf %41, %17 : vector<2x64xf32>
    %51 = arith.addf %49, %50 : vector<2x64xf32>
    %cst_34 = arith.constant dense<0.000000e+00> : vector<2x128xf32>
    %52 = tpu.matmul %51, %10, %cst_34 {dimension_numbers = #tpu.dot_dimension_numbers<[1], [0], [0], [1], [0, 0, 1, 1], [], []>} : vector<2x64xf32>, vector<64x128xf32>, vector<2x128xf32> -> vector<2x128xf32>
    %53 = vector.broadcast %11 : vector<1x128xf32> to vector<2x128xf32>
    %54 = arith.addf %52, %53 : vector<2x128xf32>
    %c0_35 = arith.constant 0 : index
    %c0_36 = arith.constant 0 : index
    %c0_37 = arith.constant 0 : index
    %55 = vector.load %arg10[%c0_35, %c0_36, %c0_37] : memref<6x2x128xf32, #tpu.memory_space<vmem>>, vector<1x2x128xf32>
    %56 = vector.shape_cast %55 : vector<1x2x128xf32> to vector<2x128xf32>
    %57 = vector.shape_cast %54 : vector<2x128xf32> to vector<1x2x128xf32>
    tpu.vector_store %arg10[%c0_35, %c0_36, %c0_37], %57 {strides = array<i32>} : memref<6x2x128xf32, #tpu.memory_space<vmem>>, vector<1x2x128xf32>,
    %c0_38 = arith.constant 0 : index
    %c0_39 = arith.constant 0 : index
    %58 = vector.load %arg11[%c0_38, %c0_39] : memref<2x64xf32, #tpu.memory_space<vmem>>, vector<2x64xf32>
    tpu.vector_store %arg11[%c0_38, %c0_39], %51 {strides = array<i32>} : memref<2x64xf32, #tpu.memory_space<vmem>>, vector<2x64xf32>,
    %cst_40 = arith.constant dense<0xFF800000> : vector<2xf32>
    %59 = vector.multi_reduction <maximumf>, %54, %cst_40 [1] : vector<2x128xf32> to vector<2xf32>
    %60 = vector.shape_cast %59 : vector<2xf32> to vector<2x1xf32>
    %61 = tpu.iota {dimensions = array<i32: 1>} : vector<2x128xi32>
    %62 = arith.sitofp %61 : vector<2x128xi32> to vector<2x128xf32>
    %63 = vector.broadcast %60 : vector<2x1xf32> to vector<2x128xf32>
    %64 = arith.cmpf oeq, %54, %63 : vector<2x128xf32>
    %cst_41 = arith.constant 1.280000e+02 : f32
    %65 = vector.broadcast %cst_41 : f32 to vector<2x128xf32>
    %66 = arith.select %64, %62, %65 : vector<2x128xi1>, vector<2x128xf32>
    %cst_42 = arith.constant dense<0x7F800000> : vector<2xf32>
    %67 = vector.multi_reduction <minimumf>, %66, %cst_42 [1] : vector<2x128xf32> to vector<2xf32>
    %68 = vector.shape_cast %67 : vector<2xf32> to vector<2x1xf32>
    %69 = vector.broadcast %68 : vector<2x1xf32> to vector<2x128xf32>
    %70 = arith.cmpf oeq, %62, %69 : vector<2x128xf32>
    %71 = arith.extui %70 : vector<2x128xi1> to vector<2x128xi32>
    %72 = arith.sitofp %71 : vector<2x128xi32> to vector<2x128xf32>
    %cst_43 = arith.constant dense<0.000000e+00> : vector<2x32xf32>
    %73 = tpu.matmul %72, %12, %cst_43 {dimension_numbers = #tpu.dot_dimension_numbers<[1], [0], [0], [1], [0, 0, 1, 1], [], []>} : vector<2x128xf32>, vector<128x32xf32>, vector<2x32xf32> -> vector<2x32xf32>
    %c0_44 = arith.constant 0 : index
    %c0_45 = arith.constant 0 : index
    %74 = vector.load %arg12[%c0_44, %c0_45] : memref<2x32xf32, #tpu.memory_space<vmem>>, vector<2x32xf32>
    tpu.vector_store %arg12[%c0_44, %c0_45], %73 {strides = array<i32>} : memref<2x32xf32, #tpu.memory_space<vmem>>, vector<2x32xf32>,
    %c0_46 = arith.constant 0 : index
    %c0_47 = arith.constant 0 : index
    %75 = vector.load %arg12[%c0_46, %c0_47] : memref<2x32xf32, #tpu.memory_space<vmem>>, vector<2x32xf32>
    %c1 = arith.constant 1 : index
    %c0_48 = arith.constant 0 : index
    %c0_49 = arith.constant 0 : index
    %76 = vector.load %arg0[%c1, %c0_48, %c0_49] : memref<6x2x32xf32, #tpu.memory_space<vmem>>, vector<1x2x32xf32>
    %77 = vector.shape_cast %76 : vector<1x2x32xf32> to vector<2x32xf32>
    %78 = tpu.concatenate %75, %77 in 1 : vector<2x32xf32>, vector<2x32xf32> -> vector<2x64xf32>
    %c0_50 = arith.constant 0 : index
    %c0_51 = arith.constant 0 : index
    %79 = vector.load %arg11[%c0_50, %c0_51] : memref<2x64xf32, #tpu.memory_space<vmem>>, vector<2x64xf32>
    %cst_52 = arith.constant dense<0.000000e+00> : vector<2x192xf32>
    %80 = tpu.matmul %78, %6, %cst_52 {dimension_numbers = #tpu.dot_dimension_numbers<[1], [0], [0], [1], [0, 0, 1, 1], [], []>} : vector<2x64xf32>, vector<64x192xf32>, vector<2x192xf32> -> vector<2x192xf32>
    %81 = vector.broadcast %8 : vector<1x192xf32> to vector<2x192xf32>
    %82 = arith.addf %80, %81 : vector<2x192xf32>
    %cst_53 = arith.constant dense<0.000000e+00> : vector<2x192xf32>
    %83 = tpu.matmul %79, %7, %cst_53 {dimension_numbers = #tpu.dot_dimension_numbers<[1], [0], [0], [1], [0, 0, 1, 1], [], []>} : vector<2x64xf32>, vector<64x192xf32>, vector<2x192xf32> -> vector<2x192xf32>
    %84 = vector.broadcast %9 : vector<1x192xf32> to vector<2x192xf32>
    %85 = arith.addf %83, %84 : vector<2x192xf32>
    %86 = vector.extract_strided_slice %82 {offsets = [0, 0], sizes = [2, 64], strides = [1, 1]} : vector<2x192xf32> to vector<2x64xf32>
    %87 = vector.extract_strided_slice %85 {offsets = [0, 0], sizes = [2, 64], strides = [1, 1]} : vector<2x192xf32> to vector<2x64xf32>
    %88 = arith.addf %86, %87 : vector<2x64xf32>
    %cst_54 = arith.constant 0.000000e+00 : f32
    %89 = vector.broadcast %cst_54 : f32 to vector<2x64xf32>
    %90 = arith.subf %89, %88 : vector<2x64xf32>
    %91 = math.exp %90 : vector<2x64xf32>
    %cst_55 = arith.constant 1.000000e+00 : f32
    %92 = vector.broadcast %cst_55 : f32 to vector<2x64xf32>
    %93 = arith.addf %92, %91 : vector<2x64xf32>
    %94 = tpu.reciprocal %93 {approx = true} : vector<2x64xf32> -> vector<2x64xf32>
    %95 = vector.extract_strided_slice %82 {offsets = [0, 64], sizes = [2, 64], strides = [1, 1]} : vector<2x192xf32> to vector<2x64xf32>
    %96 = vector.extract_strided_slice %85 {offsets = [0, 64], sizes = [2, 64], strides = [1, 1]} : vector<2x192xf32> to vector<2x64xf32>
    %97 = arith.addf %95, %96 : vector<2x64xf32>
    %cst_56 = arith.constant 0.000000e+00 : f32
    %98 = vector.broadcast %cst_56 : f32 to vector<2x64xf32>
    %99 = arith.subf %98, %97 : vector<2x64xf32>
    %100 = math.exp %99 : vector<2x64xf32>
    %cst_57 = arith.constant 1.000000e+00 : f32
    %101 = vector.broadcast %cst_57 : f32 to vector<2x64xf32>
    %102 = arith.addf %101, %100 : vector<2x64xf32>
    %103 = tpu.reciprocal %102 {approx = true} : vector<2x64xf32> -> vector<2x64xf32>
    %104 = vector.extract_strided_slice %82 {offsets = [0, 128], sizes = [2, 64], strides = [1, 1]} : vector<2x192xf32> to vector<2x64xf32>
    %105 = vector.extract_strided_slice %85 {offsets = [0, 128], sizes = [2, 64], strides = [1, 1]} : vector<2x192xf32> to vector<2x64xf32>
    %106 = arith.mulf %94, %105 : vector<2x64xf32>
    %107 = arith.addf %104, %106 : vector<2x64xf32>
    %108 = math.tanh %107 : vector<2x64xf32>
    %cst_58 = arith.constant 1.000000e+00 : f32
    %109 = vector.broadcast %cst_58 : f32 to vector<2x64xf32>
    %110 = arith.subf %109, %103 : vector<2x64xf32>
    %111 = arith.mulf %110, %108 : vector<2x64xf32>
    %112 = arith.mulf %103, %79 : vector<2x64xf32>
    %113 = arith.addf %111, %112 : vector<2x64xf32>
    %cst_59 = arith.constant dense<0.000000e+00> : vector<2x128xf32>
    %114 = tpu.matmul %113, %10, %cst_59 {dimension_numbers = #tpu.dot_dimension_numbers<[1], [0], [0], [1], [0, 0, 1, 1], [], []>} : vector<2x64xf32>, vector<64x128xf32>, vector<2x128xf32> -> vector<2x128xf32>
    %115 = vector.broadcast %11 : vector<1x128xf32> to vector<2x128xf32>
    %116 = arith.addf %114, %115 : vector<2x128xf32>
    %c1_60 = arith.constant 1 : index
    %c0_61 = arith.constant 0 : index
    %c0_62 = arith.constant 0 : index
    %117 = vector.load %arg10[%c1_60, %c0_61, %c0_62] : memref<6x2x128xf32, #tpu.memory_space<vmem>>, vector<1x2x128xf32>
    %118 = vector.shape_cast %117 : vector<1x2x128xf32> to vector<2x128xf32>
    %119 = vector.shape_cast %116 : vector<2x128xf32> to vector<1x2x128xf32>
    tpu.vector_store %arg10[%c1_60, %c0_61, %c0_62], %119 {strides = array<i32>} : memref<6x2x128xf32, #tpu.memory_space<vmem>>, vector<1x2x128xf32>,
    %c0_63 = arith.constant 0 : index
    %c0_64 = arith.constant 0 : index
    %120 = vector.load %arg11[%c0_63, %c0_64] : memref<2x64xf32, #tpu.memory_space<vmem>>, vector<2x64xf32>
    tpu.vector_store %arg11[%c0_63, %c0_64], %113 {strides = array<i32>} : memref<2x64xf32, #tpu.memory_space<vmem>>, vector<2x64xf32>,
    %cst_65 = arith.constant dense<0xFF800000> : vector<2xf32>
    %121 = vector.multi_reduction <maximumf>, %116, %cst_65 [1] : vector<2x128xf32> to vector<2xf32>
    %122 = vector.shape_cast %121 : vector<2xf32> to vector<2x1xf32>
    %123 = tpu.iota {dimensions = array<i32: 1>} : vector<2x128xi32>
    %124 = arith.sitofp %123 : vector<2x128xi32> to vector<2x128xf32>
    %125 = vector.broadcast %122 : vector<2x1xf32> to vector<2x128xf32>
    %126 = arith.cmpf oeq, %116, %125 : vector<2x128xf32>
    %cst_66 = arith.constant 1.280000e+02 : f32
    %127 = vector.broadcast %cst_66 : f32 to vector<2x128xf32>
    %128 = arith.select %126, %124, %127 : vector<2x128xi1>, vector<2x128xf32>
    %cst_67 = arith.constant dense<0x7F800000> : vector<2xf32>
    %129 = vector.multi_reduction <minimumf>, %128, %cst_67 [1] : vector<2x128xf32> to vector<2xf32>
    %130 = vector.shape_cast %129 : vector<2xf32> to vector<2x1xf32>
    %131 = vector.broadcast %130 : vector<2x1xf32> to vector<2x128xf32>
    %132 = arith.cmpf oeq, %124, %131 : vector<2x128xf32>
    %133 = arith.extui %132 : vector<2x128xi1> to vector<2x128xi32>
    %134 = arith.sitofp %133 : vector<2x128xi32> to vector<2x128xf32>
    %cst_68 = arith.constant dense<0.000000e+00> : vector<2x32xf32>
    %135 = tpu.matmul %134, %12, %cst_68 {dimension_numbers = #tpu.dot_dimension_numbers<[1], [0], [0], [1], [0, 0, 1, 1], [], []>} : vector<2x128xf32>, vector<128x32xf32>, vector<2x32xf32> -> vector<2x32xf32>
    %c0_69 = arith.constant 0 : index
    %c0_70 = arith.constant 0 : index
    %136 = vector.load %arg12[%c0_69, %c0_70] : memref<2x32xf32, #tpu.memory_space<vmem>>, vector<2x32xf32>
    tpu.vector_store %arg12[%c0_69, %c0_70], %135 {strides = array<i32>} : memref<2x32xf32, #tpu.memory_space<vmem>>, vector<2x32xf32>,
    %c0_71 = arith.constant 0 : index
    %c0_72 = arith.constant 0 : index
    %137 = vector.load %arg12[%c0_71, %c0_72] : memref<2x32xf32, #tpu.memory_space<vmem>>, vector<2x32xf32>
    %c2 = arith.constant 2 : index
    %c0_73 = arith.constant 0 : index
    %c0_74 = arith.constant 0 : index
    %138 = vector.load %arg0[%c2, %c0_73, %c0_74] : memref<6x2x32xf32, #tpu.memory_space<vmem>>, vector<1x2x32xf32>
    %139 = vector.shape_cast %138 : vector<1x2x32xf32> to vector<2x32xf32>
    %140 = tpu.concatenate %137, %139 in 1 : vector<2x32xf32>, vector<2x32xf32> -> vector<2x64xf32>
    %c0_75 = arith.constant 0 : index
    %c0_76 = arith.constant 0 : index
    %141 = vector.load %arg11[%c0_75, %c0_76] : memref<2x64xf32, #tpu.memory_space<vmem>>, vector<2x64xf32>
    %cst_77 = arith.constant dense<0.000000e+00> : vector<2x192xf32>
    %142 = tpu.matmul %140, %6, %cst_77 {dimension_numbers = #tpu.dot_dimension_numbers<[1], [0], [0], [1], [0, 0, 1, 1], [], []>} : vector<2x64xf32>, vector<64x192xf32>, vector<2x192xf32> -> vector<2x192xf32>
    %143 = vector.broadcast %8 : vector<1x192xf32> to vector<2x192xf32>
    %144 = arith.addf %142, %143 : vector<2x192xf32>
    %cst_78 = arith.constant dense<0.000000e+00> : vector<2x192xf32>
    %145 = tpu.matmul %141, %7, %cst_78 {dimension_numbers = #tpu.dot_dimension_numbers<[1], [0], [0], [1], [0, 0, 1, 1], [], []>} : vector<2x64xf32>, vector<64x192xf32>, vector<2x192xf32> -> vector<2x192xf32>
    %146 = vector.broadcast %9 : vector<1x192xf32> to vector<2x192xf32>
    %147 = arith.addf %145, %146 : vector<2x192xf32>
    %148 = vector.extract_strided_slice %144 {offsets = [0, 0], sizes = [2, 64], strides = [1, 1]} : vector<2x192xf32> to vector<2x64xf32>
    %149 = vector.extract_strided_slice %147 {offsets = [0, 0], sizes = [2, 64], strides = [1, 1]} : vector<2x192xf32> to vector<2x64xf32>
    %150 = arith.addf %148, %149 : vector<2x64xf32>
    %cst_79 = arith.constant 0.000000e+00 : f32
    %151 = vector.broadcast %cst_79 : f32 to vector<2x64xf32>
    %152 = arith.subf %151, %150 : vector<2x64xf32>
    %153 = math.exp %152 : vector<2x64xf32>
    %cst_80 = arith.constant 1.000000e+00 : f32
    %154 = vector.broadcast %cst_80 : f32 to vector<2x64xf32>
    %155 = arith.addf %154, %153 : vector<2x64xf32>
    %156 = tpu.reciprocal %155 {approx = true} : vector<2x64xf32> -> vector<2x64xf32>
    %157 = vector.extract_strided_slice %144 {offsets = [0, 64], sizes = [2, 64], strides = [1, 1]} : vector<2x192xf32> to vector<2x64xf32>
    %158 = vector.extract_strided_slice %147 {offsets = [0, 64], sizes = [2, 64], strides = [1, 1]} : vector<2x192xf32> to vector<2x64xf32>
    %159 = arith.addf %157, %158 : vector<2x64xf32>
    %cst_81 = arith.constant 0.000000e+00 : f32
    %160 = vector.broadcast %cst_81 : f32 to vector<2x64xf32>
    %161 = arith.subf %160, %159 : vector<2x64xf32>
    %162 = math.exp %161 : vector<2x64xf32>
    %cst_82 = arith.constant 1.000000e+00 : f32
    %163 = vector.broadcast %cst_82 : f32 to vector<2x64xf32>
    %164 = arith.addf %163, %162 : vector<2x64xf32>
    %165 = tpu.reciprocal %164 {approx = true} : vector<2x64xf32> -> vector<2x64xf32>
    %166 = vector.extract_strided_slice %144 {offsets = [0, 128], sizes = [2, 64], strides = [1, 1]} : vector<2x192xf32> to vector<2x64xf32>
    %167 = vector.extract_strided_slice %147 {offsets = [0, 128], sizes = [2, 64], strides = [1, 1]} : vector<2x192xf32> to vector<2x64xf32>
    %168 = arith.mulf %156, %167 : vector<2x64xf32>
    %169 = arith.addf %166, %168 : vector<2x64xf32>
    %170 = math.tanh %169 : vector<2x64xf32>
    %cst_83 = arith.constant 1.000000e+00 : f32
    %171 = vector.broadcast %cst_83 : f32 to vector<2x64xf32>
    %172 = arith.subf %171, %165 : vector<2x64xf32>
    %173 = arith.mulf %172, %170 : vector<2x64xf32>
    %174 = arith.mulf %165, %141 : vector<2x64xf32>
    %175 = arith.addf %173, %174 : vector<2x64xf32>
    %cst_84 = arith.constant dense<0.000000e+00> : vector<2x128xf32>
    %176 = tpu.matmul %175, %10, %cst_84 {dimension_numbers = #tpu.dot_dimension_numbers<[1], [0], [0], [1], [0, 0, 1, 1], [], []>} : vector<2x64xf32>, vector<64x128xf32>, vector<2x128xf32> -> vector<2x128xf32>
    %177 = vector.broadcast %11 : vector<1x128xf32> to vector<2x128xf32>
    %178 = arith.addf %176, %177 : vector<2x128xf32>
    %c2_85 = arith.constant 2 : index
    %c0_86 = arith.constant 0 : index
    %c0_87 = arith.constant 0 : index
    %179 = vector.load %arg10[%c2_85, %c0_86, %c0_87] : memref<6x2x128xf32, #tpu.memory_space<vmem>>, vector<1x2x128xf32>
    %180 = vector.shape_cast %179 : vector<1x2x128xf32> to vector<2x128xf32>
    %181 = vector.shape_cast %178 : vector<2x128xf32> to vector<1x2x128xf32>
    tpu.vector_store %arg10[%c2_85, %c0_86, %c0_87], %181 {strides = array<i32>} : memref<6x2x128xf32, #tpu.memory_space<vmem>>, vector<1x2x128xf32>,
    %c0_88 = arith.constant 0 : index
    %c0_89 = arith.constant 0 : index
    %182 = vector.load %arg11[%c0_88, %c0_89] : memref<2x64xf32, #tpu.memory_space<vmem>>, vector<2x64xf32>
    tpu.vector_store %arg11[%c0_88, %c0_89], %175 {strides = array<i32>} : memref<2x64xf32, #tpu.memory_space<vmem>>, vector<2x64xf32>,
    %cst_90 = arith.constant dense<0xFF800000> : vector<2xf32>
    %183 = vector.multi_reduction <maximumf>, %178, %cst_90 [1] : vector<2x128xf32> to vector<2xf32>
    %184 = vector.shape_cast %183 : vector<2xf32> to vector<2x1xf32>
    %185 = tpu.iota {dimensions = array<i32: 1>} : vector<2x128xi32>
    %186 = arith.sitofp %185 : vector<2x128xi32> to vector<2x128xf32>
    %187 = vector.broadcast %184 : vector<2x1xf32> to vector<2x128xf32>
    %188 = arith.cmpf oeq, %178, %187 : vector<2x128xf32>
    %cst_91 = arith.constant 1.280000e+02 : f32
    %189 = vector.broadcast %cst_91 : f32 to vector<2x128xf32>
    %190 = arith.select %188, %186, %189 : vector<2x128xi1>, vector<2x128xf32>
    %cst_92 = arith.constant dense<0x7F800000> : vector<2xf32>
    %191 = vector.multi_reduction <minimumf>, %190, %cst_92 [1] : vector<2x128xf32> to vector<2xf32>
    %192 = vector.shape_cast %191 : vector<2xf32> to vector<2x1xf32>
    %193 = vector.broadcast %192 : vector<2x1xf32> to vector<2x128xf32>
    %194 = arith.cmpf oeq, %186, %193 : vector<2x128xf32>
    %195 = arith.extui %194 : vector<2x128xi1> to vector<2x128xi32>
    %196 = arith.sitofp %195 : vector<2x128xi32> to vector<2x128xf32>
    %cst_93 = arith.constant dense<0.000000e+00> : vector<2x32xf32>
    %197 = tpu.matmul %196, %12, %cst_93 {dimension_numbers = #tpu.dot_dimension_numbers<[1], [0], [0], [1], [0, 0, 1, 1], [], []>} : vector<2x128xf32>, vector<128x32xf32>, vector<2x32xf32> -> vector<2x32xf32>
    %c0_94 = arith.constant 0 : index
    %c0_95 = arith.constant 0 : index
    %198 = vector.load %arg12[%c0_94, %c0_95] : memref<2x32xf32, #tpu.memory_space<vmem>>, vector<2x32xf32>
    tpu.vector_store %arg12[%c0_94, %c0_95], %197 {strides = array<i32>} : memref<2x32xf32, #tpu.memory_space<vmem>>, vector<2x32xf32>,
    %c0_96 = arith.constant 0 : index
    %c0_97 = arith.constant 0 : index
    %199 = vector.load %arg12[%c0_96, %c0_97] : memref<2x32xf32, #tpu.memory_space<vmem>>, vector<2x32xf32>
    %c3 = arith.constant 3 : index
    %c0_98 = arith.constant 0 : index
    %c0_99 = arith.constant 0 : index
    %200 = vector.load %arg0[%c3, %c0_98, %c0_99] : memref<6x2x32xf32, #tpu.memory_space<vmem>>, vector<1x2x32xf32>
    %201 = vector.shape_cast %200 : vector<1x2x32xf32> to vector<2x32xf32>
    %202 = tpu.concatenate %199, %201 in 1 : vector<2x32xf32>, vector<2x32xf32> -> vector<2x64xf32>
    %c0_100 = arith.constant 0 : index
    %c0_101 = arith.constant 0 : index
    %203 = vector.load %arg11[%c0_100, %c0_101] : memref<2x64xf32, #tpu.memory_space<vmem>>, vector<2x64xf32>
    %cst_102 = arith.constant dense<0.000000e+00> : vector<2x192xf32>
    %204 = tpu.matmul %202, %6, %cst_102 {dimension_numbers = #tpu.dot_dimension_numbers<[1], [0], [0], [1], [0, 0, 1, 1], [], []>} : vector<2x64xf32>, vector<64x192xf32>, vector<2x192xf32> -> vector<2x192xf32>
    %205 = vector.broadcast %8 : vector<1x192xf32> to vector<2x192xf32>
    %206 = arith.addf %204, %205 : vector<2x192xf32>
    %cst_103 = arith.constant dense<0.000000e+00> : vector<2x192xf32>
    %207 = tpu.matmul %203, %7, %cst_103 {dimension_numbers = #tpu.dot_dimension_numbers<[1], [0], [0], [1], [0, 0, 1, 1], [], []>} : vector<2x64xf32>, vector<64x192xf32>, vector<2x192xf32> -> vector<2x192xf32>
    %208 = vector.broadcast %9 : vector<1x192xf32> to vector<2x192xf32>
    %209 = arith.addf %207, %208 : vector<2x192xf32>
    %210 = vector.extract_strided_slice %206 {offsets = [0, 0], sizes = [2, 64], strides = [1, 1]} : vector<2x192xf32> to vector<2x64xf32>
    %211 = vector.extract_strided_slice %209 {offsets = [0, 0], sizes = [2, 64], strides = [1, 1]} : vector<2x192xf32> to vector<2x64xf32>
    %212 = arith.addf %210, %211 : vector<2x64xf32>
    %cst_104 = arith.constant 0.000000e+00 : f32
    %213 = vector.broadcast %cst_104 : f32 to vector<2x64xf32>
    %214 = arith.subf %213, %212 : vector<2x64xf32>
    %215 = math.exp %214 : vector<2x64xf32>
    %cst_105 = arith.constant 1.000000e+00 : f32
    %216 = vector.broadcast %cst_105 : f32 to vector<2x64xf32>
    %217 = arith.addf %216, %215 : vector<2x64xf32>
    %218 = tpu.reciprocal %217 {approx = true} : vector<2x64xf32> -> vector<2x64xf32>
    %219 = vector.extract_strided_slice %206 {offsets = [0, 64], sizes = [2, 64], strides = [1, 1]} : vector<2x192xf32> to vector<2x64xf32>
    %220 = vector.extract_strided_slice %209 {offsets = [0, 64], sizes = [2, 64], strides = [1, 1]} : vector<2x192xf32> to vector<2x64xf32>
    %221 = arith.addf %219, %220 : vector<2x64xf32>
    %cst_106 = arith.constant 0.000000e+00 : f32
    %222 = vector.broadcast %cst_106 : f32 to vector<2x64xf32>
    %223 = arith.subf %222, %221 : vector<2x64xf32>
    %224 = math.exp %223 : vector<2x64xf32>
    %cst_107 = arith.constant 1.000000e+00 : f32
    %225 = vector.broadcast %cst_107 : f32 to vector<2x64xf32>
    %226 = arith.addf %225, %224 : vector<2x64xf32>
    %227 = tpu.reciprocal %226 {approx = true} : vector<2x64xf32> -> vector<2x64xf32>
    %228 = vector.extract_strided_slice %206 {offsets = [0, 128], sizes = [2, 64], strides = [1, 1]} : vector<2x192xf32> to vector<2x64xf32>
    %229 = vector.extract_strided_slice %209 {offsets = [0, 128], sizes = [2, 64], strides = [1, 1]} : vector<2x192xf32> to vector<2x64xf32>
    %230 = arith.mulf %218, %229 : vector<2x64xf32>
    %231 = arith.addf %228, %230 : vector<2x64xf32>
    %232 = math.tanh %231 : vector<2x64xf32>
    %cst_108 = arith.constant 1.000000e+00 : f32
    %233 = vector.broadcast %cst_108 : f32 to vector<2x64xf32>
    %234 = arith.subf %233, %227 : vector<2x64xf32>
    %235 = arith.mulf %234, %232 : vector<2x64xf32>
    %236 = arith.mulf %227, %203 : vector<2x64xf32>
    %237 = arith.addf %235, %236 : vector<2x64xf32>
    %cst_109 = arith.constant dense<0.000000e+00> : vector<2x128xf32>
    %238 = tpu.matmul %237, %10, %cst_109 {dimension_numbers = #tpu.dot_dimension_numbers<[1], [0], [0], [1], [0, 0, 1, 1], [], []>} : vector<2x64xf32>, vector<64x128xf32>, vector<2x128xf32> -> vector<2x128xf32>
    %239 = vector.broadcast %11 : vector<1x128xf32> to vector<2x128xf32>
    %240 = arith.addf %238, %239 : vector<2x128xf32>
    %c3_110 = arith.constant 3 : index
    %c0_111 = arith.constant 0 : index
    %c0_112 = arith.constant 0 : index
    %241 = vector.load %arg10[%c3_110, %c0_111, %c0_112] : memref<6x2x128xf32, #tpu.memory_space<vmem>>, vector<1x2x128xf32>
    %242 = vector.shape_cast %241 : vector<1x2x128xf32> to vector<2x128xf32>
    %243 = vector.shape_cast %240 : vector<2x128xf32> to vector<1x2x128xf32>
    tpu.vector_store %arg10[%c3_110, %c0_111, %c0_112], %243 {strides = array<i32>} : memref<6x2x128xf32, #tpu.memory_space<vmem>>, vector<1x2x128xf32>,
    %c0_113 = arith.constant 0 : index
    %c0_114 = arith.constant 0 : index
    %244 = vector.load %arg11[%c0_113, %c0_114] : memref<2x64xf32, #tpu.memory_space<vmem>>, vector<2x64xf32>
    tpu.vector_store %arg11[%c0_113, %c0_114], %237 {strides = array<i32>} : memref<2x64xf32, #tpu.memory_space<vmem>>, vector<2x64xf32>,
    %cst_115 = arith.constant dense<0xFF800000> : vector<2xf32>
    %245 = vector.multi_reduction <maximumf>, %240, %cst_115 [1] : vector<2x128xf32> to vector<2xf32>
    %246 = vector.shape_cast %245 : vector<2xf32> to vector<2x1xf32>
    %247 = tpu.iota {dimensions = array<i32: 1>} : vector<2x128xi32>
    %248 = arith.sitofp %247 : vector<2x128xi32> to vector<2x128xf32>
    %249 = vector.broadcast %246 : vector<2x1xf32> to vector<2x128xf32>
    %250 = arith.cmpf oeq, %240, %249 : vector<2x128xf32>
    %cst_116 = arith.constant 1.280000e+02 : f32
    %251 = vector.broadcast %cst_116 : f32 to vector<2x128xf32>
    %252 = arith.select %250, %248, %251 : vector<2x128xi1>, vector<2x128xf32>
    %cst_117 = arith.constant dense<0x7F800000> : vector<2xf32>
    %253 = vector.multi_reduction <minimumf>, %252, %cst_117 [1] : vector<2x128xf32> to vector<2xf32>
    %254 = vector.shape_cast %253 : vector<2xf32> to vector<2x1xf32>
    %255 = vector.broadcast %254 : vector<2x1xf32> to vector<2x128xf32>
    %256 = arith.cmpf oeq, %248, %255 : vector<2x128xf32>
    %257 = arith.extui %256 : vector<2x128xi1> to vector<2x128xi32>
    %258 = arith.sitofp %257 : vector<2x128xi32> to vector<2x128xf32>
    %cst_118 = arith.constant dense<0.000000e+00> : vector<2x32xf32>
    %259 = tpu.matmul %258, %12, %cst_118 {dimension_numbers = #tpu.dot_dimension_numbers<[1], [0], [0], [1], [0, 0, 1, 1], [], []>} : vector<2x128xf32>, vector<128x32xf32>, vector<2x32xf32> -> vector<2x32xf32>
    %c0_119 = arith.constant 0 : index
    %c0_120 = arith.constant 0 : index
    %260 = vector.load %arg12[%c0_119, %c0_120] : memref<2x32xf32, #tpu.memory_space<vmem>>, vector<2x32xf32>
    tpu.vector_store %arg12[%c0_119, %c0_120], %259 {strides = array<i32>} : memref<2x32xf32, #tpu.memory_space<vmem>>, vector<2x32xf32>,
    %c0_121 = arith.constant 0 : index
    %c0_122 = arith.constant 0 : index
    %261 = vector.load %arg12[%c0_121, %c0_122] : memref<2x32xf32, #tpu.memory_space<vmem>>, vector<2x32xf32>
    %c4 = arith.constant 4 : index
    %c0_123 = arith.constant 0 : index
    %c0_124 = arith.constant 0 : index
    %262 = vector.load %arg0[%c4, %c0_123, %c0_124] : memref<6x2x32xf32, #tpu.memory_space<vmem>>, vector<1x2x32xf32>
    %263 = vector.shape_cast %262 : vector<1x2x32xf32> to vector<2x32xf32>
    %264 = tpu.concatenate %261, %263 in 1 : vector<2x32xf32>, vector<2x32xf32> -> vector<2x64xf32>
    %c0_125 = arith.constant 0 : index
    %c0_126 = arith.constant 0 : index
    %265 = vector.load %arg11[%c0_125, %c0_126] : memref<2x64xf32, #tpu.memory_space<vmem>>, vector<2x64xf32>
    %cst_127 = arith.constant dense<0.000000e+00> : vector<2x192xf32>
    %266 = tpu.matmul %264, %6, %cst_127 {dimension_numbers = #tpu.dot_dimension_numbers<[1], [0], [0], [1], [0, 0, 1, 1], [], []>} : vector<2x64xf32>, vector<64x192xf32>, vector<2x192xf32> -> vector<2x192xf32>
    %267 = vector.broadcast %8 : vector<1x192xf32> to vector<2x192xf32>
    %268 = arith.addf %266, %267 : vector<2x192xf32>
    %cst_128 = arith.constant dense<0.000000e+00> : vector<2x192xf32>
    %269 = tpu.matmul %265, %7, %cst_128 {dimension_numbers = #tpu.dot_dimension_numbers<[1], [0], [0], [1], [0, 0, 1, 1], [], []>} : vector<2x64xf32>, vector<64x192xf32>, vector<2x192xf32> -> vector<2x192xf32>
    %270 = vector.broadcast %9 : vector<1x192xf32> to vector<2x192xf32>
    %271 = arith.addf %269, %270 : vector<2x192xf32>
    %272 = vector.extract_strided_slice %268 {offsets = [0, 0], sizes = [2, 64], strides = [1, 1]} : vector<2x192xf32> to vector<2x64xf32>
    %273 = vector.extract_strided_slice %271 {offsets = [0, 0], sizes = [2, 64], strides = [1, 1]} : vector<2x192xf32> to vector<2x64xf32>
    %274 = arith.addf %272, %273 : vector<2x64xf32>
    %cst_129 = arith.constant 0.000000e+00 : f32
    %275 = vector.broadcast %cst_129 : f32 to vector<2x64xf32>
    %276 = arith.subf %275, %274 : vector<2x64xf32>
    %277 = math.exp %276 : vector<2x64xf32>
    %cst_130 = arith.constant 1.000000e+00 : f32
    %278 = vector.broadcast %cst_130 : f32 to vector<2x64xf32>
    %279 = arith.addf %278, %277 : vector<2x64xf32>
    %280 = tpu.reciprocal %279 {approx = true} : vector<2x64xf32> -> vector<2x64xf32>
    %281 = vector.extract_strided_slice %268 {offsets = [0, 64], sizes = [2, 64], strides = [1, 1]} : vector<2x192xf32> to vector<2x64xf32>
    %282 = vector.extract_strided_slice %271 {offsets = [0, 64], sizes = [2, 64], strides = [1, 1]} : vector<2x192xf32> to vector<2x64xf32>
    %283 = arith.addf %281, %282 : vector<2x64xf32>
    %cst_131 = arith.constant 0.000000e+00 : f32
    %284 = vector.broadcast %cst_131 : f32 to vector<2x64xf32>
    %285 = arith.subf %284, %283 : vector<2x64xf32>
    %286 = math.exp %285 : vector<2x64xf32>
    %cst_132 = arith.constant 1.000000e+00 : f32
    %287 = vector.broadcast %cst_132 : f32 to vector<2x64xf32>
    %288 = arith.addf %287, %286 : vector<2x64xf32>
    %289 = tpu.reciprocal %288 {approx = true} : vector<2x64xf32> -> vector<2x64xf32>
    %290 = vector.extract_strided_slice %268 {offsets = [0, 128], sizes = [2, 64], strides = [1, 1]} : vector<2x192xf32> to vector<2x64xf32>
    %291 = vector.extract_strided_slice %271 {offsets = [0, 128], sizes = [2, 64], strides = [1, 1]} : vector<2x192xf32> to vector<2x64xf32>
    %292 = arith.mulf %280, %291 : vector<2x64xf32>
    %293 = arith.addf %290, %292 : vector<2x64xf32>
    %294 = math.tanh %293 : vector<2x64xf32>
    %cst_133 = arith.constant 1.000000e+00 : f32
    %295 = vector.broadcast %cst_133 : f32 to vector<2x64xf32>
    %296 = arith.subf %295, %289 : vector<2x64xf32>
    %297 = arith.mulf %296, %294 : vector<2x64xf32>
    %298 = arith.mulf %289, %265 : vector<2x64xf32>
    %299 = arith.addf %297, %298 : vector<2x64xf32>
    %cst_134 = arith.constant dense<0.000000e+00> : vector<2x128xf32>
    %300 = tpu.matmul %299, %10, %cst_134 {dimension_numbers = #tpu.dot_dimension_numbers<[1], [0], [0], [1], [0, 0, 1, 1], [], []>} : vector<2x64xf32>, vector<64x128xf32>, vector<2x128xf32> -> vector<2x128xf32>
    %301 = vector.broadcast %11 : vector<1x128xf32> to vector<2x128xf32>
    %302 = arith.addf %300, %301 : vector<2x128xf32>
    %c4_135 = arith.constant 4 : index
    %c0_136 = arith.constant 0 : index
    %c0_137 = arith.constant 0 : index
    %303 = vector.load %arg10[%c4_135, %c0_136, %c0_137] : memref<6x2x128xf32, #tpu.memory_space<vmem>>, vector<1x2x128xf32>
    %304 = vector.shape_cast %303 : vector<1x2x128xf32> to vector<2x128xf32>
    %305 = vector.shape_cast %302 : vector<2x128xf32> to vector<1x2x128xf32>
    tpu.vector_store %arg10[%c4_135, %c0_136, %c0_137], %305 {strides = array<i32>} : memref<6x2x128xf32, #tpu.memory_space<vmem>>, vector<1x2x128xf32>,
    %c0_138 = arith.constant 0 : index
    %c0_139 = arith.constant 0 : index
    %306 = vector.load %arg11[%c0_138, %c0_139] : memref<2x64xf32, #tpu.memory_space<vmem>>, vector<2x64xf32>
    tpu.vector_store %arg11[%c0_138, %c0_139], %299 {strides = array<i32>} : memref<2x64xf32, #tpu.memory_space<vmem>>, vector<2x64xf32>,
    %cst_140 = arith.constant dense<0xFF800000> : vector<2xf32>
    %307 = vector.multi_reduction <maximumf>, %302, %cst_140 [1] : vector<2x128xf32> to vector<2xf32>
    %308 = vector.shape_cast %307 : vector<2xf32> to vector<2x1xf32>
    %309 = tpu.iota {dimensions = array<i32: 1>} : vector<2x128xi32>
    %310 = arith.sitofp %309 : vector<2x128xi32> to vector<2x128xf32>
    %311 = vector.broadcast %308 : vector<2x1xf32> to vector<2x128xf32>
    %312 = arith.cmpf oeq, %302, %311 : vector<2x128xf32>
    %cst_141 = arith.constant 1.280000e+02 : f32
    %313 = vector.broadcast %cst_141 : f32 to vector<2x128xf32>
    %314 = arith.select %312, %310, %313 : vector<2x128xi1>, vector<2x128xf32>
    %cst_142 = arith.constant dense<0x7F800000> : vector<2xf32>
    %315 = vector.multi_reduction <minimumf>, %314, %cst_142 [1] : vector<2x128xf32> to vector<2xf32>
    %316 = vector.shape_cast %315 : vector<2xf32> to vector<2x1xf32>
    %317 = vector.broadcast %316 : vector<2x1xf32> to vector<2x128xf32>
    %318 = arith.cmpf oeq, %310, %317 : vector<2x128xf32>
    %319 = arith.extui %318 : vector<2x128xi1> to vector<2x128xi32>
    %320 = arith.sitofp %319 : vector<2x128xi32> to vector<2x128xf32>
    %cst_143 = arith.constant dense<0.000000e+00> : vector<2x32xf32>
    %321 = tpu.matmul %320, %12, %cst_143 {dimension_numbers = #tpu.dot_dimension_numbers<[1], [0], [0], [1], [0, 0, 1, 1], [], []>} : vector<2x128xf32>, vector<128x32xf32>, vector<2x32xf32> -> vector<2x32xf32>
    %c0_144 = arith.constant 0 : index
    %c0_145 = arith.constant 0 : index
    %322 = vector.load %arg12[%c0_144, %c0_145] : memref<2x32xf32, #tpu.memory_space<vmem>>, vector<2x32xf32>
    tpu.vector_store %arg12[%c0_144, %c0_145], %321 {strides = array<i32>} : memref<2x32xf32, #tpu.memory_space<vmem>>, vector<2x32xf32>,
    %c0_146 = arith.constant 0 : index
    %c0_147 = arith.constant 0 : index
    %323 = vector.load %arg12[%c0_146, %c0_147] : memref<2x32xf32, #tpu.memory_space<vmem>>, vector<2x32xf32>
    %c5 = arith.constant 5 : index
    %c0_148 = arith.constant 0 : index
    %c0_149 = arith.constant 0 : index
    %324 = vector.load %arg0[%c5, %c0_148, %c0_149] : memref<6x2x32xf32, #tpu.memory_space<vmem>>, vector<1x2x32xf32>
    %325 = vector.shape_cast %324 : vector<1x2x32xf32> to vector<2x32xf32>
    %326 = tpu.concatenate %323, %325 in 1 : vector<2x32xf32>, vector<2x32xf32> -> vector<2x64xf32>
    %c0_150 = arith.constant 0 : index
    %c0_151 = arith.constant 0 : index
    %327 = vector.load %arg11[%c0_150, %c0_151] : memref<2x64xf32, #tpu.memory_space<vmem>>, vector<2x64xf32>
    %cst_152 = arith.constant dense<0.000000e+00> : vector<2x192xf32>
    %328 = tpu.matmul %326, %6, %cst_152 {dimension_numbers = #tpu.dot_dimension_numbers<[1], [0], [0], [1], [0, 0, 1, 1], [], []>} : vector<2x64xf32>, vector<64x192xf32>, vector<2x192xf32> -> vector<2x192xf32>
    %329 = vector.broadcast %8 : vector<1x192xf32> to vector<2x192xf32>
    %330 = arith.addf %328, %329 : vector<2x192xf32>
    %cst_153 = arith.constant dense<0.000000e+00> : vector<2x192xf32>
    %331 = tpu.matmul %327, %7, %cst_153 {dimension_numbers = #tpu.dot_dimension_numbers<[1], [0], [0], [1], [0, 0, 1, 1], [], []>} : vector<2x64xf32>, vector<64x192xf32>, vector<2x192xf32> -> vector<2x192xf32>
    %332 = vector.broadcast %9 : vector<1x192xf32> to vector<2x192xf32>
    %333 = arith.addf %331, %332 : vector<2x192xf32>
    %334 = vector.extract_strided_slice %330 {offsets = [0, 0], sizes = [2, 64], strides = [1, 1]} : vector<2x192xf32> to vector<2x64xf32>
    %335 = vector.extract_strided_slice %333 {offsets = [0, 0], sizes = [2, 64], strides = [1, 1]} : vector<2x192xf32> to vector<2x64xf32>
    %336 = arith.addf %334, %335 : vector<2x64xf32>
    %cst_154 = arith.constant 0.000000e+00 : f32
    %337 = vector.broadcast %cst_154 : f32 to vector<2x64xf32>
    %338 = arith.subf %337, %336 : vector<2x64xf32>
    %339 = math.exp %338 : vector<2x64xf32>
    %cst_155 = arith.constant 1.000000e+00 : f32
    %340 = vector.broadcast %cst_155 : f32 to vector<2x64xf32>
    %341 = arith.addf %340, %339 : vector<2x64xf32>
    %342 = tpu.reciprocal %341 {approx = true} : vector<2x64xf32> -> vector<2x64xf32>
    %343 = vector.extract_strided_slice %330 {offsets = [0, 64], sizes = [2, 64], strides = [1, 1]} : vector<2x192xf32> to vector<2x64xf32>
    %344 = vector.extract_strided_slice %333 {offsets = [0, 64], sizes = [2, 64], strides = [1, 1]} : vector<2x192xf32> to vector<2x64xf32>
    %345 = arith.addf %343, %344 : vector<2x64xf32>
    %cst_156 = arith.constant 0.000000e+00 : f32
    %346 = vector.broadcast %cst_156 : f32 to vector<2x64xf32>
    %347 = arith.subf %346, %345 : vector<2x64xf32>
    %348 = math.exp %347 : vector<2x64xf32>
    %cst_157 = arith.constant 1.000000e+00 : f32
    %349 = vector.broadcast %cst_157 : f32 to vector<2x64xf32>
    %350 = arith.addf %349, %348 : vector<2x64xf32>
    %351 = tpu.reciprocal %350 {approx = true} : vector<2x64xf32> -> vector<2x64xf32>
    %352 = vector.extract_strided_slice %330 {offsets = [0, 128], sizes = [2, 64], strides = [1, 1]} : vector<2x192xf32> to vector<2x64xf32>
    %353 = vector.extract_strided_slice %333 {offsets = [0, 128], sizes = [2, 64], strides = [1, 1]} : vector<2x192xf32> to vector<2x64xf32>
    %354 = arith.mulf %342, %353 : vector<2x64xf32>
    %355 = arith.addf %352, %354 : vector<2x64xf32>
    %356 = math.tanh %355 : vector<2x64xf32>
    %cst_158 = arith.constant 1.000000e+00 : f32
    %357 = vector.broadcast %cst_158 : f32 to vector<2x64xf32>
    %358 = arith.subf %357, %351 : vector<2x64xf32>
    %359 = arith.mulf %358, %356 : vector<2x64xf32>
    %360 = arith.mulf %351, %327 : vector<2x64xf32>
    %361 = arith.addf %359, %360 : vector<2x64xf32>
    %cst_159 = arith.constant dense<0.000000e+00> : vector<2x128xf32>
    %362 = tpu.matmul %361, %10, %cst_159 {dimension_numbers = #tpu.dot_dimension_numbers<[1], [0], [0], [1], [0, 0, 1, 1], [], []>} : vector<2x64xf32>, vector<64x128xf32>, vector<2x128xf32> -> vector<2x128xf32>
    %363 = vector.broadcast %11 : vector<1x128xf32> to vector<2x128xf32>
    %364 = arith.addf %362, %363 : vector<2x128xf32>
    %c5_160 = arith.constant 5 : index
    %c0_161 = arith.constant 0 : index
    %c0_162 = arith.constant 0 : index
    %365 = vector.load %arg10[%c5_160, %c0_161, %c0_162] : memref<6x2x128xf32, #tpu.memory_space<vmem>>, vector<1x2x128xf32>
    %366 = vector.shape_cast %365 : vector<1x2x128xf32> to vector<2x128xf32>
    %367 = vector.shape_cast %364 : vector<2x128xf32> to vector<1x2x128xf32>
    tpu.vector_store %arg10[%c5_160, %c0_161, %c0_162], %367 {strides = array<i32>} : memref<6x2x128xf32, #tpu.memory_space<vmem>>, vector<1x2x128xf32>,
    %c0_163 = arith.constant 0 : index
    %c0_164 = arith.constant 0 : index
    %368 = vector.load %arg11[%c0_163, %c0_164] : memref<2x64xf32, #tpu.memory_space<vmem>>, vector<2x64xf32>
    tpu.vector_store %arg11[%c0_163, %c0_164], %361 {strides = array<i32>} : memref<2x64xf32, #tpu.memory_space<vmem>>, vector<2x64xf32>,
    %cst_165 = arith.constant dense<0xFF800000> : vector<2xf32>
    %369 = vector.multi_reduction <maximumf>, %364, %cst_165 [1] : vector<2x128xf32> to vector<2xf32>
    %370 = vector.shape_cast %369 : vector<2xf32> to vector<2x1xf32>
    %371 = tpu.iota {dimensions = array<i32: 1>} : vector<2x128xi32>
    %372 = arith.sitofp %371 : vector<2x128xi32> to vector<2x128xf32>
    %373 = vector.broadcast %370 : vector<2x1xf32> to vector<2x128xf32>
    %374 = arith.cmpf oeq, %364, %373 : vector<2x128xf32>
    %cst_166 = arith.constant 1.280000e+02 : f32
    %375 = vector.broadcast %cst_166 : f32 to vector<2x128xf32>
    %376 = arith.select %374, %372, %375 : vector<2x128xi1>, vector<2x128xf32>
    %cst_167 = arith.constant dense<0x7F800000> : vector<2xf32>
    %377 = vector.multi_reduction <minimumf>, %376, %cst_167 [1] : vector<2x128xf32> to vector<2xf32>
    %378 = vector.shape_cast %377 : vector<2xf32> to vector<2x1xf32>
    %379 = vector.broadcast %378 : vector<2x1xf32> to vector<2x128xf32>
    %380 = arith.cmpf oeq, %372, %379 : vector<2x128xf32>
    %381 = arith.extui %380 : vector<2x128xi1> to vector<2x128xi32>
    %382 = arith.sitofp %381 : vector<2x128xi32> to vector<2x128xf32>
    %cst_168 = arith.constant dense<0.000000e+00> : vector<2x32xf32>
    %383 = tpu.matmul %382, %12, %cst_168 {dimension_numbers = #tpu.dot_dimension_numbers<[1], [0], [0], [1], [0, 0, 1, 1], [], []>} : vector<2x128xf32>, vector<128x32xf32>, vector<2x32xf32> -> vector<2x32xf32>
    %c0_169 = arith.constant 0 : index
    %c0_170 = arith.constant 0 : index
    %384 = vector.load %arg12[%c0_169, %c0_170] : memref<2x32xf32, #tpu.memory_space<vmem>>, vector<2x32xf32>
    tpu.vector_store %arg12[%c0_169, %c0_170], %383 {strides = array<i32>} : memref<2x32xf32, #tpu.memory_space<vmem>>, vector<2x32xf32>,
    return
  }
}

module attributes {stable_mosaic.version = 11 : i64} {
  func.func @_char_lstm_kernel(%arg0: memref<5x12x32xf32, #tpu.memory_space<vmem>>, %arg1: memref<5x12x32xf32, #tpu.memory_space<vmem>>, %arg2: memref<64x128xf32, #tpu.memory_space<vmem>>, %arg3: memref<1x128xf32, #tpu.memory_space<vmem>>, %arg4: memref<12x32xf32, #tpu.memory_space<vmem>>, %arg5: memref<12x32xf32, #tpu.memory_space<vmem>>, %arg6: memref<12x32xf32, #tpu.memory_space<vmem>>) attributes {dimension_semantics = [], scalar_prefetch = 0 : i64, scratch_operands = 2 : i64, tpu.core_type = #tpu.core_type<tc>} {
    %cst = arith.constant 0.000000e+00 : f32
    %0 = vector.broadcast %cst : f32 to vector<12x32xf32>
    %c0 = arith.constant 0 : index
    %c0_0 = arith.constant 0 : index
    %1 = vector.load %arg5[%c0, %c0_0] : memref<12x32xf32, #tpu.memory_space<vmem>>, vector<12x32xf32>
    tpu.vector_store %arg5[%c0, %c0_0], %0 {strides = array<i32>} : memref<12x32xf32, #tpu.memory_space<vmem>>, vector<12x32xf32>,
    %cst_1 = arith.constant 0.000000e+00 : f32
    %2 = vector.broadcast %cst_1 : f32 to vector<12x32xf32>
    %c0_2 = arith.constant 0 : index
    %c0_3 = arith.constant 0 : index
    %3 = vector.load %arg6[%c0_2, %c0_3] : memref<12x32xf32, #tpu.memory_space<vmem>>, vector<12x32xf32>
    tpu.vector_store %arg6[%c0_2, %c0_3], %2 {strides = array<i32>} : memref<12x32xf32, #tpu.memory_space<vmem>>, vector<12x32xf32>,
    %c0_4 = arith.constant 0 : index
    %c0_5 = arith.constant 0 : index
    %4 = vector.load %arg2[%c0_4, %c0_5] : memref<64x128xf32, #tpu.memory_space<vmem>>, vector<64x128xf32>
    %c0_6 = arith.constant 0 : index
    %c0_7 = arith.constant 0 : index
    %5 = vector.load %arg3[%c0_6, %c0_7] : memref<1x128xf32, #tpu.memory_space<vmem>>, vector<1x128xf32>
    %c0_8 = arith.constant 0 : index
    %c0_9 = arith.constant 0 : index
    %6 = vector.load %arg5[%c0_8, %c0_9] : memref<12x32xf32, #tpu.memory_space<vmem>>, vector<12x32xf32>
    %c0_10 = arith.constant 0 : index
    %c0_11 = arith.constant 0 : index
    %7 = vector.load %arg6[%c0_10, %c0_11] : memref<12x32xf32, #tpu.memory_space<vmem>>, vector<12x32xf32>
    %c0_12 = arith.constant 0 : index
    %c0_13 = arith.constant 0 : index
    %c0_14 = arith.constant 0 : index
    %8 = vector.load %arg0[%c0_12, %c0_13, %c0_14] : memref<5x12x32xf32, #tpu.memory_space<vmem>>, vector<1x12x32xf32>
    %9 = vector.shape_cast %8 : vector<1x12x32xf32> to vector<12x32xf32>
    %10 = tpu.concatenate %9, %6 in 1 : vector<12x32xf32>, vector<12x32xf32> -> vector<12x64xf32>
    %cst_15 = arith.constant dense<0.000000e+00> : vector<12x128xf32>
    %11 = tpu.matmul %10, %4, %cst_15 {dimension_numbers = #tpu.dot_dimension_numbers<[1], [0], [0], [1], [0, 0, 1, 1], [], []>} : vector<12x64xf32>, vector<64x128xf32>, vector<12x128xf32> -> vector<12x128xf32>
    %12 = vector.broadcast %5 : vector<1x128xf32> to vector<12x128xf32>
    %13 = arith.addf %11, %12 : vector<12x128xf32>
    %14 = vector.extract_strided_slice %13 {offsets = [0, 0], sizes = [12, 32], strides = [1, 1]} : vector<12x128xf32> to vector<12x32xf32>
    %cst_16 = arith.constant 0.000000e+00 : f32
    %15 = vector.broadcast %cst_16 : f32 to vector<12x32xf32>
    %16 = arith.subf %15, %14 : vector<12x32xf32>
    %17 = math.exp %16 : vector<12x32xf32>
    %cst_17 = arith.constant 1.000000e+00 : f32
    %18 = vector.broadcast %cst_17 : f32 to vector<12x32xf32>
    %19 = arith.addf %18, %17 : vector<12x32xf32>
    %20 = tpu.reciprocal %19 {approx = true} : vector<12x32xf32> -> vector<12x32xf32>
    %21 = vector.extract_strided_slice %13 {offsets = [0, 32], sizes = [12, 32], strides = [1, 1]} : vector<12x128xf32> to vector<12x32xf32>
    %cst_18 = arith.constant 0.000000e+00 : f32
    %22 = vector.broadcast %cst_18 : f32 to vector<12x32xf32>
    %23 = arith.subf %22, %21 : vector<12x32xf32>
    %24 = math.exp %23 : vector<12x32xf32>
    %cst_19 = arith.constant 1.000000e+00 : f32
    %25 = vector.broadcast %cst_19 : f32 to vector<12x32xf32>
    %26 = arith.addf %25, %24 : vector<12x32xf32>
    %27 = tpu.reciprocal %26 {approx = true} : vector<12x32xf32> -> vector<12x32xf32>
    %28 = vector.extract_strided_slice %13 {offsets = [0, 64], sizes = [12, 32], strides = [1, 1]} : vector<12x128xf32> to vector<12x32xf32>
    %29 = math.tanh %28 : vector<12x32xf32>
    %30 = vector.extract_strided_slice %13 {offsets = [0, 96], sizes = [12, 32], strides = [1, 1]} : vector<12x128xf32> to vector<12x32xf32>
    %cst_20 = arith.constant 0.000000e+00 : f32
    %31 = vector.broadcast %cst_20 : f32 to vector<12x32xf32>
    %32 = arith.subf %31, %30 : vector<12x32xf32>
    %33 = math.exp %32 : vector<12x32xf32>
    %cst_21 = arith.constant 1.000000e+00 : f32
    %34 = vector.broadcast %cst_21 : f32 to vector<12x32xf32>
    %35 = arith.addf %34, %33 : vector<12x32xf32>
    %36 = tpu.reciprocal %35 {approx = true} : vector<12x32xf32> -> vector<12x32xf32>
    %37 = arith.mulf %27, %7 : vector<12x32xf32>
    %38 = arith.mulf %20, %29 : vector<12x32xf32>
    %39 = arith.addf %37, %38 : vector<12x32xf32>
    %40 = math.tanh %39 : vector<12x32xf32>
    %41 = arith.mulf %36, %40 : vector<12x32xf32>
    %c0_22 = arith.constant 0 : index
    %c0_23 = arith.constant 0 : index
    %c0_24 = arith.constant 0 : index
    %42 = vector.load %arg1[%c0_22, %c0_23, %c0_24] : memref<5x12x32xf32, #tpu.memory_space<vmem>>, vector<1x12x32xf32>
    %43 = vector.shape_cast %42 : vector<1x12x32xf32> to vector<12x32xf32>
    %44 = arith.mulf %43, %41 : vector<12x32xf32>
    %cst_25 = arith.constant 1.000000e+00 : f32
    %45 = vector.broadcast %cst_25 : f32 to vector<12x32xf32>
    %46 = arith.subf %45, %43 : vector<12x32xf32>
    %47 = arith.mulf %46, %6 : vector<12x32xf32>
    %48 = arith.addf %44, %47 : vector<12x32xf32>
    %c0_26 = arith.constant 0 : index
    %c0_27 = arith.constant 0 : index
    %49 = vector.load %arg5[%c0_26, %c0_27] : memref<12x32xf32, #tpu.memory_space<vmem>>, vector<12x32xf32>
    tpu.vector_store %arg5[%c0_26, %c0_27], %48 {strides = array<i32>} : memref<12x32xf32, #tpu.memory_space<vmem>>, vector<12x32xf32>,
    %50 = arith.mulf %43, %39 : vector<12x32xf32>
    %cst_28 = arith.constant 1.000000e+00 : f32
    %51 = vector.broadcast %cst_28 : f32 to vector<12x32xf32>
    %52 = arith.subf %51, %43 : vector<12x32xf32>
    %53 = arith.mulf %52, %7 : vector<12x32xf32>
    %54 = arith.addf %50, %53 : vector<12x32xf32>
    %c0_29 = arith.constant 0 : index
    %c0_30 = arith.constant 0 : index
    %55 = vector.load %arg6[%c0_29, %c0_30] : memref<12x32xf32, #tpu.memory_space<vmem>>, vector<12x32xf32>
    tpu.vector_store %arg6[%c0_29, %c0_30], %54 {strides = array<i32>} : memref<12x32xf32, #tpu.memory_space<vmem>>, vector<12x32xf32>,
    %c0_31 = arith.constant 0 : index
    %c0_32 = arith.constant 0 : index
    %56 = vector.load %arg5[%c0_31, %c0_32] : memref<12x32xf32, #tpu.memory_space<vmem>>, vector<12x32xf32>
    %c0_33 = arith.constant 0 : index
    %c0_34 = arith.constant 0 : index
    %57 = vector.load %arg6[%c0_33, %c0_34] : memref<12x32xf32, #tpu.memory_space<vmem>>, vector<12x32xf32>
    %c1 = arith.constant 1 : index
    %c0_35 = arith.constant 0 : index
    %c0_36 = arith.constant 0 : index
    %58 = vector.load %arg0[%c1, %c0_35, %c0_36] : memref<5x12x32xf32, #tpu.memory_space<vmem>>, vector<1x12x32xf32>
    %59 = vector.shape_cast %58 : vector<1x12x32xf32> to vector<12x32xf32>
    %60 = tpu.concatenate %59, %56 in 1 : vector<12x32xf32>, vector<12x32xf32> -> vector<12x64xf32>
    %cst_37 = arith.constant dense<0.000000e+00> : vector<12x128xf32>
    %61 = tpu.matmul %60, %4, %cst_37 {dimension_numbers = #tpu.dot_dimension_numbers<[1], [0], [0], [1], [0, 0, 1, 1], [], []>} : vector<12x64xf32>, vector<64x128xf32>, vector<12x128xf32> -> vector<12x128xf32>
    %62 = vector.broadcast %5 : vector<1x128xf32> to vector<12x128xf32>
    %63 = arith.addf %61, %62 : vector<12x128xf32>
    %64 = vector.extract_strided_slice %63 {offsets = [0, 0], sizes = [12, 32], strides = [1, 1]} : vector<12x128xf32> to vector<12x32xf32>
    %cst_38 = arith.constant 0.000000e+00 : f32
    %65 = vector.broadcast %cst_38 : f32 to vector<12x32xf32>
    %66 = arith.subf %65, %64 : vector<12x32xf32>
    %67 = math.exp %66 : vector<12x32xf32>
    %cst_39 = arith.constant 1.000000e+00 : f32
    %68 = vector.broadcast %cst_39 : f32 to vector<12x32xf32>
    %69 = arith.addf %68, %67 : vector<12x32xf32>
    %70 = tpu.reciprocal %69 {approx = true} : vector<12x32xf32> -> vector<12x32xf32>
    %71 = vector.extract_strided_slice %63 {offsets = [0, 32], sizes = [12, 32], strides = [1, 1]} : vector<12x128xf32> to vector<12x32xf32>
    %cst_40 = arith.constant 0.000000e+00 : f32
    %72 = vector.broadcast %cst_40 : f32 to vector<12x32xf32>
    %73 = arith.subf %72, %71 : vector<12x32xf32>
    %74 = math.exp %73 : vector<12x32xf32>
    %cst_41 = arith.constant 1.000000e+00 : f32
    %75 = vector.broadcast %cst_41 : f32 to vector<12x32xf32>
    %76 = arith.addf %75, %74 : vector<12x32xf32>
    %77 = tpu.reciprocal %76 {approx = true} : vector<12x32xf32> -> vector<12x32xf32>
    %78 = vector.extract_strided_slice %63 {offsets = [0, 64], sizes = [12, 32], strides = [1, 1]} : vector<12x128xf32> to vector<12x32xf32>
    %79 = math.tanh %78 : vector<12x32xf32>
    %80 = vector.extract_strided_slice %63 {offsets = [0, 96], sizes = [12, 32], strides = [1, 1]} : vector<12x128xf32> to vector<12x32xf32>
    %cst_42 = arith.constant 0.000000e+00 : f32
    %81 = vector.broadcast %cst_42 : f32 to vector<12x32xf32>
    %82 = arith.subf %81, %80 : vector<12x32xf32>
    %83 = math.exp %82 : vector<12x32xf32>
    %cst_43 = arith.constant 1.000000e+00 : f32
    %84 = vector.broadcast %cst_43 : f32 to vector<12x32xf32>
    %85 = arith.addf %84, %83 : vector<12x32xf32>
    %86 = tpu.reciprocal %85 {approx = true} : vector<12x32xf32> -> vector<12x32xf32>
    %87 = arith.mulf %77, %57 : vector<12x32xf32>
    %88 = arith.mulf %70, %79 : vector<12x32xf32>
    %89 = arith.addf %87, %88 : vector<12x32xf32>
    %90 = math.tanh %89 : vector<12x32xf32>
    %91 = arith.mulf %86, %90 : vector<12x32xf32>
    %c1_44 = arith.constant 1 : index
    %c0_45 = arith.constant 0 : index
    %c0_46 = arith.constant 0 : index
    %92 = vector.load %arg1[%c1_44, %c0_45, %c0_46] : memref<5x12x32xf32, #tpu.memory_space<vmem>>, vector<1x12x32xf32>
    %93 = vector.shape_cast %92 : vector<1x12x32xf32> to vector<12x32xf32>
    %94 = arith.mulf %93, %91 : vector<12x32xf32>
    %cst_47 = arith.constant 1.000000e+00 : f32
    %95 = vector.broadcast %cst_47 : f32 to vector<12x32xf32>
    %96 = arith.subf %95, %93 : vector<12x32xf32>
    %97 = arith.mulf %96, %56 : vector<12x32xf32>
    %98 = arith.addf %94, %97 : vector<12x32xf32>
    %c0_48 = arith.constant 0 : index
    %c0_49 = arith.constant 0 : index
    %99 = vector.load %arg5[%c0_48, %c0_49] : memref<12x32xf32, #tpu.memory_space<vmem>>, vector<12x32xf32>
    tpu.vector_store %arg5[%c0_48, %c0_49], %98 {strides = array<i32>} : memref<12x32xf32, #tpu.memory_space<vmem>>, vector<12x32xf32>,
    %100 = arith.mulf %93, %89 : vector<12x32xf32>
    %cst_50 = arith.constant 1.000000e+00 : f32
    %101 = vector.broadcast %cst_50 : f32 to vector<12x32xf32>
    %102 = arith.subf %101, %93 : vector<12x32xf32>
    %103 = arith.mulf %102, %57 : vector<12x32xf32>
    %104 = arith.addf %100, %103 : vector<12x32xf32>
    %c0_51 = arith.constant 0 : index
    %c0_52 = arith.constant 0 : index
    %105 = vector.load %arg6[%c0_51, %c0_52] : memref<12x32xf32, #tpu.memory_space<vmem>>, vector<12x32xf32>
    tpu.vector_store %arg6[%c0_51, %c0_52], %104 {strides = array<i32>} : memref<12x32xf32, #tpu.memory_space<vmem>>, vector<12x32xf32>,
    %c0_53 = arith.constant 0 : index
    %c0_54 = arith.constant 0 : index
    %106 = vector.load %arg5[%c0_53, %c0_54] : memref<12x32xf32, #tpu.memory_space<vmem>>, vector<12x32xf32>
    %c0_55 = arith.constant 0 : index
    %c0_56 = arith.constant 0 : index
    %107 = vector.load %arg6[%c0_55, %c0_56] : memref<12x32xf32, #tpu.memory_space<vmem>>, vector<12x32xf32>
    %c2 = arith.constant 2 : index
    %c0_57 = arith.constant 0 : index
    %c0_58 = arith.constant 0 : index
    %108 = vector.load %arg0[%c2, %c0_57, %c0_58] : memref<5x12x32xf32, #tpu.memory_space<vmem>>, vector<1x12x32xf32>
    %109 = vector.shape_cast %108 : vector<1x12x32xf32> to vector<12x32xf32>
    %110 = tpu.concatenate %109, %106 in 1 : vector<12x32xf32>, vector<12x32xf32> -> vector<12x64xf32>
    %cst_59 = arith.constant dense<0.000000e+00> : vector<12x128xf32>
    %111 = tpu.matmul %110, %4, %cst_59 {dimension_numbers = #tpu.dot_dimension_numbers<[1], [0], [0], [1], [0, 0, 1, 1], [], []>} : vector<12x64xf32>, vector<64x128xf32>, vector<12x128xf32> -> vector<12x128xf32>
    %112 = vector.broadcast %5 : vector<1x128xf32> to vector<12x128xf32>
    %113 = arith.addf %111, %112 : vector<12x128xf32>
    %114 = vector.extract_strided_slice %113 {offsets = [0, 0], sizes = [12, 32], strides = [1, 1]} : vector<12x128xf32> to vector<12x32xf32>
    %cst_60 = arith.constant 0.000000e+00 : f32
    %115 = vector.broadcast %cst_60 : f32 to vector<12x32xf32>
    %116 = arith.subf %115, %114 : vector<12x32xf32>
    %117 = math.exp %116 : vector<12x32xf32>
    %cst_61 = arith.constant 1.000000e+00 : f32
    %118 = vector.broadcast %cst_61 : f32 to vector<12x32xf32>
    %119 = arith.addf %118, %117 : vector<12x32xf32>
    %120 = tpu.reciprocal %119 {approx = true} : vector<12x32xf32> -> vector<12x32xf32>
    %121 = vector.extract_strided_slice %113 {offsets = [0, 32], sizes = [12, 32], strides = [1, 1]} : vector<12x128xf32> to vector<12x32xf32>
    %cst_62 = arith.constant 0.000000e+00 : f32
    %122 = vector.broadcast %cst_62 : f32 to vector<12x32xf32>
    %123 = arith.subf %122, %121 : vector<12x32xf32>
    %124 = math.exp %123 : vector<12x32xf32>
    %cst_63 = arith.constant 1.000000e+00 : f32
    %125 = vector.broadcast %cst_63 : f32 to vector<12x32xf32>
    %126 = arith.addf %125, %124 : vector<12x32xf32>
    %127 = tpu.reciprocal %126 {approx = true} : vector<12x32xf32> -> vector<12x32xf32>
    %128 = vector.extract_strided_slice %113 {offsets = [0, 64], sizes = [12, 32], strides = [1, 1]} : vector<12x128xf32> to vector<12x32xf32>
    %129 = math.tanh %128 : vector<12x32xf32>
    %130 = vector.extract_strided_slice %113 {offsets = [0, 96], sizes = [12, 32], strides = [1, 1]} : vector<12x128xf32> to vector<12x32xf32>
    %cst_64 = arith.constant 0.000000e+00 : f32
    %131 = vector.broadcast %cst_64 : f32 to vector<12x32xf32>
    %132 = arith.subf %131, %130 : vector<12x32xf32>
    %133 = math.exp %132 : vector<12x32xf32>
    %cst_65 = arith.constant 1.000000e+00 : f32
    %134 = vector.broadcast %cst_65 : f32 to vector<12x32xf32>
    %135 = arith.addf %134, %133 : vector<12x32xf32>
    %136 = tpu.reciprocal %135 {approx = true} : vector<12x32xf32> -> vector<12x32xf32>
    %137 = arith.mulf %127, %107 : vector<12x32xf32>
    %138 = arith.mulf %120, %129 : vector<12x32xf32>
    %139 = arith.addf %137, %138 : vector<12x32xf32>
    %140 = math.tanh %139 : vector<12x32xf32>
    %141 = arith.mulf %136, %140 : vector<12x32xf32>
    %c2_66 = arith.constant 2 : index
    %c0_67 = arith.constant 0 : index
    %c0_68 = arith.constant 0 : index
    %142 = vector.load %arg1[%c2_66, %c0_67, %c0_68] : memref<5x12x32xf32, #tpu.memory_space<vmem>>, vector<1x12x32xf32>
    %143 = vector.shape_cast %142 : vector<1x12x32xf32> to vector<12x32xf32>
    %144 = arith.mulf %143, %141 : vector<12x32xf32>
    %cst_69 = arith.constant 1.000000e+00 : f32
    %145 = vector.broadcast %cst_69 : f32 to vector<12x32xf32>
    %146 = arith.subf %145, %143 : vector<12x32xf32>
    %147 = arith.mulf %146, %106 : vector<12x32xf32>
    %148 = arith.addf %144, %147 : vector<12x32xf32>
    %c0_70 = arith.constant 0 : index
    %c0_71 = arith.constant 0 : index
    %149 = vector.load %arg5[%c0_70, %c0_71] : memref<12x32xf32, #tpu.memory_space<vmem>>, vector<12x32xf32>
    tpu.vector_store %arg5[%c0_70, %c0_71], %148 {strides = array<i32>} : memref<12x32xf32, #tpu.memory_space<vmem>>, vector<12x32xf32>,
    %150 = arith.mulf %143, %139 : vector<12x32xf32>
    %cst_72 = arith.constant 1.000000e+00 : f32
    %151 = vector.broadcast %cst_72 : f32 to vector<12x32xf32>
    %152 = arith.subf %151, %143 : vector<12x32xf32>
    %153 = arith.mulf %152, %107 : vector<12x32xf32>
    %154 = arith.addf %150, %153 : vector<12x32xf32>
    %c0_73 = arith.constant 0 : index
    %c0_74 = arith.constant 0 : index
    %155 = vector.load %arg6[%c0_73, %c0_74] : memref<12x32xf32, #tpu.memory_space<vmem>>, vector<12x32xf32>
    tpu.vector_store %arg6[%c0_73, %c0_74], %154 {strides = array<i32>} : memref<12x32xf32, #tpu.memory_space<vmem>>, vector<12x32xf32>,
    %c0_75 = arith.constant 0 : index
    %c0_76 = arith.constant 0 : index
    %156 = vector.load %arg5[%c0_75, %c0_76] : memref<12x32xf32, #tpu.memory_space<vmem>>, vector<12x32xf32>
    %c0_77 = arith.constant 0 : index
    %c0_78 = arith.constant 0 : index
    %157 = vector.load %arg6[%c0_77, %c0_78] : memref<12x32xf32, #tpu.memory_space<vmem>>, vector<12x32xf32>
    %c3 = arith.constant 3 : index
    %c0_79 = arith.constant 0 : index
    %c0_80 = arith.constant 0 : index
    %158 = vector.load %arg0[%c3, %c0_79, %c0_80] : memref<5x12x32xf32, #tpu.memory_space<vmem>>, vector<1x12x32xf32>
    %159 = vector.shape_cast %158 : vector<1x12x32xf32> to vector<12x32xf32>
    %160 = tpu.concatenate %159, %156 in 1 : vector<12x32xf32>, vector<12x32xf32> -> vector<12x64xf32>
    %cst_81 = arith.constant dense<0.000000e+00> : vector<12x128xf32>
    %161 = tpu.matmul %160, %4, %cst_81 {dimension_numbers = #tpu.dot_dimension_numbers<[1], [0], [0], [1], [0, 0, 1, 1], [], []>} : vector<12x64xf32>, vector<64x128xf32>, vector<12x128xf32> -> vector<12x128xf32>
    %162 = vector.broadcast %5 : vector<1x128xf32> to vector<12x128xf32>
    %163 = arith.addf %161, %162 : vector<12x128xf32>
    %164 = vector.extract_strided_slice %163 {offsets = [0, 0], sizes = [12, 32], strides = [1, 1]} : vector<12x128xf32> to vector<12x32xf32>
    %cst_82 = arith.constant 0.000000e+00 : f32
    %165 = vector.broadcast %cst_82 : f32 to vector<12x32xf32>
    %166 = arith.subf %165, %164 : vector<12x32xf32>
    %167 = math.exp %166 : vector<12x32xf32>
    %cst_83 = arith.constant 1.000000e+00 : f32
    %168 = vector.broadcast %cst_83 : f32 to vector<12x32xf32>
    %169 = arith.addf %168, %167 : vector<12x32xf32>
    %170 = tpu.reciprocal %169 {approx = true} : vector<12x32xf32> -> vector<12x32xf32>
    %171 = vector.extract_strided_slice %163 {offsets = [0, 32], sizes = [12, 32], strides = [1, 1]} : vector<12x128xf32> to vector<12x32xf32>
    %cst_84 = arith.constant 0.000000e+00 : f32
    %172 = vector.broadcast %cst_84 : f32 to vector<12x32xf32>
    %173 = arith.subf %172, %171 : vector<12x32xf32>
    %174 = math.exp %173 : vector<12x32xf32>
    %cst_85 = arith.constant 1.000000e+00 : f32
    %175 = vector.broadcast %cst_85 : f32 to vector<12x32xf32>
    %176 = arith.addf %175, %174 : vector<12x32xf32>
    %177 = tpu.reciprocal %176 {approx = true} : vector<12x32xf32> -> vector<12x32xf32>
    %178 = vector.extract_strided_slice %163 {offsets = [0, 64], sizes = [12, 32], strides = [1, 1]} : vector<12x128xf32> to vector<12x32xf32>
    %179 = math.tanh %178 : vector<12x32xf32>
    %180 = vector.extract_strided_slice %163 {offsets = [0, 96], sizes = [12, 32], strides = [1, 1]} : vector<12x128xf32> to vector<12x32xf32>
    %cst_86 = arith.constant 0.000000e+00 : f32
    %181 = vector.broadcast %cst_86 : f32 to vector<12x32xf32>
    %182 = arith.subf %181, %180 : vector<12x32xf32>
    %183 = math.exp %182 : vector<12x32xf32>
    %cst_87 = arith.constant 1.000000e+00 : f32
    %184 = vector.broadcast %cst_87 : f32 to vector<12x32xf32>
    %185 = arith.addf %184, %183 : vector<12x32xf32>
    %186 = tpu.reciprocal %185 {approx = true} : vector<12x32xf32> -> vector<12x32xf32>
    %187 = arith.mulf %177, %157 : vector<12x32xf32>
    %188 = arith.mulf %170, %179 : vector<12x32xf32>
    %189 = arith.addf %187, %188 : vector<12x32xf32>
    %190 = math.tanh %189 : vector<12x32xf32>
    %191 = arith.mulf %186, %190 : vector<12x32xf32>
    %c3_88 = arith.constant 3 : index
    %c0_89 = arith.constant 0 : index
    %c0_90 = arith.constant 0 : index
    %192 = vector.load %arg1[%c3_88, %c0_89, %c0_90] : memref<5x12x32xf32, #tpu.memory_space<vmem>>, vector<1x12x32xf32>
    %193 = vector.shape_cast %192 : vector<1x12x32xf32> to vector<12x32xf32>
    %194 = arith.mulf %193, %191 : vector<12x32xf32>
    %cst_91 = arith.constant 1.000000e+00 : f32
    %195 = vector.broadcast %cst_91 : f32 to vector<12x32xf32>
    %196 = arith.subf %195, %193 : vector<12x32xf32>
    %197 = arith.mulf %196, %156 : vector<12x32xf32>
    %198 = arith.addf %194, %197 : vector<12x32xf32>
    %c0_92 = arith.constant 0 : index
    %c0_93 = arith.constant 0 : index
    %199 = vector.load %arg5[%c0_92, %c0_93] : memref<12x32xf32, #tpu.memory_space<vmem>>, vector<12x32xf32>
    tpu.vector_store %arg5[%c0_92, %c0_93], %198 {strides = array<i32>} : memref<12x32xf32, #tpu.memory_space<vmem>>, vector<12x32xf32>,
    %200 = arith.mulf %193, %189 : vector<12x32xf32>
    %cst_94 = arith.constant 1.000000e+00 : f32
    %201 = vector.broadcast %cst_94 : f32 to vector<12x32xf32>
    %202 = arith.subf %201, %193 : vector<12x32xf32>
    %203 = arith.mulf %202, %157 : vector<12x32xf32>
    %204 = arith.addf %200, %203 : vector<12x32xf32>
    %c0_95 = arith.constant 0 : index
    %c0_96 = arith.constant 0 : index
    %205 = vector.load %arg6[%c0_95, %c0_96] : memref<12x32xf32, #tpu.memory_space<vmem>>, vector<12x32xf32>
    tpu.vector_store %arg6[%c0_95, %c0_96], %204 {strides = array<i32>} : memref<12x32xf32, #tpu.memory_space<vmem>>, vector<12x32xf32>,
    %c0_97 = arith.constant 0 : index
    %c0_98 = arith.constant 0 : index
    %206 = vector.load %arg5[%c0_97, %c0_98] : memref<12x32xf32, #tpu.memory_space<vmem>>, vector<12x32xf32>
    %c0_99 = arith.constant 0 : index
    %c0_100 = arith.constant 0 : index
    %207 = vector.load %arg6[%c0_99, %c0_100] : memref<12x32xf32, #tpu.memory_space<vmem>>, vector<12x32xf32>
    %c4 = arith.constant 4 : index
    %c0_101 = arith.constant 0 : index
    %c0_102 = arith.constant 0 : index
    %208 = vector.load %arg0[%c4, %c0_101, %c0_102] : memref<5x12x32xf32, #tpu.memory_space<vmem>>, vector<1x12x32xf32>
    %209 = vector.shape_cast %208 : vector<1x12x32xf32> to vector<12x32xf32>
    %210 = tpu.concatenate %209, %206 in 1 : vector<12x32xf32>, vector<12x32xf32> -> vector<12x64xf32>
    %cst_103 = arith.constant dense<0.000000e+00> : vector<12x128xf32>
    %211 = tpu.matmul %210, %4, %cst_103 {dimension_numbers = #tpu.dot_dimension_numbers<[1], [0], [0], [1], [0, 0, 1, 1], [], []>} : vector<12x64xf32>, vector<64x128xf32>, vector<12x128xf32> -> vector<12x128xf32>
    %212 = vector.broadcast %5 : vector<1x128xf32> to vector<12x128xf32>
    %213 = arith.addf %211, %212 : vector<12x128xf32>
    %214 = vector.extract_strided_slice %213 {offsets = [0, 0], sizes = [12, 32], strides = [1, 1]} : vector<12x128xf32> to vector<12x32xf32>
    %cst_104 = arith.constant 0.000000e+00 : f32
    %215 = vector.broadcast %cst_104 : f32 to vector<12x32xf32>
    %216 = arith.subf %215, %214 : vector<12x32xf32>
    %217 = math.exp %216 : vector<12x32xf32>
    %cst_105 = arith.constant 1.000000e+00 : f32
    %218 = vector.broadcast %cst_105 : f32 to vector<12x32xf32>
    %219 = arith.addf %218, %217 : vector<12x32xf32>
    %220 = tpu.reciprocal %219 {approx = true} : vector<12x32xf32> -> vector<12x32xf32>
    %221 = vector.extract_strided_slice %213 {offsets = [0, 32], sizes = [12, 32], strides = [1, 1]} : vector<12x128xf32> to vector<12x32xf32>
    %cst_106 = arith.constant 0.000000e+00 : f32
    %222 = vector.broadcast %cst_106 : f32 to vector<12x32xf32>
    %223 = arith.subf %222, %221 : vector<12x32xf32>
    %224 = math.exp %223 : vector<12x32xf32>
    %cst_107 = arith.constant 1.000000e+00 : f32
    %225 = vector.broadcast %cst_107 : f32 to vector<12x32xf32>
    %226 = arith.addf %225, %224 : vector<12x32xf32>
    %227 = tpu.reciprocal %226 {approx = true} : vector<12x32xf32> -> vector<12x32xf32>
    %228 = vector.extract_strided_slice %213 {offsets = [0, 64], sizes = [12, 32], strides = [1, 1]} : vector<12x128xf32> to vector<12x32xf32>
    %229 = math.tanh %228 : vector<12x32xf32>
    %230 = vector.extract_strided_slice %213 {offsets = [0, 96], sizes = [12, 32], strides = [1, 1]} : vector<12x128xf32> to vector<12x32xf32>
    %cst_108 = arith.constant 0.000000e+00 : f32
    %231 = vector.broadcast %cst_108 : f32 to vector<12x32xf32>
    %232 = arith.subf %231, %230 : vector<12x32xf32>
    %233 = math.exp %232 : vector<12x32xf32>
    %cst_109 = arith.constant 1.000000e+00 : f32
    %234 = vector.broadcast %cst_109 : f32 to vector<12x32xf32>
    %235 = arith.addf %234, %233 : vector<12x32xf32>
    %236 = tpu.reciprocal %235 {approx = true} : vector<12x32xf32> -> vector<12x32xf32>
    %237 = arith.mulf %227, %207 : vector<12x32xf32>
    %238 = arith.mulf %220, %229 : vector<12x32xf32>
    %239 = arith.addf %237, %238 : vector<12x32xf32>
    %240 = math.tanh %239 : vector<12x32xf32>
    %241 = arith.mulf %236, %240 : vector<12x32xf32>
    %c4_110 = arith.constant 4 : index
    %c0_111 = arith.constant 0 : index
    %c0_112 = arith.constant 0 : index
    %242 = vector.load %arg1[%c4_110, %c0_111, %c0_112] : memref<5x12x32xf32, #tpu.memory_space<vmem>>, vector<1x12x32xf32>
    %243 = vector.shape_cast %242 : vector<1x12x32xf32> to vector<12x32xf32>
    %244 = arith.mulf %243, %241 : vector<12x32xf32>
    %cst_113 = arith.constant 1.000000e+00 : f32
    %245 = vector.broadcast %cst_113 : f32 to vector<12x32xf32>
    %246 = arith.subf %245, %243 : vector<12x32xf32>
    %247 = arith.mulf %246, %206 : vector<12x32xf32>
    %248 = arith.addf %244, %247 : vector<12x32xf32>
    %c0_114 = arith.constant 0 : index
    %c0_115 = arith.constant 0 : index
    %249 = vector.load %arg5[%c0_114, %c0_115] : memref<12x32xf32, #tpu.memory_space<vmem>>, vector<12x32xf32>
    tpu.vector_store %arg5[%c0_114, %c0_115], %248 {strides = array<i32>} : memref<12x32xf32, #tpu.memory_space<vmem>>, vector<12x32xf32>,
    %250 = arith.mulf %243, %239 : vector<12x32xf32>
    %cst_116 = arith.constant 1.000000e+00 : f32
    %251 = vector.broadcast %cst_116 : f32 to vector<12x32xf32>
    %252 = arith.subf %251, %243 : vector<12x32xf32>
    %253 = arith.mulf %252, %207 : vector<12x32xf32>
    %254 = arith.addf %250, %253 : vector<12x32xf32>
    %c0_117 = arith.constant 0 : index
    %c0_118 = arith.constant 0 : index
    %255 = vector.load %arg6[%c0_117, %c0_118] : memref<12x32xf32, #tpu.memory_space<vmem>>, vector<12x32xf32>
    tpu.vector_store %arg6[%c0_117, %c0_118], %254 {strides = array<i32>} : memref<12x32xf32, #tpu.memory_space<vmem>>, vector<12x32xf32>,
    %c0_119 = arith.constant 0 : index
    %c0_120 = arith.constant 0 : index
    %256 = vector.load %arg5[%c0_119, %c0_120] : memref<12x32xf32, #tpu.memory_space<vmem>>, vector<12x32xf32>
    %c0_121 = arith.constant 0 : index
    %c0_122 = arith.constant 0 : index
    %257 = vector.load %arg4[%c0_121, %c0_122] : memref<12x32xf32, #tpu.memory_space<vmem>>, vector<12x32xf32>
    tpu.vector_store %arg4[%c0_121, %c0_122], %256 {strides = array<i32>} : memref<12x32xf32, #tpu.memory_space<vmem>>, vector<12x32xf32>,
    return
  }
}

</mosaic_0001>

<bundles_post_ra>
// kernel: seq2seq_forward.4
= control target key start
LH: loop header
LB: loop body
LE: loop exit
PB: predicated region body
PF: predicated region fallthrough
CT: control target
= control target key end

     0   :  { %vm20_vm0 = vcmask 257024   ;;  %v1029_v0 = vmov 0.0   ;;  %s1030_s21 = smov 32   ;;  %vm49_vm1 = vcmask 261120   ;;  %vm62_vm2 = vcmask 523264   ;;  %s1358_s3 = inlined_call_operand.vmem [shape: f32[64,256], index: 3, kind: input, shape index: {}]   ;;  %s1359_s0 = inlined_call_operand.vmem [shape: f32[6,4,32], index: 0, kind: input, shape index: {}]   ;;  %s1360_s4 = inlined_call_operand.vmem [shape: f32[1,256], index: 4, kind: input, shape index: {}]   ;;  %s1361_s2 = inlined_call_operand.vmem [shape: f32[4,128], index: 2, kind: input, shape index: {}]   ;;  %s1362_s1 = inlined_call_operand.vmem [shape: f32[6,4,32], index: 1, kind: input, shape index: {}]   ;;  %s1363_s5 = inlined_call_operand.vmem [shape: f32[6,4,32], index: 5, kind: output, shape index: {}]  }
   0x1   :  { %21 = vst.msk [vmem:[#allocation2] sm:$0xf] %vm20_vm0, %v1029_v0  ;;  %22 = vst.msk [vmem:[#allocation3] sm:$0xf] %vm20_vm0, %v1029_v0  ;;  %v24_v1 = vld [vmem:[%s1358_s3 + $0x8] sm:$0xff]  ;;  %v26_v2 = vld [vmem:[%s1358_s3 + $0x18] sm:$0xff]  ;;  %130 = vmatprep.mubr.f32.mxu0 %v1029_v0  ;;  %262 = vmatprep.mubr.f32.mxu1 %v1029_v0  ;;  %v52_v30 = vlaneseq }
   0x2   :  { %v23_v3 = vld [vmem:[%s1358_s3] sm:$0xff]  ;;  %v1078_v4 = vpack.c.bf16 %v26_v2, %v24_v1  ;;  %v25_v5 = vld [vmem:[%s1358_s3 + $0x10] sm:$0xff]  ;;  %v28_v6 = vld [vmem:[%s1358_s3 + $0x28] sm:$0xff] }
   0x3   :  { %v30_v7 = vld [vmem:[%s1358_s3 + $0x38] sm:$0xff]  ;;  %v1089_v8 = vpack.c.bf16 %v25_v5, %v23_v3  ;;  %v27_v10 = vld [vmem:[%s1358_s3 + $0x20] sm:$0xff]  ;;  %v29_v11 = vld [vmem:[%s1358_s3 + $0x30] sm:$0xff]  ;;  %v53_v31 = vshrl.u32 %v52_v30, 7 }
   0x4   :  { %v1091_v9 = vpack.c.bf16 %v30_v7, %v28_v6  ;;  %v32_v12 = vld [vmem:[%s1358_s3 + $0x48] sm:$0xff]  ;;  %882 = vmatprep.subr.bf16.mxu0 %v1078_v4  ;;  %v34_v13 = vld [vmem:[%s1358_s3 + $0x58] sm:$0xff]  ;;  %898 = vmatprep.subr.bf16.mxu1 %v1078_v4  ;;  %v1108_v14 = vpack.c.bf16 %v29_v11, %v27_v10  ;;  %v31_v16 = vld [vmem:[%s1358_s3 + $0x40] sm:$0xff] }
   0x5   :  { %884 = vmatpush1.bf16.msra.mxu0 %v1089_v8  ;;  %900 = vmatpush1.bf16.msra.mxu1 %v1089_v8  ;;  %v1112_v15 = vpack.c.bf16 %v34_v13, %v32_v12  ;;  %v33_v17 = vld [vmem:[%s1358_s3 + $0x50] sm:$0xff]  ;;  %v36_v18 = vld [vmem:[%s1358_s3 + $0x68] sm:$0xff]  ;;  %v38_v19 = vld [vmem:[%s1358_s3 + $0x78] sm:$0xff]  ;;  %v54_v32 = vsub.s32 0, %v53_v31  ;;  %v58_v34 = vsub.s32 1, %v53_v31 }
   0x6   :  { %886 = vmatprep.subr.bf16.mxu0 %v1091_v9  ;;  %902 = vmatprep.subr.bf16.mxu1 %v1091_v9  ;;  %v1134_v22 = vpack.c.bf16 %v33_v17, %v31_v16  ;;  %v1137_v23 = vpack.c.bf16 %v38_v19, %v36_v18  ;;  %v35_v24 = vld [vmem:[%s1358_s3 + $0x60] sm:$0xff]  ;;  %v37_v25 = vld [vmem:[%s1358_s3 + $0x70] sm:$0xff] }
   0x7   :  { %v1150_v26 = vpack.c.bf16 %v37_v25, %v35_v24  ;;  %v44_v27 = vld [vmem:[%s1359_s0] sm:$0xf]  ;;  %v861_v13 = vld [vmem:[%s1359_s0 + $0x4] sm:$0xf] }
   0x8   :  { %v1127_v20 = vld [vmem:[#allocation2] sm:$0xf]  ;;  %v1129_v21 = vld [vmem:[#allocation3] sm:$0xf] }
   0x9   :  { %46 = vrot.lane.b32.xlu0 %v1127_v20, %s1030_s21  ;;  %888 = vmatpush1.bf16.msra.mxu0 %v1108_v14  ;;  %v39_v33 = vld [vmem:[%s1360_s4] sm:$0x3]  ;;  %s1032_s4 = smov 96  }
   0xa   :  { %890 = vmatprep.subr.bf16.mxu0 %v1112_v15  ;;  %147 = vrot.lane.b32.xlu1 %v1129_v21, %s1030_s21  ;;  %v1179_v35 = vld [vmem:[%s1361_s2] sm:$0xf]  ;;  %v1181_v36 = vrot.slane %v39_v33, %v54_v32  ;;  %v1183_v37 = vrot.slane %v39_v33, %v58_v34  ;;  %s1031_s2 = smov 64  }
   0xb   :  { %904 = vmatpush1.bf16.msra.mxu1 %v1108_v14  ;;  %v1186_v39 = vsub.f32 1.0, %v1179_v35  ;;  %v167_v61 = vld [vmem:[%s1362_s1] sm:$0xf] }
   0xc   :  { %906 = vmatprep.subr.bf16.mxu1 %v1112_v15  ;;  %v173_v62 = vsub.f32 1.0, %v167_v61 }
   0xd   :  { %892 = vmatpush1.bf16.msra.mxu0 %v1134_v22 }
   0xe   :  { %894 = vmatprep.subr.bf16.mxu0 %v1137_v23  ;;  %v174_v63 = vmul.f32 %v173_v62, %v1127_v20  ;;  %v182_v5 = vmul.f32 %v173_v62, %v1129_v21 }
   0xf   :  { %908 = vmatpush1.bf16.msra.mxu1 %v1134_v22 }
  0x10   :  { %910 = vmatprep.subr.bf16.mxu1 %v1137_v23 }
  0x11   :  { %896 = vmatpush1.bf16.msra.mxu0 %v1150_v26 }
  0x12   :  { %914 = vmatprep.subr.bf16.mxu0 %v1078_v4 }
  0x13   :  { %912 = vmatpush1.bf16.msra.mxu1 %v1150_v26 }
  0x14   :  { %930 = vmatprep.subr.bf16.mxu1 %v1078_v4 }
  0x7b   :  { %v47_v28 = vpop.permute.xlu0 %46 }
  0x7c   :  { %v50_v29 = vsel %vm49_vm1, %v44_v27, %v47_v28  ;;  %v148_v54 = vpop.permute.xlu1 %147 }
  0x7d   :  { %860 = vmatmul.mubr.msk.f32.vlgmr.msra.gmra.mrb[0].mxu0 %vm62_vm2, %v50_v29 }
  0x7e   :  { %916 = vmatpush1.bf16.msra.mxu0 %v1089_v8  ;;  %396 = vmatprep.mubr.f32.mxu0 %v1029_v0 }
  0x7f   :  { %918 = vmatprep.subr.bf16.mxu0 %v1091_v9 }
  0x82   :  { %920 = vmatpush1.bf16.msra.mxu0 %v1108_v14 }
  0x83   :  { %922 = vmatprep.subr.bf16.mxu0 %v1112_v15 }
  0x86   :  { %924 = vmatpush1.bf16.msra.mxu0 %v1134_v22 }
  0x87   :  { %926 = vmatprep.subr.bf16.mxu0 %v1137_v23 }
  0x8a   :  { %928 = vmatpush1.bf16.msra.mxu0 %v1150_v26 }
  0x8b   :  { %946 = vmatprep.subr.bf16.mxu0 %v1078_v4 }
 0x150   :  { %v132_v38 = vpop.f32.mrb[0].mxu0 }
 0x151   :  { %v133_v40 = vadd.f32 %v132_v38, %v1181_v36  ;;  %v134_v41 = vpop.f32.mrb[1].mxu0 }
 0x152   :  { %v135_v42 = vadd.f32 %v134_v41, %v1183_v37 }
 0x153   :  { %v137_v43 = vmul.f32 %v133_v40, %v1179_v35 }
 0x154   :  { %v138_v44 = vmul.f32 %v135_v42, %v1186_v39 }
 0x156   :  { %v139_v45 = vadd.f32 %v138_v44, %v137_v43 }
 0x158   :  { %981 = vtanh.f32 %v139_v45  ;;  %v140_v47 = vsub.f32 0.0, %v139_v45 }
 0x15a   :  { %v141_v48 = vmul.f32 1.442695, %v140_v47 }
 0x15c   :  { %983 = vpow2.f32 %v141_v48 }
 0x162   :  { %v982_v46 = vpop.eup %981 }
 0x163   :  { %152 = vrot.lane.b32.xlu0 %v982_v46, %s1031_s2  ;;  %v863_v46 = vld [vmem:[%s1362_s1 + $0x4] sm:$0xf] }
 0x164   :  { %v306_v47 = vsub.f32 1.0, %v863_v46 }
 0x166   :  { %v984_v49 = vpop.eup %983 }
 0x167   :  { %v143_v50 = vadd.f32 1.0, %v984_v49 }
 0x169   :  { %985 = vrcp.f32 %v143_v50 }
 0x173   :  { %v986_v51 = vpop.eup %985 }
 0x174   :  { %v150_v55 = vmul.f32 %v986_v51, %v148_v54 }
 0x1d5   :  { %v153_v52 = vpop.permute.xlu0 %152 }
 0x1d6   :  { %v155_v53 = vmul.f32 %v986_v51, %v153_v52 }
 0x1d8   :  { %157 = vrot.lane.b32.xlu1 %v155_v53, %s1030_s21 }
 0x24a   :  { %v158_v56 = vpop.permute.xlu1 %157 }
 0x24b   :  { %v160_v57 = vadd.f32 %v158_v56, %v150_v55 }
 0x24d   :  { %987 = vtanh.f32 %v160_v57 }
 0x257   :  { %v988_v58 = vpop.eup %987 }
 0x258   :  { %163 = vrot.lane.b32.xlu0 %v988_v58, %s1031_s2  ;;  %v865_v58 = vld [vmem:[%s1359_s0 + $0x8] sm:$0xf] }
 0x2ca   :  { %v164_v59 = vpop.permute.xlu0 %163 }
 0x2cb   :  { %v166_v60 = vmul.f32 %v986_v51, %v164_v59 }
 0x2cd   :  { %169 = vrot.lane.b32.xlu1 %v166_v60, %s1030_s21 }
 0x2d1   :  { %178 = vrot.lane.b32.xlu1 %v160_v57, %s1032_s4 }
 0x33f   :  { %v170_v1 = vpop.permute.xlu1 %169 }
 0x340   :  { %v172_v2 = vmul.f32 %v170_v1, %v167_v61 }
 0x342   :  { %v175_v3 = vadd.f32 %v174_v63, %v172_v2  ;;  %185 = vst.msk [vmem:[%s1363_s5] sm:$0xf] %vm20_vm0, %v172_v2 }
 0x343   :  { %v179_v6 = vpop.permute.xlu1 %178 }
 0x344   :  { %176 = vst.msk [vmem:[#allocation2] sm:$0xf] %vm20_vm0, %v175_v3  ;;  %v181_v7 = vmul.f32 %v179_v6, %v167_v61 }
 0x346   :  { %v183_v10 = vadd.f32 %v182_v5, %v181_v7 }
 0x348   :  { %184 = vst.msk [vmem:[#allocation3] sm:$0xf] %vm20_vm0, %v183_v10 }
 0x34b   :  { %v186_v11 = vld [vmem:[#allocation2] sm:$0xf] }
 0x34c   :  { %191 = vrot.lane.b32.xlu0 %v186_v11, %s1030_s21  ;;  %v307_v49 = vmul.f32 %v306_v47, %v186_v11 }
 0x34f   :  { %v187_v12 = vld [vmem:[#allocation3] sm:$0xf] }
 0x350   :  { %279 = vrot.lane.b32.xlu1 %v187_v12, %s1030_s21  ;;  %v315_v54 = vmul.f32 %v306_v47, %v187_v12 }
 0x3be   :  { %v192_v16 = vpop.permute.xlu0 %191 }
 0x3bf   :  { %v194_v17 = vsel %vm49_vm1, %v861_v13, %v192_v16 }
 0x3c0   :  { %862 = vmatmul.mubr.msk.f32.vlgmr.msra.gmra.mrb[0].mxu1 %vm62_vm2, %v194_v17 }
 0x3c1   :  { %932 = vmatpush1.bf16.msra.mxu1 %v1089_v8  ;;  %530 = vmatprep.mubr.f32.mxu1 %v1029_v0 }
 0x3c2   :  { %934 = vmatprep.subr.bf16.mxu1 %v1091_v9  ;;  %v280_v38 = vpop.permute.xlu1 %279 }
 0x3c5   :  { %936 = vmatpush1.bf16.msra.mxu1 %v1108_v14 }
 0x3c6   :  { %938 = vmatprep.subr.bf16.mxu1 %v1112_v15 }
 0x3c9   :  { %940 = vmatpush1.bf16.msra.mxu1 %v1134_v22 }
 0x3ca   :  { %942 = vmatprep.subr.bf16.mxu1 %v1137_v23 }
 0x3cd   :  { %944 = vmatpush1.bf16.msra.mxu1 %v1150_v26 }
 0x3ce   :  { %962 = vmatprep.subr.bf16.mxu1 %v1078_v4 }
 0x493   :  { %v264_v18 = vpop.f32.mrb[0].mxu1 }
 0x494   :  { %v265_v19 = vadd.f32 %v264_v18, %v1181_v36  ;;  %v266_v20 = vpop.f32.mrb[1].mxu1 }
 0x495   :  { %v267_v21 = vadd.f32 %v266_v20, %v1183_v37 }
 0x496   :  { %v269_v24 = vmul.f32 %v265_v19, %v1179_v35 }
 0x497   :  { %v270_v25 = vmul.f32 %v267_v21, %v1186_v39 }
 0x499   :  { %v271_v27 = vadd.f32 %v270_v25, %v269_v24 }
 0x49b   :  { %989 = vtanh.f32 %v271_v27  ;;  %v272_v29 = vsub.f32 0.0, %v271_v27 }
 0x49d   :  { %v273_v30 = vmul.f32 1.442695, %v272_v29 }
 0x49f   :  { %991 = vpow2.f32 %v273_v30 }
 0x4a5   :  { %v990_v28 = vpop.eup %989 }
 0x4a6   :  { %284 = vrot.lane.b32.xlu0 %v990_v28, %s1031_s2  ;;  %v867_v28 = vld [vmem:[%s1362_s1 + $0x8] sm:$0xf] }
 0x4a7   :  { %v440_v29 = vsub.f32 1.0, %v867_v28 }
 0x4a9   :  { %v992_v31 = vpop.eup %991 }
 0x4aa   :  { %v275_v4 = vadd.f32 1.0, %v992_v31 }
 0x4ac   :  { %993 = vrcp.f32 %v275_v4 }
 0x4b6   :  { %v994_v32 = vpop.eup %993 }
 0x4b7   :  { %v282_v40 = vmul.f32 %v994_v32, %v280_v38 }
 0x518   :  { %v285_v33 = vpop.permute.xlu0 %284 }
 0x519   :  { %v287_v34 = vmul.f32 %v994_v32, %v285_v33 }
 0x51b   :  { %289 = vrot.lane.b32.xlu0 %v287_v34, %s1030_s21 }
 0x58d   :  { %v290_v41 = vpop.permute.xlu0 %289 }
 0x58e   :  { %v292_v42 = vadd.f32 %v290_v41, %v282_v40 }
 0x590   :  { %995 = vtanh.f32 %v292_v42 }
 0x59a   :  { %v996_v43 = vpop.eup %995 }
 0x59b   :  { %295 = vrot.lane.b32.xlu1 %v996_v43, %s1031_s2  ;;  %v869_v43 = vld [vmem:[%s1359_s0 + $0xc] sm:$0xf] }
 0x60d   :  { %v296_v44 = vpop.permute.xlu1 %295 }
 0x60e   :  { %v298_v45 = vmul.f32 %v994_v32, %v296_v44 }
 0x610   :  { %302 = vrot.lane.b32.xlu0 %v298_v45, %s1030_s21 }
 0x614   :  { %311 = vrot.lane.b32.xlu0 %v292_v42, %s1032_s4 }
 0x682   :  { %v303_v48 = vpop.permute.xlu0 %302 }
 0x683   :  { %v305_v50 = vmul.f32 %v863_v46, %v303_v48 }
 0x685   :  { %v308_v51 = vadd.f32 %v307_v49, %v305_v50  ;;  %864 = vst.msk [vmem:[%s1363_s5 + $0x4] sm:$0xf] %vm20_vm0, %v305_v50 }
 0x686   :  { %v312_v52 = vpop.permute.xlu0 %311 }
 0x687   :  { %309 = vst.msk [vmem:[#allocation2] sm:$0xf] %vm20_vm0, %v308_v51  ;;  %v314_v53 = vmul.f32 %v863_v46, %v312_v52 }
 0x689   :  { %v316_v55 = vadd.f32 %v315_v54, %v314_v53 }
 0x68b   :  { %317 = vst.msk [vmem:[#allocation3] sm:$0xf] %vm20_vm0, %v316_v55 }
 0x68e   :  { %v320_v56 = vld [vmem:[#allocation2] sm:$0xf] }
 0x68f   :  { %325 = vrot.lane.b32.xlu1 %v320_v56, %s1030_s21  ;;  %v441_v31 = vmul.f32 %v440_v29, %v320_v56 }
 0x692   :  { %v321_v57 = vld [vmem:[#allocation3] sm:$0xf] }
 0x693   :  { %413 = vrot.lane.b32.xlu0 %v321_v57, %s1030_s21  ;;  %v449_v38 = vmul.f32 %v440_v29, %v321_v57 }
 0x701   :  { %v326_v59 = vpop.permute.xlu1 %325 }
 0x702   :  { %v328_v60 = vsel %vm49_vm1, %v865_v58, %v326_v59 }
 0x703   :  { %866 = vmatmul.mubr.msk.f32.vlgmr.msra.gmra.mrb[2].mxu0 %vm62_vm2, %v328_v60  ;;  %v871_v60 = vld [vmem:[%s1362_s1 + $0xc] sm:$0xf] }
 0x704   :  { %948 = vmatpush1.bf16.msra.mxu0 %v1089_v8  ;;  %664 = vmatprep.mubr.f32.mxu0 %v1029_v0 }
 0x705   :  { %950 = vmatprep.subr.bf16.mxu0 %v1091_v9  ;;  %v414_v18 = vpop.permute.xlu0 %413 }
 0x708   :  { %952 = vmatpush1.bf16.msra.mxu0 %v1108_v14 }
 0x709   :  { %954 = vmatprep.subr.bf16.mxu0 %v1112_v15 }
 0x70c   :  { %956 = vmatpush1.bf16.msra.mxu0 %v1134_v22 }
 0x70d   :  { %958 = vmatprep.subr.bf16.mxu0 %v1137_v23 }
 0x710   :  { %960 = vmatpush1.bf16.msra.mxu0 %v1150_v26 }
 0x7d6   :  { %v398_v61 = vpop.f32.mrb[2].mxu0 }
 0x7d7   :  { %v399_v62 = vadd.f32 %v398_v61, %v1181_v36  ;;  %v400_v63 = vpop.f32.mrb[3].mxu0  ;;  %v574_v61 = vsub.f32 1.0, %v871_v60 }
 0x7d8   :  { %v401_v1 = vadd.f32 %v400_v63, %v1183_v37 }
 0x7d9   :  { %v403_v2 = vmul.f32 %v399_v62, %v1179_v35 }
 0x7da   :  { %v404_v3 = vmul.f32 %v401_v1, %v1186_v39 }
 0x7dc   :  { %v405_v5 = vadd.f32 %v404_v3, %v403_v2 }
 0x7de   :  { %997 = vtanh.f32 %v405_v5  ;;  %v406_v7 = vsub.f32 0.0, %v405_v5 }
 0x7e0   :  { %v407_v10 = vmul.f32 1.442695, %v406_v7 }
 0x7e2   :  { %999 = vpow2.f32 %v407_v10 }
 0x7e8   :  { %v998_v6 = vpop.eup %997 }
 0x7e9   :  { %418 = vrot.lane.b32.xlu1 %v998_v6, %s1031_s2 }
 0x7ec   :  { %v1000_v11 = vpop.eup %999 }
 0x7ed   :  { %v409_v12 = vadd.f32 1.0, %v1000_v11 }
 0x7ef   :  { %1001 = vrcp.f32 %v409_v12  ;;  %v873_v12 = vld [vmem:[%s1359_s0 + $0x10] sm:$0xf] }
 0x7f9   :  { %v1002_v13 = vpop.eup %1001 }
 0x7fa   :  { %v416_v19 = vmul.f32 %v1002_v13, %v414_v18 }
 0x85b   :  { %v419_v16 = vpop.permute.xlu1 %418 }
 0x85c   :  { %v421_v17 = vmul.f32 %v1002_v13, %v419_v16 }
 0x85e   :  { %423 = vrot.lane.b32.xlu1 %v421_v17, %s1030_s21 }
 0x8d0   :  { %v424_v20 = vpop.permute.xlu1 %423 }
 0x8d1   :  { %v426_v21 = vadd.f32 %v424_v20, %v416_v19 }
 0x8d3   :  { %1003 = vtanh.f32 %v426_v21 }
 0x8dd   :  { %v1004_v24 = vpop.eup %1003 }
 0x8de   :  { %429 = vrot.lane.b32.xlu0 %v1004_v24, %s1031_s2 }
 0x950   :  { %v430_v25 = vpop.permute.xlu0 %429 }
 0x951   :  { %v432_v27 = vmul.f32 %v1002_v13, %v430_v25 }
 0x953   :  { %436 = vrot.lane.b32.xlu1 %v432_v27, %s1030_s21 }
 0x957   :  { %445 = vrot.lane.b32.xlu1 %v426_v21, %s1032_s4 }
 0x9c5   :  { %v437_v30 = vpop.permute.xlu1 %436 }
 0x9c6   :  { %v439_v4 = vmul.f32 %v867_v28, %v437_v30 }
 0x9c8   :  { %v442_v32 = vadd.f32 %v441_v31, %v439_v4  ;;  %868 = vst.msk [vmem:[%s1363_s5 + $0x8] sm:$0xf] %vm20_vm0, %v439_v4 }
 0x9c9   :  { %v446_v33 = vpop.permute.xlu1 %445 }
 0x9ca   :  { %443 = vst.msk [vmem:[#allocation2] sm:$0xf] %vm20_vm0, %v442_v32  ;;  %v448_v34 = vmul.f32 %v867_v28, %v446_v33 }
 0x9cc   :  { %v450_v40 = vadd.f32 %v449_v38, %v448_v34 }
 0x9ce   :  { %451 = vst.msk [vmem:[#allocation3] sm:$0xf] %vm20_vm0, %v450_v40 }
 0x9d1   :  { %v454_v41 = vld [vmem:[#allocation2] sm:$0xf] }
 0x9d2   :  { %459 = vrot.lane.b32.xlu0 %v454_v41, %s1030_s21  ;;  %v575_v63 = vmul.f32 %v574_v61, %v454_v41 }
 0x9d5   :  { %v455_v42 = vld [vmem:[#allocation3] sm:$0xf] }
 0x9d6   :  { %547 = vrot.lane.b32.xlu1 %v455_v42, %s1030_s21  ;;  %v583_v6 = vmul.f32 %v574_v61, %v455_v42 }
 0xa44   :  { %v460_v44 = vpop.permute.xlu0 %459 }
 0xa45   :  { %v462_v45 = vsel %vm49_vm1, %v869_v43, %v460_v44 }
 0xa46   :  { %870 = vmatmul.mubr.msk.f32.vlgmr.msra.gmra.mrb[2].mxu1 %vm62_vm2, %v462_v45  ;;  %v875_v45 = vld [vmem:[%s1362_s1 + $0x10] sm:$0xf] }
 0xa47   :  { %964 = vmatpush1.bf16.msra.mxu1 %v1089_v8  ;;  %798 = vmatprep.mubr.f32.mxu1 %v1029_v0 }
 0xa48   :  { %966 = vmatprep.subr.bf16.mxu1 %v1091_v9  ;;  %v548_v53 = vpop.permute.xlu1 %547 }
 0xa4b   :  { %968 = vmatpush1.bf16.msra.mxu1 %v1108_v14 }
 0xa4c   :  { %970 = vmatprep.subr.bf16.mxu1 %v1112_v15 }
 0xa4f   :  { %972 = vmatpush1.bf16.msra.mxu1 %v1134_v22 }
 0xa50   :  { %974 = vmatprep.subr.bf16.mxu1 %v1137_v23 }
 0xa53   :  { %976 = vmatpush1.bf16.msra.mxu1 %v1150_v26 }
 0xb19   :  { %v532_v46 = vpop.f32.mrb[2].mxu1 }
 0xb1a   :  { %v533_v47 = vadd.f32 %v532_v46, %v1181_v36  ;;  %v534_v48 = vpop.f32.mrb[3].mxu1  ;;  %v708_v46 = vsub.f32 1.0, %v875_v45 }
 0xb1b   :  { %v535_v8 = vadd.f32 %v534_v48, %v1183_v37 }
 0xb1c   :  { %v537_v0 = vmul.f32 %v533_v47, %v1179_v35 }
 0xb1d   :  { %v538_v9 = vmul.f32 %v535_v8, %v1186_v39 }
 0xb1f   :  { %v539_v49 = vadd.f32 %v538_v9, %v537_v0 }
 0xb21   :  { %1005 = vtanh.f32 %v539_v49  ;;  %v540_v15 = vsub.f32 0.0, %v539_v49 }
 0xb23   :  { %v541_v22 = vmul.f32 1.442695, %v540_v15 }
 0xb25   :  { %1007 = vpow2.f32 %v541_v22 }
 0xb2b   :  { %v1006_v14 = vpop.eup %1005 }
 0xb2c   :  { %552 = vrot.lane.b32.xlu0 %v1006_v14, %s1031_s2 }
 0xb2f   :  { %v1008_v23 = vpop.eup %1007 }
 0xb30   :  { %v543_v26 = vadd.f32 1.0, %v1008_v23 }
 0xb32   :  { %1009 = vrcp.f32 %v543_v26  ;;  %v877_v26 = vld [vmem:[%s1359_s0 + $0x14] sm:$0xf] }
 0xb3c   :  { %v1010_v50 = vpop.eup %1009 }
 0xb3d   :  { %v550_v54 = vmul.f32 %v1010_v50, %v548_v53 }
 0xb9e   :  { %v553_v51 = vpop.permute.xlu0 %552 }
 0xb9f   :  { %v555_v52 = vmul.f32 %v1010_v50, %v553_v51 }
 0xba1   :  { %557 = vrot.lane.b32.xlu0 %v555_v52, %s1030_s21 }
 0xc13   :  { %v558_v55 = vpop.permute.xlu0 %557 }
 0xc14   :  { %v560_v56 = vadd.f32 %v558_v55, %v550_v54 }
 0xc16   :  { %1011 = vtanh.f32 %v560_v56 }
 0xc20   :  { %v1012_v57 = vpop.eup %1011 }
 0xc21   :  { %563 = vrot.lane.b32.xlu1 %v1012_v57, %s1031_s2 }
 0xc93   :  { %v564_v58 = vpop.permute.xlu1 %563 }
 0xc94   :  { %v566_v59 = vmul.f32 %v1010_v50, %v564_v58 }
 0xc96   :  { %570 = vrot.lane.b32.xlu0 %v566_v59, %s1030_s21 }
 0xc9a   :  { %579 = vrot.lane.b32.xlu0 %v560_v56, %s1032_s4 }
 0xd08   :  { %v571_v62 = vpop.permute.xlu0 %570 }
 0xd09   :  { %v573_v1 = vmul.f32 %v871_v60, %v571_v62 }
 0xd0b   :  { %v576_v2 = vadd.f32 %v575_v63, %v573_v1  ;;  %872 = vst.msk [vmem:[%s1363_s5 + $0xc] sm:$0xf] %vm20_vm0, %v573_v1 }
 0xd0c   :  { %v580_v3 = vpop.permute.xlu0 %579 }
 0xd0d   :  { %577 = vst.msk [vmem:[#allocation2] sm:$0xf] %vm20_vm0, %v576_v2  ;;  %v582_v5 = vmul.f32 %v871_v60, %v580_v3 }
 0xd0f   :  { %v584_v7 = vadd.f32 %v583_v6, %v582_v5 }
 0xd11   :  { %585 = vst.msk [vmem:[#allocation3] sm:$0xf] %vm20_vm0, %v584_v7  ;;  %v879_v7 = vld [vmem:[%s1362_s1 + $0x14] sm:$0xf] }
 0xd14   :  { %v588_v10 = vld [vmem:[#allocation2] sm:$0xf] }
 0xd15   :  { %593 = vrot.lane.b32.xlu1 %v588_v10, %s1030_s21  ;;  %v709_v48 = vmul.f32 %v708_v46, %v588_v10 }
 0xd18   :  { %v589_v11 = vld [vmem:[#allocation3] sm:$0xf] }
 0xd19   :  { %681 = vrot.lane.b32.xlu0 %v589_v11, %s1030_s21  ;;  %v717_v14 = vmul.f32 %v708_v46, %v589_v11  ;;  %v842_v11 = vsub.f32 1.0, %v879_v7 }
 0xd87   :  { %v594_v13 = vpop.permute.xlu1 %593 }
 0xd88   :  { %v596_v16 = vsel %vm49_vm1, %v873_v12, %v594_v13 }
 0xd89   :  { %874 = vmatmul.mubr.msk.f32.vlgmr.msra.gmra.mrb[4].mxu0 %vm62_vm2, %v596_v16 }
 0xd8b   :  { %v682_v34 = vpop.permute.xlu0 %681 }
 0xe5c   :  { %v666_v17 = vpop.f32.mrb[4].mxu0 }
 0xe5d   :  { %v667_v18 = vadd.f32 %v666_v17, %v1181_v36  ;;  %v668_v19 = vpop.f32.mrb[5].mxu0 }
 0xe5e   :  { %v669_v20 = vadd.f32 %v668_v19, %v1183_v37 }
 0xe5f   :  { %v671_v21 = vmul.f32 %v667_v18, %v1179_v35 }
 0xe60   :  { %v672_v24 = vmul.f32 %v669_v20, %v1186_v39 }
 0xe62   :  { %v673_v25 = vadd.f32 %v672_v24, %v671_v21 }
 0xe64   :  { %1013 = vtanh.f32 %v673_v25  ;;  %v674_v28 = vsub.f32 0.0, %v673_v25 }
 0xe66   :  { %v675_v29 = vmul.f32 1.442695, %v674_v28 }
 0xe68   :  { %1015 = vpow2.f32 %v675_v29 }
 0xe6e   :  { %v1014_v27 = vpop.eup %1013 }
 0xe6f   :  { %686 = vrot.lane.b32.xlu1 %v1014_v27, %s1031_s2 }
 0xe72   :  { %v1016_v30 = vpop.eup %1015 }
 0xe73   :  { %v677_v31 = vadd.f32 1.0, %v1016_v30 }
 0xe75   :  { %1017 = vrcp.f32 %v677_v31 }
 0xe7f   :  { %v1018_v4 = vpop.eup %1017 }
 0xe80   :  { %v684_v38 = vmul.f32 %v1018_v4, %v682_v34 }
 0xee1   :  { %v687_v32 = vpop.permute.xlu1 %686 }
 0xee2   :  { %v689_v33 = vmul.f32 %v1018_v4, %v687_v32 }
 0xee4   :  { %691 = vrot.lane.b32.xlu1 %v689_v33, %s1030_s21 }
 0xf56   :  { %v692_v40 = vpop.permute.xlu1 %691 }
 0xf57   :  { %v694_v41 = vadd.f32 %v692_v40, %v684_v38 }
 0xf59   :  { %1019 = vtanh.f32 %v694_v41 }
 0xf63   :  { %v1020_v42 = vpop.eup %1019 }
 0xf64   :  { %697 = vrot.lane.b32.xlu0 %v1020_v42, %s1031_s2 }
 0xfd6   :  { %v698_v43 = vpop.permute.xlu0 %697 }
 0xfd7   :  { %v700_v44 = vmul.f32 %v1018_v4, %v698_v43 }
 0xfd9   :  { %704 = vrot.lane.b32.xlu1 %v700_v44, %s1030_s21 }
 0xfdd   :  { %713 = vrot.lane.b32.xlu1 %v694_v41, %s1032_s4 }
0x104b   :  { %v705_v47 = vpop.permute.xlu1 %704 }
0x104c   :  { %v707_v8 = vmul.f32 %v875_v45, %v705_v47 }
0x104e   :  { %v710_v0 = vadd.f32 %v709_v48, %v707_v8  ;;  %876 = vst.msk [vmem:[%s1363_s5 + $0x10] sm:$0xf] %vm20_vm0, %v707_v8 }
0x104f   :  { %v714_v9 = vpop.permute.xlu1 %713 }
0x1050   :  { %711 = vst.msk [vmem:[#allocation2] sm:$0xf] %vm20_vm0, %v710_v0  ;;  %v716_v49 = vmul.f32 %v875_v45, %v714_v9 }
0x1052   :  { %v718_v15 = vadd.f32 %v717_v14, %v716_v49 }
0x1054   :  { %719 = vst.msk [vmem:[#allocation3] sm:$0xf] %vm20_vm0, %v718_v15 }
0x1057   :  { %v722_v22 = vld [vmem:[#allocation2] sm:$0xf] }
0x1058   :  { %727 = vrot.lane.b32.xlu0 %v722_v22, %s1030_s21  ;;  %v843_v19 = vmul.f32 %v842_v11, %v722_v22 }
0x105b   :  { %v723_v23 = vld [vmem:[#allocation3] sm:$0xf] }
0x105c   :  { %815 = vrot.lane.b32.xlu1 %v723_v23, %s1030_s21  ;;  %v851_v16 = vmul.f32 %v842_v11, %v723_v23 }
0x10ca   :  { %v728_v50 = vpop.permute.xlu0 %727 }
0x10cb   :  { %v730_v51 = vsel %vm49_vm1, %v877_v26, %v728_v50 }
0x10cc   :  { %878 = vmatmul.mubr.msk.f32.vlgmr.msra.gmra.mrb[4].mxu1 %vm62_vm2, %v730_v51 }
0x119f   :  { %v800_v52 = vpop.f32.mrb[4].mxu1 }
0x11a0   :  { %v801_v53 = vadd.f32 %v800_v52, %v1181_v36  ;;  %v802_v54 = vpop.f32.mrb[5].mxu1 }
0x11a1   :  { %v803_v55 = vadd.f32 %v802_v54, %v1183_v37  ;;  %v816_v37 = vpop.permute.xlu1 %815 }
0x11a2   :  { %v805_v56 = vmul.f32 %v801_v53, %v1179_v35 }
0x11a3   :  { %v806_v57 = vmul.f32 %v803_v55, %v1186_v39 }
0x11a5   :  { %v807_v58 = vadd.f32 %v806_v57, %v805_v56 }
0x11a7   :  { %1021 = vtanh.f32 %v807_v58  ;;  %v808_v60 = vsub.f32 0.0, %v807_v58 }
0x11a9   :  { %v809_v61 = vmul.f32 1.442695, %v808_v60 }
0x11ab   :  { %1023 = vpow2.f32 %v809_v61 }
0x11b1   :  { %v1022_v59 = vpop.eup %1021 }
0x11b2   :  { %820 = vrot.lane.b32.xlu0 %v1022_v59, %s1031_s2 }
0x11b5   :  { %v1024_v62 = vpop.eup %1023 }
0x11b6   :  { %v811_v63 = vadd.f32 1.0, %v1024_v62 }
0x11b8   :  { %1025 = vrcp.f32 %v811_v63 }
0x11c2   :  { %v1026_v1 = vpop.eup %1025 }
0x11c3   :  { %v818_v35 = vmul.f32 %v1026_v1, %v816_v37 }
0x1224   :  { %v821_v36 = vpop.permute.xlu0 %820 }
0x1225   :  { %v823_v2 = vmul.f32 %v1026_v1, %v821_v36 }
0x1227   :  { %825 = vrot.lane.b32.xlu0 %v823_v2, %s1030_s21 }
0x1299   :  { %v826_v3 = vpop.permute.xlu0 %825 }
0x129a   :  { %v828_v39 = vadd.f32 %v826_v3, %v818_v35 }
0x129c   :  { %1027 = vtanh.f32 %v828_v39 }
0x12a6   :  { %v1028_v5 = vpop.eup %1027 }
0x12a7   :  { %831 = vrot.lane.b32.xlu1 %v1028_v5, %s1031_s2 }
0x12ab   :  { %847 = vrot.lane.b32.xlu1 %v828_v39, %s1032_s4 }
0x1319   :  { %v832_v6 = vpop.permute.xlu1 %831 }
0x131a   :  { %v834_v10 = vmul.f32 %v1026_v1, %v832_v6 }
0x131c   :  { %838 = vrot.lane.b32.xlu0 %v834_v10, %s1030_s21 }
0x131d   :  { %v848_v12 = vpop.permute.xlu1 %847 }
0x131e   :  { %v850_v13 = vmul.f32 %v879_v7, %v848_v12 }
0x1320   :  { %v852_v17 = vadd.f32 %v851_v16, %v850_v13 }
0x1322   :  { %853 = vst.msk [vmem:[#allocation3] sm:$0xf] %vm20_vm0, %v852_v17 }
0x138e   :  { %v839_v18 = vpop.permute.xlu0 %838 }
0x138f   :  { %v841_v20 = vmul.f32 %v879_v7, %v839_v18 }
0x1391   :  { %v844_v21 = vadd.f32 %v843_v19, %v841_v20  ;;  %880 = vst.msk [vmem:[%s1363_s5 + $0x14] sm:$0xf] %vm20_vm0, %v841_v20 }
0x1393   :  { %845 = vst.msk [vmem:[#allocation2] sm:$0xf] %vm20_vm0, %v844_v21 }

// kernel: seq2seq_forward.5
= control target key start
LH: loop header
LB: loop body
LE: loop exit
PB: predicated region body
PF: predicated region fallthrough
CT: control target
= control target key end

     0   :  { %vm20_vm0 = vcmask 257024   ;;  %v1085_v0 = vmov 0.0   ;;  %s1086_s21 = smov 64   ;;  %s1087_s26 = smov 32   ;;  %vm57_vm1 = vcmask 523264   ;;  %vm70_vm2 = vcmask 785408   ;;  %s1470_s3 = inlined_call_operand.vmem [shape: f32[96,256], index: 3, kind: input, shape index: {}]   ;;  %s1471_s0 = inlined_call_operand.vmem [shape: f32[6,4,64], index: 0, kind: input, shape index: {}]   ;;  %s1472_s4 = inlined_call_operand.vmem [shape: f32[1,256], index: 4, kind: input, shape index: {}]   ;;  %s1473_s2 = inlined_call_operand.vmem [shape: f32[4,128], index: 2, kind: input, shape index: {}]   ;;  %s1474_s1 = inlined_call_operand.vmem [shape: f32[6,4,32], index: 1, kind: input, shape index: {}]   ;;  %s1475_s5 = inlined_call_operand.vmem [shape: f32[6,4,32], index: 5, kind: output, shape index: {}]  }
   0x1   :  { %21 = vst.msk [vmem:[#allocation2] sm:$0xf] %vm20_vm0, %v1085_v0  ;;  %22 = vst.msk [vmem:[#allocation3] sm:$0xf] %vm20_vm0, %v1085_v0  ;;  %v24_v1 = vld [vmem:[%s1470_s3 + $0x8] sm:$0xff]  ;;  %v26_v2 = vld [vmem:[%s1470_s3 + $0x18] sm:$0xff]  ;;  %138 = vmatprep.mubr.f32.mxu0 %v1085_v0  ;;  %270 = vmatprep.mubr.f32.mxu1 %v1085_v0  ;;  %v60_v42 = vlaneseq }
   0x2   :  { %v23_v3 = vld [vmem:[%s1470_s3] sm:$0xff]  ;;  %v1134_v4 = vpack.c.bf16 %v26_v2, %v24_v1  ;;  %v25_v5 = vld [vmem:[%s1470_s3 + $0x10] sm:$0xff]  ;;  %v28_v6 = vld [vmem:[%s1470_s3 + $0x28] sm:$0xff] }
   0x3   :  { %v30_v7 = vld [vmem:[%s1470_s3 + $0x38] sm:$0xff]  ;;  %v1145_v8 = vpack.c.bf16 %v25_v5, %v23_v3  ;;  %v27_v10 = vld [vmem:[%s1470_s3 + $0x20] sm:$0xff]  ;;  %v29_v11 = vld [vmem:[%s1470_s3 + $0x30] sm:$0xff]  ;;  %v61_v43 = vshrl.u32 %v60_v42, 7 }
   0x4   :  { %v1147_v9 = vpack.c.bf16 %v30_v7, %v28_v6  ;;  %v32_v12 = vld [vmem:[%s1470_s3 + $0x48] sm:$0xff]  ;;  %890 = vmatprep.subr.bf16.mxu0 %v1134_v4  ;;  %v34_v13 = vld [vmem:[%s1470_s3 + $0x58] sm:$0xff]  ;;  %914 = vmatprep.subr.bf16.mxu1 %v1134_v4  ;;  %v1164_v14 = vpack.c.bf16 %v29_v11, %v27_v10  ;;  %v31_v16 = vld [vmem:[%s1470_s3 + $0x40] sm:$0xff] }
   0x5   :  { %892 = vmatpush1.bf16.msra.mxu0 %v1145_v8  ;;  %916 = vmatpush1.bf16.msra.mxu1 %v1145_v8  ;;  %v1168_v15 = vpack.c.bf16 %v34_v13, %v32_v12  ;;  %v33_v17 = vld [vmem:[%s1470_s3 + $0x50] sm:$0xff]  ;;  %v36_v18 = vld [vmem:[%s1470_s3 + $0x68] sm:$0xff]  ;;  %v38_v19 = vld [vmem:[%s1470_s3 + $0x78] sm:$0xff]  ;;  %v62_v44 = vsub.s32 0, %v61_v43  ;;  %v66_v46 = vsub.s32 1, %v61_v43 }
   0x6   :  { %894 = vmatprep.subr.bf16.mxu0 %v1147_v9  ;;  %918 = vmatprep.subr.bf16.mxu1 %v1147_v9  ;;  %v1188_v21 = vpack.c.bf16 %v33_v17, %v31_v16  ;;  %v1193_v23 = vpack.c.bf16 %v38_v19, %v36_v18  ;;  %v35_v24 = vld [vmem:[%s1470_s3 + $0x60] sm:$0xff]  ;;  %v37_v25 = vld [vmem:[%s1470_s3 + $0x70] sm:$0xff]  ;;  %v40_v26 = vld [vmem:[%s1470_s3 + $0x88] sm:$0xff] }
   0x7   :  { %v42_v27 = vld [vmem:[%s1470_s3 + $0x98] sm:$0xff]  ;;  %v1212_v28 = vpack.c.bf16 %v37_v25, %v35_v24  ;;  %v39_v30 = vld [vmem:[%s1470_s3 + $0x80] sm:$0xff]  ;;  %v41_v31 = vld [vmem:[%s1470_s3 + $0x90] sm:$0xff] }
   0x8   :  { %v1183_v20 = vld [vmem:[#allocation2] sm:$0xf]  ;;  %v1190_v22 = vld [vmem:[#allocation3] sm:$0xf]  ;;  %v1215_v29 = vpack.c.bf16 %v42_v27, %v40_v26  ;;  %v44_v32 = vld [vmem:[%s1470_s3 + $0xa8] sm:$0xff]  ;;  %v1232_v34 = vpack.c.bf16 %v41_v31, %v39_v30 }
   0x9   :  { %54 = vrot.lane.b32.xlu0 %v1183_v20, %s1086_s21  ;;  %896 = vmatpush1.bf16.msra.mxu0 %v1164_v14  ;;  %v46_v33 = vld [vmem:[%s1470_s3 + $0xb8] sm:$0xff]  ;;  %v43_v36 = vld [vmem:[%s1470_s3 + $0xa0] sm:$0xff]  ;;  %v45_v37 = vld [vmem:[%s1470_s3 + $0xb0] sm:$0xff] }
   0xa   :  { %898 = vmatprep.subr.bf16.mxu0 %v1168_v15  ;;  %155 = vrot.lane.b32.xlu1 %v1190_v22, %s1087_s26  ;;  %v1235_v35 = vpack.c.bf16 %v46_v33, %v44_v32  ;;  %v1246_v38 = vpack.c.bf16 %v45_v37, %v43_v36  ;;  %v52_v39 = vld [vmem:[%s1471_s0] sm:$0xf]  ;;  %v869_v32 = vld [vmem:[%s1471_s0 + $0x4] sm:$0xf] }
   0xb   :  { %920 = vmatpush1.bf16.msra.mxu1 %v1164_v14  ;;  %v47_v45 = vld [vmem:[%s1472_s4] sm:$0x3] }
   0xc   :  { %922 = vmatprep.subr.bf16.mxu1 %v1168_v15  ;;  %v1279_v47 = vld [vmem:[%s1473_s2] sm:$0xf]  ;;  %v1281_v48 = vrot.slane %v47_v45, %v62_v44  ;;  %v1283_v49 = vrot.slane %v47_v45, %v66_v46  ;;  %s1088_s2 = smov 96  }
   0xd   :  { %900 = vmatpush1.bf16.msra.mxu0 %v1188_v21  ;;  %v1286_v51 = vsub.f32 1.0, %v1279_v47  ;;  %v175_v13 = vld [vmem:[%s1474_s1] sm:$0xf] }
   0xe   :  { %902 = vmatprep.subr.bf16.mxu0 %v1193_v23  ;;  %v181_v16 = vsub.f32 1.0, %v175_v13 }
   0xf   :  { %924 = vmatpush1.bf16.msra.mxu1 %v1188_v21 }
  0x10   :  { %926 = vmatprep.subr.bf16.mxu1 %v1193_v23  ;;  %v182_v17 = vmul.f32 %v181_v16, %v1183_v20  ;;  %v190_v25 = vmul.f32 %v181_v16, %v1190_v22  ;;  %v873_v16 = vld [vmem:[%s1471_s0 + $0x8] sm:$0xf] }
  0x11   :  { %904 = vmatpush1.bf16.msra.mxu0 %v1212_v28 }
  0x12   :  { %906 = vmatprep.subr.bf16.mxu0 %v1215_v29 }
  0x13   :  { %928 = vmatpush1.bf16.msra.mxu1 %v1212_v28 }
  0x14   :  { %930 = vmatprep.subr.bf16.mxu1 %v1215_v29 }
  0x15   :  { %908 = vmatpush1.bf16.msra.mxu0 %v1232_v34 }
  0x16   :  { %910 = vmatprep.subr.bf16.mxu0 %v1235_v35 }
  0x17   :  { %932 = vmatpush1.bf16.msra.mxu1 %v1232_v34 }
  0x18   :  { %934 = vmatprep.subr.bf16.mxu1 %v1235_v35 }
  0x19   :  { %912 = vmatpush1.bf16.msra.mxu0 %v1246_v38 }
  0x1a   :  { %938 = vmatprep.subr.bf16.mxu0 %v1134_v4 }
  0x1b   :  { %936 = vmatpush1.bf16.msra.mxu1 %v1246_v38 }
  0x1c   :  { %962 = vmatprep.subr.bf16.mxu1 %v1134_v4 }
  0x7b   :  { %v55_v40 = vpop.permute.xlu0 %54 }
  0x7c   :  { %v58_v41 = vsel %vm57_vm1, %v52_v39, %v55_v40  ;;  %v156_v3 = vpop.permute.xlu1 %155 }
  0x7d   :  { %868 = vmatmul.mubr.msk.f32.vlgmr.msra.gmra.mrb[0].mxu0 %vm70_vm2, %v58_v41 }
  0x7e   :  { %940 = vmatpush1.bf16.msra.mxu0 %v1145_v8  ;;  %404 = vmatprep.mubr.f32.mxu0 %v1085_v0 }
  0x7f   :  { %942 = vmatprep.subr.bf16.mxu0 %v1147_v9 }
  0x82   :  { %944 = vmatpush1.bf16.msra.mxu0 %v1164_v14 }
  0x83   :  { %946 = vmatprep.subr.bf16.mxu0 %v1168_v15 }
  0x86   :  { %948 = vmatpush1.bf16.msra.mxu0 %v1188_v21 }
  0x87   :  { %950 = vmatprep.subr.bf16.mxu0 %v1193_v23 }
  0x8a   :  { %952 = vmatpush1.bf16.msra.mxu0 %v1212_v28 }
  0x8b   :  { %954 = vmatprep.subr.bf16.mxu0 %v1215_v29 }
  0x8e   :  { %956 = vmatpush1.bf16.msra.mxu0 %v1232_v34 }
  0x8f   :  { %958 = vmatprep.subr.bf16.mxu0 %v1235_v35 }
  0x92   :  { %960 = vmatpush1.bf16.msra.mxu0 %v1246_v38 }
  0x93   :  { %986 = vmatprep.subr.bf16.mxu0 %v1134_v4 }
 0x150   :  { %v140_v50 = vpop.f32.mrb[0].mxu0 }
 0x151   :  { %v141_v52 = vadd.f32 %v140_v50, %v1281_v48  ;;  %v142_v53 = vpop.f32.mrb[1].mxu0 }
 0x152   :  { %v143_v54 = vadd.f32 %v142_v53, %v1283_v49 }
 0x153   :  { %v145_v55 = vmul.f32 %v141_v52, %v1279_v47 }
 0x154   :  { %v146_v56 = vmul.f32 %v143_v54, %v1286_v51 }
 0x156   :  { %v147_v57 = vadd.f32 %v146_v56, %v145_v55 }
 0x158   :  { %1037 = vtanh.f32 %v147_v57  ;;  %v148_v59 = vsub.f32 0.0, %v147_v57 }
 0x15a   :  { %v149_v60 = vmul.f32 1.442695, %v148_v59 }
 0x15c   :  { %1039 = vpow2.f32 %v149_v60 }
 0x162   :  { %v1038_v58 = vpop.eup %1037 }
 0x163   :  { %160 = vrot.lane.b32.xlu0 %v1038_v58, %s1086_s21 }
 0x166   :  { %v1040_v61 = vpop.eup %1039 }
 0x167   :  { %v151_v62 = vadd.f32 1.0, %v1040_v61 }
 0x169   :  { %1041 = vrcp.f32 %v151_v62  ;;  %v871_v62 = vld [vmem:[%s1474_s1 + $0x4] sm:$0xf] }
 0x173   :  { %v1042_v63 = vpop.eup %1041 }
 0x174   :  { %v158_v5 = vmul.f32 %v1042_v63, %v156_v3 }
 0x1d5   :  { %v161_v1 = vpop.permute.xlu0 %160 }
 0x1d6   :  { %v163_v2 = vmul.f32 %v1042_v63, %v161_v1 }
 0x1d8   :  { %165 = vrot.lane.b32.xlu1 %v163_v2, %s1087_s26 }
 0x24a   :  { %v166_v6 = vpop.permute.xlu1 %165 }
 0x24b   :  { %v168_v7 = vadd.f32 %v166_v6, %v158_v5 }
 0x24d   :  { %1043 = vtanh.f32 %v168_v7 }
 0x257   :  { %v1044_v10 = vpop.eup %1043 }
 0x258   :  { %171 = vrot.lane.b32.xlu0 %v1044_v10, %s1086_s21 }
 0x2ca   :  { %v172_v11 = vpop.permute.xlu0 %171 }
 0x2cb   :  { %v174_v12 = vmul.f32 %v1042_v63, %v172_v11  ;;  %v314_v63 = vsub.f32 1.0, %v871_v62 }
 0x2cd   :  { %177 = vrot.lane.b32.xlu1 %v174_v12, %s1087_s26 }
 0x2d1   :  { %186 = vrot.lane.b32.xlu1 %v168_v7, %s1088_s2 }
 0x33f   :  { %v178_v18 = vpop.permute.xlu1 %177 }
 0x340   :  { %v180_v19 = vmul.f32 %v178_v18, %v175_v13 }
 0x342   :  { %v183_v24 = vadd.f32 %v182_v17, %v180_v19  ;;  %193 = vst.msk [vmem:[%s1475_s5] sm:$0xf] %vm20_vm0, %v180_v19 }
 0x343   :  { %v187_v26 = vpop.permute.xlu1 %186 }
 0x344   :  { %184 = vst.msk [vmem:[#allocation2] sm:$0xf] %vm20_vm0, %v183_v24  ;;  %v189_v27 = vmul.f32 %v187_v26, %v175_v13 }
 0x346   :  { %v191_v30 = vadd.f32 %v190_v25, %v189_v27 }
 0x348   :  { %192 = vst.msk [vmem:[#allocation3] sm:$0xf] %vm20_vm0, %v191_v30 }
 0x34b   :  { %v194_v31 = vld [vmem:[#allocation2] sm:$0xf] }
 0x34c   :  { %199 = vrot.lane.b32.xlu0 %v194_v31, %s1086_s21  ;;  %v315_v2 = vmul.f32 %v314_v63, %v194_v31 }
 0x34f   :  { %v195_v20 = vld [vmem:[#allocation3] sm:$0xf] }
 0x350   :  { %287 = vrot.lane.b32.xlu1 %v195_v20, %s1087_s26  ;;  %v323_v10 = vmul.f32 %v314_v63, %v195_v20  ;;  %v877_v63 = vld [vmem:[%s1471_s0 + $0xc] sm:$0xf] }
 0x3be   :  { %v200_v33 = vpop.permute.xlu0 %199 }
 0x3bf   :  { %v202_v22 = vsel %vm57_vm1, %v869_v32, %v200_v33 }
 0x3c0   :  { %870 = vmatmul.mubr.msk.f32.vlgmr.msra.gmra.mrb[0].mxu1 %vm70_vm2, %v202_v22 }
 0x3c1   :  { %964 = vmatpush1.bf16.msra.mxu1 %v1145_v8  ;;  %538 = vmatprep.mubr.f32.mxu1 %v1085_v0 }
 0x3c2   :  { %966 = vmatprep.subr.bf16.mxu1 %v1147_v9  ;;  %v288_v55 = vpop.permute.xlu1 %287 }
 0x3c5   :  { %968 = vmatpush1.bf16.msra.mxu1 %v1164_v14 }
 0x3c6   :  { %970 = vmatprep.subr.bf16.mxu1 %v1168_v15 }
 0x3c9   :  { %972 = vmatpush1.bf16.msra.mxu1 %v1188_v21 }
 0x3ca   :  { %974 = vmatprep.subr.bf16.mxu1 %v1193_v23 }
 0x3cd   :  { %976 = vmatpush1.bf16.msra.mxu1 %v1212_v28 }
 0x3ce   :  { %978 = vmatprep.subr.bf16.mxu1 %v1215_v29 }
 0x3d1   :  { %980 = vmatpush1.bf16.msra.mxu1 %v1232_v34 }
 0x3d2   :  { %982 = vmatprep.subr.bf16.mxu1 %v1235_v35 }
 0x3d5   :  { %984 = vmatpush1.bf16.msra.mxu1 %v1246_v38 }
 0x3d6   :  { %1010 = vmatprep.subr.bf16.mxu1 %v1134_v4 }
 0x493   :  { %v272_v36 = vpop.f32.mrb[0].mxu1 }
 0x494   :  { %v273_v37 = vadd.f32 %v272_v36, %v1281_v48  ;;  %v274_v39 = vpop.f32.mrb[1].mxu1 }
 0x495   :  { %v275_v40 = vadd.f32 %v274_v39, %v1283_v49 }
 0x496   :  { %v277_v41 = vmul.f32 %v273_v37, %v1279_v47 }
 0x497   :  { %v278_v42 = vmul.f32 %v275_v40, %v1286_v51 }
 0x499   :  { %v279_v43 = vadd.f32 %v278_v42, %v277_v41 }
 0x49b   :  { %1045 = vtanh.f32 %v279_v43  ;;  %v280_v45 = vsub.f32 0.0, %v279_v43 }
 0x49d   :  { %v281_v46 = vmul.f32 1.442695, %v280_v45 }
 0x49f   :  { %1047 = vpow2.f32 %v281_v46 }
 0x4a5   :  { %v1046_v44 = vpop.eup %1045 }
 0x4a6   :  { %292 = vrot.lane.b32.xlu0 %v1046_v44, %s1086_s21 }
 0x4a9   :  { %v1048_v50 = vpop.eup %1047 }
 0x4aa   :  { %v283_v4 = vadd.f32 1.0, %v1048_v50 }
 0x4ac   :  { %1049 = vrcp.f32 %v283_v4  ;;  %v875_v4 = vld [vmem:[%s1474_s1 + $0x8] sm:$0xf] }
 0x4b6   :  { %v1050_v52 = vpop.eup %1049 }
 0x4b7   :  { %v290_v56 = vmul.f32 %v1050_v52, %v288_v55 }
 0x518   :  { %v293_v53 = vpop.permute.xlu0 %292 }
 0x519   :  { %v295_v54 = vmul.f32 %v1050_v52, %v293_v53 }
 0x51b   :  { %297 = vrot.lane.b32.xlu0 %v295_v54, %s1087_s26 }
 0x58d   :  { %v298_v57 = vpop.permute.xlu0 %297 }
 0x58e   :  { %v300_v58 = vadd.f32 %v298_v57, %v290_v56 }
 0x590   :  { %1051 = vtanh.f32 %v300_v58 }
 0x59a   :  { %v1052_v59 = vpop.eup %1051 }
 0x59b   :  { %303 = vrot.lane.b32.xlu1 %v1052_v59, %s1086_s21 }
 0x60d   :  { %v304_v60 = vpop.permute.xlu1 %303 }
 0x60e   :  { %v306_v61 = vmul.f32 %v1050_v52, %v304_v60  ;;  %v448_v52 = vsub.f32 1.0, %v875_v4 }
 0x610   :  { %310 = vrot.lane.b32.xlu0 %v306_v61, %s1087_s26 }
 0x614   :  { %319 = vrot.lane.b32.xlu0 %v300_v58, %s1088_s2 }
 0x682   :  { %v311_v1 = vpop.permute.xlu0 %310 }
 0x683   :  { %v313_v3 = vmul.f32 %v871_v62, %v311_v1 }
 0x685   :  { %v316_v5 = vadd.f32 %v315_v2, %v313_v3  ;;  %872 = vst.msk [vmem:[%s1475_s5 + $0x4] sm:$0xf] %vm20_vm0, %v313_v3 }
 0x686   :  { %v320_v6 = vpop.permute.xlu0 %319 }
 0x687   :  { %317 = vst.msk [vmem:[#allocation2] sm:$0xf] %vm20_vm0, %v316_v5  ;;  %v322_v7 = vmul.f32 %v871_v62, %v320_v6 }
 0x689   :  { %v324_v11 = vadd.f32 %v323_v10, %v322_v7 }
 0x68b   :  { %325 = vst.msk [vmem:[#allocation3] sm:$0xf] %vm20_vm0, %v324_v11 }
 0x68e   :  { %v328_v12 = vld [vmem:[#allocation2] sm:$0xf] }
 0x68f   :  { %333 = vrot.lane.b32.xlu1 %v328_v12, %s1086_s21  ;;  %v449_v54 = vmul.f32 %v448_v52, %v328_v12 }
 0x692   :  { %v329_v13 = vld [vmem:[#allocation3] sm:$0xf] }
 0x693   :  { %421 = vrot.lane.b32.xlu0 %v329_v13, %s1087_s26  ;;  %v457_v59 = vmul.f32 %v448_v52, %v329_v13 }
 0x701   :  { %v334_v17 = vpop.permute.xlu1 %333 }
 0x702   :  { %v336_v18 = vsel %vm57_vm1, %v873_v16, %v334_v17 }
 0x703   :  { %874 = vmatmul.mubr.msk.f32.vlgmr.msra.gmra.mrb[2].mxu0 %vm70_vm2, %v336_v18  ;;  %v879_v18 = vld [vmem:[%s1474_s1 + $0xc] sm:$0xf] }
 0x704   :  { %988 = vmatpush1.bf16.msra.mxu0 %v1145_v8  ;;  %672 = vmatprep.mubr.f32.mxu0 %v1085_v0 }
 0x705   :  { %990 = vmatprep.subr.bf16.mxu0 %v1147_v9  ;;  %v422_v41 = vpop.permute.xlu0 %421 }
 0x708   :  { %992 = vmatpush1.bf16.msra.mxu0 %v1164_v14 }
 0x709   :  { %994 = vmatprep.subr.bf16.mxu0 %v1168_v15 }
 0x70c   :  { %996 = vmatpush1.bf16.msra.mxu0 %v1188_v21 }
 0x70d   :  { %998 = vmatprep.subr.bf16.mxu0 %v1193_v23 }
 0x710   :  { %1000 = vmatpush1.bf16.msra.mxu0 %v1212_v28 }
 0x711   :  { %1002 = vmatprep.subr.bf16.mxu0 %v1215_v29 }
 0x714   :  { %1004 = vmatpush1.bf16.msra.mxu0 %v1232_v34 }
 0x715   :  { %1006 = vmatprep.subr.bf16.mxu0 %v1235_v35 }
 0x718   :  { %1008 = vmatpush1.bf16.msra.mxu0 %v1246_v38 }
 0x7d6   :  { %v406_v19 = vpop.f32.mrb[2].mxu0 }
 0x7d7   :  { %v407_v24 = vadd.f32 %v406_v19, %v1281_v48  ;;  %v408_v25 = vpop.f32.mrb[3].mxu0  ;;  %v582_v19 = vsub.f32 1.0, %v879_v18 }
 0x7d8   :  { %v409_v26 = vadd.f32 %v408_v25, %v1283_v49 }
 0x7d9   :  { %v411_v27 = vmul.f32 %v407_v24, %v1279_v47 }
 0x7da   :  { %v412_v30 = vmul.f32 %v409_v26, %v1286_v51 }
 0x7dc   :  { %v413_v31 = vadd.f32 %v412_v30, %v411_v27 }
 0x7de   :  { %1053 = vtanh.f32 %v413_v31  ;;  %v414_v32 = vsub.f32 0.0, %v413_v31 }
 0x7e0   :  { %v415_v33 = vmul.f32 1.442695, %v414_v32 }
 0x7e2   :  { %1055 = vpow2.f32 %v415_v33 }
 0x7e8   :  { %v1054_v20 = vpop.eup %1053 }
 0x7e9   :  { %426 = vrot.lane.b32.xlu1 %v1054_v20, %s1086_s21 }
 0x7ec   :  { %v1056_v22 = vpop.eup %1055 }
 0x7ed   :  { %v417_v36 = vadd.f32 1.0, %v1056_v22 }
 0x7ef   :  { %1057 = vrcp.f32 %v417_v36  ;;  %v881_v36 = vld [vmem:[%s1471_s0 + $0x10] sm:$0xf] }
 0x7f9   :  { %v1058_v37 = vpop.eup %1057 }
 0x7fa   :  { %v424_v42 = vmul.f32 %v1058_v37, %v422_v41 }
 0x85b   :  { %v427_v39 = vpop.permute.xlu1 %426 }
 0x85c   :  { %v429_v40 = vmul.f32 %v1058_v37, %v427_v39 }
 0x85e   :  { %431 = vrot.lane.b32.xlu1 %v429_v40, %s1087_s26 }
 0x8d0   :  { %v432_v43 = vpop.permute.xlu1 %431 }
 0x8d1   :  { %v434_v44 = vadd.f32 %v432_v43, %v424_v42 }
 0x8d3   :  { %1059 = vtanh.f32 %v434_v44 }
 0x8dd   :  { %v1060_v45 = vpop.eup %1059 }
 0x8de   :  { %437 = vrot.lane.b32.xlu0 %v1060_v45, %s1086_s21 }
 0x950   :  { %v438_v46 = vpop.permute.xlu0 %437 }
 0x951   :  { %v440_v50 = vmul.f32 %v1058_v37, %v438_v46 }
 0x953   :  { %444 = vrot.lane.b32.xlu1 %v440_v50, %s1087_s26 }
 0x957   :  { %453 = vrot.lane.b32.xlu1 %v434_v44, %s1088_s2 }
 0x9c5   :  { %v445_v53 = vpop.permute.xlu1 %444 }
 0x9c6   :  { %v447_v55 = vmul.f32 %v875_v4, %v445_v53 }
 0x9c8   :  { %v450_v56 = vadd.f32 %v449_v54, %v447_v55  ;;  %876 = vst.msk [vmem:[%s1475_s5 + $0x8] sm:$0xf] %vm20_vm0, %v447_v55 }
 0x9c9   :  { %v454_v57 = vpop.permute.xlu1 %453 }
 0x9ca   :  { %451 = vst.msk [vmem:[#allocation2] sm:$0xf] %vm20_vm0, %v450_v56  ;;  %v456_v58 = vmul.f32 %v875_v4, %v454_v57 }
 0x9cc   :  { %v458_v60 = vadd.f32 %v457_v59, %v456_v58 }
 0x9ce   :  { %459 = vst.msk [vmem:[#allocation3] sm:$0xf] %vm20_vm0, %v458_v60 }
 0x9d1   :  { %v462_v61 = vld [vmem:[#allocation2] sm:$0xf] }
 0x9d2   :  { %467 = vrot.lane.b32.xlu0 %v462_v61, %s1086_s21  ;;  %v583_v25 = vmul.f32 %v582_v19, %v462_v61 }
 0x9d5   :  { %v463_v62 = vld [vmem:[#allocation3] sm:$0xf] }
 0x9d6   :  { %555 = vrot.lane.b32.xlu1 %v463_v62, %s1087_s26  ;;  %v591_v20 = vmul.f32 %v582_v19, %v463_v62 }
 0xa44   :  { %v468_v1 = vpop.permute.xlu0 %467 }
 0xa45   :  { %v470_v2 = vsel %vm57_vm1, %v877_v63, %v468_v1 }
 0xa46   :  { %878 = vmatmul.mubr.msk.f32.vlgmr.msra.gmra.mrb[2].mxu1 %vm70_vm2, %v470_v2  ;;  %v883_v2 = vld [vmem:[%s1474_s1 + $0x10] sm:$0xf] }
 0xa47   :  { %1012 = vmatpush1.bf16.msra.mxu1 %v1145_v8  ;;  %806 = vmatprep.mubr.f32.mxu1 %v1085_v0 }
 0xa48   :  { %1014 = vmatprep.subr.bf16.mxu1 %v1147_v9  ;;  %v556_v7 = vpop.permute.xlu1 %555 }
 0xa4b   :  { %1016 = vmatpush1.bf16.msra.mxu1 %v1164_v14 }
 0xa4c   :  { %1018 = vmatprep.subr.bf16.mxu1 %v1168_v15 }
 0xa4f   :  { %1020 = vmatpush1.bf16.msra.mxu1 %v1188_v21 }
 0xa50   :  { %1022 = vmatprep.subr.bf16.mxu1 %v1193_v23 }
 0xa53   :  { %1024 = vmatpush1.bf16.msra.mxu1 %v1212_v28 }
 0xa54   :  { %1026 = vmatprep.subr.bf16.mxu1 %v1215_v29 }
 0xa57   :  { %1028 = vmatpush1.bf16.msra.mxu1 %v1232_v34 }
 0xa58   :  { %1030 = vmatprep.subr.bf16.mxu1 %v1235_v35 }
 0xa5b   :  { %1032 = vmatpush1.bf16.msra.mxu1 %v1246_v38 }
 0xb19   :  { %v540_v0 = vpop.f32.mrb[2].mxu1 }
 0xb1a   :  { %v541_v8 = vadd.f32 %v540_v0, %v1281_v48  ;;  %v542_v9 = vpop.f32.mrb[3].mxu1  ;;  %v716_v0 = vsub.f32 1.0, %v883_v2 }
 0xb1b   :  { %v543_v14 = vadd.f32 %v542_v9, %v1283_v49 }
 0xb1c   :  { %v545_v15 = vmul.f32 %v541_v8, %v1279_v47 }
 0xb1d   :  { %v546_v21 = vmul.f32 %v543_v14, %v1286_v51 }
 0xb1f   :  { %v547_v23 = vadd.f32 %v546_v21, %v545_v15 }
 0xb21   :  { %1061 = vtanh.f32 %v547_v23  ;;  %v548_v29 = vsub.f32 0.0, %v547_v23 }
 0xb23   :  { %v549_v34 = vmul.f32 1.442695, %v548_v29 }
 0xb25   :  { %1063 = vpow2.f32 %v549_v34 }
 0xb2b   :  { %v1062_v28 = vpop.eup %1061 }
 0xb2c   :  { %560 = vrot.lane.b32.xlu0 %v1062_v28, %s1086_s21 }
 0xb2f   :  { %v1064_v35 = vpop.eup %1063 }
 0xb30   :  { %v551_v38 = vadd.f32 1.0, %v1064_v35 }
 0xb32   :  { %1065 = vrcp.f32 %v551_v38  ;;  %v885_v38 = vld [vmem:[%s1471_s0 + $0x14] sm:$0xf] }
 0xb3c   :  { %v1066_v3 = vpop.eup %1065 }
 0xb3d   :  { %v558_v10 = vmul.f32 %v1066_v3, %v556_v7 }
 0xb9e   :  { %v561_v5 = vpop.permute.xlu0 %560 }
 0xb9f   :  { %v563_v6 = vmul.f32 %v1066_v3, %v561_v5 }
 0xba1   :  { %565 = vrot.lane.b32.xlu0 %v563_v6, %s1087_s26 }
 0xc13   :  { %v566_v11 = vpop.permute.xlu0 %565 }
 0xc14   :  { %v568_v12 = vadd.f32 %v566_v11, %v558_v10 }
 0xc16   :  { %1067 = vtanh.f32 %v568_v12 }
 0xc20   :  { %v1068_v13 = vpop.eup %1067 }
 0xc21   :  { %571 = vrot.lane.b32.xlu1 %v1068_v13, %s1086_s21 }
 0xc93   :  { %v572_v16 = vpop.permute.xlu1 %571 }
 0xc94   :  { %v574_v17 = vmul.f32 %v1066_v3, %v572_v16 }
 0xc96   :  { %578 = vrot.lane.b32.xlu0 %v574_v17, %s1087_s26 }
 0xc9a   :  { %587 = vrot.lane.b32.xlu0 %v568_v12, %s1088_s2 }
 0xd08   :  { %v579_v24 = vpop.permute.xlu0 %578 }
 0xd09   :  { %v581_v26 = vmul.f32 %v879_v18, %v579_v24 }
 0xd0b   :  { %v584_v27 = vadd.f32 %v583_v25, %v581_v26  ;;  %880 = vst.msk [vmem:[%s1475_s5 + $0xc] sm:$0xf] %vm20_vm0, %v581_v26 }
 0xd0c   :  { %v588_v30 = vpop.permute.xlu0 %587 }
 0xd0d   :  { %585 = vst.msk [vmem:[#allocation2] sm:$0xf] %vm20_vm0, %v584_v27  ;;  %v590_v31 = vmul.f32 %v879_v18, %v588_v30 }
 0xd0f   :  { %v592_v32 = vadd.f32 %v591_v20, %v590_v31 }
 0xd11   :  { %593 = vst.msk [vmem:[#allocation3] sm:$0xf] %vm20_vm0, %v592_v32  ;;  %v887_v32 = vld [vmem:[%s1474_s1 + $0x14] sm:$0xf] }
 0xd14   :  { %v596_v33 = vld [vmem:[#allocation2] sm:$0xf] }
 0xd15   :  { %601 = vrot.lane.b32.xlu1 %v596_v33, %s1086_s21  ;;  %v717_v9 = vmul.f32 %v716_v0, %v596_v33 }
 0xd18   :  { %v597_v22 = vld [vmem:[#allocation3] sm:$0xf] }
 0xd19   :  { %689 = vrot.lane.b32.xlu0 %v597_v22, %s1087_s26  ;;  %v725_v28 = vmul.f32 %v716_v0, %v597_v22  ;;  %v850_v22 = vsub.f32 1.0, %v887_v32 }
 0xd87   :  { %v602_v37 = vpop.permute.xlu1 %601 }
 0xd88   :  { %v604_v39 = vsel %vm57_vm1, %v881_v36, %v602_v37 }
 0xd89   :  { %882 = vmatmul.mubr.msk.f32.vlgmr.msra.gmra.mrb[4].mxu0 %vm70_vm2, %v604_v39 }
 0xd8b   :  { %v690_v58 = vpop.permute.xlu0 %689 }
 0xe5c   :  { %v674_v40 = vpop.f32.mrb[4].mxu0 }
 0xe5d   :  { %v675_v41 = vadd.f32 %v674_v40, %v1281_v48  ;;  %v676_v42 = vpop.f32.mrb[5].mxu0 }
 0xe5e   :  { %v677_v43 = vadd.f32 %v676_v42, %v1283_v49 }
 0xe5f   :  { %v679_v44 = vmul.f32 %v675_v41, %v1279_v47 }
 0xe60   :  { %v680_v45 = vmul.f32 %v677_v43, %v1286_v51 }
 0xe62   :  { %v681_v46 = vadd.f32 %v680_v45, %v679_v44 }
 0xe64   :  { %1069 = vtanh.f32 %v681_v46  ;;  %v682_v4 = vsub.f32 0.0, %v681_v46 }
 0xe66   :  { %v683_v52 = vmul.f32 1.442695, %v682_v4 }
 0xe68   :  { %1071 = vpow2.f32 %v683_v52 }
 0xe6e   :  { %v1070_v50 = vpop.eup %1069 }
 0xe6f   :  { %694 = vrot.lane.b32.xlu1 %v1070_v50, %s1086_s21 }
 0xe72   :  { %v1072_v53 = vpop.eup %1071 }
 0xe73   :  { %v685_v54 = vadd.f32 1.0, %v1072_v53 }
 0xe75   :  { %1073 = vrcp.f32 %v685_v54 }
 0xe7f   :  { %v1074_v55 = vpop.eup %1073 }
 0xe80   :  { %v692_v59 = vmul.f32 %v1074_v55, %v690_v58 }
 0xee1   :  { %v695_v56 = vpop.permute.xlu1 %694 }
 0xee2   :  { %v697_v57 = vmul.f32 %v1074_v55, %v695_v56 }
 0xee4   :  { %699 = vrot.lane.b32.xlu1 %v697_v57, %s1087_s26 }
 0xf56   :  { %v700_v60 = vpop.permute.xlu1 %699 }
 0xf57   :  { %v702_v61 = vadd.f32 %v700_v60, %v692_v59 }
 0xf59   :  { %1075 = vtanh.f32 %v702_v61 }
 0xf63   :  { %v1076_v62 = vpop.eup %1075 }
 0xf64   :  { %705 = vrot.lane.b32.xlu0 %v1076_v62, %s1086_s21 }
 0xfd6   :  { %v706_v63 = vpop.permute.xlu0 %705 }
 0xfd7   :  { %v708_v1 = vmul.f32 %v1074_v55, %v706_v63 }
 0xfd9   :  { %712 = vrot.lane.b32.xlu1 %v708_v1, %s1087_s26 }
 0xfdd   :  { %721 = vrot.lane.b32.xlu1 %v702_v61, %s1088_s2 }
0x104b   :  { %v713_v8 = vpop.permute.xlu1 %712 }
0x104c   :  { %v715_v14 = vmul.f32 %v883_v2, %v713_v8 }
0x104e   :  { %v718_v15 = vadd.f32 %v717_v9, %v715_v14  ;;  %884 = vst.msk [vmem:[%s1475_s5 + $0x10] sm:$0xf] %vm20_vm0, %v715_v14 }
0x104f   :  { %v722_v21 = vpop.permute.xlu1 %721 }
0x1050   :  { %719 = vst.msk [vmem:[#allocation2] sm:$0xf] %vm20_vm0, %v718_v15  ;;  %v724_v23 = vmul.f32 %v883_v2, %v722_v21 }
0x1052   :  { %v726_v29 = vadd.f32 %v725_v28, %v724_v23 }
0x1054   :  { %727 = vst.msk [vmem:[#allocation3] sm:$0xf] %vm20_vm0, %v726_v29 }
0x1057   :  { %v730_v34 = vld [vmem:[#allocation2] sm:$0xf] }
0x1058   :  { %735 = vrot.lane.b32.xlu0 %v730_v34, %s1086_s21  ;;  %v851_v42 = vmul.f32 %v850_v22, %v730_v34 }
0x105b   :  { %v731_v35 = vld [vmem:[#allocation3] sm:$0xf] }
0x105c   :  { %823 = vrot.lane.b32.xlu1 %v731_v35, %s1087_s26  ;;  %v859_v39 = vmul.f32 %v850_v22, %v731_v35 }
0x10ca   :  { %v736_v3 = vpop.permute.xlu0 %735 }
0x10cb   :  { %v738_v5 = vsel %vm57_vm1, %v885_v38, %v736_v3 }
0x10cc   :  { %886 = vmatmul.mubr.msk.f32.vlgmr.msra.gmra.mrb[4].mxu1 %vm70_vm2, %v738_v5 }
0x119f   :  { %v808_v6 = vpop.f32.mrb[4].mxu1 }
0x11a0   :  { %v809_v7 = vadd.f32 %v808_v6, %v1281_v48  ;;  %v810_v10 = vpop.f32.mrb[5].mxu1 }
0x11a1   :  { %v811_v11 = vadd.f32 %v810_v10, %v1283_v49  ;;  %v824_v49 = vpop.permute.xlu1 %823 }
0x11a2   :  { %v813_v12 = vmul.f32 %v809_v7, %v1279_v47 }
0x11a3   :  { %v814_v13 = vmul.f32 %v811_v11, %v1286_v51 }
0x11a5   :  { %v815_v16 = vadd.f32 %v814_v13, %v813_v12 }
0x11a7   :  { %1077 = vtanh.f32 %v815_v16  ;;  %v816_v18 = vsub.f32 0.0, %v815_v16 }
0x11a9   :  { %v817_v19 = vmul.f32 1.442695, %v816_v18 }
0x11ab   :  { %1079 = vpow2.f32 %v817_v19 }
0x11b1   :  { %v1078_v17 = vpop.eup %1077 }
0x11b2   :  { %828 = vrot.lane.b32.xlu0 %v1078_v17, %s1086_s21 }
0x11b5   :  { %v1080_v24 = vpop.eup %1079 }
0x11b6   :  { %v819_v25 = vadd.f32 1.0, %v1080_v24 }
0x11b8   :  { %1081 = vrcp.f32 %v819_v25 }
0x11c2   :  { %v1082_v26 = vpop.eup %1081 }
0x11c3   :  { %v826_v47 = vmul.f32 %v1082_v26, %v824_v49 }
0x1224   :  { %v829_v48 = vpop.permute.xlu0 %828 }
0x1225   :  { %v831_v27 = vmul.f32 %v1082_v26, %v829_v48 }
0x1227   :  { %833 = vrot.lane.b32.xlu0 %v831_v27, %s1087_s26 }
0x1299   :  { %v834_v30 = vpop.permute.xlu0 %833 }
0x129a   :  { %v836_v51 = vadd.f32 %v834_v30, %v826_v47 }
0x129c   :  { %1083 = vtanh.f32 %v836_v51 }
0x12a6   :  { %v1084_v31 = vpop.eup %1083 }
0x12a7   :  { %839 = vrot.lane.b32.xlu1 %v1084_v31, %s1086_s21 }
0x12ab   :  { %855 = vrot.lane.b32.xlu1 %v836_v51, %s1088_s2 }
0x1319   :  { %v840_v20 = vpop.permute.xlu1 %839 }
0x131a   :  { %v842_v33 = vmul.f32 %v1082_v26, %v840_v20 }
0x131c   :  { %846 = vrot.lane.b32.xlu0 %v842_v33, %s1087_s26 }
0x131d   :  { %v856_v36 = vpop.permute.xlu1 %855 }
0x131e   :  { %v858_v37 = vmul.f32 %v887_v32, %v856_v36 }
0x1320   :  { %v860_v40 = vadd.f32 %v859_v39, %v858_v37 }
0x1322   :  { %861 = vst.msk [vmem:[#allocation3] sm:$0xf] %vm20_vm0, %v860_v40 }
0x138e   :  { %v847_v41 = vpop.permute.xlu0 %846 }
0x138f   :  { %v849_v43 = vmul.f32 %v887_v32, %v847_v41 }
0x1391   :  { %v852_v44 = vadd.f32 %v851_v42, %v849_v43  ;;  %888 = vst.msk [vmem:[%s1475_s5 + $0x14] sm:$0xf] %vm20_vm0, %v849_v43 }
0x1393   :  { %853 = vst.msk [vmem:[#allocation2] sm:$0xf] %vm20_vm0, %v852_v44 }

// kernel: seq2seq_forward.6
= control target key start
LH: loop header
LB: loop body
LE: loop exit
PB: predicated region body
PF: predicated region fallthrough
CT: control target
= control target key end

     0   :  { %vm17_vm0 = vcmask 261120   ;;  %vm19_vm1 = vcmask 257024   ;;  %v1326_v0 = vmov 0.0   ;;  %s1327_s5 = smov 32   ;;  %vm54_vm2 = vcmask 523264   ;;  %s1328_s11 = smov 64   ;;  %s1696_s2 = inlined_call_operand.vmem [shape: f32[64,128], index: 2, kind: input, shape index: {}]   ;;  %s1697_s0 = inlined_call_operand.vmem [shape: f32[5,12,32], index: 0, kind: input, shape index: {}]   ;;  %s1698_s3 = inlined_call_operand.vmem [shape: f32[1,128], index: 3, kind: input, shape index: {}]   ;;  %s1699_s1 = inlined_call_operand.vmem [shape: f32[5,12,32], index: 1, kind: input, shape index: {}]   ;;  %s1700_s4 = inlined_call_operand.vmem [shape: f32[12,32], index: 4, kind: output, shape index: {}]  }
   0x1   :  { %18 = vst.msk [vmem:[#allocation2] sm:$0xff] %vm17_vm0, %v1326_v0  ;;  %21 = vst.msk [vmem:[#allocation3] sm:$0xff] %vm17_vm0, %v1326_v0  ;;  %v23_v1 = vld [vmem:[%s1696_s2] sm:$0xff]  ;;  %v24_v2 = vld [vmem:[%s1696_s2 + $0x8] sm:$0xff]  ;;  %s1329_s15 = smov 96  }
   0x2   :  { %20 = vst.msk [vmem:[#allocation2 + $0x8] sm:$0xf] %vm19_vm1, %v1326_v0  ;;  %22 = vst.msk [vmem:[#allocation3 + $0x8] sm:$0xf] %vm19_vm1, %v1326_v0  ;;  %v25_v3 = vld [vmem:[%s1696_s2 + $0x10] sm:$0xff]  ;;  %v1368_v4 = vpack.c.bf16 %v24_v2, %v23_v1  ;;  %v26_v5 = vld [vmem:[%s1696_s2 + $0x18] sm:$0xff] }
   0x3   :  { %v1373_v6 = vpack.c.bf16 %v26_v5, %v25_v3  ;;  %v27_v7 = vld [vmem:[%s1696_s2 + $0x20] sm:$0xff]  ;;  %v28_v8 = vld [vmem:[%s1696_s2 + $0x28] sm:$0xff]  ;;  %v29_v10 = vld [vmem:[%s1696_s2 + $0x30] sm:$0xff] }
   0x4   :  { %1163 = vmatprep.subr.bf16.mxu0 %v1368_v4  ;;  %1179 = vmatprep.subr.bf16.mxu1 %v1368_v4  ;;  %v1386_v9 = vpack.c.bf16 %v28_v8, %v27_v7  ;;  %v30_v11 = vld [vmem:[%s1696_s2 + $0x38] sm:$0xff]  ;;  %v36_v16 = vld [vmem:[%s1697_s0] sm:$0xff]  ;;  %v37_v19 = vld [vmem:[%s1697_s0 + $0x8] sm:$0xf] }
   0x5   :  { %1165 = vmatpush3.bf16.msra.mxu0 %v1368_v4  ;;  %1181 = vmatpush3.bf16.msra.mxu1 %v1368_v4  ;;  %v1403_v14 = vpack.c.bf16 %v30_v11, %v29_v10  ;;  %v1442_v22 = vld [vmem:[%s1698_s3] ss:$0 sm:$0xff]  ;;  %v191_v60 = vld [vmem:[%s1699_s1 + $0x8] sm:$0xf]  ;;  %v993_v11 = vld [vmem:[%s1697_s0 + $0x10] sm:$0xff] }
   0x6   :  { %1167 = vmatprep.subr.bf16.mxu0 %v1373_v6  ;;  %1183 = vmatprep.subr.bf16.mxu1 %v1373_v6  ;;  %v190_v58 = vld [vmem:[%s1699_s1] sm:$0xff]  ;;  %v203_v62 = vsub.f32 1.0, %v191_v60 }
   0x7   :  { %v202_v59 = vsub.f32 1.0, %v190_v58 }
   0x8   :  { %v1395_v12 = vld [vmem:[#allocation2] sm:$0xff]  ;;  %v1411_v15 = vld [vmem:[#allocation3] sm:$0xff] }
   0x9   :  { %40 = vrot.lane.b32.xlu0 %v1395_v12, %s1327_s5  ;;  %1169 = vmatpush3.bf16.msra.mxu0 %v1373_v6  ;;  %v1400_v13 = vld [vmem:[#allocation2 + $0x8] sm:$0xf]  ;;  %v1448_v29 = vld [vmem:[#allocation3 + $0x8] sm:$0xf]  ;;  %v204_v61 = vmul.f32 %v202_v59, %v1395_v12 }
   0xa   :  { %1171 = vmatprep.subr.bf16.mxu0 %v1386_v9  ;;  %1185 = vmatpush3.bf16.msra.mxu1 %v1373_v6  ;;  %v205_v2 = vmul.f32 %v203_v62, %v1400_v13 }
   0xb   :  { %1187 = vmatprep.subr.bf16.mxu1 %v1386_v9 }
   0xd   :  { %42 = vrot.lane.b32.xlu0 %v1400_v13, %s1327_s5  ;;  %1173 = vmatpush3.bf16.msra.mxu0 %v1386_v9 }
   0xe   :  { %1175 = vmatprep.subr.bf16.mxu0 %v1403_v14  ;;  %1189 = vmatpush3.bf16.msra.mxu1 %v1386_v9 }
   0xf   :  { %1191 = vmatprep.subr.bf16.mxu1 %v1403_v14 }
  0x11   :  { %1177 = vmatpush3.bf16.msra.mxu0 %v1403_v14  ;;  %150 = vrot.lane.b32.xlu0 %v1411_v15, %s1327_s5 }
  0x12   :  { %1193 = vmatpush3.bf16.msra.mxu1 %v1403_v14  ;;  %1195 = vmatprep.subr.bf16.mxu0 %v1368_v4 }
  0x13   :  { %1211 = vmatprep.subr.bf16.mxu1 %v1368_v4 }
  0x7b   :  { %v41_v17 = vpop.permute.xlu0 %40 }
  0x7c   :  { %v46_v18 = vsel %vm17_vm0, %v36_v16, %v41_v17  ;;  %v994_v16 = vld [vmem:[%s1697_s0 + $0x18] sm:$0xf]  ;;  %v220_v17 = vmul.f32 %v202_v59, %v1411_v15 }
  0x7d   :  { %1083 = vmatprep.mubr.msk.f32.mxu0 %vm54_vm2, %v46_v18 }
  0x7f   :  { %v43_v20 = vpop.permute.xlu0 %42 }
  0x80   :  { %v47_v21 = vsel %vm17_vm0, %v37_v19, %v43_v20 }
  0x81   :  { %1084 = vmatmul.mubr.msk.f32.vlgmr.msra.gmra.mrb[0].mxu0 %vm54_vm2, %v47_v21 }
  0x82   :  { %1197 = vmatpush3.bf16.msra.mxu0 %v1368_v4 }
  0x83   :  { %1199 = vmatprep.subr.bf16.mxu0 %v1373_v6  ;;  %v151_v44 = vpop.permute.xlu0 %150 }
  0x86   :  { %1201 = vmatpush3.bf16.msra.mxu0 %v1373_v6 }
  0x87   :  { %1203 = vmatprep.subr.bf16.mxu0 %v1386_v9 }
  0x8a   :  { %1205 = vmatpush3.bf16.msra.mxu0 %v1386_v9 }
  0x8b   :  { %1207 = vmatprep.subr.bf16.mxu0 %v1403_v14 }
  0x8e   :  { %1209 = vmatpush3.bf16.msra.mxu0 %v1403_v14 }
  0x8f   :  { %1227 = vmatprep.subr.bf16.mxu0 %v1368_v4 }
 0x154   :  { %v1085_v23 = vpop.f32.mrb[0].mxu0 }
 0x155   :  { %v127_v24 = vpop.f32.mrb[1].mxu0  ;;  %v133_v26 = vadd.f32 %v1085_v23, %v1442_v22 }
 0x156   :  { %v128_v25 = vadd.f32 %v1442_v22, %v127_v24  ;;  %v221_v24 = vmul.f32 %v203_v62, %v1448_v29 }
 0x157   :  { %v137_v31 = vsub.f32 0.0, %v133_v26 }
 0x158   :  { %1246 = vtanh.f32 %v128_v25  ;;  %v136_v30 = vsub.f32 0.0, %v128_v25 }
 0x159   :  { %1248 = vtanh.f32 %v133_v26  ;;  %v140_v33 = vmul.f32 1.442695, %v137_v31 }
 0x15a   :  { %v138_v32 = vmul.f32 1.442695, %v136_v30 }
 0x15c   :  { %1250 = vpow2.f32 %v138_v32 }
 0x15d   :  { %1252 = vpow2.f32 %v140_v33 }
 0x162   :  { %v1247_v27 = vpop.eup %1246 }
 0x163   :  { %160 = vrot.lane.b32.xlu1 %v1247_v27, %s1328_s11  ;;  %v1249_v28 = vpop.eup %1248 }
 0x166   :  { %v1251_v34 = vpop.eup %1250 }
 0x167   :  { %162 = vrot.lane.b32.xlu1 %v1249_v28, %s1328_s11  ;;  %v142_v35 = vadd.f32 1.0, %v1251_v34  ;;  %v1253_v36 = vpop.eup %1252 }
 0x168   :  { %v143_v37 = vadd.f32 1.0, %v1253_v36 }
 0x169   :  { %1254 = vrcp.f32 %v142_v35 }
 0x16a   :  { %1256 = vrcp.f32 %v143_v37 }
 0x16b   :  { %152 = vrot.lane.b32.xlu1 %v1448_v29, %s1327_s5 }
 0x173   :  { %v1255_v38 = vpop.eup %1254 }
 0x174   :  { %v1257_v41 = vpop.eup %1256  ;;  %v156_v45 = vmul.f32 %v1255_v38, %v151_v44 }
 0x1d5   :  { %v161_v39 = vpop.permute.xlu1 %160 }
 0x1d6   :  { %v166_v40 = vmul.f32 %v1255_v38, %v161_v39 }
 0x1d8   :  { %170 = vrot.lane.b32.xlu0 %v166_v40, %s1327_s5 }
 0x1d9   :  { %v163_v42 = vpop.permute.xlu1 %162 }
 0x1da   :  { %v167_v43 = vmul.f32 %v1257_v41, %v163_v42 }
 0x1dc   :  { %172 = vrot.lane.b32.xlu1 %v167_v43, %s1327_s5 }
 0x1dd   :  { %v153_v46 = vpop.permute.xlu1 %152 }
 0x1de   :  { %v157_v49 = vmul.f32 %v1257_v41, %v153_v46 }
 0x24a   :  { %v171_v47 = vpop.permute.xlu0 %170 }
 0x24b   :  { %v176_v48 = vadd.f32 %v171_v47, %v156_v45 }
 0x24d   :  { %1258 = vtanh.f32 %v176_v48 }
 0x24e   :  { %v173_v50 = vpop.permute.xlu1 %172 }
 0x24f   :  { %v177_v51 = vadd.f32 %v173_v50, %v157_v49 }
 0x251   :  { %1260 = vtanh.f32 %v177_v51 }
 0x257   :  { %v1259_v52 = vpop.eup %1258 }
 0x258   :  { %182 = vrot.lane.b32.xlu0 %v1259_v52, %s1328_s11 }
 0x25b   :  { %v1261_v53 = vpop.eup %1260 }
 0x25c   :  { %184 = vrot.lane.b32.xlu1 %v1261_v53, %s1328_s11 }
 0x2ca   :  { %v183_v54 = vpop.permute.xlu0 %182 }
 0x2cb   :  { %v188_v55 = vmul.f32 %v1255_v38, %v183_v54 }
 0x2cd   :  { %194 = vrot.lane.b32.xlu0 %v188_v55, %s1327_s5 }
 0x2ce   :  { %v185_v56 = vpop.permute.xlu1 %184 }
 0x2cf   :  { %v189_v57 = vmul.f32 %v1257_v41, %v185_v56 }
 0x2d1   :  { %196 = vrot.lane.b32.xlu1 %v189_v57, %s1327_s5 }
 0x33f   :  { %v195_v63 = vpop.permute.xlu0 %194 }
 0x340   :  { %v200_v0 = vmul.f32 %v195_v63, %v190_v58  ;;  %v998_v63 = vld [vmem:[%s1699_s1 + $0x18] sm:$0xf] }
 0x342   :  { %v206_v1 = vadd.f32 %v204_v61, %v200_v0  ;;  %v997_v0 = vld [vmem:[%s1699_s1 + $0x10] sm:$0xff] }
 0x343   :  { %v197_v3 = vpop.permute.xlu1 %196 }
 0x344   :  { %208 = vst.msk [vmem:[#allocation2] sm:$0xff] %vm17_vm0, %v206_v1  ;;  %v201_v5 = vmul.f32 %v197_v3, %v191_v60  ;;  %v392_v1 = vsub.f32 1.0, %v998_v63 }
 0x346   :  { %v207_v7 = vadd.f32 %v205_v2, %v201_v5  ;;  %v391_v2 = vsub.f32 1.0, %v997_v0 }
 0x348   :  { %209 = vst.msk [vmem:[#allocation2 + $0x8] sm:$0xf] %vm19_vm1, %v207_v7 }
 0x34b   :  { %v1468_v8 = vld [vmem:[#allocation2] sm:$0xff] }
 0x34c   :  { %235 = vrot.lane.b32.xlu0 %v1468_v8, %s1327_s5 }
 0x34f   :  { %v1472_v10 = vld [vmem:[#allocation2 + $0x8] sm:$0xf] }
 0x350   :  { %237 = vrot.lane.b32.xlu1 %v1472_v10, %s1327_s5  ;;  %212 = vrot.lane.b32.xlu0 %v176_v48, %s1329_s15  ;;  %v394_v5 = vmul.f32 %v392_v1, %v1472_v10  ;;  %v1000_v10 = vld [vmem:[%s1697_s0 + $0x28] sm:$0xf] }
 0x354   :  { %214 = vrot.lane.b32.xlu1 %v177_v51, %s1329_s15 }
 0x3be   :  { %v236_v12 = vpop.permute.xlu0 %235 }
 0x3bf   :  { %v241_v13 = vsel %vm17_vm0, %v993_v11, %v236_v12 }
 0x3c0   :  { %1102 = vmatprep.mubr.msk.f32.mxu1 %vm54_vm2, %v241_v13  ;;  %v393_v13 = vmul.f32 %v391_v2, %v1468_v8  ;;  %v999_v8 = vld [vmem:[%s1697_s0 + $0x20] sm:$0xff] }
 0x3c2   :  { %v238_v18 = vpop.permute.xlu1 %237  ;;  %v213_v19 = vpop.permute.xlu0 %212 }
 0x3c3   :  { %v242_v20 = vsel %vm17_vm0, %v994_v16, %v238_v18  ;;  %v218_v21 = vmul.f32 %v213_v19, %v190_v58 }
 0x3c4   :  { %1103 = vmatmul.mubr.msk.f32.vlgmr.msra.gmra.mrb[0].mxu1 %vm54_vm2, %v242_v20 }
 0x3c5   :  { %v222_v23 = vadd.f32 %v220_v17, %v218_v21  ;;  %1213 = vmatpush3.bf16.msra.mxu1 %v1368_v4 }
 0x3c6   :  { %v215_v25 = vpop.permute.xlu1 %214  ;;  %1215 = vmatprep.subr.bf16.mxu1 %v1373_v6 }
 0x3c7   :  { %224 = vst.msk [vmem:[#allocation3] sm:$0xff] %vm17_vm0, %v222_v23  ;;  %v219_v26 = vmul.f32 %v215_v25, %v191_v60 }
 0x3c9   :  { %v223_v27 = vadd.f32 %v221_v24, %v219_v26  ;;  %1217 = vmatpush3.bf16.msra.mxu1 %v1373_v6 }
 0x3ca   :  { %1219 = vmatprep.subr.bf16.mxu1 %v1386_v9 }
 0x3cb   :  { %225 = vst.msk [vmem:[#allocation3 + $0x8] sm:$0xf] %vm19_vm1, %v223_v27 }
 0x3cd   :  { %1221 = vmatpush3.bf16.msra.mxu1 %v1386_v9 }
 0x3ce   :  { %1223 = vmatprep.subr.bf16.mxu1 %v1403_v14  ;;  %v1507_v34 = vld [vmem:[#allocation3] sm:$0xff] }
 0x3d1   :  { %1225 = vmatpush3.bf16.msra.mxu1 %v1403_v14 }
 0x3d2   :  { %v1503_v33 = vld [vmem:[#allocation3 + $0x8] sm:$0xf] }
 0x3d3   :  { %v410_v26 = vmul.f32 %v392_v1, %v1503_v33  ;;  %v1003_v1 = vld [vmem:[%s1699_s1 + $0x20] sm:$0xff] }
 0x497   :  { %v1104_v15 = vpop.f32.mrb[0].mxu1 }
 0x498   :  { %v321_v28 = vadd.f32 %v1104_v15, %v1442_v22  ;;  %v315_v29 = vpop.f32.mrb[1].mxu1 }
 0x499   :  { %v316_v30 = vadd.f32 %v1442_v22, %v315_v29 }
 0x49a   :  { %1262 = vtanh.f32 %v321_v28  ;;  %v325_v35 = vsub.f32 0.0, %v321_v28  ;;  %v409_v28 = vmul.f32 %v391_v2, %v1507_v34 }
 0x49b   :  { %1264 = vtanh.f32 %v316_v30  ;;  %v324_v36 = vsub.f32 0.0, %v316_v30 }
 0x49c   :  { %v328_v37 = vmul.f32 1.442695, %v325_v35 }
 0x49d   :  { %v326_v38 = vmul.f32 1.442695, %v324_v36 }
 0x49e   :  { %1266 = vpow2.f32 %v328_v37 }
 0x49f   :  { %1268 = vpow2.f32 %v326_v38 }
 0x4a4   :  { %v1263_v31 = vpop.eup %1262 }
 0x4a5   :  { %v1265_v32 = vpop.eup %1264  ;;  %350 = vrot.lane.b32.xlu1 %v1263_v31, %s1328_s11 }
 0x4a6   :  { %348 = vrot.lane.b32.xlu0 %v1265_v32, %s1328_s11 }
 0x4a8   :  { %v1267_v39 = vpop.eup %1266 }
 0x4a9   :  { %340 = vrot.lane.b32.xlu1 %v1503_v33, %s1327_s5  ;;  %v1269_v40 = vpop.eup %1268  ;;  %v331_v41 = vadd.f32 1.0, %v1267_v39 }
 0x4aa   :  { %338 = vrot.lane.b32.xlu0 %v1507_v34, %s1327_s5  ;;  %v330_v42 = vadd.f32 1.0, %v1269_v40 }
 0x4ab   :  { %1270 = vrcp.f32 %v331_v41 }
 0x4ac   :  { %1272 = vrcp.f32 %v330_v42 }
 0x4b5   :  { %v1271_v43 = vpop.eup %1270 }
 0x4b6   :  { %v1273_v45 = vpop.eup %1272 }
 0x517   :  { %v351_v44 = vpop.permute.xlu1 %350 }
 0x518   :  { %v355_v46 = vmul.f32 %v1271_v43, %v351_v44  ;;  %v349_v47 = vpop.permute.xlu0 %348 }
 0x519   :  { %v354_v48 = vmul.f32 %v1273_v45, %v349_v47 }
 0x51a   :  { %360 = vrot.lane.b32.xlu1 %v355_v46, %s1327_s5 }
 0x51b   :  { %358 = vrot.lane.b32.xlu0 %v354_v48, %s1327_s5  ;;  %v341_v49 = vpop.permute.xlu1 %340 }
 0x51c   :  { %v339_v50 = vpop.permute.xlu0 %338  ;;  %v345_v51 = vmul.f32 %v1271_v43, %v341_v49 }
 0x51d   :  { %v344_v52 = vmul.f32 %v1273_v45, %v339_v50 }
 0x58c   :  { %v361_v53 = vpop.permute.xlu1 %360 }
 0x58d   :  { %v365_v54 = vadd.f32 %v361_v53, %v345_v51  ;;  %v359_v55 = vpop.permute.xlu0 %358 }
 0x58e   :  { %v364_v56 = vadd.f32 %v359_v55, %v344_v52 }
 0x58f   :  { %1274 = vtanh.f32 %v365_v54 }
 0x590   :  { %1276 = vtanh.f32 %v364_v56 }
 0x599   :  { %v1275_v57 = vpop.eup %1274 }
 0x59a   :  { %v1277_v58 = vpop.eup %1276  ;;  %372 = vrot.lane.b32.xlu1 %v1275_v57, %s1328_s11 }
 0x59b   :  { %370 = vrot.lane.b32.xlu0 %v1277_v58, %s1328_s11 }
 0x60c   :  { %v373_v59 = vpop.permute.xlu1 %372 }
 0x60d   :  { %v377_v60 = vmul.f32 %v1271_v43, %v373_v59  ;;  %v371_v61 = vpop.permute.xlu0 %370 }
 0x60e   :  { %v376_v62 = vmul.f32 %v1273_v45, %v371_v61 }
 0x60f   :  { %385 = vrot.lane.b32.xlu1 %v377_v60, %s1327_s5 }
 0x610   :  { %383 = vrot.lane.b32.xlu0 %v376_v62, %s1327_s5 }
 0x681   :  { %v386_v3 = vpop.permute.xlu1 %385 }
 0x682   :  { %v390_v7 = vmul.f32 %v998_v63, %v386_v3  ;;  %v384_v11 = vpop.permute.xlu0 %383  ;;  %v580_v3 = vsub.f32 1.0, %v1003_v1 }
 0x683   :  { %v389_v12 = vmul.f32 %v997_v0, %v384_v11 }
 0x684   :  { %v396_v16 = vadd.f32 %v394_v5, %v390_v7 }
 0x685   :  { %v395_v17 = vadd.f32 %v393_v13, %v389_v12 }
 0x686   :  { %398 = vst.msk [vmem:[#allocation2 + $0x8] sm:$0xf] %vm19_vm1, %v396_v16 }
 0x687   :  { %397 = vst.msk [vmem:[#allocation2] sm:$0xff] %vm17_vm0, %v395_v17 }
 0x68d   :  { %v1527_v18 = vld [vmem:[#allocation2 + $0x8] sm:$0xf] }
 0x68e   :  { %426 = vrot.lane.b32.xlu1 %v1527_v18, %s1327_s5  ;;  %v1531_v19 = vld [vmem:[#allocation2] sm:$0xff] }
 0x68f   :  { %424 = vrot.lane.b32.xlu0 %v1531_v19, %s1327_s5  ;;  %v582_v16 = vmul.f32 %v580_v3, %v1531_v19  ;;  %v1006_v19 = vld [vmem:[%s1697_s0 + $0x38] sm:$0xf] }
 0x692   :  { %403 = vrot.lane.b32.xlu1 %v365_v54, %s1329_s15 }
 0x693   :  { %401 = vrot.lane.b32.xlu0 %v364_v56, %s1329_s15 }
 0x700   :  { %v427_v20 = vpop.permute.xlu1 %426 }
 0x701   :  { %v425_v21 = vpop.permute.xlu0 %424  ;;  %v431_v24 = vsel %vm17_vm0, %v1000_v10, %v427_v20 }
 0x702   :  { %v430_v23 = vsel %vm17_vm0, %v999_v8, %v425_v21 }
 0x703   :  { %1121 = vmatprep.mubr.msk.f32.mxu0 %vm54_vm2, %v430_v23 }
 0x704   :  { %v404_v25 = vpop.permute.xlu1 %403  ;;  %1122 = vmatmul.mubr.msk.f32.vlgmr.msra.gmra.mrb[2].mxu0 %vm54_vm2, %v431_v24 }
 0x705   :  { %v408_v27 = vmul.f32 %v998_v63, %v404_v25  ;;  %v402_v15 = vpop.permute.xlu0 %401  ;;  %1229 = vmatpush3.bf16.msra.mxu0 %v1368_v4 }
 0x706   :  { %v407_v29 = vmul.f32 %v997_v0, %v402_v15  ;;  %1231 = vmatprep.subr.bf16.mxu0 %v1373_v6  ;;  %v1004_v0 = vld [vmem:[%s1699_s1 + $0x28] sm:$0xf] }
 0x707   :  { %v412_v30 = vadd.f32 %v410_v26, %v408_v27  ;;  %v581_v2 = vsub.f32 1.0, %v1004_v0 }
 0x708   :  { %v411_v31 = vadd.f32 %v409_v28, %v407_v29 }
 0x709   :  { %414 = vst.msk [vmem:[#allocation3 + $0x8] sm:$0xf] %vm19_vm1, %v412_v30  ;;  %1233 = vmatpush3.bf16.msra.mxu0 %v1373_v6  ;;  %v583_v7 = vmul.f32 %v581_v2, %v1527_v18  ;;  %v1005_v18 = vld [vmem:[%s1697_s0 + $0x30] sm:$0xff] }
 0x70a   :  { %413 = vst.msk [vmem:[#allocation3] sm:$0xff] %vm17_vm0, %v411_v31  ;;  %1235 = vmatprep.subr.bf16.mxu0 %v1386_v9 }
 0x70d   :  { %1237 = vmatpush3.bf16.msra.mxu0 %v1386_v9 }
 0x70e   :  { %1239 = vmatprep.subr.bf16.mxu0 %v1403_v14 }
 0x710   :  { %v1562_v36 = vld [vmem:[#allocation3 + $0x8] sm:$0xf] }
 0x711   :  { %1241 = vmatpush3.bf16.msra.mxu0 %v1403_v14  ;;  %v1566_v9 = vld [vmem:[#allocation3] sm:$0xff]  ;;  %v599_v27 = vmul.f32 %v581_v2, %v1562_v36 }
 0x712   :  { %v598_v29 = vmul.f32 %v580_v3, %v1566_v9  ;;  %v1009_v2 = vld [vmem:[%s1699_s1 + $0x30] sm:$0xff] }
 0x7d7   :  { %v1123_v4 = vpop.f32.mrb[2].mxu0 }
 0x7d8   :  { %v510_v32 = vadd.f32 %v1123_v4, %v1442_v22  ;;  %v504_v33 = vpop.f32.mrb[3].mxu0 }
 0x7d9   :  { %v505_v34 = vadd.f32 %v1442_v22, %v504_v33 }
 0x7da   :  { %1278 = vtanh.f32 %v510_v32  ;;  %v514_v14 = vsub.f32 0.0, %v510_v32 }
 0x7db   :  { %1280 = vtanh.f32 %v505_v34  ;;  %v513_v37 = vsub.f32 0.0, %v505_v34 }
 0x7dc   :  { %v517_v38 = vmul.f32 1.442695, %v514_v14 }
 0x7dd   :  { %v515_v39 = vmul.f32 1.442695, %v513_v37 }
 0x7de   :  { %1282 = vpow2.f32 %v517_v38 }
 0x7df   :  { %1284 = vpow2.f32 %v515_v39 }
 0x7e4   :  { %v1279_v35 = vpop.eup %1278 }
 0x7e5   :  { %v1281_v6 = vpop.eup %1280  ;;  %539 = vrot.lane.b32.xlu1 %v1279_v35, %s1328_s11 }
 0x7e6   :  { %537 = vrot.lane.b32.xlu0 %v1281_v6, %s1328_s11 }
 0x7e8   :  { %v1283_v40 = vpop.eup %1282 }
 0x7e9   :  { %529 = vrot.lane.b32.xlu1 %v1562_v36, %s1327_s5  ;;  %v1285_v41 = vpop.eup %1284  ;;  %v520_v42 = vadd.f32 1.0, %v1283_v40 }
 0x7ea   :  { %527 = vrot.lane.b32.xlu0 %v1566_v9, %s1327_s5  ;;  %v519_v43 = vadd.f32 1.0, %v1285_v41 }
 0x7eb   :  { %1286 = vrcp.f32 %v520_v42 }
 0x7ec   :  { %1288 = vrcp.f32 %v519_v43 }
 0x7f5   :  { %v1287_v44 = vpop.eup %1286 }
 0x7f6   :  { %v1289_v46 = vpop.eup %1288 }
 0x857   :  { %v540_v45 = vpop.permute.xlu1 %539 }
 0x858   :  { %v544_v47 = vmul.f32 %v1287_v44, %v540_v45  ;;  %v538_v48 = vpop.permute.xlu0 %537 }
 0x859   :  { %v543_v49 = vmul.f32 %v1289_v46, %v538_v48 }
 0x85a   :  { %549 = vrot.lane.b32.xlu1 %v544_v47, %s1327_s5 }
 0x85b   :  { %547 = vrot.lane.b32.xlu0 %v543_v49, %s1327_s5  ;;  %v530_v50 = vpop.permute.xlu1 %529 }
 0x85c   :  { %v528_v51 = vpop.permute.xlu0 %527  ;;  %v534_v52 = vmul.f32 %v1287_v44, %v530_v50 }
 0x85d   :  { %v533_v53 = vmul.f32 %v1289_v46, %v528_v51 }
 0x8cc   :  { %v550_v54 = vpop.permute.xlu1 %549 }
 0x8cd   :  { %v554_v55 = vadd.f32 %v550_v54, %v534_v52  ;;  %v548_v56 = vpop.permute.xlu0 %547 }
 0x8ce   :  { %v553_v57 = vadd.f32 %v548_v56, %v533_v53 }
 0x8cf   :  { %1290 = vtanh.f32 %v554_v55 }
 0x8d0   :  { %1292 = vtanh.f32 %v553_v57 }
 0x8d9   :  { %v1291_v58 = vpop.eup %1290 }
 0x8da   :  { %v1293_v59 = vpop.eup %1292  ;;  %561 = vrot.lane.b32.xlu1 %v1291_v58, %s1328_s11 }
 0x8db   :  { %559 = vrot.lane.b32.xlu0 %v1293_v59, %s1328_s11 }
 0x94c   :  { %v562_v60 = vpop.permute.xlu1 %561 }
 0x94d   :  { %v566_v61 = vmul.f32 %v1287_v44, %v562_v60  ;;  %v560_v62 = vpop.permute.xlu0 %559 }
 0x94e   :  { %v565_v63 = vmul.f32 %v1289_v46, %v560_v62 }
 0x94f   :  { %574 = vrot.lane.b32.xlu1 %v566_v61, %s1327_s5 }
 0x950   :  { %572 = vrot.lane.b32.xlu0 %v565_v63, %s1327_s5 }
 0x9c1   :  { %v575_v5 = vpop.permute.xlu1 %574 }
 0x9c2   :  { %v579_v11 = vmul.f32 %v1004_v0, %v575_v5  ;;  %v573_v12 = vpop.permute.xlu0 %572  ;;  %v769_v5 = vsub.f32 1.0, %v1009_v2 }
 0x9c3   :  { %v578_v13 = vmul.f32 %v1003_v1, %v573_v12 }
 0x9c4   :  { %v585_v17 = vadd.f32 %v583_v7, %v579_v11 }
 0x9c5   :  { %v584_v8 = vadd.f32 %v582_v16, %v578_v13 }
 0x9c6   :  { %587 = vst.msk [vmem:[#allocation2 + $0x8] sm:$0xf] %vm19_vm1, %v585_v17 }
 0x9c7   :  { %586 = vst.msk [vmem:[#allocation2] sm:$0xff] %vm17_vm0, %v584_v8 }
 0x9cd   :  { %v1586_v10 = vld [vmem:[#allocation2 + $0x8] sm:$0xf] }
 0x9ce   :  { %615 = vrot.lane.b32.xlu1 %v1586_v10, %s1327_s5  ;;  %v1590_v20 = vld [vmem:[#allocation2] sm:$0xff] }
 0x9cf   :  { %613 = vrot.lane.b32.xlu0 %v1590_v20, %s1327_s5  ;;  %v771_v17 = vmul.f32 %v769_v5, %v1590_v20  ;;  %v1012_v20 = vld [vmem:[%s1697_s0 + $0x48] sm:$0xf] }
 0x9d2   :  { %592 = vrot.lane.b32.xlu1 %v554_v55, %s1329_s15 }
 0x9d3   :  { %590 = vrot.lane.b32.xlu0 %v553_v57, %s1329_s15 }
 0xa40   :  { %v616_v21 = vpop.permute.xlu1 %615 }
 0xa41   :  { %v614_v23 = vpop.permute.xlu0 %613  ;;  %v620_v25 = vsel %vm17_vm0, %v1006_v19, %v616_v21 }
 0xa42   :  { %v619_v24 = vsel %vm17_vm0, %v1005_v18, %v614_v23 }
 0xa43   :  { %1140 = vmatprep.mubr.msk.f32.mxu1 %vm54_vm2, %v619_v24 }
 0xa44   :  { %v593_v26 = vpop.permute.xlu1 %592  ;;  %1141 = vmatmul.mubr.msk.f32.vlgmr.msra.gmra.mrb[2].mxu1 %vm54_vm2, %v620_v25 }
 0xa45   :  { %v597_v15 = vmul.f32 %v1004_v0, %v593_v26  ;;  %v591_v28 = vpop.permute.xlu0 %590 }
 0xa46   :  { %v596_v30 = vmul.f32 %v1003_v1, %v591_v28  ;;  %v1010_v1 = vld [vmem:[%s1699_s1 + $0x38] sm:$0xf] }
 0xa47   :  { %v601_v31 = vadd.f32 %v599_v27, %v597_v15  ;;  %v770_v3 = vsub.f32 1.0, %v1010_v1 }
 0xa48   :  { %v600_v4 = vadd.f32 %v598_v29, %v596_v30 }
 0xa49   :  { %603 = vst.msk [vmem:[#allocation3 + $0x8] sm:$0xf] %vm19_vm1, %v601_v31  ;;  %v772_v11 = vmul.f32 %v770_v3, %v1586_v10  ;;  %v1011_v10 = vld [vmem:[%s1697_s0 + $0x40] sm:$0xff] }
 0xa4a   :  { %602 = vst.msk [vmem:[#allocation3] sm:$0xff] %vm17_vm0, %v600_v4 }
 0xa50   :  { %v1614_v9 = vld [vmem:[#allocation3 + $0x8] sm:$0xf] }
 0xa51   :  { %v1618_v14 = vld [vmem:[#allocation3] sm:$0xff]  ;;  %v788_v15 = vmul.f32 %v770_v3, %v1614_v9 }
 0xa52   :  { %v787_v30 = vmul.f32 %v769_v5, %v1618_v14 }
 0xb17   :  { %v1142_v32 = vpop.f32.mrb[2].mxu1 }
 0xb18   :  { %v699_v33 = vadd.f32 %v1142_v32, %v1442_v22  ;;  %v693_v34 = vpop.f32.mrb[3].mxu1 }
 0xb19   :  { %v694_v35 = vadd.f32 %v1442_v22, %v693_v34 }
 0xb1a   :  { %1294 = vtanh.f32 %v699_v33  ;;  %v703_v37 = vsub.f32 0.0, %v699_v33 }
 0xb1b   :  { %1296 = vtanh.f32 %v694_v35  ;;  %v702_v38 = vsub.f32 0.0, %v694_v35 }
 0xb1c   :  { %v706_v39 = vmul.f32 1.442695, %v703_v37 }
 0xb1d   :  { %v704_v40 = vmul.f32 1.442695, %v702_v38 }
 0xb1e   :  { %1298 = vpow2.f32 %v706_v39 }
 0xb1f   :  { %1300 = vpow2.f32 %v704_v40 }
 0xb24   :  { %v1295_v6 = vpop.eup %1294 }
 0xb25   :  { %v1297_v36 = vpop.eup %1296  ;;  %728 = vrot.lane.b32.xlu1 %v1295_v6, %s1328_s11 }
 0xb26   :  { %726 = vrot.lane.b32.xlu0 %v1297_v36, %s1328_s11 }
 0xb28   :  { %v1299_v41 = vpop.eup %1298 }
 0xb29   :  { %718 = vrot.lane.b32.xlu1 %v1614_v9, %s1327_s5  ;;  %v1301_v42 = vpop.eup %1300  ;;  %v709_v43 = vadd.f32 1.0, %v1299_v41 }
 0xb2a   :  { %716 = vrot.lane.b32.xlu0 %v1618_v14, %s1327_s5  ;;  %v708_v44 = vadd.f32 1.0, %v1301_v42 }
 0xb2b   :  { %1302 = vrcp.f32 %v709_v43 }
 0xb2c   :  { %1304 = vrcp.f32 %v708_v44 }
 0xb35   :  { %v1303_v45 = vpop.eup %1302 }
 0xb36   :  { %v1305_v47 = vpop.eup %1304 }
 0xb97   :  { %v729_v46 = vpop.permute.xlu1 %728 }
 0xb98   :  { %v733_v48 = vmul.f32 %v1303_v45, %v729_v46  ;;  %v727_v49 = vpop.permute.xlu0 %726 }
 0xb99   :  { %v732_v50 = vmul.f32 %v1305_v47, %v727_v49 }
 0xb9a   :  { %738 = vrot.lane.b32.xlu1 %v733_v48, %s1327_s5 }
 0xb9b   :  { %736 = vrot.lane.b32.xlu0 %v732_v50, %s1327_s5  ;;  %v719_v51 = vpop.permute.xlu1 %718 }
 0xb9c   :  { %v717_v52 = vpop.permute.xlu0 %716  ;;  %v723_v53 = vmul.f32 %v1303_v45, %v719_v51 }
 0xb9d   :  { %v722_v54 = vmul.f32 %v1305_v47, %v717_v52 }
 0xc0c   :  { %v739_v55 = vpop.permute.xlu1 %738 }
 0xc0d   :  { %v743_v56 = vadd.f32 %v739_v55, %v723_v53  ;;  %v737_v57 = vpop.permute.xlu0 %736 }
 0xc0e   :  { %v742_v58 = vadd.f32 %v737_v57, %v722_v54 }
 0xc0f   :  { %1306 = vtanh.f32 %v743_v56 }
 0xc10   :  { %1308 = vtanh.f32 %v742_v58 }
 0xc19   :  { %v1307_v59 = vpop.eup %1306 }
 0xc1a   :  { %v1309_v60 = vpop.eup %1308  ;;  %750 = vrot.lane.b32.xlu1 %v1307_v59, %s1328_s11 }
 0xc1b   :  { %748 = vrot.lane.b32.xlu0 %v1309_v60, %s1328_s11 }
 0xc8c   :  { %v751_v61 = vpop.permute.xlu1 %750 }
 0xc8d   :  { %v755_v62 = vmul.f32 %v1303_v45, %v751_v61  ;;  %v749_v63 = vpop.permute.xlu0 %748 }
 0xc8e   :  { %v754_v0 = vmul.f32 %v1305_v47, %v749_v63 }
 0xc8f   :  { %763 = vrot.lane.b32.xlu1 %v755_v62, %s1327_s5 }
 0xc90   :  { %761 = vrot.lane.b32.xlu0 %v754_v0, %s1327_s5 }
 0xd01   :  { %v764_v7 = vpop.permute.xlu1 %763 }
 0xd02   :  { %v768_v12 = vmul.f32 %v1010_v1, %v764_v7  ;;  %v762_v13 = vpop.permute.xlu0 %761 }
 0xd03   :  { %v767_v16 = vmul.f32 %v1009_v2, %v762_v13 }
 0xd04   :  { %v774_v8 = vadd.f32 %v772_v11, %v768_v12 }
 0xd05   :  { %v773_v18 = vadd.f32 %v771_v17, %v767_v16 }
 0xd06   :  { %776 = vst.msk [vmem:[#allocation2 + $0x8] sm:$0xf] %vm19_vm1, %v774_v8 }
 0xd07   :  { %775 = vst.msk [vmem:[#allocation2] sm:$0xff] %vm17_vm0, %v773_v18 }
 0xd0d   :  { %v1638_v19 = vld [vmem:[#allocation2 + $0x8] sm:$0xf] }
 0xd0e   :  { %804 = vrot.lane.b32.xlu1 %v1638_v19, %s1327_s5  ;;  %v1642_v21 = vld [vmem:[#allocation2] sm:$0xff] }
 0xd0f   :  { %802 = vrot.lane.b32.xlu0 %v1642_v21, %s1327_s5 }
 0xd12   :  { %781 = vrot.lane.b32.xlu1 %v743_v56, %s1329_s15 }
 0xd13   :  { %779 = vrot.lane.b32.xlu0 %v742_v58, %s1329_s15 }
 0xd80   :  { %v805_v23 = vpop.permute.xlu1 %804 }
 0xd81   :  { %v803_v24 = vpop.permute.xlu0 %802  ;;  %v809_v26 = vsel %vm17_vm0, %v1012_v20, %v805_v23 }
 0xd82   :  { %v808_v25 = vsel %vm17_vm0, %v1011_v10, %v803_v24 }
 0xd83   :  { %1159 = vmatprep.mubr.msk.f32.mxu0 %vm54_vm2, %v808_v25 }
 0xd84   :  { %v782_v27 = vpop.permute.xlu1 %781  ;;  %1160 = vmatmul.mubr.msk.f32.vlgmr.msra.gmra.mrb[4].mxu0 %vm54_vm2, %v809_v26 }
 0xd85   :  { %v786_v28 = vmul.f32 %v1010_v1, %v782_v27  ;;  %v780_v29 = vpop.permute.xlu0 %779  ;;  %v1016_v1 = vld [vmem:[%s1699_s1 + $0x48] sm:$0xf] }
 0xd86   :  { %v785_v31 = vmul.f32 %v1009_v2, %v780_v29  ;;  %v1015_v2 = vld [vmem:[%s1699_s1 + $0x40] sm:$0xff]  ;;  %v959_v3 = vsub.f32 1.0, %v1016_v1 }
 0xd87   :  { %v790_v4 = vadd.f32 %v788_v15, %v786_v28  ;;  %v958_v5 = vsub.f32 1.0, %v1015_v2 }
 0xd88   :  { %v789_v32 = vadd.f32 %v787_v30, %v785_v31  ;;  %v961_v11 = vmul.f32 %v959_v3, %v1638_v19 }
 0xd89   :  { %792 = vst.msk [vmem:[#allocation3 + $0x8] sm:$0xf] %vm19_vm1, %v790_v4  ;;  %v960_v17 = vmul.f32 %v958_v5, %v1642_v21 }
 0xd8a   :  { %791 = vst.msk [vmem:[#allocation3] sm:$0xff] %vm17_vm0, %v789_v32 }
 0xd90   :  { %v796_v14 = vld [vmem:[#allocation3 + $0x8] sm:$0xf] }
 0xd91   :  { %v795_v37 = vld [vmem:[#allocation3] sm:$0xff]  ;;  %v977_v20 = vmul.f32 %v959_v3, %v796_v14 }
 0xd92   :  { %v976_v25 = vmul.f32 %v958_v5, %v795_v37 }
 0xe57   :  { %v1161_v33 = vpop.f32.mrb[4].mxu0 }
 0xe58   :  { %v888_v34 = vadd.f32 %v1161_v33, %v1442_v22  ;;  %v882_v35 = vpop.f32.mrb[5].mxu0 }
 0xe59   :  { %v883_v6 = vadd.f32 %v1442_v22, %v882_v35 }
 0xe5a   :  { %1310 = vtanh.f32 %v888_v34  ;;  %v892_v38 = vsub.f32 0.0, %v888_v34 }
 0xe5b   :  { %1312 = vtanh.f32 %v883_v6  ;;  %v891_v39 = vsub.f32 0.0, %v883_v6 }
 0xe5c   :  { %v895_v40 = vmul.f32 1.442695, %v892_v38 }
 0xe5d   :  { %v893_v41 = vmul.f32 1.442695, %v891_v39 }
 0xe5e   :  { %1314 = vpow2.f32 %v895_v40 }
 0xe5f   :  { %1316 = vpow2.f32 %v893_v41 }
 0xe64   :  { %v1311_v36 = vpop.eup %1310 }
 0xe65   :  { %v1313_v9 = vpop.eup %1312  ;;  %917 = vrot.lane.b32.xlu1 %v1311_v36, %s1328_s11 }
 0xe66   :  { %915 = vrot.lane.b32.xlu0 %v1313_v9, %s1328_s11 }
 0xe68   :  { %v1315_v22 = vpop.eup %1314 }
 0xe69   :  { %907 = vrot.lane.b32.xlu1 %v796_v14, %s1327_s5  ;;  %v1317_v42 = vpop.eup %1316  ;;  %v898_v43 = vadd.f32 1.0, %v1315_v22 }
 0xe6a   :  { %905 = vrot.lane.b32.xlu0 %v795_v37, %s1327_s5  ;;  %v897_v44 = vadd.f32 1.0, %v1317_v42 }
 0xe6b   :  { %1318 = vrcp.f32 %v898_v43 }
 0xe6c   :  { %1320 = vrcp.f32 %v897_v44 }
 0xe75   :  { %v1319_v45 = vpop.eup %1318 }
 0xe76   :  { %v1321_v47 = vpop.eup %1320 }
 0xed7   :  { %v918_v46 = vpop.permute.xlu1 %917 }
 0xed8   :  { %v922_v48 = vmul.f32 %v1319_v45, %v918_v46  ;;  %v916_v49 = vpop.permute.xlu0 %915 }
 0xed9   :  { %v921_v50 = vmul.f32 %v1321_v47, %v916_v49 }
 0xeda   :  { %927 = vrot.lane.b32.xlu1 %v922_v48, %s1327_s5 }
 0xedb   :  { %925 = vrot.lane.b32.xlu0 %v921_v50, %s1327_s5  ;;  %v908_v51 = vpop.permute.xlu1 %907 }
 0xedc   :  { %v906_v52 = vpop.permute.xlu0 %905  ;;  %v912_v53 = vmul.f32 %v1319_v45, %v908_v51 }
 0xedd   :  { %v911_v54 = vmul.f32 %v1321_v47, %v906_v52 }
 0xf4c   :  { %v928_v55 = vpop.permute.xlu1 %927 }
 0xf4d   :  { %v932_v56 = vadd.f32 %v928_v55, %v912_v53  ;;  %v926_v57 = vpop.permute.xlu0 %925 }
 0xf4e   :  { %v931_v58 = vadd.f32 %v926_v57, %v911_v54 }
 0xf4f   :  { %1322 = vtanh.f32 %v932_v56 }
 0xf50   :  { %1324 = vtanh.f32 %v931_v58 }
 0xf59   :  { %v1323_v59 = vpop.eup %1322 }
 0xf5a   :  { %v1325_v60 = vpop.eup %1324  ;;  %939 = vrot.lane.b32.xlu1 %v1323_v59, %s1328_s11 }
 0xf5b   :  { %937 = vrot.lane.b32.xlu0 %v1325_v60, %s1328_s11 }
 0xfcc   :  { %v940_v61 = vpop.permute.xlu1 %939 }
 0xfcd   :  { %v944_v62 = vmul.f32 %v1319_v45, %v940_v61  ;;  %v938_v63 = vpop.permute.xlu0 %937 }
 0xfce   :  { %v943_v0 = vmul.f32 %v1321_v47, %v938_v63 }
 0xfcf   :  { %952 = vrot.lane.b32.xlu1 %v944_v62, %s1327_s5 }
 0xfd0   :  { %950 = vrot.lane.b32.xlu0 %v943_v0, %s1327_s5 }
 0xfd3   :  { %970 = vrot.lane.b32.xlu1 %v932_v56, %s1329_s15 }
 0xfd4   :  { %968 = vrot.lane.b32.xlu0 %v931_v58, %s1329_s15 }
0x1041   :  { %v953_v7 = vpop.permute.xlu1 %952 }
0x1042   :  { %v957_v12 = vmul.f32 %v1016_v1, %v953_v7  ;;  %v951_v13 = vpop.permute.xlu0 %950 }
0x1043   :  { %v956_v16 = vmul.f32 %v1015_v2, %v951_v13 }
0x1044   :  { %v963_v8 = vadd.f32 %v961_v11, %v957_v12 }
0x1045   :  { %v962_v18 = vadd.f32 %v960_v17, %v956_v16  ;;  %v971_v10 = vpop.permute.xlu1 %970 }
0x1046   :  { %965 = vst.msk [vmem:[#allocation2 + $0x8] sm:$0xf] %vm19_vm1, %v963_v8  ;;  %v975_v23 = vmul.f32 %v1016_v1, %v971_v10  ;;  %v969_v24 = vpop.permute.xlu0 %968 }
0x1047   :  { %964 = vst.msk [vmem:[#allocation2] sm:$0xff] %vm17_vm0, %v962_v18  ;;  %v974_v26 = vmul.f32 %v1015_v2, %v969_v24 }
0x1048   :  { %v979_v27 = vadd.f32 %v977_v20, %v975_v23 }
0x1049   :  { %v978_v15 = vadd.f32 %v976_v25, %v974_v26 }
0x104a   :  { %981 = vst.msk [vmem:[#allocation3 + $0x8] sm:$0xf] %vm19_vm1, %v979_v27 }
0x104b   :  { %980 = vst.msk [vmem:[#allocation3] sm:$0xff] %vm17_vm0, %v978_v15 }
0x104d   :  { %v983_v19 = vld [vmem:[#allocation2 + $0x8] sm:$0xf] }
0x104e   :  { %985 = vst.msk [vmem:[%s1700_s4 + $0x8] sm:$0xf] %vm19_vm1, %v983_v19  ;;  %v982_v21 = vld [vmem:[#allocation2] sm:$0xff] }
0x104f   :  { %984 = vst.msk [vmem:[%s1700_s4] sm:$0xff] %vm17_vm0, %v982_v21 }

// kernel: seq2seq_forward.7
= control target key start
LH: loop header
LB: loop body
LE: loop exit
PB: predicated region body
PF: predicated region fallthrough
CT: control target
= control target key end

     0   :  { %v3141_v3 = vmov 0.0   ;;  %s3142_s18 = smov 32   ;;  %vm43_vm0 = vcmask 254976   ;;  %vm36_vm1 = vcmask 517120   ;;  %vm110_vm2 = vcmask 261120   ;;  %s3895_s0 = inlined_call_operand.vmem [shape: f32[6,2,32], index: 0, kind: input, shape index: {}]   ;;  %s3896_s3 = inlined_call_operand.vmem [shape: f32[6,2,128], index: 3, kind: input, shape index: {}]   ;;  %s3897_s4 = inlined_call_operand.vmem [shape: f32[64,192], index: 4, kind: input, shape index: {}]   ;;  %s3898_s2 = inlined_call_operand.vmem [shape: f32[128,32], index: 2, kind: input, shape index: {}]   ;;  %s3899_s5 = inlined_call_operand.vmem [shape: f32[64,192], index: 5, kind: input, shape index: {}]   ;;  %s3900_s1 = inlined_call_operand.vmem [shape: f32[2,64], index: 1, kind: input, shape index: {}]   ;;  %s3901_s6 = inlined_call_operand.vmem [shape: f32[1,192], index: 6, kind: input, shape index: {}]   ;;  %s3902_s7 = inlined_call_operand.vmem [shape: f32[1,192], index: 7, kind: input, shape index: {}]   ;;  %s3903_s8 = inlined_call_operand.vmem [shape: f32[64,128], index: 8, kind: input, shape index: {}]   ;;  %s3904_s9 = inlined_call_operand.vmem [shape: f32[1,128], index: 9, kind: input, shape index: {}]   ;;  %s3905_s10 = inlined_call_operand.vmem [shape: f32[6,2,128], index: 10, kind: output, shape index: {}]  }
   0x1   :  { %v105_v0 = vld [vmem:[%s3895_s0] sm:$0x3]  ;;  %v46_v1 = vld [vmem:[%s3897_s4 + $0x8] sm:$0xff]  ;;  %v48_v2 = vld [vmem:[%s3897_s4 + $0x18] sm:$0xff]  ;;  %192 = vmatprep.mubr.f32.mxu1 %v3141_v3  ;;  %vm124_vm3 = vcmask 523264   ;;  %v114_v57 = vlaneseq  ;;  %vm3145_vm4 = vmmov 0  }
   0x2   :  { %107 = vrot.lane.b32.xlu0 %v105_v0, %s3142_s18  ;;  %v3213_v4 = vpack.c.bf16 %v48_v2, %v46_v1  ;;  %v45_v5 = vld [vmem:[%s3897_s4] sm:$0xff]  ;;  %v47_v6 = vld [vmem:[%s3897_s4 + $0x10] sm:$0xff]  ;;  %v50_v7 = vld [vmem:[%s3897_s4 + $0x28] sm:$0xff]  ;;  %2382 = vmatprep.mubr.msk.f32.mxu0 %vm3145_vm4, %v3141_v3  ;;  %vm388_vm5 = vcmask 1041408  }
   0x3   :  { %v3224_v8 = vpack.c.bf16 %v47_v6, %v45_v5  ;;  %v52_v9 = vld [vmem:[%s3897_s4 + $0x38] sm:$0xff]  ;;  %v49_v10 = vld [vmem:[%s3897_s4 + $0x20] sm:$0xff]  ;;  %v51_v11 = vld [vmem:[%s3897_s4 + $0x30] sm:$0xff]  ;;  %v115_v59 = vshrl.u32 %v114_v57, 7 }
   0x4   :  { %2691 = vmatprep.subr.bf16.mxu1 %v3213_v4  ;;  %v3236_v12 = vpack.c.bf16 %v52_v9, %v50_v7  ;;  %v54_v13 = vld [vmem:[%s3897_s4 + $0x48] sm:$0xff]  ;;  %v56_v14 = vld [vmem:[%s3897_s4 + $0x58] sm:$0xff]  ;;  %v3245_v15 = vpack.c.bf16 %v51_v11, %v49_v10  ;;  %v53_v17 = vld [vmem:[%s3897_s4 + $0x40] sm:$0xff] }
   0x5   :  { %2693 = vmatpush1.bf16.msra.mxu1 %v3224_v8  ;;  %v3248_v16 = vpack.c.bf16 %v56_v14, %v54_v13  ;;  %v55_v18 = vld [vmem:[%s3897_s4 + $0x50] sm:$0xff]  ;;  %v2168_v19 = vld [vmem:[%s3898_s2] ss:$0 sm:$0xff]  ;;  %v58_v20 = vld [vmem:[%s3897_s4 + $0x68] sm:$0xff]  ;;  %v116_v60 = vsub.s32 0, %v115_v59  ;;  %v120_v14 = vsub.s32 1, %v115_v59 }
   0x6   :  { %2695 = vmatprep.subr.bf16.mxu1 %v3236_v12  ;;  %v60_v21 = vld [vmem:[%s3897_s4 + $0x78] sm:$0xff]  ;;  %44 = vst.msk [vmem:[#allocation3] sm:$0x3] %vm43_vm0, %v2168_v19  ;;  %v3267_v22 = vpack.c.bf16 %v55_v18, %v53_v17  ;;  %v57_v24 = vld [vmem:[%s3897_s4 + $0x60] sm:$0xff]  ;;  %v59_v25 = vld [vmem:[%s3897_s4 + $0x70] sm:$0xff]  ;;  %s3143_s4 = smov 64  }
   0x7   :  { %v3270_v23 = vpack.c.bf16 %v60_v21, %v58_v20  ;;  %v62_v26 = vld [vmem:[%s3899_s5 + $0x8] sm:$0xff]  ;;  %v64_v27 = vld [vmem:[%s3899_s5 + $0x18] sm:$0xff]  ;;  %v35_v28 = vld [vmem:[%s3900_s1] sm:$0x3]  ;;  %v3288_v29 = vpack.c.bf16 %v59_v25, %v57_v24 }
   0x8   :  { %37 = vst.msk [vmem:[#allocation2] sm:$0x3] %vm36_vm1, %v35_v28  ;;  %v3292_v30 = vpack.c.bf16 %v64_v27, %v62_v26  ;;  %v61_v32 = vld [vmem:[%s3899_s5] sm:$0xff]  ;;  %v63_v33 = vld [vmem:[%s3899_s5 + $0x10] sm:$0xff]  ;;  %v66_v34 = vld [vmem:[%s3899_s5 + $0x28] sm:$0xff]  ;;  %v3144_v26 = vmov 0.0|0.0  }
   0x9   :  { %2697 = vmatpush1.bf16.msra.mxu1 %v3245_v15  ;;  %v68_v35 = vld [vmem:[%s3899_s5 + $0x38] sm:$0xff]  ;;  %v3309_v37 = vpack.c.bf16 %v63_v33, %v61_v32  ;;  %v65_v40 = vld [vmem:[%s3899_s5 + $0x20] sm:$0xff]  ;;  %v67_v41 = vld [vmem:[%s3899_s5 + $0x30] sm:$0xff]  ;;  %2722 = vmatprep.subr.bf16.mxu0 %v3144_v26 }
   0xa   :  { %2699 = vmatprep.subr.bf16.mxu1 %v3248_v16  ;;  %v3311_v39 = vpack.c.bf16 %v68_v35, %v66_v34  ;;  %v70_v43 = vld [vmem:[%s3899_s5 + $0x48] sm:$0xff]  ;;  %v72_v44 = vld [vmem:[%s3899_s5 + $0x58] sm:$0xff]  ;;  %v3328_v45 = vpack.c.bf16 %v67_v41, %v65_v40  ;;  %v69_v47 = vld [vmem:[%s3899_s5 + $0x40] sm:$0xff] }
   0xb   :  { %v3332_v46 = vpack.c.bf16 %v72_v44, %v70_v43  ;;  %v71_v48 = vld [vmem:[%s3899_s5 + $0x50] sm:$0xff]  ;;  %v74_v49 = vld [vmem:[%s3899_s5 + $0x68] sm:$0xff]  ;;  %v76_v50 = vld [vmem:[%s3899_s5 + $0x78] sm:$0xff] }
   0xc   :  { %v3347_v51 = vpack.c.bf16 %v71_v48, %v69_v47  ;;  %v3350_v52 = vpack.c.bf16 %v76_v50, %v74_v49  ;;  %v73_v53 = vld [vmem:[%s3899_s5 + $0x60] sm:$0xff]  ;;  %v75_v54 = vld [vmem:[%s3899_s5 + $0x70] sm:$0xff]  ;;  %v80_v28 = vld [vmem:[%s3903_s8 + $0x8] sm:$0xff] }
   0xd   :  { %2701 = vmatpush1.bf16.msra.mxu1 %v3267_v22  ;;  %v104_v36 = vld [vmem:[#allocation3] sm:$0x3]  ;;  %v3359_v55 = vpack.c.bf16 %v75_v54, %v73_v53  ;;  %v77_v61 = vld [vmem:[%s3901_s6] sm:$0x3]  ;;  %v82_v33 = vld [vmem:[%s3903_s8 + $0x18] sm:$0xff] }
   0xe   :  { %2703 = vmatprep.subr.bf16.mxu1 %v3270_v23  ;;  %v78_v62 = vld [vmem:[%s3902_s7] sm:$0x3]  ;;  %v3371_v63 = vrot.slane %v77_v61, %v116_v60  ;;  %v3379_v18 = vrot.slane %v77_v61, %v120_v14  ;;  %v85_v41 = vld [vmem:[%s3903_s8 + $0x30] sm:$0xff] }
   0xf   :  { %v112_v31 = vld [vmem:[#allocation2] sm:$0x3]  ;;  %v3373_v0 = vrot.slane %v78_v62, %v116_v60  ;;  %v3377_v17 = vrot.slane %v78_v62, %v120_v14  ;;  %v2175_v62 = vld [vmem:[%s3895_s0 + $0x2] sm:$0x3] }
  0x10   :  { %299 = vrot.lane.b32.xlu1 %v112_v31, %s3143_s4  ;;  %v79_v27 = vld [vmem:[%s3903_s8] sm:$0xff] }
  0x11   :  { %2705 = vmatpush1.bf16.msra.mxu1 %v3288_v29  ;;  %v3395_v32 = vpack.c.bf16 %v80_v28, %v79_v27  ;;  %v83_v35 = vld [vmem:[%s3903_s8 + $0x20] sm:$0xff]  ;;  %v98_v28 = vld [vmem:[%s3898_s2 + $0x50] sm:$0xff] }
  0x12   :  { %2707 = vmatprep.subr.bf16.mxu1 %v3292_v30 }
  0x13   :  { %2724 = vmatpush3.bf16.msra.mxu0 %v3395_v32 }
  0x14   :  { %2725 = vmatprep.subr.bf16.mxu0 %v3144_v26 }
  0x74   :  { %v108_v38 = vpop.permute.xlu0 %107 }
  0x75   :  { %v111_v42 = vsel %vm110_vm2, %v104_v36, %v108_v38  ;;  %v84_v36 = vld [vmem:[%s3903_s8 + $0x28] sm:$0xff] }
  0x76   :  { %2169 = vmatmul.mubr.msk.f32.vlgmr.msra.gmra.mrb[0].mxu1 %vm124_vm3, %v111_v42  ;;  %v3414_v40 = vpack.c.bf16 %v84_v36, %v83_v35  ;;  %v86_v42 = vld [vmem:[%s3903_s8 + $0x38] sm:$0xff]  ;;  %v100_v35 = vld [vmem:[%s3898_s2 + $0x60] sm:$0xff]  ;;  %v101_v36 = vld [vmem:[%s3898_s2 + $0x68] sm:$0xff] }
  0x77   :  { %2709 = vmatpush1.bf16.msra.mxu1 %v3309_v37  ;;  %277 = vmatprep.mubr.f32.mxu1 %v3141_v3  ;;  %v3425_v43 = vpack.c.bf16 %v86_v42, %v85_v41  ;;  %v102_v41 = vld [vmem:[%s3898_s2 + $0x70] sm:$0xff]  ;;  %v103_v42 = vld [vmem:[%s3898_s2 + $0x78] sm:$0xff] }
  0x78   :  { %2711 = vmatprep.subr.bf16.mxu1 %v3311_v39 }
  0x7b   :  { %2713 = vmatpush1.bf16.msra.mxu1 %v3328_v45 }
  0x7c   :  { %2715 = vmatprep.subr.bf16.mxu1 %v3332_v46 }
  0x7f   :  { %2717 = vmatpush1.bf16.msra.mxu1 %v3347_v51 }
  0x80   :  { %2719 = vmatprep.subr.bf16.mxu1 %v3350_v52 }
  0x82   :  { %v300_v44 = vpop.permute.xlu1 %299 }
  0x83   :  { %2721 = vmatpush1.bf16.msra.mxu1 %v3359_v55 }
  0x84   :  { %2734 = vmatprep.subr.bf16.mxu1 %v3144_v26 }
  0x86   :  { %2170 = vmatmul.mubr.msk.f32.vlgmr.msra.gmra.mrb[2].mxu1 %vm124_vm3, %v112_v31  ;;  %v81_v31 = vld [vmem:[%s3903_s8 + $0x10] sm:$0xff] }
  0x87   :  { %2417 = vmatprep.mubr.msk.f32.mxu1 %vm3145_vm4, %v3141_v3  ;;  %v3404_v34 = vpack.c.bf16 %v82_v33, %v81_v31  ;;  %v99_v31 = vld [vmem:[%s3898_s2 + $0x58] sm:$0xff] }
  0x88   :  { %v3515_v33 = vpack.c.bf16 %v99_v31, %v98_v28 }
  0x89   :  { %2727 = vmatpush3.bf16.msra.mxu0 %v3404_v34 }
  0x8a   :  { %2728 = vmatprep.subr.bf16.mxu0 %v3144_v26 }
  0x8d   :  { %2730 = vmatpush3.bf16.msra.mxu0 %v3414_v40 }
  0x8e   :  { %2731 = vmatprep.subr.bf16.mxu0 %v3144_v26 }
  0x91   :  { %2733 = vmatpush3.bf16.msra.mxu0 %v3425_v43 }
  0x92   :  { %2759 = vmatprep.subr.bf16.mxu0 %v3213_v4 }
 0x149   :  { %v194_v56 = vpop.f32.mrb[0].mxu1 }
 0x14a   :  { %v196_v58 = vpop.f32.mrb[1].mxu1  ;;  %v195_v2 = vadd.f32 %v194_v56, %v3371_v63  ;;  %v3445_v56 = vld [vmem:[%s3904_s9] ss:$0 sm:$0xff] }
 0x14b   :  { %v197_v21 = vadd.f32 %v196_v58, %v3379_v18 }
 0x159   :  { %v279_v1 = vpop.f32.mrb[2].mxu1 }
 0x15a   :  { %v280_v5 = vadd.f32 %v279_v1, %v3373_v0  ;;  %v281_v6 = vpop.f32.mrb[3].mxu1  ;;  %v88_v1 = vld [vmem:[%s3898_s2] sm:$0xff] }
 0x15b   :  { %v282_v19 = vadd.f32 %v281_v6, %v3377_v17 }
 0x15c   :  { %v284_v7 = vadd.f32 %v280_v5, %v195_v2  ;;  %v89_v2 = vld [vmem:[%s3898_s2 + $0x8] sm:$0xff]  ;;  %v90_v5 = vld [vmem:[%s3898_s2 + $0x10] sm:$0xff] }
 0x15d   :  { %v3465_v6 = vpack.c.bf16 %v89_v2, %v88_v1 }
 0x15e   :  { %v285_v9 = vsub.f32 0.0, %v284_v7  ;;  %v91_v7 = vld [vmem:[%s3898_s2 + $0x18] sm:$0xff] }
 0x15f   :  { %2736 = vmatpush3.bf16.msra.mxu1 %v3465_v6 }
 0x160   :  { %v286_v10 = vmul.f32 1.442695, %v285_v9  ;;  %v3471_v9 = vpack.c.bf16 %v91_v7, %v90_v5  ;;  %2737 = vmatprep.subr.bf16.mxu1 %v3144_v26 }
 0x162   :  { %3104 = vpow2.f32 %v286_v10 }
 0x163   :  { %2739 = vmatpush3.bf16.msra.mxu1 %v3471_v9 }
 0x164   :  { %2740 = vmatprep.subr.bf16.mxu1 %v3144_v26 }
 0x16c   :  { %v3105_v11 = vpop.eup %3104 }
 0x16d   :  { %v288_v13 = vadd.f32 1.0, %v3105_v11  ;;  %v92_v11 = vld [vmem:[%s3898_s2 + $0x20] sm:$0xff] }
 0x16f   :  { %3106 = vrcp.f32 %v288_v13  ;;  %v93_v13 = vld [vmem:[%s3898_s2 + $0x28] sm:$0xff] }
 0x170   :  { %v3485_v14 = vpack.c.bf16 %v93_v13, %v92_v11 }
 0x172   :  { %2742 = vmatpush3.bf16.msra.mxu1 %v3485_v14 }
 0x173   :  { %2743 = vmatprep.subr.bf16.mxu1 %v3144_v26 }
 0x179   :  { %v3107_v20 = vpop.eup %3106 }
 0x17a   :  { %v290_v24 = vmul.f32 %v3107_v20, %v282_v19  ;;  %v293_v47 = vsub.f32 1.0, %v3107_v20  ;;  %v302_v49 = vmul.f32 %v3107_v20, %v300_v44  ;;  %v94_v19 = vld [vmem:[%s3898_s2 + $0x30] sm:$0xff]  ;;  %v95_v20 = vld [vmem:[%s3898_s2 + $0x38] sm:$0xff]  ;;  %v3535_v44 = vpack.c.bf16 %v103_v42, %v102_v41 }
 0x17c   :  { %v291_v25 = vadd.f32 %v290_v24, %v197_v21  ;;  %v3495_v21 = vpack.c.bf16 %v95_v20, %v94_v19  ;;  %v96_v24 = vld [vmem:[%s3898_s2 + $0x40] sm:$0xff] }
 0x17e   :  { %3108 = vtanh.f32 %v291_v25  ;;  %v97_v25 = vld [vmem:[%s3898_s2 + $0x48] sm:$0xff]  ;;  %2745 = vmatpush3.bf16.msra.mxu1 %v3495_v21 }
 0x17f   :  { %v3505_v27 = vpack.c.bf16 %v97_v25, %v96_v24  ;;  %2746 = vmatprep.subr.bf16.mxu1 %v3144_v26 }
 0x182   :  { %2748 = vmatpush3.bf16.msra.mxu1 %v3505_v27 }
 0x183   :  { %2749 = vmatprep.subr.bf16.mxu1 %v3144_v26 }
 0x186   :  { %2751 = vmatpush3.bf16.msra.mxu1 %v3515_v33 }
 0x187   :  { %2752 = vmatprep.subr.bf16.mxu1 %v3144_v26 }
 0x188   :  { %v3109_v38 = vpop.eup %3108 }
 0x189   :  { %295 = vrot.lane.b32.xlu0 %v3109_v38, %s3143_s4  ;;  %v3525_v38 = vpack.c.bf16 %v101_v36, %v100_v35 }
 0x18b   :  { %2754 = vmatpush3.bf16.msra.mxu1 %v3525_v38 }
 0x18c   :  { %2755 = vmatprep.subr.bf16.mxu1 %v3144_v26 }
 0x18f   :  { %2757 = vmatpush3.bf16.msra.mxu1 %v3535_v44 }
 0x190   :  { %2790 = vmatprep.subr.bf16.mxu1 %v3144_v26 }
 0x1fb   :  { %v296_v48 = vpop.permute.xlu0 %295 }
 0x1fc   :  { %v298_v50 = vmul.f32 %v296_v48, %v293_v47  ;;  %v393_v47 = vand.u32 127, %v114_v57 }
 0x1fe   :  { %v303_v53 = vadd.f32 %v302_v49, %v298_v50  ;;  %v3541_v48 = vcvt.s32.f32 %v393_v47 }
 0x200   :  { %311 = vrot.lane.b32.xlu1 %v303_v53, %s3143_s4 }
 0x272   :  { %v312_v54 = vpop.permute.xlu1 %311 }
 0x273   :  { %387 = vst.msk [vmem:[#allocation2] sm:$0x3] %vm36_vm1, %v312_v54  ;;  %2383 = vmatmul.mubr.msk.f32.vlgmr.msra.gmra.mrb[0].mxu0 %vm124_vm3, %v312_v54 }
 0x274   :  { %2761 = vmatpush1.bf16.msra.mxu0 %v3224_v8  ;;  %550 = vmatprep.mubr.f32.mxu0 %v3141_v3 }
 0x275   :  { %2763 = vmatprep.subr.bf16.mxu0 %v3236_v12 }
 0x278   :  { %2765 = vmatpush1.bf16.msra.mxu0 %v3245_v15 }
 0x279   :  { %2767 = vmatprep.subr.bf16.mxu0 %v3248_v16 }
 0x27a   :  { %v3473_v10 = vld [vmem:[#allocation2] sm:$0x3] }
 0x27c   :  { %2769 = vmatpush1.bf16.msra.mxu0 %v3267_v22 }
 0x27d   :  { %2771 = vmatprep.subr.bf16.mxu0 %v3270_v23 }
 0x280   :  { %2773 = vmatpush1.bf16.msra.mxu0 %v3288_v29 }
 0x281   :  { %2775 = vmatprep.subr.bf16.mxu0 %v3292_v30 }
 0x346   :  { %v381_v58 = vpop.f32.mrb[0].mxu0 }
 0x347   :  { %v382_v59 = vadd.f32 %v3445_v56, %v381_v58  ;;  %v2384_v60 = vpop.f32.mrb[1].mxu0  ;;  %v3146_v58 = vmov 1.0  }
 0x349   :  { %385 = vst [vmem:[%s3905_s10] sm:$0x3] %v382_v59  ;;  %v389_v61 = vsel %vm388_vm5, %v382_v59, -inf }
 0x34a   :  { %390 = vmax.xlane.f32.xlu0 %v389_v61 }
 0x360   :  { %478 = vrot.lane.b32.xlu0 %v2175_v62, %s3142_s18 }
 0x364   :  { %646 = vrot.lane.b32.xlu0 %v3473_v10, %s3143_s4 }
 0x3d7   :  { %v391_v49 = vpop.xlane.xlu0 %390 }
 0x3d8   :  { %vm395_vm6 = vcmp.eq.f32.partialorder %v382_v59, %v391_v49 }
 0x3d9   :  { %v396_v50 = vsel %vm395_vm6, %v3541_v48, 128.0 }
 0x3da   :  { %v397_v53 = vsel %vm388_vm5, %v396_v50, inf }
 0x3db   :  { %398 = vmin.xlane.f32.xlu1 %v397_v53  ;;  %v479_v60 = vpop.permute.xlu0 %478 }
 0x3df   :  { %v647_v49 = vpop.permute.xlu0 %646 }
 0x468   :  { %v399_v54 = vpop.xlane.xlu1 %398 }
 0x469   :  { %vm400_vm7 = vcmp.eq.f32.partialorder %v3541_v48, %v399_v54 }
 0x46a   :  { %2418 = vmatmul.mubr.msk.f32.vlgmr.msra.gmra.mrb[4].mxu1 %vm400_vm7, %v3146_v58 }
 0x46b   :  { %2792 = vmatpush3.bf16.msra.mxu1 %v3395_v32  ;;  %2436 = vmatprep.mubr.msk.f32.mxu1 %vm3145_vm4, %v3141_v3 }
 0x46c   :  { %2793 = vmatprep.subr.bf16.mxu1 %v3144_v26 }
 0x46f   :  { %2795 = vmatpush3.bf16.msra.mxu1 %v3404_v34 }
 0x470   :  { %2796 = vmatprep.subr.bf16.mxu1 %v3144_v26 }
 0x473   :  { %2798 = vmatpush3.bf16.msra.mxu1 %v3414_v40 }
 0x474   :  { %2799 = vmatprep.subr.bf16.mxu1 %v3144_v26 }
 0x477   :  { %2801 = vmatpush3.bf16.msra.mxu1 %v3425_v43 }
 0x478   :  { %2827 = vmatprep.subr.bf16.mxu1 %v3213_v4 }
 0x53d   :  { %v469_v57 = vpop.f32.mrb[4].mxu1 }
 0x53e   :  { %473 = vst.msk [vmem:[#allocation3] sm:$0x3] %vm43_vm0, %v469_v57  ;;  %v2419_v59 = vpop.f32.mrb[5].mxu1 }
 0x545   :  { %v474_v61 = vld [vmem:[#allocation3] sm:$0x3] }
 0x546   :  { %v481_v62 = vsel %vm110_vm2, %v474_v61, %v479_v60 }
 0x547   :  { %2176 = vmatmul.mubr.msk.f32.vlgmr.msra.gmra.mrb[2].mxu0 %vm124_vm3, %v481_v62 }
 0x548   :  { %2777 = vmatpush1.bf16.msra.mxu0 %v3309_v37  ;;  %624 = vmatprep.mubr.f32.mxu0 %v3141_v3 }
 0x549   :  { %2779 = vmatprep.subr.bf16.mxu0 %v3311_v39 }
 0x54c   :  { %2781 = vmatpush1.bf16.msra.mxu0 %v3328_v45 }
 0x54d   :  { %2783 = vmatprep.subr.bf16.mxu0 %v3332_v46 }
 0x550   :  { %2785 = vmatpush1.bf16.msra.mxu0 %v3347_v51 }
 0x551   :  { %2787 = vmatprep.subr.bf16.mxu0 %v3350_v52 }
 0x554   :  { %2789 = vmatpush1.bf16.msra.mxu0 %v3359_v55 }
 0x555   :  { %2802 = vmatprep.subr.bf16.mxu0 %v3144_v26 }
 0x557   :  { %2177 = vmatmul.mubr.msk.f32.vlgmr.msra.gmra.mrb[4].mxu0 %vm124_vm3, %v3473_v10 }
 0x558   :  { %2804 = vmatpush3.bf16.msra.mxu0 %v3465_v6  ;;  %2471 = vmatprep.mubr.msk.f32.mxu0 %vm3145_vm4, %v3141_v3 }
 0x559   :  { %2805 = vmatprep.subr.bf16.mxu0 %v3144_v26 }
 0x55c   :  { %2807 = vmatpush3.bf16.msra.mxu0 %v3471_v9 }
 0x55d   :  { %2808 = vmatprep.subr.bf16.mxu0 %v3144_v26 }
 0x560   :  { %2810 = vmatpush3.bf16.msra.mxu0 %v3485_v14 }
 0x561   :  { %2811 = vmatprep.subr.bf16.mxu0 %v3144_v26 }
 0x564   :  { %2813 = vmatpush3.bf16.msra.mxu0 %v3495_v21 }
 0x565   :  { %2814 = vmatprep.subr.bf16.mxu0 %v3144_v26 }
 0x568   :  { %2816 = vmatpush3.bf16.msra.mxu0 %v3505_v27 }
 0x569   :  { %2817 = vmatprep.subr.bf16.mxu0 %v3144_v26 }
 0x56c   :  { %2819 = vmatpush3.bf16.msra.mxu0 %v3515_v33 }
 0x56d   :  { %2820 = vmatprep.subr.bf16.mxu0 %v3144_v26 }
 0x570   :  { %2822 = vmatpush3.bf16.msra.mxu0 %v3525_v38 }
 0x571   :  { %2823 = vmatprep.subr.bf16.mxu0 %v3144_v26 }
 0x574   :  { %2825 = vmatpush3.bf16.msra.mxu0 %v3535_v44 }
 0x575   :  { %2858 = vmatprep.subr.bf16.mxu0 %v3144_v26 }
 0x61a   :  { %v552_v1 = vpop.f32.mrb[2].mxu0 }
 0x61b   :  { %v554_v2 = vpop.f32.mrb[3].mxu0  ;;  %v553_v7 = vadd.f32 %v552_v1, %v3371_v63 }
 0x61c   :  { %v555_v35 = vadd.f32 %v554_v2, %v3379_v18  ;;  %v2182_v2 = vld [vmem:[%s3895_s0 + $0x4] sm:$0x3] }
 0x62a   :  { %v626_v5 = vpop.f32.mrb[4].mxu0 }
 0x62b   :  { %v627_v10 = vadd.f32 %v626_v5, %v3373_v0  ;;  %v628_v11 = vpop.f32.mrb[5].mxu0 }
 0x62c   :  { %v629_v28 = vadd.f32 %v628_v11, %v3377_v17 }
 0x62d   :  { %v631_v13 = vadd.f32 %v627_v10, %v553_v7 }
 0x62f   :  { %v632_v19 = vsub.f32 0.0, %v631_v13 }
 0x631   :  { %v633_v20 = vmul.f32 1.442695, %v632_v19 }
 0x633   :  { %3110 = vpow2.f32 %v633_v20 }
 0x63d   :  { %v3111_v24 = vpop.eup %3110 }
 0x63e   :  { %v635_v25 = vadd.f32 1.0, %v3111_v24 }
 0x640   :  { %3112 = vrcp.f32 %v635_v25 }
 0x64a   :  { %v3113_v31 = vpop.eup %3112 }
 0x64b   :  { %v637_v36 = vmul.f32 %v3113_v31, %v629_v28  ;;  %v640_v47 = vsub.f32 1.0, %v3113_v31  ;;  %v649_v53 = vmul.f32 %v3113_v31, %v647_v49 }
 0x64d   :  { %v638_v41 = vadd.f32 %v637_v36, %v555_v35 }
 0x64f   :  { %3114 = vtanh.f32 %v638_v41 }
 0x659   :  { %v3115_v42 = vpop.eup %3114 }
 0x65a   :  { %642 = vrot.lane.b32.xlu1 %v3115_v42, %s3143_s4 }
 0x6cc   :  { %v643_v50 = vpop.permute.xlu1 %642 }
 0x6cd   :  { %v645_v54 = vmul.f32 %v643_v50, %v640_v47 }
 0x6cf   :  { %v650_v57 = vadd.f32 %v649_v53, %v645_v54 }
 0x6d1   :  { %652 = vrot.lane.b32.xlu1 %v650_v57, %s3143_s4 }
 0x743   :  { %v653_v59 = vpop.permute.xlu1 %652 }
 0x744   :  { %729 = vst.msk [vmem:[#allocation2] sm:$0x3] %vm36_vm1, %v653_v59  ;;  %2437 = vmatmul.mubr.msk.f32.vlgmr.msra.gmra.mrb[6].mxu1 %vm124_vm3, %v653_v59 }
 0x745   :  { %2829 = vmatpush1.bf16.msra.mxu1 %v3224_v8  ;;  %888 = vmatprep.mubr.f32.mxu1 %v3141_v3 }
 0x746   :  { %2831 = vmatprep.subr.bf16.mxu1 %v3236_v12 }
 0x749   :  { %2833 = vmatpush1.bf16.msra.mxu1 %v3245_v15 }
 0x74a   :  { %2835 = vmatprep.subr.bf16.mxu1 %v3248_v16 }
 0x74b   :  { %v820_v5 = vld [vmem:[#allocation2] sm:$0x3] }
 0x74d   :  { %2837 = vmatpush1.bf16.msra.mxu1 %v3267_v22 }
 0x74e   :  { %2839 = vmatprep.subr.bf16.mxu1 %v3270_v23 }
 0x751   :  { %2841 = vmatpush1.bf16.msra.mxu1 %v3288_v29 }
 0x752   :  { %2843 = vmatprep.subr.bf16.mxu1 %v3292_v30 }
 0x817   :  { %v722_v60 = vpop.f32.mrb[6].mxu1 }
 0x818   :  { %v723_v61 = vadd.f32 %v3445_v56, %v722_v60  ;;  %v2438_v62 = vpop.f32.mrb[7].mxu1 }
 0x81a   :  { %2179 = vst [vmem:[%s3905_s10 + $0x2] sm:$0x3] %v723_v61  ;;  %v730_v1 = vsel %vm388_vm5, %v723_v61, -inf }
 0x81b   :  { %731 = vmax.xlane.f32.xlu0 %v730_v1 }
 0x831   :  { %816 = vrot.lane.b32.xlu0 %v2182_v2, %s3142_s18 }
 0x835   :  { %984 = vrot.lane.b32.xlu0 %v820_v5, %s3143_s4 }
 0x8a8   :  { %v732_v7 = vpop.xlane.xlu0 %731 }
 0x8a9   :  { %vm733_vm8 = vcmp.eq.f32.partialorder %v723_v61, %v732_v7 }
 0x8aa   :  { %v734_v10 = vsel %vm733_vm8, %v3541_v48, 128.0 }
 0x8ab   :  { %v735_v11 = vsel %vm388_vm5, %v734_v10, inf }
 0x8ac   :  { %736 = vmin.xlane.f32.xlu1 %v735_v11  ;;  %v817_v24 = vpop.permute.xlu0 %816 }
 0x8b0   :  { %v985_v7 = vpop.permute.xlu0 %984 }
 0x939   :  { %v737_v13 = vpop.xlane.xlu1 %736 }
 0x93a   :  { %vm738_vm9 = vcmp.eq.f32.partialorder %v3541_v48, %v737_v13 }
 0x93b   :  { %2472 = vmatmul.mubr.msk.f32.vlgmr.msra.gmra.mrb[6].mxu0 %vm738_vm9, %v3146_v58 }
 0x93c   :  { %2860 = vmatpush3.bf16.msra.mxu0 %v3395_v32  ;;  %2490 = vmatprep.mubr.msk.f32.mxu0 %vm3145_vm4, %v3141_v3 }
 0x93d   :  { %2861 = vmatprep.subr.bf16.mxu0 %v3144_v26 }
 0x940   :  { %2863 = vmatpush3.bf16.msra.mxu0 %v3404_v34 }
 0x941   :  { %2864 = vmatprep.subr.bf16.mxu0 %v3144_v26 }
 0x944   :  { %2866 = vmatpush3.bf16.msra.mxu0 %v3414_v40 }
 0x945   :  { %2867 = vmatprep.subr.bf16.mxu0 %v3144_v26 }
 0x948   :  { %2869 = vmatpush3.bf16.msra.mxu0 %v3425_v43 }
 0x949   :  { %2895 = vmatprep.subr.bf16.mxu0 %v3213_v4 }
 0xa0e   :  { %v807_v19 = vpop.f32.mrb[6].mxu0 }
 0xa0f   :  { %811 = vst.msk [vmem:[#allocation3] sm:$0x3] %vm43_vm0, %v807_v19  ;;  %v2473_v20 = vpop.f32.mrb[7].mxu0 }
 0xa16   :  { %v812_v25 = vld [vmem:[#allocation3] sm:$0x3] }
 0xa17   :  { %v819_v28 = vsel %vm110_vm2, %v812_v25, %v817_v24 }
 0xa18   :  { %2183 = vmatmul.mubr.msk.f32.vlgmr.msra.gmra.mrb[8].mxu1 %vm124_vm3, %v819_v28 }
 0xa19   :  { %2845 = vmatpush1.bf16.msra.mxu1 %v3309_v37  ;;  %962 = vmatprep.mubr.f32.mxu1 %v3141_v3 }
 0xa1a   :  { %2847 = vmatprep.subr.bf16.mxu1 %v3311_v39 }
 0xa1d   :  { %2849 = vmatpush1.bf16.msra.mxu1 %v3328_v45 }
 0xa1e   :  { %2851 = vmatprep.subr.bf16.mxu1 %v3332_v46 }
 0xa21   :  { %2853 = vmatpush1.bf16.msra.mxu1 %v3347_v51 }
 0xa22   :  { %2855 = vmatprep.subr.bf16.mxu1 %v3350_v52 }
 0xa25   :  { %2857 = vmatpush1.bf16.msra.mxu1 %v3359_v55 }
 0xa26   :  { %2870 = vmatprep.subr.bf16.mxu1 %v3144_v26 }
 0xa28   :  { %2184 = vmatmul.mubr.msk.f32.vlgmr.msra.gmra.mrb[10].mxu1 %vm124_vm3, %v820_v5 }
 0xa29   :  { %2872 = vmatpush3.bf16.msra.mxu1 %v3465_v6  ;;  %2525 = vmatprep.mubr.msk.f32.mxu1 %vm3145_vm4, %v3141_v3 }
 0xa2a   :  { %2873 = vmatprep.subr.bf16.mxu1 %v3144_v26 }
 0xa2d   :  { %2875 = vmatpush3.bf16.msra.mxu1 %v3471_v9 }
 0xa2e   :  { %2876 = vmatprep.subr.bf16.mxu1 %v3144_v26 }
 0xa31   :  { %2878 = vmatpush3.bf16.msra.mxu1 %v3485_v14 }
 0xa32   :  { %2879 = vmatprep.subr.bf16.mxu1 %v3144_v26 }
 0xa35   :  { %2881 = vmatpush3.bf16.msra.mxu1 %v3495_v21 }
 0xa36   :  { %2882 = vmatprep.subr.bf16.mxu1 %v3144_v26 }
 0xa39   :  { %2884 = vmatpush3.bf16.msra.mxu1 %v3505_v27 }
 0xa3a   :  { %2885 = vmatprep.subr.bf16.mxu1 %v3144_v26 }
 0xa3d   :  { %2887 = vmatpush3.bf16.msra.mxu1 %v3515_v33 }
 0xa3e   :  { %2888 = vmatprep.subr.bf16.mxu1 %v3144_v26 }
 0xa41   :  { %2890 = vmatpush3.bf16.msra.mxu1 %v3525_v38 }
 0xa42   :  { %2891 = vmatprep.subr.bf16.mxu1 %v3144_v26 }
 0xa45   :  { %2893 = vmatpush3.bf16.msra.mxu1 %v3535_v44 }
 0xa46   :  { %2926 = vmatprep.subr.bf16.mxu1 %v3144_v26 }
 0xaeb   :  { %v890_v31 = vpop.f32.mrb[8].mxu1 }
 0xaec   :  { %v892_v35 = vpop.f32.mrb[9].mxu1  ;;  %v891_v41 = vadd.f32 %v890_v31, %v3371_v63 }
 0xaed   :  { %v893_v61 = vadd.f32 %v892_v35, %v3379_v18  ;;  %v2189_v35 = vld [vmem:[%s3895_s0 + $0x6] sm:$0x3] }
 0xafb   :  { %v964_v36 = vpop.f32.mrb[10].mxu1 }
 0xafc   :  { %v965_v42 = vadd.f32 %v964_v36, %v3373_v0  ;;  %v966_v47 = vpop.f32.mrb[11].mxu1 }
 0xafd   :  { %v967_v59 = vadd.f32 %v966_v47, %v3377_v17 }
 0xafe   :  { %v969_v49 = vadd.f32 %v965_v42, %v891_v41 }
 0xb00   :  { %v970_v50 = vsub.f32 0.0, %v969_v49 }
 0xb02   :  { %v971_v53 = vmul.f32 1.442695, %v970_v50 }
 0xb04   :  { %3116 = vpow2.f32 %v971_v53 }
 0xb0e   :  { %v3117_v54 = vpop.eup %3116 }
 0xb0f   :  { %v973_v57 = vadd.f32 1.0, %v3117_v54 }
 0xb11   :  { %3118 = vrcp.f32 %v973_v57 }
 0xb1b   :  { %v3119_v60 = vpop.eup %3118 }
 0xb1c   :  { %v975_v62 = vmul.f32 %v3119_v60, %v967_v59  ;;  %v978_v5 = vsub.f32 1.0, %v3119_v60  ;;  %v987_v11 = vmul.f32 %v3119_v60, %v985_v7 }
 0xb1e   :  { %v976_v1 = vadd.f32 %v975_v62, %v893_v61 }
 0xb20   :  { %3120 = vtanh.f32 %v976_v1 }
 0xb2a   :  { %v3121_v2 = vpop.eup %3120 }
 0xb2b   :  { %980 = vrot.lane.b32.xlu1 %v3121_v2, %s3143_s4 }
 0xb9d   :  { %v981_v10 = vpop.permute.xlu1 %980 }
 0xb9e   :  { %v983_v13 = vmul.f32 %v981_v10, %v978_v5 }
 0xba0   :  { %v988_v19 = vadd.f32 %v987_v11, %v983_v13 }
 0xba2   :  { %990 = vrot.lane.b32.xlu1 %v988_v19, %s3143_s4 }
 0xc14   :  { %v991_v20 = vpop.permute.xlu1 %990 }
 0xc15   :  { %1067 = vst.msk [vmem:[#allocation2] sm:$0x3] %vm36_vm1, %v991_v20  ;;  %2491 = vmatmul.mubr.msk.f32.vlgmr.msra.gmra.mrb[8].mxu0 %vm124_vm3, %v991_v20 }
 0xc16   :  { %2897 = vmatpush1.bf16.msra.mxu0 %v3224_v8  ;;  %1226 = vmatprep.mubr.f32.mxu0 %v3141_v3 }
 0xc17   :  { %2899 = vmatprep.subr.bf16.mxu0 %v3236_v12 }
 0xc1a   :  { %2901 = vmatpush1.bf16.msra.mxu0 %v3245_v15 }
 0xc1b   :  { %2903 = vmatprep.subr.bf16.mxu0 %v3248_v16 }
 0xc1c   :  { %v1158_v36 = vld [vmem:[#allocation2] sm:$0x3] }
 0xc1e   :  { %2905 = vmatpush1.bf16.msra.mxu0 %v3267_v22 }
 0xc1f   :  { %2907 = vmatprep.subr.bf16.mxu0 %v3270_v23 }
 0xc22   :  { %2909 = vmatpush1.bf16.msra.mxu0 %v3288_v29 }
 0xc23   :  { %2911 = vmatprep.subr.bf16.mxu0 %v3292_v30 }
 0xce8   :  { %v1060_v24 = vpop.f32.mrb[8].mxu0 }
 0xce9   :  { %v1061_v25 = vadd.f32 %v3445_v56, %v1060_v24  ;;  %v2492_v28 = vpop.f32.mrb[9].mxu0 }
 0xceb   :  { %2186 = vst [vmem:[%s3905_s10 + $0x4] sm:$0x3] %v1061_v25  ;;  %v1068_v31 = vsel %vm388_vm5, %v1061_v25, -inf }
 0xcec   :  { %1069 = vmax.xlane.f32.xlu0 %v1068_v31 }
 0xd02   :  { %1154 = vrot.lane.b32.xlu0 %v2189_v35, %s3142_s18 }
 0xd06   :  { %1322 = vrot.lane.b32.xlu0 %v1158_v36, %s3143_s4 }
 0xd79   :  { %v1070_v41 = vpop.xlane.xlu0 %1069 }
 0xd7a   :  { %vm1071_vm10 = vcmp.eq.f32.partialorder %v1061_v25, %v1070_v41 }
 0xd7b   :  { %v1072_v42 = vsel %vm1071_vm10, %v3541_v48, 128.0 }
 0xd7c   :  { %v1073_v47 = vsel %vm388_vm5, %v1072_v42, inf }
 0xd7d   :  { %1074 = vmin.xlane.f32.xlu1 %v1073_v47  ;;  %v1155_v54 = vpop.permute.xlu0 %1154 }
 0xd81   :  { %v1323_v41 = vpop.permute.xlu0 %1322 }
 0xe0a   :  { %v1075_v49 = vpop.xlane.xlu1 %1074 }
 0xe0b   :  { %vm1076_vm11 = vcmp.eq.f32.partialorder %v3541_v48, %v1075_v49 }
 0xe0c   :  { %2526 = vmatmul.mubr.msk.f32.vlgmr.msra.gmra.mrb[12].mxu1 %vm1076_vm11, %v3146_v58 }
 0xe0d   :  { %2928 = vmatpush3.bf16.msra.mxu1 %v3395_v32  ;;  %2544 = vmatprep.mubr.msk.f32.mxu1 %vm3145_vm4, %v3141_v3 }
 0xe0e   :  { %2929 = vmatprep.subr.bf16.mxu1 %v3144_v26 }
 0xe11   :  { %2931 = vmatpush3.bf16.msra.mxu1 %v3404_v34 }
 0xe12   :  { %2932 = vmatprep.subr.bf16.mxu1 %v3144_v26 }
 0xe15   :  { %2934 = vmatpush3.bf16.msra.mxu1 %v3414_v40 }
 0xe16   :  { %2935 = vmatprep.subr.bf16.mxu1 %v3144_v26 }
 0xe19   :  { %2937 = vmatpush3.bf16.msra.mxu1 %v3425_v43 }
 0xe1a   :  { %2963 = vmatprep.subr.bf16.mxu1 %v3213_v4 }
 0xedf   :  { %v1145_v50 = vpop.f32.mrb[12].mxu1 }
 0xee0   :  { %1149 = vst.msk [vmem:[#allocation3] sm:$0x3] %vm43_vm0, %v1145_v50  ;;  %v2527_v53 = vpop.f32.mrb[13].mxu1 }
 0xee7   :  { %v1150_v57 = vld [vmem:[#allocation3] sm:$0x3] }
 0xee8   :  { %v1157_v59 = vsel %vm110_vm2, %v1150_v57, %v1155_v54 }
 0xee9   :  { %2190 = vmatmul.mubr.msk.f32.vlgmr.msra.gmra.mrb[10].mxu0 %vm124_vm3, %v1157_v59 }
 0xeea   :  { %2913 = vmatpush1.bf16.msra.mxu0 %v3309_v37  ;;  %1300 = vmatprep.mubr.f32.mxu0 %v3141_v3 }
 0xeeb   :  { %2915 = vmatprep.subr.bf16.mxu0 %v3311_v39 }
 0xeee   :  { %2917 = vmatpush1.bf16.msra.mxu0 %v3328_v45 }
 0xeef   :  { %2919 = vmatprep.subr.bf16.mxu0 %v3332_v46 }
 0xef2   :  { %2921 = vmatpush1.bf16.msra.mxu0 %v3347_v51 }
 0xef3   :  { %2923 = vmatprep.subr.bf16.mxu0 %v3350_v52 }
 0xef6   :  { %2925 = vmatpush1.bf16.msra.mxu0 %v3359_v55 }
 0xef7   :  { %2938 = vmatprep.subr.bf16.mxu0 %v3144_v26 }
 0xef9   :  { %2191 = vmatmul.mubr.msk.f32.vlgmr.msra.gmra.mrb[12].mxu0 %vm124_vm3, %v1158_v36 }
 0xefa   :  { %2940 = vmatpush3.bf16.msra.mxu0 %v3465_v6  ;;  %2579 = vmatprep.mubr.msk.f32.mxu0 %vm3145_vm4, %v3141_v3 }
 0xefb   :  { %2941 = vmatprep.subr.bf16.mxu0 %v3144_v26 }
 0xefe   :  { %2943 = vmatpush3.bf16.msra.mxu0 %v3471_v9 }
 0xeff   :  { %2944 = vmatprep.subr.bf16.mxu0 %v3144_v26 }
 0xf02   :  { %2946 = vmatpush3.bf16.msra.mxu0 %v3485_v14 }
 0xf03   :  { %2947 = vmatprep.subr.bf16.mxu0 %v3144_v26 }
 0xf06   :  { %2949 = vmatpush3.bf16.msra.mxu0 %v3495_v21 }
 0xf07   :  { %2950 = vmatprep.subr.bf16.mxu0 %v3144_v26 }
 0xf0a   :  { %2952 = vmatpush3.bf16.msra.mxu0 %v3505_v27 }
 0xf0b   :  { %2953 = vmatprep.subr.bf16.mxu0 %v3144_v26 }
 0xf0e   :  { %2955 = vmatpush3.bf16.msra.mxu0 %v3515_v33 }
 0xf0f   :  { %2956 = vmatprep.subr.bf16.mxu0 %v3144_v26 }
 0xf12   :  { %2958 = vmatpush3.bf16.msra.mxu0 %v3525_v38 }
 0xf13   :  { %2959 = vmatprep.subr.bf16.mxu0 %v3144_v26 }
 0xf16   :  { %2961 = vmatpush3.bf16.msra.mxu0 %v3535_v44 }
 0xf17   :  { %2994 = vmatprep.subr.bf16.mxu0 %v3144_v26 }
 0xfbc   :  { %v1228_v60 = vpop.f32.mrb[10].mxu0 }
 0xfbd   :  { %v1230_v61 = vpop.f32.mrb[11].mxu0  ;;  %v1229_v1 = vadd.f32 %v1228_v60, %v3371_v63 }
 0xfbe   :  { %v1231_v25 = vadd.f32 %v1230_v61, %v3379_v18  ;;  %v2196_v61 = vld [vmem:[%s3895_s0 + $0x8] sm:$0x3] }
 0xfcc   :  { %v1302_v62 = vpop.f32.mrb[12].mxu0 }
 0xfcd   :  { %v1303_v2 = vadd.f32 %v1302_v62, %v3373_v0  ;;  %v1304_v5 = vpop.f32.mrb[13].mxu0 }
 0xfce   :  { %v1305_v20 = vadd.f32 %v1304_v5, %v3377_v17 }
 0xfcf   :  { %v1307_v7 = vadd.f32 %v1303_v2, %v1229_v1 }
 0xfd1   :  { %v1308_v10 = vsub.f32 0.0, %v1307_v7 }
 0xfd3   :  { %v1309_v11 = vmul.f32 1.442695, %v1308_v10 }
 0xfd5   :  { %3122 = vpow2.f32 %v1309_v11 }
 0xfdf   :  { %v3123_v13 = vpop.eup %3122 }
 0xfe0   :  { %v1311_v19 = vadd.f32 1.0, %v3123_v13 }
 0xfe2   :  { %3124 = vrcp.f32 %v1311_v19 }
 0xfec   :  { %v3125_v24 = vpop.eup %3124 }
 0xfed   :  { %v1313_v28 = vmul.f32 %v3125_v24, %v1305_v20  ;;  %v1316_v36 = vsub.f32 1.0, %v3125_v24  ;;  %v1325_v47 = vmul.f32 %v3125_v24, %v1323_v41 }
 0xfef   :  { %v1314_v31 = vadd.f32 %v1313_v28, %v1231_v25 }
 0xff1   :  { %3126 = vtanh.f32 %v1314_v31 }
 0xffb   :  { %v3127_v35 = vpop.eup %3126 }
 0xffc   :  { %1318 = vrot.lane.b32.xlu1 %v3127_v35, %s3143_s4 }
0x106e   :  { %v1319_v42 = vpop.permute.xlu1 %1318 }
0x106f   :  { %v1321_v49 = vmul.f32 %v1319_v42, %v1316_v36 }
0x1071   :  { %v1326_v50 = vadd.f32 %v1325_v47, %v1321_v49 }
0x1073   :  { %1328 = vrot.lane.b32.xlu1 %v1326_v50, %s3143_s4 }
0x10e5   :  { %v1329_v53 = vpop.permute.xlu1 %1328 }
0x10e6   :  { %1405 = vst.msk [vmem:[#allocation2] sm:$0x3] %vm36_vm1, %v1329_v53  ;;  %2545 = vmatmul.mubr.msk.f32.vlgmr.msra.gmra.mrb[14].mxu1 %vm124_vm3, %v1329_v53 }
0x10e7   :  { %2965 = vmatpush1.bf16.msra.mxu1 %v3224_v8  ;;  %1564 = vmatprep.mubr.f32.mxu1 %v3141_v3 }
0x10e8   :  { %2967 = vmatprep.subr.bf16.mxu1 %v3236_v12 }
0x10eb   :  { %2969 = vmatpush1.bf16.msra.mxu1 %v3245_v15 }
0x10ec   :  { %2971 = vmatprep.subr.bf16.mxu1 %v3248_v16 }
0x10ed   :  { %v1496_v62 = vld [vmem:[#allocation2] sm:$0x3] }
0x10ef   :  { %2973 = vmatpush1.bf16.msra.mxu1 %v3267_v22 }
0x10f0   :  { %2975 = vmatprep.subr.bf16.mxu1 %v3270_v23 }
0x10f3   :  { %2977 = vmatpush1.bf16.msra.mxu1 %v3288_v29 }
0x10f4   :  { %2979 = vmatprep.subr.bf16.mxu1 %v3292_v30 }
0x11b9   :  { %v1398_v54 = vpop.f32.mrb[14].mxu1 }
0x11ba   :  { %v1399_v57 = vadd.f32 %v3445_v56, %v1398_v54  ;;  %v2546_v59 = vpop.f32.mrb[15].mxu1 }
0x11bc   :  { %2193 = vst [vmem:[%s3905_s10 + $0x6] sm:$0x3] %v1399_v57  ;;  %v1406_v60 = vsel %vm388_vm5, %v1399_v57, -inf }
0x11bd   :  { %1407 = vmax.xlane.f32.xlu0 %v1406_v60 }
0x11d3   :  { %1492 = vrot.lane.b32.xlu0 %v2196_v61, %s3142_s18 }
0x11d7   :  { %1660 = vrot.lane.b32.xlu0 %v1496_v62, %s3143_s4 }
0x124a   :  { %v1408_v1 = vpop.xlane.xlu0 %1407 }
0x124b   :  { %vm1409_vm12 = vcmp.eq.f32.partialorder %v1399_v57, %v1408_v1 }
0x124c   :  { %v1410_v2 = vsel %vm1409_vm12, %v3541_v48, 128.0 }
0x124d   :  { %v1411_v5 = vsel %vm388_vm5, %v1410_v2, inf }
0x124e   :  { %1412 = vmin.xlane.f32.xlu1 %v1411_v5  ;;  %v1493_v13 = vpop.permute.xlu0 %1492 }
0x12db   :  { %v1413_v7 = vpop.xlane.xlu1 %1412 }
0x12dc   :  { %vm1414_vm13 = vcmp.eq.f32.partialorder %v3541_v48, %v1413_v7 }
0x12dd   :  { %2580 = vmatmul.mubr.msk.f32.vlgmr.msra.gmra.mrb[14].mxu0 %vm1414_vm13, %v3146_v58 }
0x12de   :  { %2996 = vmatpush3.bf16.msra.mxu0 %v3395_v32  ;;  %2598 = vmatprep.mubr.msk.f32.mxu0 %vm3145_vm4, %v3141_v3 }
0x12df   :  { %2997 = vmatprep.subr.bf16.mxu0 %v3144_v26 }
0x12e2   :  { %2999 = vmatpush3.bf16.msra.mxu0 %v3404_v34 }
0x12e3   :  { %3000 = vmatprep.subr.bf16.mxu0 %v3144_v26 }
0x12e6   :  { %3002 = vmatpush3.bf16.msra.mxu0 %v3414_v40 }
0x12e7   :  { %3003 = vmatprep.subr.bf16.mxu0 %v3144_v26 }
0x12ea   :  { %3005 = vmatpush3.bf16.msra.mxu0 %v3425_v43 }
0x12eb   :  { %3031 = vmatprep.subr.bf16.mxu0 %v3213_v4 }
0x13b0   :  { %v1483_v10 = vpop.f32.mrb[14].mxu0 }
0x13b1   :  { %1487 = vst.msk [vmem:[#allocation3] sm:$0x3] %vm43_vm0, %v1483_v10  ;;  %v2581_v11 = vpop.f32.mrb[15].mxu0 }
0x13b8   :  { %v1488_v19 = vld [vmem:[#allocation3] sm:$0x3] }
0x13b9   :  { %v1495_v20 = vsel %vm110_vm2, %v1488_v19, %v1493_v13 }
0x13ba   :  { %2197 = vmatmul.mubr.msk.f32.vlgmr.msra.gmra.mrb[16].mxu1 %vm124_vm3, %v1495_v20 }
0x13bb   :  { %2981 = vmatpush1.bf16.msra.mxu1 %v3309_v37  ;;  %1638 = vmatprep.mubr.f32.mxu1 %v3141_v3 }
0x13bc   :  { %2983 = vmatprep.subr.bf16.mxu1 %v3311_v39 }
0x13bf   :  { %2985 = vmatpush1.bf16.msra.mxu1 %v3328_v45 }
0x13c0   :  { %2987 = vmatprep.subr.bf16.mxu1 %v3332_v46 }
0x13c3   :  { %2989 = vmatpush1.bf16.msra.mxu1 %v3347_v51 }
0x13c4   :  { %2991 = vmatprep.subr.bf16.mxu1 %v3350_v52 }
0x13c7   :  { %2993 = vmatpush1.bf16.msra.mxu1 %v3359_v55 }
0x13c8   :  { %3006 = vmatprep.subr.bf16.mxu1 %v3144_v26 }
0x13ca   :  { %2198 = vmatmul.mubr.msk.f32.vlgmr.msra.gmra.mrb[18].mxu1 %vm124_vm3, %v1496_v62  ;;  %v1661_v62 = vpop.permute.xlu0 %1660 }
0x13cb   :  { %3008 = vmatpush3.bf16.msra.mxu1 %v3465_v6  ;;  %2633 = vmatprep.mubr.msk.f32.mxu1 %vm3145_vm4, %v3141_v3 }
0x13cc   :  { %3009 = vmatprep.subr.bf16.mxu1 %v3144_v26 }
0x13cf   :  { %3011 = vmatpush3.bf16.msra.mxu1 %v3471_v9 }
0x13d0   :  { %3012 = vmatprep.subr.bf16.mxu1 %v3144_v26 }
0x13d3   :  { %3014 = vmatpush3.bf16.msra.mxu1 %v3485_v14 }
0x13d4   :  { %3015 = vmatprep.subr.bf16.mxu1 %v3144_v26 }
0x13d7   :  { %3017 = vmatpush3.bf16.msra.mxu1 %v3495_v21 }
0x13d8   :  { %3018 = vmatprep.subr.bf16.mxu1 %v3144_v26 }
0x13db   :  { %3020 = vmatpush3.bf16.msra.mxu1 %v3505_v27 }
0x13dc   :  { %3021 = vmatprep.subr.bf16.mxu1 %v3144_v26 }
0x13df   :  { %3023 = vmatpush3.bf16.msra.mxu1 %v3515_v33 }
0x13e0   :  { %3024 = vmatprep.subr.bf16.mxu1 %v3144_v26 }
0x13e3   :  { %3026 = vmatpush3.bf16.msra.mxu1 %v3525_v38 }
0x13e4   :  { %3027 = vmatprep.subr.bf16.mxu1 %v3144_v26 }
0x13e7   :  { %3029 = vmatpush3.bf16.msra.mxu1 %v3535_v44 }
0x13e8   :  { %3062 = vmatprep.subr.bf16.mxu1 %v3144_v26 }
0x148d   :  { %v1566_v4 = vpop.f32.mrb[16].mxu1 }
0x148e   :  { %v1568_v24 = vpop.f32.mrb[17].mxu1  ;;  %v1567_v28 = vadd.f32 %v1566_v4, %v3371_v63 }
0x148f   :  { %v1569_v54 = vadd.f32 %v1568_v24, %v3379_v18 }
0x149d   :  { %v1640_v25 = vpop.f32.mrb[18].mxu1 }
0x149e   :  { %v1641_v31 = vadd.f32 %v1640_v25, %v3373_v0  ;;  %v1642_v35 = vpop.f32.mrb[19].mxu1 }
0x149f   :  { %v1643_v50 = vadd.f32 %v1642_v35, %v3377_v17 }
0x14a0   :  { %v1645_v36 = vadd.f32 %v1641_v31, %v1567_v28 }
0x14a2   :  { %v1646_v41 = vsub.f32 0.0, %v1645_v36 }
0x14a4   :  { %v1647_v42 = vmul.f32 1.442695, %v1646_v41 }
0x14a6   :  { %3128 = vpow2.f32 %v1647_v42 }
0x14b0   :  { %v3129_v47 = vpop.eup %3128 }
0x14b1   :  { %v1649_v49 = vadd.f32 1.0, %v3129_v47 }
0x14b3   :  { %3130 = vrcp.f32 %v1649_v49 }
0x14bd   :  { %v3131_v53 = vpop.eup %3130 }
0x14be   :  { %v1651_v57 = vmul.f32 %v3131_v53, %v1643_v50  ;;  %v1654_v61 = vsub.f32 1.0, %v3131_v53  ;;  %v1663_v2 = vmul.f32 %v3131_v53, %v1661_v62 }
0x14c0   :  { %v1652_v59 = vadd.f32 %v1651_v57, %v1569_v54 }
0x14c2   :  { %3132 = vtanh.f32 %v1652_v59 }
0x14cc   :  { %v3133_v60 = vpop.eup %3132 }
0x14cd   :  { %1656 = vrot.lane.b32.xlu1 %v3133_v60, %s3143_s4 }
0x153f   :  { %v1657_v1 = vpop.permute.xlu1 %1656 }
0x1540   :  { %v1659_v5 = vmul.f32 %v1657_v1, %v1654_v61 }
0x1542   :  { %v1664_v7 = vadd.f32 %v1663_v2, %v1659_v5 }
0x1544   :  { %1666 = vrot.lane.b32.xlu1 %v1664_v7, %s3143_s4 }
0x15b6   :  { %v1667_v10 = vpop.permute.xlu1 %1666 }
0x15b7   :  { %1743 = vst.msk [vmem:[#allocation2] sm:$0x3] %vm36_vm1, %v1667_v10  ;;  %2599 = vmatmul.mubr.msk.f32.vlgmr.msra.gmra.mrb[16].mxu0 %vm124_vm3, %v1667_v10 }
0x15b8   :  { %3033 = vmatpush1.bf16.msra.mxu0 %v3224_v8  ;;  %1902 = vmatprep.mubr.f32.mxu0 %v3141_v3 }
0x15b9   :  { %3035 = vmatprep.subr.bf16.mxu0 %v3236_v12 }
0x15bc   :  { %3037 = vmatpush1.bf16.msra.mxu0 %v3245_v15  ;;  %v2203_v15 = vld [vmem:[%s3895_s0 + $0xa] sm:$0x3] }
0x15bd   :  { %3039 = vmatprep.subr.bf16.mxu0 %v3248_v16 }
0x15be   :  { %v1834_v16 = vld [vmem:[#allocation2] sm:$0x3] }
0x15c0   :  { %3041 = vmatpush1.bf16.msra.mxu0 %v3267_v22 }
0x15c1   :  { %3043 = vmatprep.subr.bf16.mxu0 %v3270_v23 }
0x15c4   :  { %3045 = vmatpush1.bf16.msra.mxu0 %v3288_v29 }
0x15c5   :  { %3047 = vmatprep.subr.bf16.mxu0 %v3292_v30 }
0x168a   :  { %v1736_v11 = vpop.f32.mrb[16].mxu0 }
0x168b   :  { %v1737_v13 = vadd.f32 %v3445_v56, %v1736_v11  ;;  %v2600_v8 = vpop.f32.mrb[17].mxu0 }
0x168d   :  { %2200 = vst [vmem:[%s3905_s10 + $0x8] sm:$0x3] %v1737_v13  ;;  %v1744_v12 = vsel %vm388_vm5, %v1737_v13, -inf }
0x168e   :  { %1745 = vmax.xlane.f32.xlu0 %v1744_v12 }
0x16a4   :  { %1830 = vrot.lane.b32.xlu0 %v2203_v15, %s3142_s18 }
0x16a8   :  { %1998 = vrot.lane.b32.xlu0 %v1834_v16, %s3143_s4 }
0x171b   :  { %v1746_v22 = vpop.xlane.xlu0 %1745 }
0x171c   :  { %vm1747_vm14 = vcmp.eq.f32.partialorder %v1737_v13, %v1746_v22 }
0x171d   :  { %v1748_v23 = vsel %vm1747_vm14, %v3541_v48, 128.0 }
0x171e   :  { %v1749_v29 = vsel %vm388_vm5, %v1748_v23, inf }
0x171f   :  { %1750 = vmin.xlane.f32.xlu1 %v1749_v29 }
0x17ac   :  { %v1751_v30 = vpop.xlane.xlu1 %1750 }
0x17ad   :  { %vm1752_vm15 = vcmp.eq.f32.partialorder %v3541_v48, %v1751_v30 }
0x17ae   :  { %2634 = vmatmul.mubr.msk.f32.vlgmr.msra.gmra.mrb[20].mxu1 %vm1752_vm15, %v3146_v58 }
0x17af   :  { %3064 = vmatpush3.bf16.msra.mxu1 %v3395_v32  ;;  %2652 = vmatprep.mubr.msk.f32.mxu1 %vm3145_vm4, %v3141_v3  ;;  %v1831_v32 = vpop.permute.xlu0 %1830 }
0x17b0   :  { %3065 = vmatprep.subr.bf16.mxu1 %v3144_v26 }
0x17b3   :  { %3067 = vmatpush3.bf16.msra.mxu1 %v3404_v34 }
0x17b4   :  { %3068 = vmatprep.subr.bf16.mxu1 %v3144_v26 }
0x17b7   :  { %3070 = vmatpush3.bf16.msra.mxu1 %v3414_v40 }
0x17b8   :  { %3071 = vmatprep.subr.bf16.mxu1 %v3144_v26 }
0x17bb   :  { %3073 = vmatpush3.bf16.msra.mxu1 %v3425_v43 }
0x1881   :  { %v1821_v56 = vpop.f32.mrb[20].mxu1 }
0x1882   :  { %1825 = vst.msk [vmem:[#allocation3] sm:$0x3] %vm43_vm0, %v1821_v56  ;;  %v2635_v19 = vpop.f32.mrb[21].mxu1 }
0x1889   :  { %v1826_v20 = vld [vmem:[#allocation3] sm:$0x3] }
0x188a   :  { %v1833_v4 = vsel %vm110_vm2, %v1826_v20, %v1831_v32 }
0x188b   :  { %2204 = vmatmul.mubr.msk.f32.vlgmr.msra.gmra.mrb[18].mxu0 %vm124_vm3, %v1833_v4 }
0x188c   :  { %3049 = vmatpush1.bf16.msra.mxu0 %v3309_v37  ;;  %1976 = vmatprep.mubr.f32.mxu0 %v3141_v3 }
0x188d   :  { %3051 = vmatprep.subr.bf16.mxu0 %v3311_v39 }
0x1890   :  { %3053 = vmatpush1.bf16.msra.mxu0 %v3328_v45 }
0x1891   :  { %3055 = vmatprep.subr.bf16.mxu0 %v3332_v46 }
0x1894   :  { %3057 = vmatpush1.bf16.msra.mxu0 %v3347_v51 }
0x1895   :  { %3059 = vmatprep.subr.bf16.mxu0 %v3350_v52 }
0x1898   :  { %3061 = vmatpush1.bf16.msra.mxu0 %v3359_v55 }
0x1899   :  { %3074 = vmatprep.subr.bf16.mxu0 %v3144_v26 }
0x189b   :  { %2205 = vmatmul.mubr.msk.f32.vlgmr.msra.gmra.mrb[20].mxu0 %vm124_vm3, %v1834_v16 }
0x189c   :  { %3076 = vmatpush3.bf16.msra.mxu0 %v3465_v6  ;;  %2687 = vmatprep.mubr.msk.f32.mxu0 %vm3145_vm4, %v3141_v3 }
0x189d   :  { %3077 = vmatprep.subr.bf16.mxu0 %v3144_v26 }
0x18a0   :  { %3079 = vmatpush3.bf16.msra.mxu0 %v3471_v9 }
0x18a1   :  { %3080 = vmatprep.subr.bf16.mxu0 %v3144_v26 }
0x18a4   :  { %3082 = vmatpush3.bf16.msra.mxu0 %v3485_v14 }
0x18a5   :  { %3083 = vmatprep.subr.bf16.mxu0 %v3144_v26 }
0x18a8   :  { %3085 = vmatpush3.bf16.msra.mxu0 %v3495_v21 }
0x18a9   :  { %3086 = vmatprep.subr.bf16.mxu0 %v3144_v26 }
0x18ac   :  { %3088 = vmatpush3.bf16.msra.mxu0 %v3505_v27 }
0x18ad   :  { %3089 = vmatprep.subr.bf16.mxu0 %v3144_v26 }
0x18b0   :  { %3091 = vmatpush3.bf16.msra.mxu0 %v3515_v33 }
0x18b1   :  { %3092 = vmatprep.subr.bf16.mxu0 %v3144_v26 }
0x18b4   :  { %3094 = vmatpush3.bf16.msra.mxu0 %v3525_v38 }
0x18b5   :  { %3095 = vmatprep.subr.bf16.mxu0 %v3144_v26 }
0x18b8   :  { %3097 = vmatpush3.bf16.msra.mxu0 %v3535_v44 }
0x195e   :  { %v1904_v3 = vpop.f32.mrb[18].mxu0 }
0x195f   :  { %v1906_v37 = vpop.f32.mrb[19].mxu0  ;;  %v1905_v45 = vadd.f32 %v1904_v3, %v3371_v63 }
0x1960   :  { %v1907_v9 = vadd.f32 %v1906_v37, %v3379_v18  ;;  %v3140_v18 = vld [vmem:[%s3904_s9] ss:$0 sm:$0xff] }
0x196e   :  { %v1978_v39 = vpop.f32.mrb[20].mxu0 }
0x196f   :  { %v1979_v46 = vadd.f32 %v1978_v39, %v3373_v0  ;;  %v1980_v51 = vpop.f32.mrb[21].mxu0  ;;  %v1999_v0 = vpop.permute.xlu0 %1998 }
0x1970   :  { %v1981_v6 = vadd.f32 %v1980_v51, %v3377_v17 }
0x1971   :  { %v1983_v52 = vadd.f32 %v1979_v46, %v1905_v45 }
0x1973   :  { %v1984_v55 = vsub.f32 0.0, %v1983_v52 }
0x1975   :  { %v1985_v34 = vmul.f32 1.442695, %v1984_v55 }
0x1977   :  { %3134 = vpow2.f32 %v1985_v34 }
0x1981   :  { %v3135_v40 = vpop.eup %3134 }
0x1982   :  { %v1987_v43 = vadd.f32 1.0, %v3135_v40 }
0x1984   :  { %3136 = vrcp.f32 %v1987_v43 }
0x198e   :  { %v3137_v26 = vpop.eup %3136 }
0x198f   :  { %v1989_v14 = vmul.f32 %v3137_v26, %v1981_v6  ;;  %v1992_v63 = vsub.f32 1.0, %v3137_v26  ;;  %v2001_v38 = vmul.f32 %v3137_v26, %v1999_v0 }
0x1991   :  { %v1990_v21 = vadd.f32 %v1989_v14, %v1907_v9 }
0x1993   :  { %3138 = vtanh.f32 %v1990_v21 }
0x199d   :  { %v3139_v27 = vpop.eup %3138 }
0x199e   :  { %1994 = vrot.lane.b32.xlu1 %v3139_v27, %s3143_s4 }
0x1a10   :  { %v1995_v33 = vpop.permute.xlu1 %1994 }
0x1a11   :  { %v1997_v44 = vmul.f32 %v1995_v33, %v1992_v63 }
0x1a13   :  { %v2002_v24 = vadd.f32 %v2001_v38, %v1997_v44 }
0x1a15   :  { %2004 = vrot.lane.b32.xlu1 %v2002_v24, %s3143_s4 }
0x1a87   :  { %v2005_v25 = vpop.permute.xlu1 %2004 }
0x1a88   :  { %2081 = vst.msk [vmem:[#allocation2] sm:$0x3] %vm36_vm1, %v2005_v25  ;;  %2653 = vmatmul.mubr.msk.f32.vlgmr.msra.gmra.mrb[22].mxu1 %vm124_vm3, %v2005_v25 }
0x1b5b   :  { %v2074_v17 = vpop.f32.mrb[22].mxu1 }
0x1b5c   :  { %v2075_v28 = vadd.f32 %v3140_v18, %v2074_v17  ;;  %v2654_v31 = vpop.f32.mrb[23].mxu1 }
0x1b5e   :  { %2207 = vst [vmem:[%s3905_s10 + $0xa] sm:$0x3] %v2075_v28  ;;  %v2082_v35 = vsel %vm388_vm5, %v2075_v28, -inf }
0x1b5f   :  { %2083 = vmax.xlane.f32.xlu0 %v2082_v35 }
0x1bec   :  { %v2084_v36 = vpop.xlane.xlu0 %2083 }
0x1bed   :  { %vm2085_vm2 = vcmp.eq.f32.partialorder %v2075_v28, %v2084_v36 }
0x1bee   :  { %v2086_v41 = vsel %vm2085_vm2, %v3541_v48, 128.0 }
0x1bef   :  { %v2087_v42 = vsel %vm388_vm5, %v2086_v41, inf }
0x1bf0   :  { %2088 = vmin.xlane.f32.xlu1 %v2087_v42 }
0x1c7d   :  { %v2089_v47 = vpop.xlane.xlu1 %2088 }
0x1c7e   :  { %vm2090_vm1 = vcmp.eq.f32.partialorder %v3541_v48, %v2089_v47 }
0x1c7f   :  { %2688 = vmatmul.mubr.msk.f32.vlgmr.msra.gmra.mrb[22].mxu0 %vm2090_vm1, %v3146_v58 }
0x1d52   :  { %v2159_v49 = vpop.f32.mrb[22].mxu0 }
0x1d53   :  { %2163 = vst.msk [vmem:[#allocation3] sm:$0x3] %vm43_vm0, %v2159_v49  ;;  %v2689_v50 = vpop.f32.mrb[23].mxu0 }

</bundles_post_ra>
